<compile_context>
chip_gen: v7x
topology: tpu7x:2x2x1
jax: 0.10.0
libtpu: 0.0.40
codegen_flags: <defaults>
</compile_context>

<pallas_src>
import functools

import jax
import jax.numpy as jnp
from jax import lax
from jax.experimental import pallas as pl
from jax.experimental.pallas import tpu as pltpu


# ----------------------------------------------------------------------------
# Small padding / repacking helpers (wrapper-side glue).
# ----------------------------------------------------------------------------
def _ceil_to(x, m):
    return ((x + m - 1) // m) * m


def _pad_to(x, shape):
    return jnp.pad(x, [(0, s - d) for d, s in zip(x.shape, shape)])


def _pack_gate_cols(w, S, Sp):
    """(rows, 3*S) packed r|z|n -> (rows, 3*Sp): each gate in its own
    lane-aligned Sp-wide block, zero elsewhere."""
    rows = w.shape[0]
    out = jnp.zeros((rows, 3 * Sp), jnp.float32)
    for g in range(3):
        out = out.at[:, g * Sp:g * Sp + S].set(
            w[:, g * S:(g + 1) * S].astype(jnp.float32))
    return out


# ----------------------------------------------------------------------------
# Pallas kernel: the whole greedy attention-decoder loop.
# ----------------------------------------------------------------------------
def _attn_decoder_kernel(enc_ref, emb_ref, wa_enc_ref, wa_st_ref, ba_ref,
                         va_ref, vb_ref, wih_emb_ref, wih_attn_ref, whh_ref,
                         bih_ref, bhhn_ref, wout_ref, bout_ref,
                         out_ref, hid_ref, *, nsteps, sos_id):
    f32 = jnp.float32
    Bp, T, Hp = enc_ref.shape
    Vp = emb_ref.shape[0]
    Sp = hid_ref.shape[1]
    Ap = wa_enc_ref.shape[1]

    enc = enc_ref[...]                                            # (Bp, T, Hp)

    # -- hoisted, loop-invariant work (perf feedback #1): encoder side of the
    #    attention projection, computed once as one big MXU matmul.
    enc_proj = jnp.dot(enc.reshape(Bp * T, Hp), wa_enc_ref[...],
                       preferred_element_type=f32)
    enc_proj = (enc_proj + ba_ref[...]).reshape(Bp, T, Ap)        # (Bp, T, Ap)

    emb_tbl = emb_ref[...]                                        # (Vp, Ep)
    wa_st = wa_st_ref[...]                                        # (Sp, Ap)
    va = va_ref[...].reshape(1, 1, Ap)
    vb = vb_ref[...]                                              # (1, 1)
    wih_emb = wih_emb_ref[...]                                    # (Ep, 3Sp)
    wih_attn = wih_attn_ref[...]                                  # (Hp, 3Sp)
    whh = whh_ref[...]                                            # (Sp, 3Sp)
    bih = bih_ref[...]                                            # (1, 3Sp) (r/z hidden bias folded in)
    bhh_n = bhhn_ref[...]                                         # (1, Sp)
    wout = wout_ref[...]                                          # (Sp, Vp)
    bout = bout_ref[...]                                          # (1, Vp)  (-1e30 on padded vocab lanes)

    lane_v = lax.broadcasted_iota(jnp.int32, (Bp, Vp), 1).astype(f32)
    h0 = jnp.zeros((Bp, Sp), f32)
    onehot0 = (lane_v == float(sos_id)).astype(f32)               # <SOS> one-hot

    def step(i, carry):
        h, onehot = carry                                         # (Bp,Sp), (Bp,Vp)

        # Embedding lookup as a one-hot matmul (MXU; avoids an in-kernel gather).
        x_emb = jnp.dot(onehot, emb_tbl, preferred_element_type=f32)    # (Bp, Ep)

        # Additive attention: relu(v(W(cat(enc, state)))) -> softmax over T.
        st_proj = jnp.dot(h, wa_st, preferred_element_type=f32)         # (Bp, Ap)
        scores = jnp.sum((enc_proj + st_proj[:, None, :]) * va, axis=-1) + vb
        scores = jnp.maximum(scores, 0.0)                                # (Bp, T)
        scores = scores - jnp.max(scores, axis=-1, keepdims=True)
        num = jnp.exp(scores)
        attn_w = num / jnp.sum(num, axis=-1, keepdims=True)              # (Bp, T)

        attn_ctx = jnp.sum(attn_w[:, :, None] * enc, axis=1)             # (Bp, Hp)

        # GRU cell (torch gate order r, z, n).  Each gate occupies its own
        # lane-aligned Sp-wide block of the 3*Sp projection -> vreg-whole slices.
        gi = (jnp.dot(x_emb, wih_emb, preferred_element_type=f32)
              + jnp.dot(attn_ctx, wih_attn, preferred_element_type=f32)
              + bih)                                                      # (Bp, 3Sp)
        gh = jnp.dot(h, whh, preferred_element_type=f32)                  # (Bp, 3Sp)
        r = jax.nn.sigmoid(gi[:, 0:Sp] + gh[:, 0:Sp])
        z = jax.nn.sigmoid(gi[:, Sp:2 * Sp] + gh[:, Sp:2 * Sp])
        n = jnp.tanh(gi[:, 2 * Sp:3 * Sp] + r * (gh[:, 2 * Sp:3 * Sp] + bhh_n))
        h_new = (1.0 - z) * n + z * h

        # Vocab projection + log_softmax (padded vocab lanes carry -1e30 bias).
        logits = jnp.dot(h_new, wout, preferred_element_type=f32) + bout  # (Bp, Vp)
        m = jnp.max(logits, axis=-1, keepdims=True)
        shifted = logits - m
        logp = shifted - jnp.log(jnp.sum(jnp.exp(shifted), axis=-1,
                                         keepdims=True))

        out_ref[i] = logp               # full (Bp, Vp) lane-dense, unmasked store

        # Greedy feedback: first-index argmax -> next one-hot token.
        maxv = jnp.max(logp, axis=-1, keepdims=True)
        idx = jnp.min(jnp.where(logp == maxv, lane_v, float(Vp)),
                      axis=-1, keepdims=True)
        onehot_new = (lane_v == idx).astype(f32)
        return h_new, onehot_new

    # Short static trip count -> fully unrolled for LLO scheduler visibility.
    h_final, _ = lax.fori_loop(0, nsteps, step, (h0, onehot0), unroll=True)
    hid_ref[...] = h_final


# ----------------------------------------------------------------------------
# Wrapper: pad / repack parameters to (8,128)-aligned tiles, call the kernel,
# slice the padding back off.
# ----------------------------------------------------------------------------
def attn_decoder_forward(encoder_outputs, params, nsteps, sos_id):
    (emb, wa_enc, wa_st, ba, va, vb,
     w_ih, w_hh, b_ih, b_hh, w_out, b_out) = params

    f32 = jnp.float32
    B, T, H = encoder_outputs.shape
    V, E = emb.shape
    S = w_hh.shape[0]
    A = wa_enc.shape[1]

    Bp = _ceil_to(B, 8)
    Hp = _ceil_to(H, 128)
    Ep = _ceil_to(E, 128)
    Sp = _ceil_to(S, 128)
    Ap = _ceil_to(A, 128)
    Vp = _ceil_to(V, 128)

    enc_p = _pad_to(encoder_outputs.astype(f32), (Bp, T, Hp))
    emb_p = _pad_to(emb.astype(f32), (Vp, Ep))
    wa_enc_p = _pad_to(wa_enc.astype(f32), (Hp, Ap))
    wa_st_p = _pad_to(wa_st.astype(f32), (Sp, Ap))
    ba_p = _pad_to(ba.astype(f32)[None, :], (1, Ap))
    va_p = _pad_to(va.astype(f32)[None, :], (1, Ap))
    vb_p = jnp.reshape(vb, (1, 1)).astype(f32)

    # GRU weights: split the input projection into its emb / attention halves
    # and repack gates into lane-aligned Sp-wide blocks.  Fold the r/z hidden
    # biases into the input bias (only the n gate needs b_hh separately).
    b_ih_c = b_ih.astype(f32) + jnp.concatenate(
        [b_hh[:2 * S].astype(f32), jnp.zeros((S,), f32)])
    wih_emb_p = _pad_to(_pack_gate_cols(w_ih[:E], S, Sp), (Ep, 3 * Sp))
    wih_attn_p = _pad_to(_pack_gate_cols(w_ih[E:E + H], S, Sp), (Hp, 3 * Sp))
    whh_p = _pad_to(_pack_gate_cols(w_hh, S, Sp), (Sp, 3 * Sp))
    bih_p = _pack_gate_cols(b_ih_c[None, :], S, Sp)                 # (1, 3Sp)
    bhhn_p = _pad_to(b_hh[None, 2 * S:].astype(f32), (1, Sp))

    wout_p = _pad_to(w_out.astype(f32), (Sp, Vp))
    # Padded vocab lanes get a huge negative bias so softmax/argmax ignore them.
    bout_p = jnp.full((1, Vp), -1e30, f32).at[0, :V].set(b_out.astype(f32))

    args = (enc_p, emb_p, wa_enc_p, wa_st_p, ba_p, va_p, vb_p,
            wih_emb_p, wih_attn_p, whh_p, bih_p, bhhn_p, wout_p, bout_p)

    # Advisory cost estimate for the XLA scheduler.
    flops = (2 * Bp * T * Hp * Ap
             + nsteps * 2 * Bp * (Vp * Ep + Sp * Ap + T * Ap + T * Hp
                                  + (Ep + Hp + Sp) * 3 * Sp + Sp * Vp))
    bytes_accessed = (sum(int(a.size) for a in args)
                      + nsteps * Bp * Vp + Bp * Sp) * 4
    transcendentals = nsteps * Bp * (2 * 3 * Sp + T + Vp)

    kernel = functools.partial(_attn_decoder_kernel,
                               nsteps=nsteps, sos_id=sos_id)
    vmem = pltpu.MemorySpace.VMEM
    out_p, hid_p = pl.pallas_call(
        kernel,
        out_shape=(jax.ShapeDtypeStruct((nsteps, Bp, Vp), f32),
                   jax.ShapeDtypeStruct((Bp, Sp), f32)),
        in_specs=[pl.BlockSpec(memory_space=vmem) for _ in range(len(args))],
        out_specs=(pl.BlockSpec(memory_space=vmem),
                   pl.BlockSpec(memory_space=vmem)),
        compiler_params=pltpu.CompilerParams(
            vmem_limit_bytes=32 * 1024 * 1024),
        cost_estimate=pl.CostEstimate(flops=flops,
                                      transcendentals=transcendentals,
                                      bytes_accessed=bytes_accessed),
    )(*args)

    decoder_outputs = jnp.transpose(out_p[:, :B, :V], (1, 0, 2))    # (B, nsteps, V)
    decoder_hidden = hid_p[:B, :S][None, :, :]                      # (1, B, S)
    return decoder_outputs, decoder_hidden


# ----------------------------------------------------------------------------
# Pure-JAX reference (mirrors the PyTorch module) for validation.
# ----------------------------------------------------------------------------
def _reference(enc, params, nsteps, sos_id, precision):
    (emb, wa_enc, wa_st, ba, va, vb,
     w_ih, w_hh, b_ih, b_hh, w_out, b_out) = params
    B, T, H = enc.shape
    S = w_hh.shape[0]
    dot = functools.partial(jnp.dot, precision=precision)

    h = jnp.zeros((B, S), jnp.float32)
    tok = jnp.full((B,), sos_id, jnp.int32)
    enc2 = enc.reshape(B * T, H)
    outs = []
    for _ in range(nsteps):
        x = emb[tok]                                                     # (B, E)
        pre = (dot(enc2, wa_enc).reshape(B, T, -1)
               + dot(h, wa_st)[:, None, :] + ba)                         # (B, T, A)
        scores = jnp.maximum(
            jnp.einsum('bta,a->bt', pre, va, precision=precision) + vb, 0.0)
        attn_w = jax.nn.softmax(scores, axis=1)                          # (B, T)
        ctx = jnp.einsum('bt,bth->bh', attn_w, enc, precision=precision)  # (B, H)
        gin = jnp.concatenate([x, ctx], axis=-1)
        gi = dot(gin, w_ih) + b_ih
        gh = dot(h, w_hh) + b_hh
        r = jax.nn.sigmoid(gi[:, :S] + gh[:, :S])
        z = jax.nn.sigmoid(gi[:, S:2 * S] + gh[:, S:2 * S])
        n = jnp.tanh(gi[:, 2 * S:] + r * gh[:, 2 * S:])
        h = (1.0 - z) * n + z * h
        logits = dot(h, w_out) + b_out
        logp = jax.nn.log_softmax(logits, axis=-1)
        outs.append(logp)
        tok = jnp.argmax(logp, axis=-1).astype(jnp.int32)
    return jnp.stack(outs, axis=1), h[None]


if __name__ == "__main__":
    # Small shapes consistent with the module's forward.
    B, T, H = 2, 8, 32      # batch, encoder seq len, encoder feature dim ("hidden_size")
    E, S, A, V = 16, 32, 10, 20   # emb dim, state_size, attn_size, vocab size
    nsteps = 6
    sos_id = 1              # TODO(synk): Vocabulary.get_dummy_ind('<SOS>') replaced by a static constant.

    key = jax.random.PRNGKey(0)
    ks = jax.random.split(key, 13)

    def rnd(k, shape, scale=0.2):
        return jax.random.normal(k, shape, jnp.float32) * scale

    enc = rnd(ks[0], (B, T, H), 0.5)
    emb = rnd(ks[1], (V, E), 0.3)
    wa_enc = rnd(ks[2], (H, A))
    wa_st = rnd(ks[3], (S, A))
    ba = rnd(ks[4], (A,))
    va = rnd(ks[5], (A,))
    vb = rnd(ks[6], ())
    w_ih = rnd(ks[7], (E + H, 3 * S))
    w_hh = rnd(ks[8], (S, 3 * S))
    b_ih = rnd(ks[9], (3 * S,))
    b_hh = rnd(ks[10], (3 * S,))
    w_out = rnd(ks[11], (S, V), 0.3)
    b_out = rnd(ks[12], (V,), 0.5)

    params = (emb, wa_enc, wa_st, ba, va, vb,
              w_ih, w_hh, b_ih, b_hh, w_out, b_out)

    dec_out, dec_hid = attn_decoder_forward(enc, params, nsteps, sos_id)
    dec_out, dec_hid = jax.block_until_ready((dec_out, dec_hid))

    assert dec_out.shape == (B, nsteps, V)
    assert dec_hid.shape == (1, B, S)

    # The in-kernel MXU f32 matmul precision may differ from XLA's default f32
    # matmul precision on TPU, so accept a match against the reference at
    # either precision setting.
    ok = False
    for prec in (lax.Precision.HIGHEST, lax.Precision.DEFAULT):
        ref_out, ref_hid = _reference(enc, params, nsteps, sos_id, prec)
        if (jnp.allclose(dec_out, ref_out, atol=2e-2, rtol=2e-2)
                and jnp.allclose(dec_hid, ref_hid, atol=2e-2, rtol=2e-2)):
            ok = True
            break
    assert ok, "Pallas AttnDecoder output does not match the JAX reference"

    print("KERNEL_OK")
</pallas_src>

<mosaic_0001>
module attributes {stable_mosaic.version = 11 : i64} {
  func.func @_attn_decoder_kernel(%arg0: memref<8x8x128xf32, #tpu.memory_space<vmem>>, %arg1: memref<128x128xf32, #tpu.memory_space<vmem>>, %arg2: memref<128x128xf32, #tpu.memory_space<vmem>>, %arg3: memref<128x128xf32, #tpu.memory_space<vmem>>, %arg4: memref<1x128xf32, #tpu.memory_space<vmem>>, %arg5: memref<1x128xf32, #tpu.memory_space<vmem>>, %arg6: memref<1x1xf32, #tpu.memory_space<vmem>>, %arg7: memref<128x384xf32, #tpu.memory_space<vmem>>, %arg8: memref<128x384xf32, #tpu.memory_space<vmem>>, %arg9: memref<128x384xf32, #tpu.memory_space<vmem>>, %arg10: memref<1x384xf32, #tpu.memory_space<vmem>>, %arg11: memref<1x128xf32, #tpu.memory_space<vmem>>, %arg12: memref<128x128xf32, #tpu.memory_space<vmem>>, %arg13: memref<1x128xf32, #tpu.memory_space<vmem>>, %arg14: memref<6x8x128xf32, #tpu.memory_space<vmem>>, %arg15: memref<8x128xf32, #tpu.memory_space<vmem>>) attributes {dimension_semantics = [], scalar_prefetch = 0 : i64, scratch_operands = 0 : i64, tpu.core_type = #tpu.core_type<tc>} {
    %c0 = arith.constant 0 : index
    %c0_0 = arith.constant 0 : index
    %c0_1 = arith.constant 0 : index
    %0 = vector.load %arg0[%c0, %c0_0, %c0_1] : memref<8x8x128xf32, #tpu.memory_space<vmem>>, vector<8x8x128xf32>
    %1 = vector.shape_cast %0 : vector<8x8x128xf32> to vector<64x128xf32>
    %c0_2 = arith.constant 0 : index
    %c0_3 = arith.constant 0 : index
    %2 = vector.load %arg2[%c0_2, %c0_3] : memref<128x128xf32, #tpu.memory_space<vmem>>, vector<128x128xf32>
    %cst = arith.constant dense<0.000000e+00> : vector<64x128xf32>
    %3 = tpu.matmul %1, %2, %cst {dimension_numbers = #tpu.dot_dimension_numbers<[1], [0], [0], [1], [0, 0, 1, 1], [], []>} : vector<64x128xf32>, vector<128x128xf32>, vector<64x128xf32> -> vector<64x128xf32>
    %c0_4 = arith.constant 0 : index
    %c0_5 = arith.constant 0 : index
    %4 = vector.load %arg4[%c0_4, %c0_5] : memref<1x128xf32, #tpu.memory_space<vmem>>, vector<1x128xf32>
    %5 = vector.broadcast %4 : vector<1x128xf32> to vector<64x128xf32>
    %6 = arith.addf %3, %5 : vector<64x128xf32>
    %7 = vector.shape_cast %6 : vector<64x128xf32> to vector<8x8x128xf32>
    %c0_6 = arith.constant 0 : index
    %c0_7 = arith.constant 0 : index
    %8 = vector.load %arg1[%c0_6, %c0_7] : memref<128x128xf32, #tpu.memory_space<vmem>>, vector<128x128xf32>
    %c0_8 = arith.constant 0 : index
    %c0_9 = arith.constant 0 : index
    %9 = vector.load %arg3[%c0_8, %c0_9] : memref<128x128xf32, #tpu.memory_space<vmem>>, vector<128x128xf32>
    %c0_10 = arith.constant 0 : index
    %c0_11 = arith.constant 0 : index
    %10 = vector.load %arg5[%c0_10, %c0_11] : memref<1x128xf32, #tpu.memory_space<vmem>>, vector<1x128xf32>
    %11 = vector.shape_cast %10 : vector<1x128xf32> to vector<1x1x128xf32>
    %c0_12 = arith.constant 0 : index
    %c0_13 = arith.constant 0 : index
    %12 = vector.load %arg6[%c0_12, %c0_13] : memref<1x1xf32, #tpu.memory_space<vmem>>, vector<1x1xf32>
    %c0_14 = arith.constant 0 : index
    %c0_15 = arith.constant 0 : index
    %13 = vector.load %arg7[%c0_14, %c0_15] : memref<128x384xf32, #tpu.memory_space<vmem>>, vector<128x384xf32>
    %c0_16 = arith.constant 0 : index
    %c0_17 = arith.constant 0 : index
    %14 = vector.load %arg8[%c0_16, %c0_17] : memref<128x384xf32, #tpu.memory_space<vmem>>, vector<128x384xf32>
    %c0_18 = arith.constant 0 : index
    %c0_19 = arith.constant 0 : index
    %15 = vector.load %arg9[%c0_18, %c0_19] : memref<128x384xf32, #tpu.memory_space<vmem>>, vector<128x384xf32>
    %c0_20 = arith.constant 0 : index
    %c0_21 = arith.constant 0 : index
    %16 = vector.load %arg10[%c0_20, %c0_21] : memref<1x384xf32, #tpu.memory_space<vmem>>, vector<1x384xf32>
    %c0_22 = arith.constant 0 : index
    %c0_23 = arith.constant 0 : index
    %17 = vector.load %arg11[%c0_22, %c0_23] : memref<1x128xf32, #tpu.memory_space<vmem>>, vector<1x128xf32>
    %c0_24 = arith.constant 0 : index
    %c0_25 = arith.constant 0 : index
    %18 = vector.load %arg12[%c0_24, %c0_25] : memref<128x128xf32, #tpu.memory_space<vmem>>, vector<128x128xf32>
    %c0_26 = arith.constant 0 : index
    %c0_27 = arith.constant 0 : index
    %19 = vector.load %arg13[%c0_26, %c0_27] : memref<1x128xf32, #tpu.memory_space<vmem>>, vector<1x128xf32>
    %20 = tpu.iota {dimensions = array<i32: 1>} : vector<8x128xi32>
    %21 = arith.sitofp %20 : vector<8x128xi32> to vector<8x128xf32>
    %cst_28 = arith.constant 0.000000e+00 : f32
    %22 = vector.broadcast %cst_28 : f32 to vector<8x128xf32>
    %cst_29 = arith.constant 1.000000e+00 : f32
    %23 = vector.broadcast %cst_29 : f32 to vector<8x128xf32>
    %24 = arith.cmpf oeq, %21, %23 : vector<8x128xf32>
    %25 = arith.extui %24 : vector<8x128xi1> to vector<8x128xi32>
    %26 = arith.sitofp %25 : vector<8x128xi32> to vector<8x128xf32>
    %c0_i32 = arith.constant 0 : i32
    %cst_30 = arith.constant dense<0.000000e+00> : vector<8x128xf32>
    %27 = tpu.matmul %26, %8, %cst_30 {dimension_numbers = #tpu.dot_dimension_numbers<[1], [0], [0], [1], [0, 0, 1, 1], [], []>} : vector<8x128xf32>, vector<128x128xf32>, vector<8x128xf32> -> vector<8x128xf32>
    %cst_31 = arith.constant dense<0.000000e+00> : vector<8x128xf32>
    %28 = tpu.matmul %22, %9, %cst_31 {dimension_numbers = #tpu.dot_dimension_numbers<[1], [0], [0], [1], [0, 0, 1, 1], [], []>} : vector<8x128xf32>, vector<128x128xf32>, vector<8x128xf32> -> vector<8x128xf32>
    %29 = vector.shape_cast %28 : vector<8x128xf32> to vector<8x1x128xf32>
    %30 = vector.broadcast %29 : vector<8x1x128xf32> to vector<8x8x128xf32>
    %31 = arith.addf %7, %30 : vector<8x8x128xf32>
    %32 = vector.broadcast %11 : vector<1x1x128xf32> to vector<8x8x128xf32>
    %33 = arith.mulf %31, %32 : vector<8x8x128xf32>
    %cst_32 = arith.constant dense<0.000000e+00> : vector<8x8xf32>
    %34 = vector.multi_reduction <add>, %33, %cst_32 [2] : vector<8x8x128xf32> to vector<8x8xf32>
    %35 = vector.broadcast %12 : vector<1x1xf32> to vector<8x8xf32>
    %36 = arith.addf %34, %35 : vector<8x8xf32>
    %cst_33 = arith.constant 0.000000e+00 : f32
    %37 = vector.broadcast %cst_33 : f32 to vector<8x8xf32>
    %38 = arith.maximumf %36, %37 : vector<8x8xf32>
    %cst_34 = arith.constant dense<0xFF800000> : vector<8xf32>
    %39 = vector.multi_reduction <maximumf>, %38, %cst_34 [1] : vector<8x8xf32> to vector<8xf32>
    %40 = vector.shape_cast %39 : vector<8xf32> to vector<8x1xf32>
    %41 = vector.broadcast %40 : vector<8x1xf32> to vector<8x8xf32>
    %42 = arith.subf %38, %41 : vector<8x8xf32>
    %43 = math.exp %42 : vector<8x8xf32>
    %cst_35 = arith.constant dense<0.000000e+00> : vector<8xf32>
    %44 = vector.multi_reduction <add>, %43, %cst_35 [1] : vector<8x8xf32> to vector<8xf32>
    %45 = vector.shape_cast %44 : vector<8xf32> to vector<8x1xf32>
    %46 = vector.broadcast %45 : vector<8x1xf32> to vector<8x8xf32>
    %47 = arith.divf %43, %46 : vector<8x8xf32>
    %48 = vector.shape_cast %47 : vector<8x8xf32> to vector<8x8x1xf32>
    %49 = vector.broadcast %48 : vector<8x8x1xf32> to vector<8x8x128xf32>
    %50 = arith.mulf %49, %0 : vector<8x8x128xf32>
    %cst_36 = arith.constant dense<0.000000e+00> : vector<8x128xf32>
    %51 = vector.multi_reduction <add>, %50, %cst_36 [1] : vector<8x8x128xf32> to vector<8x128xf32>
    %cst_37 = arith.constant dense<0.000000e+00> : vector<8x384xf32>
    %52 = tpu.matmul %27, %13, %cst_37 {dimension_numbers = #tpu.dot_dimension_numbers<[1], [0], [0], [1], [0, 0, 1, 1], [], []>} : vector<8x128xf32>, vector<128x384xf32>, vector<8x384xf32> -> vector<8x384xf32>
    %cst_38 = arith.constant dense<0.000000e+00> : vector<8x384xf32>
    %53 = tpu.matmul %51, %14, %cst_38 {dimension_numbers = #tpu.dot_dimension_numbers<[1], [0], [0], [1], [0, 0, 1, 1], [], []>} : vector<8x128xf32>, vector<128x384xf32>, vector<8x384xf32> -> vector<8x384xf32>
    %54 = arith.addf %52, %53 : vector<8x384xf32>
    %55 = vector.broadcast %16 : vector<1x384xf32> to vector<8x384xf32>
    %56 = arith.addf %54, %55 : vector<8x384xf32>
    %cst_39 = arith.constant dense<0.000000e+00> : vector<8x384xf32>
    %57 = tpu.matmul %22, %15, %cst_39 {dimension_numbers = #tpu.dot_dimension_numbers<[1], [0], [0], [1], [0, 0, 1, 1], [], []>} : vector<8x128xf32>, vector<128x384xf32>, vector<8x384xf32> -> vector<8x384xf32>
    %58 = vector.extract_strided_slice %56 {offsets = [0, 0], sizes = [8, 128], strides = [1, 1]} : vector<8x384xf32> to vector<8x128xf32>
    %59 = vector.extract_strided_slice %57 {offsets = [0, 0], sizes = [8, 128], strides = [1, 1]} : vector<8x384xf32> to vector<8x128xf32>
    %60 = arith.addf %58, %59 : vector<8x128xf32>
    %61 = arith.negf %60 : vector<8x128xf32>
    %62 = math.exp %61 : vector<8x128xf32>
    %cst_40 = arith.constant 1.000000e+00 : f32
    %63 = vector.broadcast %cst_40 : f32 to vector<8x128xf32>
    %64 = arith.addf %63, %62 : vector<8x128xf32>
    %65 = arith.divf %63, %64 : vector<8x128xf32>
    %66 = vector.extract_strided_slice %56 {offsets = [0, 128], sizes = [8, 128], strides = [1, 1]} : vector<8x384xf32> to vector<8x128xf32>
    %67 = vector.extract_strided_slice %57 {offsets = [0, 128], sizes = [8, 128], strides = [1, 1]} : vector<8x384xf32> to vector<8x128xf32>
    %68 = arith.addf %66, %67 : vector<8x128xf32>
    %69 = arith.negf %68 : vector<8x128xf32>
    %70 = math.exp %69 : vector<8x128xf32>
    %cst_41 = arith.constant 1.000000e+00 : f32
    %71 = vector.broadcast %cst_41 : f32 to vector<8x128xf32>
    %72 = arith.addf %71, %70 : vector<8x128xf32>
    %73 = arith.divf %71, %72 : vector<8x128xf32>
    %74 = vector.extract_strided_slice %56 {offsets = [0, 256], sizes = [8, 128], strides = [1, 1]} : vector<8x384xf32> to vector<8x128xf32>
    %75 = vector.extract_strided_slice %57 {offsets = [0, 256], sizes = [8, 128], strides = [1, 1]} : vector<8x384xf32> to vector<8x128xf32>
    %76 = vector.broadcast %17 : vector<1x128xf32> to vector<8x128xf32>
    %77 = arith.addf %75, %76 : vector<8x128xf32>
    %78 = arith.mulf %65, %77 : vector<8x128xf32>
    %79 = arith.addf %74, %78 : vector<8x128xf32>
    %80 = math.tanh %79 : vector<8x128xf32>
    %cst_42 = arith.constant 1.000000e+00 : f32
    %81 = vector.broadcast %cst_42 : f32 to vector<8x128xf32>
    %82 = arith.subf %81, %73 : vector<8x128xf32>
    %83 = arith.mulf %82, %80 : vector<8x128xf32>
    %84 = arith.mulf %73, %22 : vector<8x128xf32>
    %85 = arith.addf %83, %84 : vector<8x128xf32>
    %cst_43 = arith.constant dense<0.000000e+00> : vector<8x128xf32>
    %86 = tpu.matmul %85, %18, %cst_43 {dimension_numbers = #tpu.dot_dimension_numbers<[1], [0], [0], [1], [0, 0, 1, 1], [], []>} : vector<8x128xf32>, vector<128x128xf32>, vector<8x128xf32> -> vector<8x128xf32>
    %87 = vector.broadcast %19 : vector<1x128xf32> to vector<8x128xf32>
    %88 = arith.addf %86, %87 : vector<8x128xf32>
    %cst_44 = arith.constant dense<0xFF800000> : vector<8xf32>
    %89 = vector.multi_reduction <maximumf>, %88, %cst_44 [1] : vector<8x128xf32> to vector<8xf32>
    %90 = vector.shape_cast %89 : vector<8xf32> to vector<8x1xf32>
    %91 = vector.broadcast %90 : vector<8x1xf32> to vector<8x128xf32>
    %92 = arith.subf %88, %91 : vector<8x128xf32>
    %93 = math.exp %92 : vector<8x128xf32>
    %cst_45 = arith.constant dense<0.000000e+00> : vector<8xf32>
    %94 = vector.multi_reduction <add>, %93, %cst_45 [1] : vector<8x128xf32> to vector<8xf32>
    %95 = vector.shape_cast %94 : vector<8xf32> to vector<8x1xf32>
    %96 = math.log %95 : vector<8x1xf32>
    %97 = vector.broadcast %96 : vector<8x1xf32> to vector<8x128xf32>
    %98 = arith.subf %92, %97 : vector<8x128xf32>
    %99 = arith.index_cast %c0_i32 : i32 to index
    %c0_46 = arith.constant 0 : index
    %c0_47 = arith.constant 0 : index
    %100 = vector.load %arg14[%99, %c0_46, %c0_47] : memref<6x8x128xf32, #tpu.memory_space<vmem>>, vector<1x8x128xf32>
    %101 = vector.shape_cast %100 : vector<1x8x128xf32> to vector<8x128xf32>
    %102 = vector.shape_cast %98 : vector<8x128xf32> to vector<1x8x128xf32>
    tpu.vector_store %arg14[%99, %c0_46, %c0_47], %102 {strides = array<i32>} : memref<6x8x128xf32, #tpu.memory_space<vmem>>, vector<1x8x128xf32>,
    %cst_48 = arith.constant dense<0xFF800000> : vector<8xf32>
    %103 = vector.multi_reduction <maximumf>, %98, %cst_48 [1] : vector<8x128xf32> to vector<8xf32>
    %104 = vector.shape_cast %103 : vector<8xf32> to vector<8x1xf32>
    %105 = vector.broadcast %104 : vector<8x1xf32> to vector<8x128xf32>
    %106 = arith.cmpf oeq, %98, %105 : vector<8x128xf32>
    %cst_49 = arith.constant 1.280000e+02 : f32
    %107 = vector.broadcast %cst_49 : f32 to vector<8x128xf32>
    %108 = arith.select %106, %21, %107 : vector<8x128xi1>, vector<8x128xf32>
    %cst_50 = arith.constant dense<0x7F800000> : vector<8xf32>
    %109 = vector.multi_reduction <minimumf>, %108, %cst_50 [1] : vector<8x128xf32> to vector<8xf32>
    %110 = vector.shape_cast %109 : vector<8xf32> to vector<8x1xf32>
    %111 = vector.broadcast %110 : vector<8x1xf32> to vector<8x128xf32>
    %112 = arith.cmpf oeq, %21, %111 : vector<8x128xf32>
    %113 = arith.extui %112 : vector<8x128xi1> to vector<8x128xi32>
    %114 = arith.sitofp %113 : vector<8x128xi32> to vector<8x128xf32>
    %c1_i32 = arith.constant 1 : i32
    %cst_51 = arith.constant dense<0.000000e+00> : vector<8x128xf32>
    %115 = tpu.matmul %114, %8, %cst_51 {dimension_numbers = #tpu.dot_dimension_numbers<[1], [0], [0], [1], [0, 0, 1, 1], [], []>} : vector<8x128xf32>, vector<128x128xf32>, vector<8x128xf32> -> vector<8x128xf32>
    %cst_52 = arith.constant dense<0.000000e+00> : vector<8x128xf32>
    %116 = tpu.matmul %85, %9, %cst_52 {dimension_numbers = #tpu.dot_dimension_numbers<[1], [0], [0], [1], [0, 0, 1, 1], [], []>} : vector<8x128xf32>, vector<128x128xf32>, vector<8x128xf32> -> vector<8x128xf32>
    %117 = vector.shape_cast %116 : vector<8x128xf32> to vector<8x1x128xf32>
    %118 = vector.broadcast %117 : vector<8x1x128xf32> to vector<8x8x128xf32>
    %119 = arith.addf %7, %118 : vector<8x8x128xf32>
    %120 = vector.broadcast %11 : vector<1x1x128xf32> to vector<8x8x128xf32>
    %121 = arith.mulf %119, %120 : vector<8x8x128xf32>
    %cst_53 = arith.constant dense<0.000000e+00> : vector<8x8xf32>
    %122 = vector.multi_reduction <add>, %121, %cst_53 [2] : vector<8x8x128xf32> to vector<8x8xf32>
    %123 = vector.broadcast %12 : vector<1x1xf32> to vector<8x8xf32>
    %124 = arith.addf %122, %123 : vector<8x8xf32>
    %cst_54 = arith.constant 0.000000e+00 : f32
    %125 = vector.broadcast %cst_54 : f32 to vector<8x8xf32>
    %126 = arith.maximumf %124, %125 : vector<8x8xf32>
    %cst_55 = arith.constant dense<0xFF800000> : vector<8xf32>
    %127 = vector.multi_reduction <maximumf>, %126, %cst_55 [1] : vector<8x8xf32> to vector<8xf32>
    %128 = vector.shape_cast %127 : vector<8xf32> to vector<8x1xf32>
    %129 = vector.broadcast %128 : vector<8x1xf32> to vector<8x8xf32>
    %130 = arith.subf %126, %129 : vector<8x8xf32>
    %131 = math.exp %130 : vector<8x8xf32>
    %cst_56 = arith.constant dense<0.000000e+00> : vector<8xf32>
    %132 = vector.multi_reduction <add>, %131, %cst_56 [1] : vector<8x8xf32> to vector<8xf32>
    %133 = vector.shape_cast %132 : vector<8xf32> to vector<8x1xf32>
    %134 = vector.broadcast %133 : vector<8x1xf32> to vector<8x8xf32>
    %135 = arith.divf %131, %134 : vector<8x8xf32>
    %136 = vector.shape_cast %135 : vector<8x8xf32> to vector<8x8x1xf32>
    %137 = vector.broadcast %136 : vector<8x8x1xf32> to vector<8x8x128xf32>
    %138 = arith.mulf %137, %0 : vector<8x8x128xf32>
    %cst_57 = arith.constant dense<0.000000e+00> : vector<8x128xf32>
    %139 = vector.multi_reduction <add>, %138, %cst_57 [1] : vector<8x8x128xf32> to vector<8x128xf32>
    %cst_58 = arith.constant dense<0.000000e+00> : vector<8x384xf32>
    %140 = tpu.matmul %115, %13, %cst_58 {dimension_numbers = #tpu.dot_dimension_numbers<[1], [0], [0], [1], [0, 0, 1, 1], [], []>} : vector<8x128xf32>, vector<128x384xf32>, vector<8x384xf32> -> vector<8x384xf32>
    %cst_59 = arith.constant dense<0.000000e+00> : vector<8x384xf32>
    %141 = tpu.matmul %139, %14, %cst_59 {dimension_numbers = #tpu.dot_dimension_numbers<[1], [0], [0], [1], [0, 0, 1, 1], [], []>} : vector<8x128xf32>, vector<128x384xf32>, vector<8x384xf32> -> vector<8x384xf32>
    %142 = arith.addf %140, %141 : vector<8x384xf32>
    %143 = vector.broadcast %16 : vector<1x384xf32> to vector<8x384xf32>
    %144 = arith.addf %142, %143 : vector<8x384xf32>
    %cst_60 = arith.constant dense<0.000000e+00> : vector<8x384xf32>
    %145 = tpu.matmul %85, %15, %cst_60 {dimension_numbers = #tpu.dot_dimension_numbers<[1], [0], [0], [1], [0, 0, 1, 1], [], []>} : vector<8x128xf32>, vector<128x384xf32>, vector<8x384xf32> -> vector<8x384xf32>
    %146 = vector.extract_strided_slice %144 {offsets = [0, 0], sizes = [8, 128], strides = [1, 1]} : vector<8x384xf32> to vector<8x128xf32>
    %147 = vector.extract_strided_slice %145 {offsets = [0, 0], sizes = [8, 128], strides = [1, 1]} : vector<8x384xf32> to vector<8x128xf32>
    %148 = arith.addf %146, %147 : vector<8x128xf32>
    %149 = arith.negf %148 : vector<8x128xf32>
    %150 = math.exp %149 : vector<8x128xf32>
    %cst_61 = arith.constant 1.000000e+00 : f32
    %151 = vector.broadcast %cst_61 : f32 to vector<8x128xf32>
    %152 = arith.addf %151, %150 : vector<8x128xf32>
    %153 = arith.divf %151, %152 : vector<8x128xf32>
    %154 = vector.extract_strided_slice %144 {offsets = [0, 128], sizes = [8, 128], strides = [1, 1]} : vector<8x384xf32> to vector<8x128xf32>
    %155 = vector.extract_strided_slice %145 {offsets = [0, 128], sizes = [8, 128], strides = [1, 1]} : vector<8x384xf32> to vector<8x128xf32>
    %156 = arith.addf %154, %155 : vector<8x128xf32>
    %157 = arith.negf %156 : vector<8x128xf32>
    %158 = math.exp %157 : vector<8x128xf32>
    %cst_62 = arith.constant 1.000000e+00 : f32
    %159 = vector.broadcast %cst_62 : f32 to vector<8x128xf32>
    %160 = arith.addf %159, %158 : vector<8x128xf32>
    %161 = arith.divf %159, %160 : vector<8x128xf32>
    %162 = vector.extract_strided_slice %144 {offsets = [0, 256], sizes = [8, 128], strides = [1, 1]} : vector<8x384xf32> to vector<8x128xf32>
    %163 = vector.extract_strided_slice %145 {offsets = [0, 256], sizes = [8, 128], strides = [1, 1]} : vector<8x384xf32> to vector<8x128xf32>
    %164 = vector.broadcast %17 : vector<1x128xf32> to vector<8x128xf32>
    %165 = arith.addf %163, %164 : vector<8x128xf32>
    %166 = arith.mulf %153, %165 : vector<8x128xf32>
    %167 = arith.addf %162, %166 : vector<8x128xf32>
    %168 = math.tanh %167 : vector<8x128xf32>
    %cst_63 = arith.constant 1.000000e+00 : f32
    %169 = vector.broadcast %cst_63 : f32 to vector<8x128xf32>
    %170 = arith.subf %169, %161 : vector<8x128xf32>
    %171 = arith.mulf %170, %168 : vector<8x128xf32>
    %172 = arith.mulf %161, %85 : vector<8x128xf32>
    %173 = arith.addf %171, %172 : vector<8x128xf32>
    %cst_64 = arith.constant dense<0.000000e+00> : vector<8x128xf32>
    %174 = tpu.matmul %173, %18, %cst_64 {dimension_numbers = #tpu.dot_dimension_numbers<[1], [0], [0], [1], [0, 0, 1, 1], [], []>} : vector<8x128xf32>, vector<128x128xf32>, vector<8x128xf32> -> vector<8x128xf32>
    %175 = vector.broadcast %19 : vector<1x128xf32> to vector<8x128xf32>
    %176 = arith.addf %174, %175 : vector<8x128xf32>
    %cst_65 = arith.constant dense<0xFF800000> : vector<8xf32>
    %177 = vector.multi_reduction <maximumf>, %176, %cst_65 [1] : vector<8x128xf32> to vector<8xf32>
    %178 = vector.shape_cast %177 : vector<8xf32> to vector<8x1xf32>
    %179 = vector.broadcast %178 : vector<8x1xf32> to vector<8x128xf32>
    %180 = arith.subf %176, %179 : vector<8x128xf32>
    %181 = math.exp %180 : vector<8x128xf32>
    %cst_66 = arith.constant dense<0.000000e+00> : vector<8xf32>
    %182 = vector.multi_reduction <add>, %181, %cst_66 [1] : vector<8x128xf32> to vector<8xf32>
    %183 = vector.shape_cast %182 : vector<8xf32> to vector<8x1xf32>
    %184 = math.log %183 : vector<8x1xf32>
    %185 = vector.broadcast %184 : vector<8x1xf32> to vector<8x128xf32>
    %186 = arith.subf %180, %185 : vector<8x128xf32>
    %187 = arith.index_cast %c1_i32 : i32 to index
    %c0_67 = arith.constant 0 : index
    %c0_68 = arith.constant 0 : index
    %188 = vector.load %arg14[%187, %c0_67, %c0_68] : memref<6x8x128xf32, #tpu.memory_space<vmem>>, vector<1x8x128xf32>
    %189 = vector.shape_cast %188 : vector<1x8x128xf32> to vector<8x128xf32>
    %190 = vector.shape_cast %186 : vector<8x128xf32> to vector<1x8x128xf32>
    tpu.vector_store %arg14[%187, %c0_67, %c0_68], %190 {strides = array<i32>} : memref<6x8x128xf32, #tpu.memory_space<vmem>>, vector<1x8x128xf32>,
    %cst_69 = arith.constant dense<0xFF800000> : vector<8xf32>
    %191 = vector.multi_reduction <maximumf>, %186, %cst_69 [1] : vector<8x128xf32> to vector<8xf32>
    %192 = vector.shape_cast %191 : vector<8xf32> to vector<8x1xf32>
    %193 = vector.broadcast %192 : vector<8x1xf32> to vector<8x128xf32>
    %194 = arith.cmpf oeq, %186, %193 : vector<8x128xf32>
    %cst_70 = arith.constant 1.280000e+02 : f32
    %195 = vector.broadcast %cst_70 : f32 to vector<8x128xf32>
    %196 = arith.select %194, %21, %195 : vector<8x128xi1>, vector<8x128xf32>
    %cst_71 = arith.constant dense<0x7F800000> : vector<8xf32>
    %197 = vector.multi_reduction <minimumf>, %196, %cst_71 [1] : vector<8x128xf32> to vector<8xf32>
    %198 = vector.shape_cast %197 : vector<8xf32> to vector<8x1xf32>
    %199 = vector.broadcast %198 : vector<8x1xf32> to vector<8x128xf32>
    %200 = arith.cmpf oeq, %21, %199 : vector<8x128xf32>
    %201 = arith.extui %200 : vector<8x128xi1> to vector<8x128xi32>
    %202 = arith.sitofp %201 : vector<8x128xi32> to vector<8x128xf32>
    %c2_i32 = arith.constant 2 : i32
    %cst_72 = arith.constant dense<0.000000e+00> : vector<8x128xf32>
    %203 = tpu.matmul %202, %8, %cst_72 {dimension_numbers = #tpu.dot_dimension_numbers<[1], [0], [0], [1], [0, 0, 1, 1], [], []>} : vector<8x128xf32>, vector<128x128xf32>, vector<8x128xf32> -> vector<8x128xf32>
    %cst_73 = arith.constant dense<0.000000e+00> : vector<8x128xf32>
    %204 = tpu.matmul %173, %9, %cst_73 {dimension_numbers = #tpu.dot_dimension_numbers<[1], [0], [0], [1], [0, 0, 1, 1], [], []>} : vector<8x128xf32>, vector<128x128xf32>, vector<8x128xf32> -> vector<8x128xf32>
    %205 = vector.shape_cast %204 : vector<8x128xf32> to vector<8x1x128xf32>
    %206 = vector.broadcast %205 : vector<8x1x128xf32> to vector<8x8x128xf32>
    %207 = arith.addf %7, %206 : vector<8x8x128xf32>
    %208 = vector.broadcast %11 : vector<1x1x128xf32> to vector<8x8x128xf32>
    %209 = arith.mulf %207, %208 : vector<8x8x128xf32>
    %cst_74 = arith.constant dense<0.000000e+00> : vector<8x8xf32>
    %210 = vector.multi_reduction <add>, %209, %cst_74 [2] : vector<8x8x128xf32> to vector<8x8xf32>
    %211 = vector.broadcast %12 : vector<1x1xf32> to vector<8x8xf32>
    %212 = arith.addf %210, %211 : vector<8x8xf32>
    %cst_75 = arith.constant 0.000000e+00 : f32
    %213 = vector.broadcast %cst_75 : f32 to vector<8x8xf32>
    %214 = arith.maximumf %212, %213 : vector<8x8xf32>
    %cst_76 = arith.constant dense<0xFF800000> : vector<8xf32>
    %215 = vector.multi_reduction <maximumf>, %214, %cst_76 [1] : vector<8x8xf32> to vector<8xf32>
    %216 = vector.shape_cast %215 : vector<8xf32> to vector<8x1xf32>
    %217 = vector.broadcast %216 : vector<8x1xf32> to vector<8x8xf32>
    %218 = arith.subf %214, %217 : vector<8x8xf32>
    %219 = math.exp %218 : vector<8x8xf32>
    %cst_77 = arith.constant dense<0.000000e+00> : vector<8xf32>
    %220 = vector.multi_reduction <add>, %219, %cst_77 [1] : vector<8x8xf32> to vector<8xf32>
    %221 = vector.shape_cast %220 : vector<8xf32> to vector<8x1xf32>
    %222 = vector.broadcast %221 : vector<8x1xf32> to vector<8x8xf32>
    %223 = arith.divf %219, %222 : vector<8x8xf32>
    %224 = vector.shape_cast %223 : vector<8x8xf32> to vector<8x8x1xf32>
    %225 = vector.broadcast %224 : vector<8x8x1xf32> to vector<8x8x128xf32>
    %226 = arith.mulf %225, %0 : vector<8x8x128xf32>
    %cst_78 = arith.constant dense<0.000000e+00> : vector<8x128xf32>
    %227 = vector.multi_reduction <add>, %226, %cst_78 [1] : vector<8x8x128xf32> to vector<8x128xf32>
    %cst_79 = arith.constant dense<0.000000e+00> : vector<8x384xf32>
    %228 = tpu.matmul %203, %13, %cst_79 {dimension_numbers = #tpu.dot_dimension_numbers<[1], [0], [0], [1], [0, 0, 1, 1], [], []>} : vector<8x128xf32>, vector<128x384xf32>, vector<8x384xf32> -> vector<8x384xf32>
    %cst_80 = arith.constant dense<0.000000e+00> : vector<8x384xf32>
    %229 = tpu.matmul %227, %14, %cst_80 {dimension_numbers = #tpu.dot_dimension_numbers<[1], [0], [0], [1], [0, 0, 1, 1], [], []>} : vector<8x128xf32>, vector<128x384xf32>, vector<8x384xf32> -> vector<8x384xf32>
    %230 = arith.addf %228, %229 : vector<8x384xf32>
    %231 = vector.broadcast %16 : vector<1x384xf32> to vector<8x384xf32>
    %232 = arith.addf %230, %231 : vector<8x384xf32>
    %cst_81 = arith.constant dense<0.000000e+00> : vector<8x384xf32>
    %233 = tpu.matmul %173, %15, %cst_81 {dimension_numbers = #tpu.dot_dimension_numbers<[1], [0], [0], [1], [0, 0, 1, 1], [], []>} : vector<8x128xf32>, vector<128x384xf32>, vector<8x384xf32> -> vector<8x384xf32>
    %234 = vector.extract_strided_slice %232 {offsets = [0, 0], sizes = [8, 128], strides = [1, 1]} : vector<8x384xf32> to vector<8x128xf32>
    %235 = vector.extract_strided_slice %233 {offsets = [0, 0], sizes = [8, 128], strides = [1, 1]} : vector<8x384xf32> to vector<8x128xf32>
    %236 = arith.addf %234, %235 : vector<8x128xf32>
    %237 = arith.negf %236 : vector<8x128xf32>
    %238 = math.exp %237 : vector<8x128xf32>
    %cst_82 = arith.constant 1.000000e+00 : f32
    %239 = vector.broadcast %cst_82 : f32 to vector<8x128xf32>
    %240 = arith.addf %239, %238 : vector<8x128xf32>
    %241 = arith.divf %239, %240 : vector<8x128xf32>
    %242 = vector.extract_strided_slice %232 {offsets = [0, 128], sizes = [8, 128], strides = [1, 1]} : vector<8x384xf32> to vector<8x128xf32>
    %243 = vector.extract_strided_slice %233 {offsets = [0, 128], sizes = [8, 128], strides = [1, 1]} : vector<8x384xf32> to vector<8x128xf32>
    %244 = arith.addf %242, %243 : vector<8x128xf32>
    %245 = arith.negf %244 : vector<8x128xf32>
    %246 = math.exp %245 : vector<8x128xf32>
    %cst_83 = arith.constant 1.000000e+00 : f32
    %247 = vector.broadcast %cst_83 : f32 to vector<8x128xf32>
    %248 = arith.addf %247, %246 : vector<8x128xf32>
    %249 = arith.divf %247, %248 : vector<8x128xf32>
    %250 = vector.extract_strided_slice %232 {offsets = [0, 256], sizes = [8, 128], strides = [1, 1]} : vector<8x384xf32> to vector<8x128xf32>
    %251 = vector.extract_strided_slice %233 {offsets = [0, 256], sizes = [8, 128], strides = [1, 1]} : vector<8x384xf32> to vector<8x128xf32>
    %252 = vector.broadcast %17 : vector<1x128xf32> to vector<8x128xf32>
    %253 = arith.addf %251, %252 : vector<8x128xf32>
    %254 = arith.mulf %241, %253 : vector<8x128xf32>
    %255 = arith.addf %250, %254 : vector<8x128xf32>
    %256 = math.tanh %255 : vector<8x128xf32>
    %cst_84 = arith.constant 1.000000e+00 : f32
    %257 = vector.broadcast %cst_84 : f32 to vector<8x128xf32>
    %258 = arith.subf %257, %249 : vector<8x128xf32>
    %259 = arith.mulf %258, %256 : vector<8x128xf32>
    %260 = arith.mulf %249, %173 : vector<8x128xf32>
    %261 = arith.addf %259, %260 : vector<8x128xf32>
    %cst_85 = arith.constant dense<0.000000e+00> : vector<8x128xf32>
    %262 = tpu.matmul %261, %18, %cst_85 {dimension_numbers = #tpu.dot_dimension_numbers<[1], [0], [0], [1], [0, 0, 1, 1], [], []>} : vector<8x128xf32>, vector<128x128xf32>, vector<8x128xf32> -> vector<8x128xf32>
    %263 = vector.broadcast %19 : vector<1x128xf32> to vector<8x128xf32>
    %264 = arith.addf %262, %263 : vector<8x128xf32>
    %cst_86 = arith.constant dense<0xFF800000> : vector<8xf32>
    %265 = vector.multi_reduction <maximumf>, %264, %cst_86 [1] : vector<8x128xf32> to vector<8xf32>
    %266 = vector.shape_cast %265 : vector<8xf32> to vector<8x1xf32>
    %267 = vector.broadcast %266 : vector<8x1xf32> to vector<8x128xf32>
    %268 = arith.subf %264, %267 : vector<8x128xf32>
    %269 = math.exp %268 : vector<8x128xf32>
    %cst_87 = arith.constant dense<0.000000e+00> : vector<8xf32>
    %270 = vector.multi_reduction <add>, %269, %cst_87 [1] : vector<8x128xf32> to vector<8xf32>
    %271 = vector.shape_cast %270 : vector<8xf32> to vector<8x1xf32>
    %272 = math.log %271 : vector<8x1xf32>
    %273 = vector.broadcast %272 : vector<8x1xf32> to vector<8x128xf32>
    %274 = arith.subf %268, %273 : vector<8x128xf32>
    %275 = arith.index_cast %c2_i32 : i32 to index
    %c0_88 = arith.constant 0 : index
    %c0_89 = arith.constant 0 : index
    %276 = vector.load %arg14[%275, %c0_88, %c0_89] : memref<6x8x128xf32, #tpu.memory_space<vmem>>, vector<1x8x128xf32>
    %277 = vector.shape_cast %276 : vector<1x8x128xf32> to vector<8x128xf32>
    %278 = vector.shape_cast %274 : vector<8x128xf32> to vector<1x8x128xf32>
    tpu.vector_store %arg14[%275, %c0_88, %c0_89], %278 {strides = array<i32>} : memref<6x8x128xf32, #tpu.memory_space<vmem>>, vector<1x8x128xf32>,
    %cst_90 = arith.constant dense<0xFF800000> : vector<8xf32>
    %279 = vector.multi_reduction <maximumf>, %274, %cst_90 [1] : vector<8x128xf32> to vector<8xf32>
    %280 = vector.shape_cast %279 : vector<8xf32> to vector<8x1xf32>
    %281 = vector.broadcast %280 : vector<8x1xf32> to vector<8x128xf32>
    %282 = arith.cmpf oeq, %274, %281 : vector<8x128xf32>
    %cst_91 = arith.constant 1.280000e+02 : f32
    %283 = vector.broadcast %cst_91 : f32 to vector<8x128xf32>
    %284 = arith.select %282, %21, %283 : vector<8x128xi1>, vector<8x128xf32>
    %cst_92 = arith.constant dense<0x7F800000> : vector<8xf32>
    %285 = vector.multi_reduction <minimumf>, %284, %cst_92 [1] : vector<8x128xf32> to vector<8xf32>
    %286 = vector.shape_cast %285 : vector<8xf32> to vector<8x1xf32>
    %287 = vector.broadcast %286 : vector<8x1xf32> to vector<8x128xf32>
    %288 = arith.cmpf oeq, %21, %287 : vector<8x128xf32>
    %289 = arith.extui %288 : vector<8x128xi1> to vector<8x128xi32>
    %290 = arith.sitofp %289 : vector<8x128xi32> to vector<8x128xf32>
    %c3_i32 = arith.constant 3 : i32
    %cst_93 = arith.constant dense<0.000000e+00> : vector<8x128xf32>
    %291 = tpu.matmul %290, %8, %cst_93 {dimension_numbers = #tpu.dot_dimension_numbers<[1], [0], [0], [1], [0, 0, 1, 1], [], []>} : vector<8x128xf32>, vector<128x128xf32>, vector<8x128xf32> -> vector<8x128xf32>
    %cst_94 = arith.constant dense<0.000000e+00> : vector<8x128xf32>
    %292 = tpu.matmul %261, %9, %cst_94 {dimension_numbers = #tpu.dot_dimension_numbers<[1], [0], [0], [1], [0, 0, 1, 1], [], []>} : vector<8x128xf32>, vector<128x128xf32>, vector<8x128xf32> -> vector<8x128xf32>
    %293 = vector.shape_cast %292 : vector<8x128xf32> to vector<8x1x128xf32>
    %294 = vector.broadcast %293 : vector<8x1x128xf32> to vector<8x8x128xf32>
    %295 = arith.addf %7, %294 : vector<8x8x128xf32>
    %296 = vector.broadcast %11 : vector<1x1x128xf32> to vector<8x8x128xf32>
    %297 = arith.mulf %295, %296 : vector<8x8x128xf32>
    %cst_95 = arith.constant dense<0.000000e+00> : vector<8x8xf32>
    %298 = vector.multi_reduction <add>, %297, %cst_95 [2] : vector<8x8x128xf32> to vector<8x8xf32>
    %299 = vector.broadcast %12 : vector<1x1xf32> to vector<8x8xf32>
    %300 = arith.addf %298, %299 : vector<8x8xf32>
    %cst_96 = arith.constant 0.000000e+00 : f32
    %301 = vector.broadcast %cst_96 : f32 to vector<8x8xf32>
    %302 = arith.maximumf %300, %301 : vector<8x8xf32>
    %cst_97 = arith.constant dense<0xFF800000> : vector<8xf32>
    %303 = vector.multi_reduction <maximumf>, %302, %cst_97 [1] : vector<8x8xf32> to vector<8xf32>
    %304 = vector.shape_cast %303 : vector<8xf32> to vector<8x1xf32>
    %305 = vector.broadcast %304 : vector<8x1xf32> to vector<8x8xf32>
    %306 = arith.subf %302, %305 : vector<8x8xf32>
    %307 = math.exp %306 : vector<8x8xf32>
    %cst_98 = arith.constant dense<0.000000e+00> : vector<8xf32>
    %308 = vector.multi_reduction <add>, %307, %cst_98 [1] : vector<8x8xf32> to vector<8xf32>
    %309 = vector.shape_cast %308 : vector<8xf32> to vector<8x1xf32>
    %310 = vector.broadcast %309 : vector<8x1xf32> to vector<8x8xf32>
    %311 = arith.divf %307, %310 : vector<8x8xf32>
    %312 = vector.shape_cast %311 : vector<8x8xf32> to vector<8x8x1xf32>
    %313 = vector.broadcast %312 : vector<8x8x1xf32> to vector<8x8x128xf32>
    %314 = arith.mulf %313, %0 : vector<8x8x128xf32>
    %cst_99 = arith.constant dense<0.000000e+00> : vector<8x128xf32>
    %315 = vector.multi_reduction <add>, %314, %cst_99 [1] : vector<8x8x128xf32> to vector<8x128xf32>
    %cst_100 = arith.constant dense<0.000000e+00> : vector<8x384xf32>
    %316 = tpu.matmul %291, %13, %cst_100 {dimension_numbers = #tpu.dot_dimension_numbers<[1], [0], [0], [1], [0, 0, 1, 1], [], []>} : vector<8x128xf32>, vector<128x384xf32>, vector<8x384xf32> -> vector<8x384xf32>
    %cst_101 = arith.constant dense<0.000000e+00> : vector<8x384xf32>
    %317 = tpu.matmul %315, %14, %cst_101 {dimension_numbers = #tpu.dot_dimension_numbers<[1], [0], [0], [1], [0, 0, 1, 1], [], []>} : vector<8x128xf32>, vector<128x384xf32>, vector<8x384xf32> -> vector<8x384xf32>
    %318 = arith.addf %316, %317 : vector<8x384xf32>
    %319 = vector.broadcast %16 : vector<1x384xf32> to vector<8x384xf32>
    %320 = arith.addf %318, %319 : vector<8x384xf32>
    %cst_102 = arith.constant dense<0.000000e+00> : vector<8x384xf32>
    %321 = tpu.matmul %261, %15, %cst_102 {dimension_numbers = #tpu.dot_dimension_numbers<[1], [0], [0], [1], [0, 0, 1, 1], [], []>} : vector<8x128xf32>, vector<128x384xf32>, vector<8x384xf32> -> vector<8x384xf32>
    %322 = vector.extract_strided_slice %320 {offsets = [0, 0], sizes = [8, 128], strides = [1, 1]} : vector<8x384xf32> to vector<8x128xf32>
    %323 = vector.extract_strided_slice %321 {offsets = [0, 0], sizes = [8, 128], strides = [1, 1]} : vector<8x384xf32> to vector<8x128xf32>
    %324 = arith.addf %322, %323 : vector<8x128xf32>
    %325 = arith.negf %324 : vector<8x128xf32>
    %326 = math.exp %325 : vector<8x128xf32>
    %cst_103 = arith.constant 1.000000e+00 : f32
    %327 = vector.broadcast %cst_103 : f32 to vector<8x128xf32>
    %328 = arith.addf %327, %326 : vector<8x128xf32>
    %329 = arith.divf %327, %328 : vector<8x128xf32>
    %330 = vector.extract_strided_slice %320 {offsets = [0, 128], sizes = [8, 128], strides = [1, 1]} : vector<8x384xf32> to vector<8x128xf32>
    %331 = vector.extract_strided_slice %321 {offsets = [0, 128], sizes = [8, 128], strides = [1, 1]} : vector<8x384xf32> to vector<8x128xf32>
    %332 = arith.addf %330, %331 : vector<8x128xf32>
    %333 = arith.negf %332 : vector<8x128xf32>
    %334 = math.exp %333 : vector<8x128xf32>
    %cst_104 = arith.constant 1.000000e+00 : f32
    %335 = vector.broadcast %cst_104 : f32 to vector<8x128xf32>
    %336 = arith.addf %335, %334 : vector<8x128xf32>
    %337 = arith.divf %335, %336 : vector<8x128xf32>
    %338 = vector.extract_strided_slice %320 {offsets = [0, 256], sizes = [8, 128], strides = [1, 1]} : vector<8x384xf32> to vector<8x128xf32>
    %339 = vector.extract_strided_slice %321 {offsets = [0, 256], sizes = [8, 128], strides = [1, 1]} : vector<8x384xf32> to vector<8x128xf32>
    %340 = vector.broadcast %17 : vector<1x128xf32> to vector<8x128xf32>
    %341 = arith.addf %339, %340 : vector<8x128xf32>
    %342 = arith.mulf %329, %341 : vector<8x128xf32>
    %343 = arith.addf %338, %342 : vector<8x128xf32>
    %344 = math.tanh %343 : vector<8x128xf32>
    %cst_105 = arith.constant 1.000000e+00 : f32
    %345 = vector.broadcast %cst_105 : f32 to vector<8x128xf32>
    %346 = arith.subf %345, %337 : vector<8x128xf32>
    %347 = arith.mulf %346, %344 : vector<8x128xf32>
    %348 = arith.mulf %337, %261 : vector<8x128xf32>
    %349 = arith.addf %347, %348 : vector<8x128xf32>
    %cst_106 = arith.constant dense<0.000000e+00> : vector<8x128xf32>
    %350 = tpu.matmul %349, %18, %cst_106 {dimension_numbers = #tpu.dot_dimension_numbers<[1], [0], [0], [1], [0, 0, 1, 1], [], []>} : vector<8x128xf32>, vector<128x128xf32>, vector<8x128xf32> -> vector<8x128xf32>
    %351 = vector.broadcast %19 : vector<1x128xf32> to vector<8x128xf32>
    %352 = arith.addf %350, %351 : vector<8x128xf32>
    %cst_107 = arith.constant dense<0xFF800000> : vector<8xf32>
    %353 = vector.multi_reduction <maximumf>, %352, %cst_107 [1] : vector<8x128xf32> to vector<8xf32>
    %354 = vector.shape_cast %353 : vector<8xf32> to vector<8x1xf32>
    %355 = vector.broadcast %354 : vector<8x1xf32> to vector<8x128xf32>
    %356 = arith.subf %352, %355 : vector<8x128xf32>
    %357 = math.exp %356 : vector<8x128xf32>
    %cst_108 = arith.constant dense<0.000000e+00> : vector<8xf32>
    %358 = vector.multi_reduction <add>, %357, %cst_108 [1] : vector<8x128xf32> to vector<8xf32>
    %359 = vector.shape_cast %358 : vector<8xf32> to vector<8x1xf32>
    %360 = math.log %359 : vector<8x1xf32>
    %361 = vector.broadcast %360 : vector<8x1xf32> to vector<8x128xf32>
    %362 = arith.subf %356, %361 : vector<8x128xf32>
    %363 = arith.index_cast %c3_i32 : i32 to index
    %c0_109 = arith.constant 0 : index
    %c0_110 = arith.constant 0 : index
    %364 = vector.load %arg14[%363, %c0_109, %c0_110] : memref<6x8x128xf32, #tpu.memory_space<vmem>>, vector<1x8x128xf32>
    %365 = vector.shape_cast %364 : vector<1x8x128xf32> to vector<8x128xf32>
    %366 = vector.shape_cast %362 : vector<8x128xf32> to vector<1x8x128xf32>
    tpu.vector_store %arg14[%363, %c0_109, %c0_110], %366 {strides = array<i32>} : memref<6x8x128xf32, #tpu.memory_space<vmem>>, vector<1x8x128xf32>,
    %cst_111 = arith.constant dense<0xFF800000> : vector<8xf32>
    %367 = vector.multi_reduction <maximumf>, %362, %cst_111 [1] : vector<8x128xf32> to vector<8xf32>
    %368 = vector.shape_cast %367 : vector<8xf32> to vector<8x1xf32>
    %369 = vector.broadcast %368 : vector<8x1xf32> to vector<8x128xf32>
    %370 = arith.cmpf oeq, %362, %369 : vector<8x128xf32>
    %cst_112 = arith.constant 1.280000e+02 : f32
    %371 = vector.broadcast %cst_112 : f32 to vector<8x128xf32>
    %372 = arith.select %370, %21, %371 : vector<8x128xi1>, vector<8x128xf32>
    %cst_113 = arith.constant dense<0x7F800000> : vector<8xf32>
    %373 = vector.multi_reduction <minimumf>, %372, %cst_113 [1] : vector<8x128xf32> to vector<8xf32>
    %374 = vector.shape_cast %373 : vector<8xf32> to vector<8x1xf32>
    %375 = vector.broadcast %374 : vector<8x1xf32> to vector<8x128xf32>
    %376 = arith.cmpf oeq, %21, %375 : vector<8x128xf32>
    %377 = arith.extui %376 : vector<8x128xi1> to vector<8x128xi32>
    %378 = arith.sitofp %377 : vector<8x128xi32> to vector<8x128xf32>
    %c4_i32 = arith.constant 4 : i32
    %cst_114 = arith.constant dense<0.000000e+00> : vector<8x128xf32>
    %379 = tpu.matmul %378, %8, %cst_114 {dimension_numbers = #tpu.dot_dimension_numbers<[1], [0], [0], [1], [0, 0, 1, 1], [], []>} : vector<8x128xf32>, vector<128x128xf32>, vector<8x128xf32> -> vector<8x128xf32>
    %cst_115 = arith.constant dense<0.000000e+00> : vector<8x128xf32>
    %380 = tpu.matmul %349, %9, %cst_115 {dimension_numbers = #tpu.dot_dimension_numbers<[1], [0], [0], [1], [0, 0, 1, 1], [], []>} : vector<8x128xf32>, vector<128x128xf32>, vector<8x128xf32> -> vector<8x128xf32>
    %381 = vector.shape_cast %380 : vector<8x128xf32> to vector<8x1x128xf32>
    %382 = vector.broadcast %381 : vector<8x1x128xf32> to vector<8x8x128xf32>
    %383 = arith.addf %7, %382 : vector<8x8x128xf32>
    %384 = vector.broadcast %11 : vector<1x1x128xf32> to vector<8x8x128xf32>
    %385 = arith.mulf %383, %384 : vector<8x8x128xf32>
    %cst_116 = arith.constant dense<0.000000e+00> : vector<8x8xf32>
    %386 = vector.multi_reduction <add>, %385, %cst_116 [2] : vector<8x8x128xf32> to vector<8x8xf32>
    %387 = vector.broadcast %12 : vector<1x1xf32> to vector<8x8xf32>
    %388 = arith.addf %386, %387 : vector<8x8xf32>
    %cst_117 = arith.constant 0.000000e+00 : f32
    %389 = vector.broadcast %cst_117 : f32 to vector<8x8xf32>
    %390 = arith.maximumf %388, %389 : vector<8x8xf32>
    %cst_118 = arith.constant dense<0xFF800000> : vector<8xf32>
    %391 = vector.multi_reduction <maximumf>, %390, %cst_118 [1] : vector<8x8xf32> to vector<8xf32>
    %392 = vector.shape_cast %391 : vector<8xf32> to vector<8x1xf32>
    %393 = vector.broadcast %392 : vector<8x1xf32> to vector<8x8xf32>
    %394 = arith.subf %390, %393 : vector<8x8xf32>
    %395 = math.exp %394 : vector<8x8xf32>
    %cst_119 = arith.constant dense<0.000000e+00> : vector<8xf32>
    %396 = vector.multi_reduction <add>, %395, %cst_119 [1] : vector<8x8xf32> to vector<8xf32>
    %397 = vector.shape_cast %396 : vector<8xf32> to vector<8x1xf32>
    %398 = vector.broadcast %397 : vector<8x1xf32> to vector<8x8xf32>
    %399 = arith.divf %395, %398 : vector<8x8xf32>
    %400 = vector.shape_cast %399 : vector<8x8xf32> to vector<8x8x1xf32>
    %401 = vector.broadcast %400 : vector<8x8x1xf32> to vector<8x8x128xf32>
    %402 = arith.mulf %401, %0 : vector<8x8x128xf32>
    %cst_120 = arith.constant dense<0.000000e+00> : vector<8x128xf32>
    %403 = vector.multi_reduction <add>, %402, %cst_120 [1] : vector<8x8x128xf32> to vector<8x128xf32>
    %cst_121 = arith.constant dense<0.000000e+00> : vector<8x384xf32>
    %404 = tpu.matmul %379, %13, %cst_121 {dimension_numbers = #tpu.dot_dimension_numbers<[1], [0], [0], [1], [0, 0, 1, 1], [], []>} : vector<8x128xf32>, vector<128x384xf32>, vector<8x384xf32> -> vector<8x384xf32>
    %cst_122 = arith.constant dense<0.000000e+00> : vector<8x384xf32>
    %405 = tpu.matmul %403, %14, %cst_122 {dimension_numbers = #tpu.dot_dimension_numbers<[1], [0], [0], [1], [0, 0, 1, 1], [], []>} : vector<8x128xf32>, vector<128x384xf32>, vector<8x384xf32> -> vector<8x384xf32>
    %406 = arith.addf %404, %405 : vector<8x384xf32>
    %407 = vector.broadcast %16 : vector<1x384xf32> to vector<8x384xf32>
    %408 = arith.addf %406, %407 : vector<8x384xf32>
    %cst_123 = arith.constant dense<0.000000e+00> : vector<8x384xf32>
    %409 = tpu.matmul %349, %15, %cst_123 {dimension_numbers = #tpu.dot_dimension_numbers<[1], [0], [0], [1], [0, 0, 1, 1], [], []>} : vector<8x128xf32>, vector<128x384xf32>, vector<8x384xf32> -> vector<8x384xf32>
    %410 = vector.extract_strided_slice %408 {offsets = [0, 0], sizes = [8, 128], strides = [1, 1]} : vector<8x384xf32> to vector<8x128xf32>
    %411 = vector.extract_strided_slice %409 {offsets = [0, 0], sizes = [8, 128], strides = [1, 1]} : vector<8x384xf32> to vector<8x128xf32>
    %412 = arith.addf %410, %411 : vector<8x128xf32>
    %413 = arith.negf %412 : vector<8x128xf32>
    %414 = math.exp %413 : vector<8x128xf32>
    %cst_124 = arith.constant 1.000000e+00 : f32
    %415 = vector.broadcast %cst_124 : f32 to vector<8x128xf32>
    %416 = arith.addf %415, %414 : vector<8x128xf32>
    %417 = arith.divf %415, %416 : vector<8x128xf32>
    %418 = vector.extract_strided_slice %408 {offsets = [0, 128], sizes = [8, 128], strides = [1, 1]} : vector<8x384xf32> to vector<8x128xf32>
    %419 = vector.extract_strided_slice %409 {offsets = [0, 128], sizes = [8, 128], strides = [1, 1]} : vector<8x384xf32> to vector<8x128xf32>
    %420 = arith.addf %418, %419 : vector<8x128xf32>
    %421 = arith.negf %420 : vector<8x128xf32>
    %422 = math.exp %421 : vector<8x128xf32>
    %cst_125 = arith.constant 1.000000e+00 : f32
    %423 = vector.broadcast %cst_125 : f32 to vector<8x128xf32>
    %424 = arith.addf %423, %422 : vector<8x128xf32>
    %425 = arith.divf %423, %424 : vector<8x128xf32>
    %426 = vector.extract_strided_slice %408 {offsets = [0, 256], sizes = [8, 128], strides = [1, 1]} : vector<8x384xf32> to vector<8x128xf32>
    %427 = vector.extract_strided_slice %409 {offsets = [0, 256], sizes = [8, 128], strides = [1, 1]} : vector<8x384xf32> to vector<8x128xf32>
    %428 = vector.broadcast %17 : vector<1x128xf32> to vector<8x128xf32>
    %429 = arith.addf %427, %428 : vector<8x128xf32>
    %430 = arith.mulf %417, %429 : vector<8x128xf32>
    %431 = arith.addf %426, %430 : vector<8x128xf32>
    %432 = math.tanh %431 : vector<8x128xf32>
    %cst_126 = arith.constant 1.000000e+00 : f32
    %433 = vector.broadcast %cst_126 : f32 to vector<8x128xf32>
    %434 = arith.subf %433, %425 : vector<8x128xf32>
    %435 = arith.mulf %434, %432 : vector<8x128xf32>
    %436 = arith.mulf %425, %349 : vector<8x128xf32>
    %437 = arith.addf %435, %436 : vector<8x128xf32>
    %cst_127 = arith.constant dense<0.000000e+00> : vector<8x128xf32>
    %438 = tpu.matmul %437, %18, %cst_127 {dimension_numbers = #tpu.dot_dimension_numbers<[1], [0], [0], [1], [0, 0, 1, 1], [], []>} : vector<8x128xf32>, vector<128x128xf32>, vector<8x128xf32> -> vector<8x128xf32>
    %439 = vector.broadcast %19 : vector<1x128xf32> to vector<8x128xf32>
    %440 = arith.addf %438, %439 : vector<8x128xf32>
    %cst_128 = arith.constant dense<0xFF800000> : vector<8xf32>
    %441 = vector.multi_reduction <maximumf>, %440, %cst_128 [1] : vector<8x128xf32> to vector<8xf32>
    %442 = vector.shape_cast %441 : vector<8xf32> to vector<8x1xf32>
    %443 = vector.broadcast %442 : vector<8x1xf32> to vector<8x128xf32>
    %444 = arith.subf %440, %443 : vector<8x128xf32>
    %445 = math.exp %444 : vector<8x128xf32>
    %cst_129 = arith.constant dense<0.000000e+00> : vector<8xf32>
    %446 = vector.multi_reduction <add>, %445, %cst_129 [1] : vector<8x128xf32> to vector<8xf32>
    %447 = vector.shape_cast %446 : vector<8xf32> to vector<8x1xf32>
    %448 = math.log %447 : vector<8x1xf32>
    %449 = vector.broadcast %448 : vector<8x1xf32> to vector<8x128xf32>
    %450 = arith.subf %444, %449 : vector<8x128xf32>
    %451 = arith.index_cast %c4_i32 : i32 to index
    %c0_130 = arith.constant 0 : index
    %c0_131 = arith.constant 0 : index
    %452 = vector.load %arg14[%451, %c0_130, %c0_131] : memref<6x8x128xf32, #tpu.memory_space<vmem>>, vector<1x8x128xf32>
    %453 = vector.shape_cast %452 : vector<1x8x128xf32> to vector<8x128xf32>
    %454 = vector.shape_cast %450 : vector<8x128xf32> to vector<1x8x128xf32>
    tpu.vector_store %arg14[%451, %c0_130, %c0_131], %454 {strides = array<i32>} : memref<6x8x128xf32, #tpu.memory_space<vmem>>, vector<1x8x128xf32>,
    %cst_132 = arith.constant dense<0xFF800000> : vector<8xf32>
    %455 = vector.multi_reduction <maximumf>, %450, %cst_132 [1] : vector<8x128xf32> to vector<8xf32>
    %456 = vector.shape_cast %455 : vector<8xf32> to vector<8x1xf32>
    %457 = vector.broadcast %456 : vector<8x1xf32> to vector<8x128xf32>
    %458 = arith.cmpf oeq, %450, %457 : vector<8x128xf32>
    %cst_133 = arith.constant 1.280000e+02 : f32
    %459 = vector.broadcast %cst_133 : f32 to vector<8x128xf32>
    %460 = arith.select %458, %21, %459 : vector<8x128xi1>, vector<8x128xf32>
    %cst_134 = arith.constant dense<0x7F800000> : vector<8xf32>
    %461 = vector.multi_reduction <minimumf>, %460, %cst_134 [1] : vector<8x128xf32> to vector<8xf32>
    %462 = vector.shape_cast %461 : vector<8xf32> to vector<8x1xf32>
    %463 = vector.broadcast %462 : vector<8x1xf32> to vector<8x128xf32>
    %464 = arith.cmpf oeq, %21, %463 : vector<8x128xf32>
    %465 = arith.extui %464 : vector<8x128xi1> to vector<8x128xi32>
    %466 = arith.sitofp %465 : vector<8x128xi32> to vector<8x128xf32>
    %c5_i32 = arith.constant 5 : i32
    %cst_135 = arith.constant dense<0.000000e+00> : vector<8x128xf32>
    %467 = tpu.matmul %466, %8, %cst_135 {dimension_numbers = #tpu.dot_dimension_numbers<[1], [0], [0], [1], [0, 0, 1, 1], [], []>} : vector<8x128xf32>, vector<128x128xf32>, vector<8x128xf32> -> vector<8x128xf32>
    %cst_136 = arith.constant dense<0.000000e+00> : vector<8x128xf32>
    %468 = tpu.matmul %437, %9, %cst_136 {dimension_numbers = #tpu.dot_dimension_numbers<[1], [0], [0], [1], [0, 0, 1, 1], [], []>} : vector<8x128xf32>, vector<128x128xf32>, vector<8x128xf32> -> vector<8x128xf32>
    %469 = vector.shape_cast %468 : vector<8x128xf32> to vector<8x1x128xf32>
    %470 = vector.broadcast %469 : vector<8x1x128xf32> to vector<8x8x128xf32>
    %471 = arith.addf %7, %470 : vector<8x8x128xf32>
    %472 = vector.broadcast %11 : vector<1x1x128xf32> to vector<8x8x128xf32>
    %473 = arith.mulf %471, %472 : vector<8x8x128xf32>
    %cst_137 = arith.constant dense<0.000000e+00> : vector<8x8xf32>
    %474 = vector.multi_reduction <add>, %473, %cst_137 [2] : vector<8x8x128xf32> to vector<8x8xf32>
    %475 = vector.broadcast %12 : vector<1x1xf32> to vector<8x8xf32>
    %476 = arith.addf %474, %475 : vector<8x8xf32>
    %cst_138 = arith.constant 0.000000e+00 : f32
    %477 = vector.broadcast %cst_138 : f32 to vector<8x8xf32>
    %478 = arith.maximumf %476, %477 : vector<8x8xf32>
    %cst_139 = arith.constant dense<0xFF800000> : vector<8xf32>
    %479 = vector.multi_reduction <maximumf>, %478, %cst_139 [1] : vector<8x8xf32> to vector<8xf32>
    %480 = vector.shape_cast %479 : vector<8xf32> to vector<8x1xf32>
    %481 = vector.broadcast %480 : vector<8x1xf32> to vector<8x8xf32>
    %482 = arith.subf %478, %481 : vector<8x8xf32>
    %483 = math.exp %482 : vector<8x8xf32>
    %cst_140 = arith.constant dense<0.000000e+00> : vector<8xf32>
    %484 = vector.multi_reduction <add>, %483, %cst_140 [1] : vector<8x8xf32> to vector<8xf32>
    %485 = vector.shape_cast %484 : vector<8xf32> to vector<8x1xf32>
    %486 = vector.broadcast %485 : vector<8x1xf32> to vector<8x8xf32>
    %487 = arith.divf %483, %486 : vector<8x8xf32>
    %488 = vector.shape_cast %487 : vector<8x8xf32> to vector<8x8x1xf32>
    %489 = vector.broadcast %488 : vector<8x8x1xf32> to vector<8x8x128xf32>
    %490 = arith.mulf %489, %0 : vector<8x8x128xf32>
    %cst_141 = arith.constant dense<0.000000e+00> : vector<8x128xf32>
    %491 = vector.multi_reduction <add>, %490, %cst_141 [1] : vector<8x8x128xf32> to vector<8x128xf32>
    %cst_142 = arith.constant dense<0.000000e+00> : vector<8x384xf32>
    %492 = tpu.matmul %467, %13, %cst_142 {dimension_numbers = #tpu.dot_dimension_numbers<[1], [0], [0], [1], [0, 0, 1, 1], [], []>} : vector<8x128xf32>, vector<128x384xf32>, vector<8x384xf32> -> vector<8x384xf32>
    %cst_143 = arith.constant dense<0.000000e+00> : vector<8x384xf32>
    %493 = tpu.matmul %491, %14, %cst_143 {dimension_numbers = #tpu.dot_dimension_numbers<[1], [0], [0], [1], [0, 0, 1, 1], [], []>} : vector<8x128xf32>, vector<128x384xf32>, vector<8x384xf32> -> vector<8x384xf32>
    %494 = arith.addf %492, %493 : vector<8x384xf32>
    %495 = vector.broadcast %16 : vector<1x384xf32> to vector<8x384xf32>
    %496 = arith.addf %494, %495 : vector<8x384xf32>
    %cst_144 = arith.constant dense<0.000000e+00> : vector<8x384xf32>
    %497 = tpu.matmul %437, %15, %cst_144 {dimension_numbers = #tpu.dot_dimension_numbers<[1], [0], [0], [1], [0, 0, 1, 1], [], []>} : vector<8x128xf32>, vector<128x384xf32>, vector<8x384xf32> -> vector<8x384xf32>
    %498 = vector.extract_strided_slice %496 {offsets = [0, 0], sizes = [8, 128], strides = [1, 1]} : vector<8x384xf32> to vector<8x128xf32>
    %499 = vector.extract_strided_slice %497 {offsets = [0, 0], sizes = [8, 128], strides = [1, 1]} : vector<8x384xf32> to vector<8x128xf32>
    %500 = arith.addf %498, %499 : vector<8x128xf32>
    %501 = arith.negf %500 : vector<8x128xf32>
    %502 = math.exp %501 : vector<8x128xf32>
    %cst_145 = arith.constant 1.000000e+00 : f32
    %503 = vector.broadcast %cst_145 : f32 to vector<8x128xf32>
    %504 = arith.addf %503, %502 : vector<8x128xf32>
    %505 = arith.divf %503, %504 : vector<8x128xf32>
    %506 = vector.extract_strided_slice %496 {offsets = [0, 128], sizes = [8, 128], strides = [1, 1]} : vector<8x384xf32> to vector<8x128xf32>
    %507 = vector.extract_strided_slice %497 {offsets = [0, 128], sizes = [8, 128], strides = [1, 1]} : vector<8x384xf32> to vector<8x128xf32>
    %508 = arith.addf %506, %507 : vector<8x128xf32>
    %509 = arith.negf %508 : vector<8x128xf32>
    %510 = math.exp %509 : vector<8x128xf32>
    %cst_146 = arith.constant 1.000000e+00 : f32
    %511 = vector.broadcast %cst_146 : f32 to vector<8x128xf32>
    %512 = arith.addf %511, %510 : vector<8x128xf32>
    %513 = arith.divf %511, %512 : vector<8x128xf32>
    %514 = vector.extract_strided_slice %496 {offsets = [0, 256], sizes = [8, 128], strides = [1, 1]} : vector<8x384xf32> to vector<8x128xf32>
    %515 = vector.extract_strided_slice %497 {offsets = [0, 256], sizes = [8, 128], strides = [1, 1]} : vector<8x384xf32> to vector<8x128xf32>
    %516 = vector.broadcast %17 : vector<1x128xf32> to vector<8x128xf32>
    %517 = arith.addf %515, %516 : vector<8x128xf32>
    %518 = arith.mulf %505, %517 : vector<8x128xf32>
    %519 = arith.addf %514, %518 : vector<8x128xf32>
    %520 = math.tanh %519 : vector<8x128xf32>
    %cst_147 = arith.constant 1.000000e+00 : f32
    %521 = vector.broadcast %cst_147 : f32 to vector<8x128xf32>
    %522 = arith.subf %521, %513 : vector<8x128xf32>
    %523 = arith.mulf %522, %520 : vector<8x128xf32>
    %524 = arith.mulf %513, %437 : vector<8x128xf32>
    %525 = arith.addf %523, %524 : vector<8x128xf32>
    %cst_148 = arith.constant dense<0.000000e+00> : vector<8x128xf32>
    %526 = tpu.matmul %525, %18, %cst_148 {dimension_numbers = #tpu.dot_dimension_numbers<[1], [0], [0], [1], [0, 0, 1, 1], [], []>} : vector<8x128xf32>, vector<128x128xf32>, vector<8x128xf32> -> vector<8x128xf32>
    %527 = vector.broadcast %19 : vector<1x128xf32> to vector<8x128xf32>
    %528 = arith.addf %526, %527 : vector<8x128xf32>
    %cst_149 = arith.constant dense<0xFF800000> : vector<8xf32>
    %529 = vector.multi_reduction <maximumf>, %528, %cst_149 [1] : vector<8x128xf32> to vector<8xf32>
    %530 = vector.shape_cast %529 : vector<8xf32> to vector<8x1xf32>
    %531 = vector.broadcast %530 : vector<8x1xf32> to vector<8x128xf32>
    %532 = arith.subf %528, %531 : vector<8x128xf32>
    %533 = math.exp %532 : vector<8x128xf32>
    %cst_150 = arith.constant dense<0.000000e+00> : vector<8xf32>
    %534 = vector.multi_reduction <add>, %533, %cst_150 [1] : vector<8x128xf32> to vector<8xf32>
    %535 = vector.shape_cast %534 : vector<8xf32> to vector<8x1xf32>
    %536 = math.log %535 : vector<8x1xf32>
    %537 = vector.broadcast %536 : vector<8x1xf32> to vector<8x128xf32>
    %538 = arith.subf %532, %537 : vector<8x128xf32>
    %539 = arith.index_cast %c5_i32 : i32 to index
    %c0_151 = arith.constant 0 : index
    %c0_152 = arith.constant 0 : index
    %540 = vector.load %arg14[%539, %c0_151, %c0_152] : memref<6x8x128xf32, #tpu.memory_space<vmem>>, vector<1x8x128xf32>
    %541 = vector.shape_cast %540 : vector<1x8x128xf32> to vector<8x128xf32>
    %542 = vector.shape_cast %538 : vector<8x128xf32> to vector<1x8x128xf32>
    tpu.vector_store %arg14[%539, %c0_151, %c0_152], %542 {strides = array<i32>} : memref<6x8x128xf32, #tpu.memory_space<vmem>>, vector<1x8x128xf32>,
    %cst_153 = arith.constant dense<0xFF800000> : vector<8xf32>
    %543 = vector.multi_reduction <maximumf>, %538, %cst_153 [1] : vector<8x128xf32> to vector<8xf32>
    %544 = vector.shape_cast %543 : vector<8xf32> to vector<8x1xf32>
    %545 = vector.broadcast %544 : vector<8x1xf32> to vector<8x128xf32>
    %546 = arith.cmpf oeq, %538, %545 : vector<8x128xf32>
    %cst_154 = arith.constant 1.280000e+02 : f32
    %547 = vector.broadcast %cst_154 : f32 to vector<8x128xf32>
    %548 = arith.select %546, %21, %547 : vector<8x128xi1>, vector<8x128xf32>
    %cst_155 = arith.constant dense<0x7F800000> : vector<8xf32>
    %549 = vector.multi_reduction <minimumf>, %548, %cst_155 [1] : vector<8x128xf32> to vector<8xf32>
    %550 = vector.shape_cast %549 : vector<8xf32> to vector<8x1xf32>
    %551 = vector.broadcast %550 : vector<8x1xf32> to vector<8x128xf32>
    %552 = arith.cmpf oeq, %21, %551 : vector<8x128xf32>
    %553 = arith.extui %552 : vector<8x128xi1> to vector<8x128xi32>
    %554 = arith.sitofp %553 : vector<8x128xi32> to vector<8x128xf32>
    %c6_i32 = arith.constant 6 : i32
    %c0_156 = arith.constant 0 : index
    %c0_157 = arith.constant 0 : index
    %555 = vector.load %arg15[%c0_156, %c0_157] : memref<8x128xf32, #tpu.memory_space<vmem>>, vector<8x128xf32>
    tpu.vector_store %arg15[%c0_156, %c0_157], %525 {strides = array<i32>} : memref<8x128xf32, #tpu.memory_space<vmem>>, vector<8x128xf32>,
    return
  }
}

</mosaic_0001>

<bundles_post_ra>
// kernel: tpu_custom_call.1
= control target key start
LH: loop header
LB: loop body
LE: loop exit
PB: predicated region body
PF: predicated region fallthrough
CT: control target
= control target key end

     0   :  { %s14227_s0 = inlined_call_operand.hbm [shape: f32[8,8,128], index: 0, kind: input, shape index: {}]   ;;  %s14228_s1 = inlined_call_operand.hbm [shape: f32[128,128], index: 1, kind: input, shape index: {}]   ;;  %s14229_s2 = inlined_call_operand.hbm [shape: f32[128,128], index: 2, kind: input, shape index: {}]   ;;  %s14230_s3 = inlined_call_operand.hbm [shape: f32[128,128], index: 3, kind: input, shape index: {}]   ;;  %s14231_s4 = inlined_call_operand.vmem [shape: f32[1,128], index: 4, kind: input, shape index: {}]   ;;  %s14232_s5 = inlined_call_operand.vmem [shape: f32[1,128], index: 5, kind: input, shape index: {}]   ;;  %s14233_s6 = inlined_call_operand.<no memory space> [shape: f32[1,1], index: 6, kind: input, shape index: {}]   ;;  %s14234_s7 = inlined_call_operand.hbm [shape: f32[128,384], index: 7, kind: input, shape index: {}]   ;;  %s14235_s8 = inlined_call_operand.hbm [shape: f32[128,384], index: 8, kind: input, shape index: {}]   ;;  %s14236_s9 = inlined_call_operand.hbm [shape: f32[128,384], index: 9, kind: input, shape index: {}]   ;;  %s14237_s10 = inlined_call_operand.vmem [shape: f32[1,384], index: 10, kind: input, shape index: {}]   ;;  %s14238_s11 = inlined_call_operand.vmem [shape: f32[1,128], index: 11, kind: input, shape index: {}]   ;;  %s14239_s12 = inlined_call_operand.hbm [shape: f32[128,128], index: 12, kind: input, shape index: {}]   ;;  %s14240_s13 = inlined_call_operand.vmem [shape: f32[1,128], index: 13, kind: input, shape index: {}]   ;;  %s14241_s14 = inlined_call_operand.hbm [shape: f32[6,8,128], index: 14, kind: output, shape index: {0}]   ;;  %s14242_s15 = inlined_call_operand.hbm [shape: f32[8,128], index: 15, kind: output, shape index: {1}]  }
   0x1   :  { %v21_v0 = vstv %s14233_s6 }
   0x2   :  { %22 = vst [vmem:[#allocation2] sm:$0x1] %v21_v0 }
   0x3   :  { %23 = vsyncpa [#allocation4], 0 }
   0x4   :  { %24 = vsyncpa [#allocation7], 0 }
   0x5   :  { %25 = vsyncpa [#allocation10], 0 }
   0x6   :  { %26 = vsyncpa [#allocation13], 0 }
   0x7   :  { %27 = vsyncpa [#allocation16], 0 }
   0x8   :  { %28 = vsyncpa [#allocation5], 0 }
   0x9   :  { %29 = vsyncpa [#allocation19], 0  ;;  %s11681_s20 = smov [#allocation6]   ;;  %s11682_s22 = smov [#allocation9]  }
   0xa   :  { %s47_s21 = sshll.u32 %s11681_s20, 4  ;;  %s71_s23 = sshll.u32 %s11682_s22, 4  ;;  %s48_s21 = int_to_ptr.vmem [resolvable:$true] %s47_s21  ;;  %s11784_s23 = int_to_ptr.vmem [resolvable:$true] %s71_s23 }
   0xb   :  { %s11447_s26 = scalar_lea.hbm %s14228_s1, 2048 }
   0xc   :  { %p11448_p0 = scmp.ne.s32.totalorder %s14228_s1, %s11447_s26  ;;  %p11451_p1 = scmp.lt.u32.totalorder %s11447_s26, %s14228_s1 }
   0xe   :  { %p11453_p2 = pnand %p11451_p1, %p11448_p0 }
  0x10   :  { %11456 = shalt.err (!%p11453_p2)
}
  0x11   :  { %s11457_s30 = scalar_lea.vmem %s48_s21, 2048  ;;  %p11462_p4 = scmp.lt.s32.totalorder %s48_s21, %s48_s21 }
  0x12   :  { %p11458_p3 = scmp.ne.s32.totalorder %s48_s21, %s11457_s30  ;;  %p11463_p5 = scmp.lt.s32.totalorder %s11457_s30, %s11457_s30 }
  0x14   :  { %p11464_p6 = por %p11463_p5, %p11462_p4 }
  0x16   :  { %p11465_p7 = pnand %p11464_p6, %p11458_p3 }
  0x18   :  { %11468 = shalt.err (!%p11465_p7)
}
  0x19   :  { %s11683_s16 = smov 128   ;;  %s11684_s17 = smov 8  }
  0x1a   :  { %53 = dma.hbm_to_vmem [thread:$0]  %s14228_s1, 2048, %s48_s21, [#allocation7], %s11683_s16, %s11683_s16, %s11684_s17  }
  0x1b   :  { %s11469_s24 = scalar_lea.hbm %s14230_s3, 2048 }
  0x1c   :  { %p11470_p8 = scmp.ne.s32.totalorder %s14230_s3, %s11469_s24  ;;  %p11473_p9 = scmp.lt.u32.totalorder %s11469_s24, %s14230_s3 }
  0x1e   :  { %p11475_p10 = pnand %p11473_p9, %p11470_p8 }
  0x20   :  { %11478 = shalt.err (!%p11475_p10)
}
  0x21   :  { %s11479_s28 = scalar_lea.vmem %s11784_s23, 2048  ;;  %p11484_p12 = scmp.lt.s32.totalorder %s11784_s23, %s11784_s23 }
  0x22   :  { %p11480_p11 = scmp.ne.s32.totalorder %s11784_s23, %s11479_s28  ;;  %p11485_p13 = scmp.lt.s32.totalorder %s11479_s28, %s11479_s28 }
  0x24   :  { %p11486_p0 = por %p11485_p13, %p11484_p12 }
  0x26   :  { %p11487_p1 = pnand %p11486_p0, %p11480_p11 }
  0x28   :  { %11490 = shalt.err (!%p11487_p1)
}
  0x29   :  { %77 = dma.hbm_to_vmem [thread:$0]  %s14230_s3, 2048, %s11784_s23, [#allocation10], %s11683_s16, %s11683_s16, %s11684_s17  }
  0x2a   :  { %s11685_s29 = smov [#allocation12]   ;;  %s11686_s18 = smov [#allocation3]  }
  0x2b   :  { %s101_s30 = sshll.u32 %s11685_s29, 4  ;;  %s35_s19 = sshll.u32 %s11686_s18, 4  ;;  %s102_s30 = int_to_ptr.vmem [resolvable:$true] %s101_s30  ;;  %s11821_s19 = int_to_ptr.vmem [resolvable:$true] %s35_s19 }
  0x2c   :  { %s11491_s24 = scalar_lea.hbm %s14235_s8, 6144 }
  0x2d   :  { %p11492_p2 = scmp.ne.s32.totalorder %s14235_s8, %s11491_s24  ;;  %p11495_p3 = scmp.lt.u32.totalorder %s11491_s24, %s14235_s8 }
  0x2f   :  { %p11497_p4 = pnand %p11495_p3, %p11492_p2 }
  0x31   :  { %11500 = shalt.err (!%p11497_p4)
}
  0x32   :  { %s11501_s3 = scalar_lea.vmem %s102_s30, 6144  ;;  %p11506_p6 = scmp.lt.s32.totalorder %s102_s30, %s102_s30 }
  0x33   :  { %p11502_p5 = scmp.ne.s32.totalorder %s102_s30, %s11501_s3  ;;  %p11507_p7 = scmp.lt.s32.totalorder %s11501_s3, %s11501_s3 }
  0x35   :  { %p11508_p8 = por %p11507_p7, %p11506_p6 }
  0x37   :  { %p11509_p9 = pnand %p11508_p8, %p11502_p5 }
  0x39   :  { %11512 = shalt.err (!%p11509_p9)
}
  0x3a   :  { %s11687_s23 = smov 384   ;;  %s11688_s28 = smov 24  }
  0x3b   :  { %107 = dma.hbm_to_vmem [thread:$0]  %s14235_s8, 6144, %s102_s30, [#allocation13], %s11687_s23, %s11687_s23, %s11688_s28  }
  0x3c   :  { %s11513_s20 = scalar_lea.hbm %s14227_s0, 1024 }
  0x3d   :  { %p11514_p10 = scmp.ne.s32.totalorder %s14227_s0, %s11513_s20  ;;  %p11517_p11 = scmp.lt.u32.totalorder %s11513_s20, %s14227_s0 }
  0x3f   :  { %p11519_p12 = pnand %p11517_p11, %p11514_p10 }
  0x41   :  { %11522 = shalt.err (!%p11519_p12)
}
  0x42   :  { %s11523_s6 = scalar_lea.vmem %s11821_s19, 1024  ;;  %p11528_p0 = scmp.lt.s32.totalorder %s11821_s19, %s11821_s19 }
  0x43   :  { %p11524_p13 = scmp.ne.s32.totalorder %s11821_s19, %s11523_s6  ;;  %p11529_p1 = scmp.lt.s32.totalorder %s11523_s6, %s11523_s6 }
  0x45   :  { %p11530_p2 = por %p11529_p1, %p11528_p0 }
  0x47   :  { %p11531_p3 = pnand %p11530_p2, %p11524_p13 }
  0x49   :  { %11534 = shalt.err (!%p11531_p3)
}
  0x4a   :  { %41 = dma.hbm_to_vmem [thread:$0]  %s14227_s0, 1024, %s11821_s19, [#allocation4], %s11683_s16, %s11683_s16, %s11684_s17  }
  0x4b   :  { %s11689_s27 = smov [#allocation8]   ;;  %s11690_s1 = smov [#allocation11]  }
  0x4c   :  { %s59_s3 = sshll.u32 %s11689_s27, 4  ;;  %s89_s21 = sshll.u32 %s11690_s1, 4  ;;  %s60_s3 = int_to_ptr.vmem [resolvable:$true] %s59_s3  ;;  %s11858_s21 = int_to_ptr.vmem [resolvable:$true] %s89_s21 }
  0x4d   :  { %s11535_s20 = scalar_lea.hbm %s14229_s2, 2048 }
  0x4e   :  { %p11536_p4 = scmp.ne.s32.totalorder %s14229_s2, %s11535_s20  ;;  %p11539_p5 = scmp.lt.u32.totalorder %s11535_s20, %s14229_s2 }
  0x50   :  { %p11541_p6 = pnand %p11539_p5, %p11536_p4 }
  0x52   :  { %11544 = shalt.err (!%p11541_p6)
}
  0x53   :  { %s11545_s0 = scalar_lea.vmem %s60_s3, 2048  ;;  %p11550_p8 = scmp.lt.s32.totalorder %s60_s3, %s60_s3 }
  0x54   :  { %p11546_p7 = scmp.ne.s32.totalorder %s60_s3, %s11545_s0  ;;  %p11551_p9 = scmp.lt.s32.totalorder %s11545_s0, %s11545_s0 }
  0x56   :  { %p11552_p10 = por %p11551_p9, %p11550_p8 }
  0x58   :  { %p11553_p11 = pnand %p11552_p10, %p11546_p7 }
  0x5a   :  { %11556 = shalt.err (!%p11553_p11)
}
  0x5b   :  { %65 = dma.hbm_to_vmem [thread:$0]  %s14229_s2, 2048, %s60_s3, [#allocation7], %s11683_s16, %s11683_s16, %s11684_s17  }
  0x5c   :  { %s11557_s27 = scalar_lea.hbm %s14234_s7, 6144 }
  0x5d   :  { %p11558_p12 = scmp.ne.s32.totalorder %s14234_s7, %s11557_s27  ;;  %p11561_p13 = scmp.lt.u32.totalorder %s11557_s27, %s14234_s7 }
  0x5f   :  { %p11563_p0 = pnand %p11561_p13, %p11558_p12 }
  0x61   :  { %11566 = shalt.err (!%p11563_p0)
}
  0x62   :  { %s11567_s22 = scalar_lea.vmem %s11858_s21, 6144  ;;  %p11572_p2 = scmp.lt.s32.totalorder %s11858_s21, %s11858_s21 }
  0x63   :  { %p11568_p1 = scmp.ne.s32.totalorder %s11858_s21, %s11567_s22  ;;  %p11573_p3 = scmp.lt.s32.totalorder %s11567_s22, %s11567_s22 }
  0x65   :  { %p11574_p4 = por %p11573_p3, %p11572_p2 }
  0x67   :  { %p11575_p5 = pnand %p11574_p4, %p11568_p1 }
  0x69   :  { %11578 = shalt.err (!%p11575_p5)
}
  0x6a   :  { %95 = dma.hbm_to_vmem [thread:$0]  %s14234_s7, 6144, %s11858_s21, [#allocation10], %s11687_s23, %s11687_s23, %s11688_s28  }
  0x6b   :  { %s11691_s24 = smov [#allocation14]   ;;  %s11692_s26 = smov [#allocation15]  }
  0x6c   :  { %s113_s25 = sshll.u32 %s11691_s24, 4  ;;  %s129_s0 = sshll.u32 %s11692_s26, 4  ;;  %s114_s25 = int_to_ptr.vmem [resolvable:$true] %s113_s25  ;;  %s11895_s0 = int_to_ptr.vmem [resolvable:$true] %s129_s0 }
  0x6d   :  { %s11579_s8 = scalar_lea.hbm %s14236_s9, 6144 }
  0x6e   :  { %p11580_p6 = scmp.ne.s32.totalorder %s14236_s9, %s11579_s8  ;;  %p11583_p7 = scmp.lt.u32.totalorder %s11579_s8, %s14236_s9 }
  0x70   :  { %p11585_p8 = pnand %p11583_p7, %p11580_p6 }
  0x72   :  { %11588 = shalt.err (!%p11585_p8)
}
  0x73   :  { %s11589_s7 = scalar_lea.vmem %s114_s25, 6144  ;;  %p11594_p10 = scmp.lt.s32.totalorder %s114_s25, %s114_s25 }
  0x74   :  { %p11590_p9 = scmp.ne.s32.totalorder %s114_s25, %s11589_s7  ;;  %p11595_p11 = scmp.lt.s32.totalorder %s11589_s7, %s11589_s7 }
  0x76   :  { %p11596_p12 = por %p11595_p11, %p11594_p10 }
  0x78   :  { %p11597_p13 = pnand %p11596_p12, %p11590_p9 }
  0x7a   :  { %11600 = shalt.err (!%p11597_p13)
}
  0x7b   :  { %119 = dma.hbm_to_vmem [thread:$0]  %s14236_s9, 6144, %s114_s25, [#allocation13], %s11687_s23, %s11687_s23, %s11688_s28  }
  0x7c   :  { %s11601_s2 = scalar_lea.hbm %s14239_s12, 2048 }
  0x7d   :  { %p11602_p0 = scmp.ne.s32.totalorder %s14239_s12, %s11601_s2  ;;  %p11605_p1 = scmp.lt.u32.totalorder %s11601_s2, %s14239_s12 }
  0x7f   :  { %p11607_p2 = pnand %p11605_p1, %p11602_p0 }
  0x81   :  { %11610 = shalt.err (!%p11607_p2)
}
  0x82   :  { %s11611_s6 = scalar_lea.vmem %s11895_s0, 2048  ;;  %p11616_p4 = scmp.lt.s32.totalorder %s11895_s0, %s11895_s0 }
  0x83   :  { %p11612_p3 = scmp.ne.s32.totalorder %s11895_s0, %s11611_s6  ;;  %p11617_p5 = scmp.lt.s32.totalorder %s11611_s6, %s11611_s6 }
  0x85   :  { %p11618_p6 = por %p11617_p5, %p11616_p4 }
  0x87   :  { %p11619_p7 = pnand %p11618_p6, %p11612_p3 }
  0x89   :  { %11622 = shalt.err (!%p11619_p7)
}
  0x8a   :  { %135 = dma.hbm_to_vmem [thread:$0]  %s14239_s12, 2048, %s11895_s0, [#allocation16], %s11683_s16, %s11683_s16, %s11684_s17  }
  0x8b   :  { %11667 = dma.done.wait [#allocation4], 1024  }
  0x8c   :  { %11668 = vsyncadd [#allocation4], 4294966272 }
  0x8d   :  { %11669 = dma.done.wait [#allocation7], 4096  }
  0x8e   :  { %11670 = vsyncadd [#allocation7], 4294963200 }
  0x8f   :  { %11671 = dma.done.wait [#allocation10], 8192  }
  0x90   :  { %11672 = vsyncadd [#allocation10], 4294959104 }
  0x91   :  { %11673 = dma.done.wait [#allocation13], 12288  }
  0x92   :  { %11674 = vsyncadd [#allocation13], 4294955008 }
  0x93   :  { %11675 = dma.done.wait [#allocation16], 2048  }
  0x94   :  { %11676 = vsyncadd [#allocation16], 4294965248  ;;  %v14245_v1 = vmov 0.0|0.0   ;;  %vm11694_vm0 = vmmov 0   ;;  %v14243_v2 = vmov 0.0   ;;  %v170_v3 = vld [vmem:[#allocation8] sm:$0xff] }
  0x95   :  { %9641 = vmatprep.subr.bf16.mxu1 %v14245_v1  ;;  %8381 = vmatprep.mubr.msk.f32.mxu1 %vm11694_vm0, %v14243_v2  ;;  %v171_v4 = vld [vmem:[#allocation8 + $0x8] sm:$0xff]  ;;  %v172_v5 = vld [vmem:[#allocation8 + $0x10] sm:$0xff]  ;;  %v173_v7 = vld [vmem:[#allocation8 + $0x18] sm:$0xff]  ;;  %v11696_v59 = vmov 0   ;;  %vm834_vm1 = vcmask 1041409   ;;  %vm836_vm2 = vcmask 1042434  }
  0x96   :  { %v9609_v6 = vpack.c.bf16 %v171_v4, %v170_v3  ;;  %v9613_v8 = vpack.c.bf16 %v173_v7, %v172_v5  ;;  %v174_v9 = vld [vmem:[#allocation8 + $0x20] sm:$0xff]  ;;  %v175_v10 = vld [vmem:[#allocation8 + $0x28] sm:$0xff]  ;;  %v176_v13 = vld [vmem:[#allocation8 + $0x30] sm:$0xff]  ;;  %11137 = vset.pattern.permute.xlu0 %v11696_v59  ;;  %11138 = vset.pattern.permute.xlu1 %v11696_v59  ;;  %v11697_v7 = vmov 1966171168   ;;  %vm838_vm3 = vcmask 1043459  }
  0x97   :  { %v9617_v11 = vpack.c.bf16 %v175_v10, %v174_v9  ;;  %v11935_v12 = vld [vmem:[#allocation3] sm:$0xff]  ;;  %v177_v14 = vld [vmem:[#allocation8 + $0x38] sm:$0xff]  ;;  %v179_v17 = vld [vmem:[#allocation8 + $0x48] sm:$0xff]  ;;  %vm840_vm4 = vcmask 1044484   ;;  %vm842_vm5 = vcmask 1045509   ;;  %vm844_vm6 = vcmask 1046534  }
  0x98   :  { %9610 = vmatprep.subr.bf16.mxu0 %v9609_v6  ;;  %8337 = vmatprep.mubr.f32.mxu0 %v11935_v12  ;;  %v9621_v15 = vpack.c.bf16 %v177_v14, %v176_v13  ;;  %v178_v16 = vld [vmem:[#allocation8 + $0x40] sm:$0xff]  ;;  %v180_v19 = vld [vmem:[#allocation8 + $0x50] sm:$0xff]  ;;  %v181_v20 = vld [vmem:[#allocation8 + $0x58] sm:$0xff]  ;;  %vm846_vm7 = vcmask 1047559   ;;  %vm849_vm8 = vcmask 64512  }
  0x99   :  { %9612 = vmatpush3.bf16.msra.mxu0 %v9609_v6  ;;  %v9625_v18 = vpack.c.bf16 %v179_v17, %v178_v16  ;;  %v9629_v21 = vpack.c.bf16 %v181_v20, %v180_v19  ;;  %v182_v22 = vld [vmem:[#allocation8 + $0x60] sm:$0xff]  ;;  %v183_v23 = vld [vmem:[#allocation8 + $0x68] sm:$0xff]  ;;  %v184_v25 = vld [vmem:[#allocation8 + $0x70] sm:$0xff]  ;;  %v495_v6 = vlaneseq }
  0x9a   :  { %9614 = vmatprep.subr.bf16.mxu0 %v9613_v8  ;;  %v9633_v24 = vpack.c.bf16 %v183_v23, %v182_v22  ;;  %v185_v26 = vld [vmem:[#allocation8 + $0x78] sm:$0xff]  ;;  %v314_v28 = vld [vmem:[#allocation9] sm:$0xff]  ;;  %v315_v29 = vld [vmem:[#allocation9 + $0x8] sm:$0xff] }
  0x9b   :  { %v9637_v27 = vpack.c.bf16 %v185_v26, %v184_v25  ;;  %v11938_v30 = vld [vmem:[#allocation3 + $0x8] sm:$0xff]  ;;  %v11940_v31 = vpack.c.bf16 %v315_v29, %v314_v28  ;;  %v316_v32 = vld [vmem:[#allocation9 + $0x10] sm:$0xff]  ;;  %v317_v33 = vld [vmem:[#allocation9 + $0x18] sm:$0xff]  ;;  %v11998_v10 = vshrl.u32 %v495_v6, 7 }
  0x9c   :  { %v11943_v34 = vld [vmem:[#allocation3 + $0x10] sm:$0xff]  ;;  %v11947_v35 = vpack.c.bf16 %v317_v33, %v316_v32  ;;  %v11950_v36 = vld [vmem:[#allocation3 + $0x18] sm:$0xff]  ;;  %v318_v37 = vld [vmem:[#allocation9 + $0x20] sm:$0xff] }
  0x9d   :  { %9616 = vmatpush3.bf16.msra.mxu0 %v9613_v8  ;;  %14527 = vst [vmem:[#allocation27_spill] sm:$0xff] %v11940_v31  ;;  %v319_v38 = vld [vmem:[#allocation9 + $0x28] sm:$0xff]  ;;  %v11953_v39 = vld [vmem:[#allocation3 + $0x20] sm:$0xff]  ;;  %v320_v42 = vld [vmem:[#allocation9 + $0x30] sm:$0xff]  ;;  %v644_v8 = vunpack.c.l.s4 %v11697_v7  ;;  %v12005_v17 = vsub.s32 0, %v11998_v10 }
  0x9e   :  { %9618 = vmatprep.subr.bf16.mxu0 %v9617_v11  ;;  %14528 = vst [vmem:[#allocation28_spill] sm:$0xff] %v11947_v35  ;;  %v11957_v40 = vpack.c.bf16 %v319_v38, %v318_v37  ;;  %v11960_v41 = vld [vmem:[#allocation3 + $0x28] sm:$0xff]  ;;  %v321_v43 = vld [vmem:[#allocation9 + $0x38] sm:$0xff]  ;;  %v11963_v44 = vld [vmem:[#allocation3 + $0x30] sm:$0xff] }
  0x9f   :  { %v11967_v45 = vpack.c.bf16 %v321_v43, %v320_v42  ;;  %v11970_v46 = vld [vmem:[#allocation3 + $0x38] sm:$0xff]  ;;  %v322_v47 = vld [vmem:[#allocation9 + $0x40] sm:$0xff]  ;;  %v323_v48 = vld [vmem:[#allocation9 + $0x48] sm:$0xff]  ;;  %v645_v9 = vunpack.c.0.s8 %v644_v8 }
  0xa0   :  { %14529 = vst [vmem:[#allocation29_spill] sm:$0xff] %v11957_v40  ;;  %v11975_v49 = vpack.c.bf16 %v323_v48, %v322_v47  ;;  %v324_v50 = vld [vmem:[#allocation9 + $0x50] sm:$0xff]  ;;  %v325_v51 = vld [vmem:[#allocation9 + $0x58] sm:$0xff]  ;;  %v326_v53 = vld [vmem:[#allocation9 + $0x60] sm:$0xff] }
  0xa1   :  { %9620 = vmatpush3.bf16.msra.mxu0 %v9617_v11  ;;  %14530 = vst [vmem:[#allocation30_spill] sm:$0xff] %v11967_v45  ;;  %v11981_v52 = vpack.c.bf16 %v325_v51, %v324_v50  ;;  %v327_v54 = vld [vmem:[#allocation9 + $0x68] sm:$0xff]  ;;  %v328_v56 = vld [vmem:[#allocation9 + $0x70] sm:$0xff]  ;;  %v329_v57 = vld [vmem:[#allocation9 + $0x78] sm:$0xff]  ;;  %v12001_v11 = vsub.s32 %v645_v9, %v11998_v10 }
  0xa2   :  { %9622 = vmatprep.subr.bf16.mxu0 %v9621_v15  ;;  %14531 = vst [vmem:[#allocation31_spill] sm:$0xff] %v11975_v49  ;;  %v11985_v55 = vpack.c.bf16 %v327_v54, %v326_v53  ;;  %v11989_v58 = vpack.c.bf16 %v329_v57, %v328_v56  ;;  %v7643_v29 = vld [vmem:[%s14232_s5] ss:$0 sm:$0xff] }
  0xa3   :  { %14532 = vst [vmem:[#allocation32_spill] sm:$0xff] %v11981_v52  ;;  %14535 = vst [vmem:[#allocation35_spill] sm:$0xff] %v12001_v11 }
  0xa4   :  { %14533 = vst [vmem:[#allocation33_spill] sm:$0xff] %v11985_v55  ;;  %14534 = vst [vmem:[#allocation34_spill] sm:$0xff] %v11989_v58 }
  0xa5   :  { %9624 = vmatpush3.bf16.msra.mxu0 %v9621_v15 }
  0xa6   :  { %9626 = vmatprep.subr.bf16.mxu0 %v9625_v18 }
  0xa9   :  { %9628 = vmatpush3.bf16.msra.mxu0 %v9625_v18  ;;  %v7640_v18 = vld [vmem:[%s14231_s4] ss:$0 sm:$0xff] }
  0xaa   :  { %9630 = vmatprep.subr.bf16.mxu0 %v9629_v21 }
  0xad   :  { %9632 = vmatpush3.bf16.msra.mxu0 %v9629_v21 }
  0xae   :  { %9634 = vmatprep.subr.bf16.mxu0 %v9633_v24 }
  0xb1   :  { %9636 = vmatpush3.bf16.msra.mxu0 %v9633_v24 }
  0xb2   :  { %9638 = vmatprep.subr.bf16.mxu0 %v9637_v27 }
  0xb5   :  { %9640 = vmatpush3.bf16.msra.mxu0 %v9637_v27 }
  0xb6   :  { %9665 = vmatprep.subr.bf16.mxu0 %v14245_v1 }
  0xb8   :  { %8338 = vmatmul.mubr.f32.vlgmr.msra.gmra.mrb[0].mxu0 %v11938_v30 }
  0xb9   :  { %9667 = vmatpush3.bf16.msra.mxu0 %v11940_v31  ;;  %8340 = vmatprep.mubr.f32.mxu0 %v11943_v34 }
  0xba   :  { %9668 = vmatprep.subr.bf16.mxu0 %v14245_v1 }
  0xbc   :  { %8341 = vmatmul.mubr.f32.gmra.mrb[2].mxu0 %v11950_v36 }
  0xbd   :  { %9670 = vmatpush3.bf16.msra.mxu0 %v11947_v35  ;;  %8343 = vmatprep.mubr.f32.mxu0 %v11953_v39 }
  0xbe   :  { %9671 = vmatprep.subr.bf16.mxu0 %v14245_v1 }
  0xc0   :  { %8344 = vmatmul.mubr.f32.gmra.mrb[4].mxu0 %v11960_v41 }
  0xc1   :  { %9673 = vmatpush3.bf16.msra.mxu0 %v11957_v40  ;;  %8346 = vmatprep.mubr.f32.mxu0 %v11963_v44 }
  0xc2   :  { %9674 = vmatprep.subr.bf16.mxu0 %v14245_v1 }
  0xc4   :  { %8347 = vmatmul.mubr.f32.gmra.mrb[6].mxu0 %v11970_v46 }
  0xc5   :  { %9676 = vmatpush3.bf16.msra.mxu0 %v11967_v45  ;;  %8416 = vmatprep.mubr.msk.f32.mxu0 %vm11694_vm0, %v14243_v2 }
  0xc6   :  { %9677 = vmatprep.subr.bf16.mxu0 %v14245_v1 }
  0xc9   :  { %9679 = vmatpush3.bf16.msra.mxu0 %v11975_v49 }
  0xca   :  { %9680 = vmatprep.subr.bf16.mxu0 %v14245_v1 }
  0xcd   :  { %9682 = vmatpush3.bf16.msra.mxu0 %v11981_v52 }
  0xce   :  { %9683 = vmatprep.subr.bf16.mxu0 %v14245_v1 }
  0xd1   :  { %9685 = vmatpush3.bf16.msra.mxu0 %v11985_v55 }
  0xd2   :  { %9686 = vmatprep.subr.bf16.mxu0 %v14245_v1 }
  0xd5   :  { %9688 = vmatpush3.bf16.msra.mxu0 %v11989_v58 }
  0xd6   :  { %9721 = vmatprep.subr.bf16.mxu0 %v14245_v1 }
  0xd8   :  { %8417 = vmatmul.mubr.f32.vlgmr.msra.gmra.mrb[8].mxu0 %v14243_v2 }
  0xd9   :  { %8451 = vmatprep.mubr.msk.f32.mxu0 %vm11694_vm0, %v14243_v2 }
 0x18b   :  { %v8339_v60 = vpop.f32.mrb[0].mxu0 }
 0x18c   :  { %v259_v61 = vpop.f32.mrb[1].mxu0  ;;  %v12024_v38 = vadd.f32 %v8339_v60, %v7640_v18 }
 0x18d   :  { %v12013_v25 = vadd.f32 %v7640_v18, %v259_v61 }
 0x18e   :  { %14538 = vst [vmem:[#allocation38_spill] sm:$0xff] %v12024_v38 }
 0x18f   :  { %v8342_v62 = vpop.f32.mrb[2].mxu0  ;;  %14536 = vst [vmem:[#allocation36_spill] sm:$0xff] %v12013_v25 }
 0x190   :  { %v269_v63 = vpop.f32.mrb[3].mxu0  ;;  %v12028_v47 = vadd.f32 %v8342_v62, %v7640_v18 }
 0x191   :  { %v12017_v28 = vadd.f32 %v7640_v18, %v269_v63 }
 0x192   :  { %14539 = vst [vmem:[#allocation39_spill] sm:$0xff] %v12028_v47 }
 0x193   :  { %v8345_v0 = vpop.f32.mrb[4].mxu0  ;;  %14537 = vst [vmem:[#allocation37_spill] sm:$0xff] %v12017_v28 }
 0x194   :  { %v279_v3 = vpop.f32.mrb[5].mxu0  ;;  %v12038_v62 = vadd.f32 %v8345_v0, %v7640_v18 }
 0x195   :  { %v12036_v63 = vadd.f32 %v7640_v18, %v279_v3 }
 0x196   :  { %14541 = vst [vmem:[#allocation41_spill] sm:$0xff] %v12038_v62 }
 0x197   :  { %v8348_v4 = vpop.f32.mrb[6].mxu0  ;;  %14540 = vst [vmem:[#allocation40_spill] sm:$0xff] %v12036_v63 }
 0x198   :  { %v289_v5 = vpop.f32.mrb[7].mxu0 }
 0x1ab   :  { %v637_v13 = vpop.f32.mrb[8].mxu0 }
 0x1ac   :  { %v642_v14 = vcombine.high %v637_v13, %v637_v13  ;;  %v649_v15 = vrot.slane %v637_v13, %v12001_v11  ;;  %v8418_v16 = vpop.f32.mrb[9].mxu0 }
 0x1ad   :  { %v12044_v16 = vadd.f32 %v7640_v18, %v289_v5 }
 0x1ae   :  { %v656_v19 = vrot.slane %v642_v14, %v12001_v11  ;;  %v657_v20 = vcombine.high %v649_v15, %v649_v15  ;;  %v665_v21 = vrot.slane %v649_v15, %v12001_v11 }
 0x1af   :  { %14542 = vst [vmem:[#allocation42_spill] sm:$0xff] %v12044_v16 }
 0x1b0   :  { %v658_v22 = vcombine.high %v656_v19, %v656_v19  ;;  %v679_v23 = vrot.slane %v657_v20, %v12001_v11  ;;  %v687_v24 = vcombine.high %v665_v21, %v665_v21  ;;  %v672_v26 = vrot.slane %v656_v19, %v12001_v11 }
 0x1b1   :  { %v694_v27 = vrot.slane %v665_v21, %v12005_v17  ;;  %v12046_v19 = vadd.f32 %v8348_v4, %v7640_v18 }
 0x1b2   :  { %v702_v32 = vrot.slane %v687_v24, %v12005_v17  ;;  %v698_v33 = vrot.slane %v679_v23, %v12005_v17  ;;  %v689_v37 = vcombine.high %v679_v23, %v679_v23  ;;  %v686_v43 = vrot.slane %v658_v22, %v12001_v11  ;;  %v7644_v24 = vld [vmem:[#allocation2] ss:$0 sm:$0xff] }
 0x1b3   :  { %v731_v42 = vadd.f32 %v694_v27, %v12013_v25  ;;  %v710_v54 = vrot.slane %v672_v26, %v12005_v17  ;;  %v688_v56 = vcombine.high %v672_v26, %v672_v26  ;;  %14543 = vst [vmem:[#allocation43_spill] sm:$0xff] %v12046_v19 }
 0x1b4   :  { %v733_v48 = vadd.f32 %v702_v32, %v12017_v28  ;;  %v706_v50 = vrot.slane %v689_v37, %v12005_v17  ;;  %v732_v53 = vadd.f32 %v698_v33, %v12024_v38  ;;  %v714_v60 = vrot.slane %v686_v43, %v12005_v17 }
 0x1b5   :  { %v745_v51 = vmul.f32 %v7643_v29, %v731_v42  ;;  %v690_v61 = vcombine.high %v686_v43, %v686_v43  ;;  %v735_v8 = vadd.f32 %v710_v54, %v12036_v63  ;;  %v718_v9 = vrot.slane %v688_v56, %v12005_v17 }
 0x1b6   :  { %v747_v57 = vmul.f32 %v7643_v29, %v733_v48  ;;  %v734_v59 = vadd.f32 %v706_v50, %v12028_v47  ;;  %v746_v7 = vmul.f32 %v7643_v29, %v732_v53  ;;  %v736_v14 = vadd.f32 %v714_v60, %v12038_v62 }
 0x1b7   :  { %753 = vadd.xlane.f32.xlu0 %v745_v51  ;;  %v722_v15 = vrot.slane %v690_v61, %v12005_v17  ;;  %v749_v3 = vmul.f32 %v7643_v29, %v735_v8  ;;  %v737_v0 = vadd.f32 %v718_v9, %v12044_v16  ;;  %v12051_v33 = vand.u32 127, %v495_v6 }
 0x1b8   :  { %757 = vadd.xlane.f32.xlu1 %v747_v57  ;;  %v748_v13 = vmul.f32 %v7643_v29, %v734_v59  ;;  %v750_v20 = vmul.f32 %v7643_v29, %v736_v14 }
 0x1b9   :  { %v738_v21 = vadd.f32 %v722_v15, %v12046_v19  ;;  %v751_v22 = vmul.f32 %v7643_v29, %v737_v0  ;;  %v12055_v42 = vsub.s32 %v12051_v33, %v11998_v10 }
 0x1bb   :  { %755 = vadd.xlane.f32.xlu0 %v746_v7  ;;  %v752_v23 = vmul.f32 %v7643_v29, %v738_v21  ;;  %14544 = vst [vmem:[#allocation44_spill] sm:$0xff] %v12055_v42 }
 0x1bc   :  { %759 = vadd.xlane.f32.xlu1 %v748_v13 }
 0x1bf   :  { %761 = vadd.xlane.f32.xlu0 %v749_v3 }
 0x1c0   :  { %763 = vadd.xlane.f32.xlu1 %v750_v20 }
 0x1c3   :  { %765 = vadd.xlane.f32.xlu0 %v751_v22 }
 0x1c4   :  { %767 = vadd.xlane.f32.xlu1 %v752_v23 }
 0x1d9   :  { %775 = vperm.xlu0 %11137, %v7644_v24  }
 0x244   :  { %v754_v5 = vpop.xlane.xlu0 %753 }
 0x245   :  { %v758_v26 = vpop.xlane.xlu1 %757 }
 0x248   :  { %v756_v27 = vpop.xlane.xlu0 %755 }
 0x249   :  { %v760_v4 = vpop.xlane.xlu1 %759 }
 0x24c   :  { %v762_v18 = vpop.xlane.xlu0 %761 }
 0x24d   :  { %v764_v32 = vpop.xlane.xlu1 %763 }
 0x250   :  { %v766_v37 = vpop.xlane.xlu0 %765 }
 0x251   :  { %v768_v29 = vpop.xlane.xlu1 %767 }
 0x258   :  { %v12057_v43 = vpop.permute.xlu0 %775 }
 0x259   :  { %14545 = vst [vmem:[#allocation45_spill] sm:$0xff] %v12057_v43  ;;  %v778_v48 = vadd.f32 %v12057_v43, %v754_v5  ;;  %v779_v50 = vadd.f32 %v12057_v43, %v756_v27  ;;  %v780_v51 = vadd.f32 %v12057_v43, %v758_v26  ;;  %v12063_v53 = vadd.f32 %v12057_v43, %v760_v4 }
 0x25a   :  { %v12066_v6 = vadd.f32 %v12057_v43, %v762_v18  ;;  %v12069_v54 = vadd.f32 %v12057_v43, %v764_v32  ;;  %v12072_v56 = vadd.f32 %v12057_v43, %v766_v37  ;;  %v785_v57 = vadd.f32 %v12057_v43, %v768_v29 }
 0x25b   :  { %v786_v59 = vmax.f32 %v778_v48, 0.0  ;;  %v787_v60 = vmax.f32 %v779_v50, 0.0  ;;  %v788_v61 = vmax.f32 %v780_v51, 0.0  ;;  %v789_v7 = vmax.f32 %v12063_v53, 0.0 }
 0x25c   :  { %v790_v8 = vmax.f32 %v12066_v6, 0.0  ;;  %v791_v9 = vmax.f32 %v12069_v54, 0.0  ;;  %v792_v3 = vmax.f32 %v12072_v56, 0.0  ;;  %v793_v0 = vmax.f32 %v785_v57, 0.0 }
 0x25d   :  { %v805_v13 = vrot.slane %v786_v59, %v12055_v42  ;;  %v809_v14 = vrot.slane %v787_v60, %v12055_v42  ;;  %v813_v15 = vrot.slane %v788_v61, %v12055_v42  ;;  %v817_v20 = vrot.slane %v789_v7, %v12055_v42 }
 0x25e   :  { %v821_v22 = vrot.slane %v790_v8, %v12055_v42  ;;  %v825_v24 = vrot.slane %v791_v9, %v12055_v42  ;;  %v829_v26 = vrot.slane %v792_v3, %v12055_v42  ;;  %v833_v4 = vrot.slane %v793_v0, %v12055_v42 }
 0x25f   :  { %v835_v21 = vsel %vm834_vm1, %v809_v14, %v805_v13  ;;  %v12100_v48 = vsub.s32 1, %v11998_v10  ;;  %v12103_v50 = vsub.s32 7, %v11998_v10  ;;  %v12106_v51 = vsub.s32 2, %v11998_v10 }
 0x260   :  { %v837_v23 = vsel %vm836_vm2, %v813_v15, %v835_v21  ;;  %v12112_v14 = vsub.s32 3, %v11998_v10 }
 0x261   :  { %v839_v5 = vsel %vm838_vm3, %v817_v20, %v837_v23  ;;  %14546 = vst [vmem:[#allocation46_spill] sm:$0xff] %v12103_v50  ;;  %14547 = vst [vmem:[#allocation47_spill] sm:$0xff] %v12106_v51 }
 0x262   :  { %v841_v27 = vsel %vm840_vm4, %v821_v22, %v839_v5  ;;  %14548 = vst [vmem:[#allocation48_spill] sm:$0xff] %v12112_v14 }
 0x263   :  { %v843_v18 = vsel %vm842_vm5, %v825_v24, %v841_v27  ;;  %v12116_v24 = vsub.s32 4, %v11998_v10 }
 0x264   :  { %v845_v32 = vsel %vm844_vm6, %v829_v26, %v843_v18  ;;  %v12120_v18 = vsub.s32 5, %v11998_v10 }
 0x265   :  { %v847_v37 = vsel %vm846_vm7, %v833_v4, %v845_v32  ;;  %14549 = vst [vmem:[#allocation49_spill] sm:$0xff] %v12116_v24 }
 0x266   :  { %v850_v29 = vsel %vm849_vm8, %v847_v37, -inf  ;;  %14550 = vst [vmem:[#allocation50_spill] sm:$0xff] %v12120_v18 }
 0x267   :  { %851 = vmax.xlane.f32.xlu1 %v850_v29 }
 0x2f4   :  { %v852_v53 = vpop.xlane.xlu1 %851 }
 0x2f5   :  { %v857_v6 = vrot.slane %v852_v53, %v12005_v17  ;;  %v861_v57 = vrot.slane %v852_v53, %v12100_v48  ;;  %v885_v13 = vrot.slane %v852_v53, %v12103_v50  ;;  %v865_v15 = vrot.slane %v852_v53, %v12106_v51 }
 0x2f6   :  { %v869_v26 = vrot.slane %v852_v53, %v12112_v14  ;;  %v873_v32 = vrot.slane %v852_v53, %v12116_v24  ;;  %v877_v37 = vrot.slane %v852_v53, %v12120_v18 }
 0x2f7   :  { %v894_v20 = vsub.f32 %v786_v59, %v857_v6  ;;  %v895_v21 = vsub.f32 %v787_v60, %v861_v57  ;;  %v901_v22 = vsub.f32 %v793_v0, %v885_v13  ;;  %v896_v4 = vsub.f32 %v788_v61, %v865_v15 }
 0x2f8   :  { %v897_v60 = vsub.f32 %v789_v7, %v869_v26  ;;  %v12124_v0 = vsub.s32 6, %v11998_v10  ;;  %v898_v6 = vsub.f32 %v790_v8, %v873_v32  ;;  %v899_v10 = vsub.f32 %v791_v9, %v877_v37  ;;  %v302_v32 = vld [vmem:[#allocation6 + $0x20] sm:$0xff]  ;;  %v304_v37 = vld [vmem:[#allocation6 + $0x30] sm:$0xff] }
 0x2f9   :  { %v902_v23 = vmul.f32 1.442695, %v894_v20  ;;  %v916_v5 = vmul.f32 1.442695, %v901_v22  ;;  %v904_v27 = vmul.f32 1.442695, %v895_v21 }
 0x2fa   :  { %v906_v59 = vmul.f32 1.442695, %v896_v4  ;;  %14551 = vst [vmem:[#allocation51_spill] sm:$0xff] %v12124_v0  ;;  %v908_v29 = vmul.f32 1.442695, %v897_v60  ;;  %v881_v13 = vrot.slane %v852_v53, %v12124_v0 }
 0x2fb   :  { %11139 = vpow2.f32 %v902_v23  ;;  %v910_v7 = vmul.f32 1.442695, %v898_v6  ;;  %v912_v8 = vmul.f32 1.442695, %v899_v10  ;;  %v299_v23 = vld [vmem:[#allocation6 + $0x8] sm:$0xff] }
 0x2fc   :  { %11141 = vpow2.f32 %v916_v5  ;;  %v900_v20 = vsub.f32 %v792_v3, %v881_v13  ;;  %v298_v3 = vld [vmem:[#allocation6] sm:$0xff]  ;;  %v300_v5 = vld [vmem:[#allocation6 + $0x10] sm:$0xff] }
 0x2fd   :  { %11143 = vpow2.f32 %v904_v27  ;;  %v12156_v26 = vpack.c.bf16 %v299_v23, %v298_v3  ;;  %v301_v27 = vld [vmem:[#allocation6 + $0x18] sm:$0xff]  ;;  %v306_v13 = vld [vmem:[#allocation6 + $0x40] sm:$0xff]  ;;  %v311_v23 = vld [vmem:[#allocation6 + $0x68] sm:$0xff] }
 0x2fe   :  { %11145 = vpow2.f32 %v906_v59  ;;  %v914_v53 = vmul.f32 1.442695, %v900_v20  ;;  %v12159_v4 = vpack.c.bf16 %v301_v27, %v300_v5  ;;  %v303_v59 = vld [vmem:[#allocation6 + $0x28] sm:$0xff]  ;;  %v309_v20 = vld [vmem:[#allocation6 + $0x58] sm:$0xff]  ;;  %v310_v3 = vld [vmem:[#allocation6 + $0x60] sm:$0xff] }
 0x2ff   :  { %11147 = vpow2.f32 %v908_v29  ;;  %14552 = vst [vmem:[#allocation52_spill] sm:$0xff] %v12156_v26  ;;  %9643 = vmatpush3.bf16.msra.mxu1 %v12156_v26  ;;  %v12163_v60 = vpack.c.bf16 %v303_v59, %v302_v32  ;;  %v305_v29 = vld [vmem:[#allocation6 + $0x38] sm:$0xff]  ;;  %v12179_v5 = vpack.c.bf16 %v311_v23, %v310_v3 }
 0x300   :  { %11149 = vpow2.f32 %v910_v7  ;;  %14553 = vst [vmem:[#allocation53_spill] sm:$0xff] %v12159_v4  ;;  %9644 = vmatprep.subr.bf16.mxu1 %v14245_v1  ;;  %v12167_v6 = vpack.c.bf16 %v305_v29, %v304_v37  ;;  %v307_v7 = vld [vmem:[#allocation6 + $0x48] sm:$0xff] }
 0x301   :  { %11151 = vpow2.f32 %v912_v8  ;;  %14554 = vst [vmem:[#allocation54_spill] sm:$0xff] %v12163_v60  ;;  %v12171_v10 = vpack.c.bf16 %v307_v7, %v306_v13  ;;  %v308_v8 = vld [vmem:[#allocation6 + $0x50] sm:$0xff]  ;;  %14558 = vst [vmem:[#allocation58_spill] sm:$0xff] %v12179_v5 }
 0x302   :  { %11153 = vpow2.f32 %v914_v53  ;;  %14555 = vst [vmem:[#allocation55_spill] sm:$0xff] %v12167_v6  ;;  %v12175_v53 = vpack.c.bf16 %v309_v20, %v308_v8 }
 0x303   :  { %9646 = vmatpush3.bf16.msra.mxu1 %v12159_v4  ;;  %14556 = vst [vmem:[#allocation56_spill] sm:$0xff] %v12171_v10 }
 0x304   :  { %9647 = vmatprep.subr.bf16.mxu1 %v14245_v1  ;;  %14557 = vst [vmem:[#allocation57_spill] sm:$0xff] %v12175_v53 }
 0x305   :  { %v12127_v57 = vpop.eup %11139 }
 0x306   :  { %v12129_v61 = vpop.eup %11141  ;;  %927 = vperm.xlu1 %11138, %v12127_v57  }
 0x307   :  { %948 = vperm.xlu0 %11137, %v12129_v61   ;;  %v12136_v15 = vpop.eup %11143  ;;  %9649 = vmatpush3.bf16.msra.mxu1 %v12163_v60 }
 0x308   :  { %v12141_v21 = vpop.eup %11145  ;;  %9650 = vmatprep.subr.bf16.mxu1 %v14245_v1 }
 0x309   :  { %v12144_v22 = vpop.eup %11147 }
 0x30a   :  { %930 = vperm.xlu1 %11138, %v12136_v15   ;;  %v12147_v54 = vpop.eup %11149 }
 0x30b   :  { %v12150_v9 = vpop.eup %11151  ;;  %9652 = vmatpush3.bf16.msra.mxu1 %v12167_v6 }
 0x30c   :  { %v12153_v56 = vpop.eup %11153  ;;  %9653 = vmatprep.subr.bf16.mxu1 %v14245_v1 }
 0x30e   :  { %933 = vperm.xlu1 %11138, %v12141_v21  }
 0x30f   :  { %9655 = vmatpush3.bf16.msra.mxu1 %v12171_v10 }
 0x310   :  { %9656 = vmatprep.subr.bf16.mxu1 %v14245_v1 }
 0x312   :  { %936 = vperm.xlu1 %11138, %v12144_v22  }
 0x313   :  { %9658 = vmatpush3.bf16.msra.mxu1 %v12175_v53 }
 0x314   :  { %9659 = vmatprep.subr.bf16.mxu1 %v14245_v1 }
 0x316   :  { %939 = vperm.xlu1 %11138, %v12147_v54  }
 0x317   :  { %9661 = vmatpush3.bf16.msra.mxu1 %v12179_v5 }
 0x318   :  { %9662 = vmatprep.subr.bf16.mxu1 %v14245_v1 }
 0x31a   :  { %942 = vperm.xlu1 %11138, %v12150_v9  }
 0x31e   :  { %945 = vperm.xlu1 %11138, %v12153_v56  }
 0x385   :  { %v928_v27 = vpop.permute.xlu1 %927 }
 0x386   :  { %v953_v8 = vrot.slane %v928_v27, %v12055_v42  ;;  %v949_v43 = vpop.permute.xlu0 %948 }
 0x387   :  { %v981_v27 = vrot.slane %v949_v43, %v12055_v42 }
 0x389   :  { %v931_v32 = vpop.permute.xlu1 %930 }
 0x38a   :  { %v957_v13 = vrot.slane %v931_v32, %v12055_v42 }
 0x38c   :  { %v982_v2 = vsel %vm834_vm1, %v957_v13, %v953_v8 }
 0x38d   :  { %v934_v59 = vpop.permute.xlu1 %933 }
 0x38e   :  { %v961_v7 = vrot.slane %v934_v59, %v12055_v42 }
 0x390   :  { %v983_v19 = vsel %vm836_vm2, %v961_v7, %v982_v2  ;;  %v313_v2 = vld [vmem:[#allocation6 + $0x78] sm:$0xff] }
 0x391   :  { %v937_v37 = vpop.permute.xlu1 %936 }
 0x392   :  { %v965_v20 = vrot.slane %v937_v37, %v12055_v42 }
 0x394   :  { %v984_v16 = vsel %vm838_vm3, %v965_v20, %v983_v19  ;;  %v12201_v19 = vcvt.s32.f32 %v12051_v33 }
 0x395   :  { %v940_v29 = vpop.permute.xlu1 %939 }
 0x396   :  { %v969_v23 = vrot.slane %v940_v29, %v12055_v42  ;;  %14559 = vst [vmem:[#allocation59_spill] sm:$0xff] %v12201_v19  ;;  %vm498_vm9 = vcmp.eq.f32.partialorder %v12201_v19, 1.0  ;;  %v333_v19 = vld [vmem:[#allocation11 + $0x8] sm:$0xff] }
 0x398   :  { %v985_v32 = vsel %vm840_vm4, %v969_v23, %v984_v16 }
 0x399   :  { %v943_v3 = vpop.permute.xlu1 %942 }
 0x39a   :  { %v973_v1 = vrot.slane %v943_v3, %v12055_v42  ;;  %v312_v3 = vld [vmem:[#allocation6 + $0x70] sm:$0xff] }
 0x39b   :  { %v12203_v7 = vpack.c.bf16 %v313_v2, %v312_v3 }
 0x39c   :  { %v986_v37 = vsel %vm842_vm5, %v973_v1, %v985_v32  ;;  %v14561_v1 = vmov 0.0  }
 0x39d   :  { %v946_v62 = vpop.permute.xlu1 %945  ;;  %14560 = vst [vmem:[#allocation60_spill] sm:$0xff] %v12203_v7  ;;  %9664 = vmatpush3.bf16.msra.mxu1 %v12203_v7 }
 0x39e   :  { %v977_v59 = vrot.slane %v946_v62, %v12055_v42  ;;  %v14255_v62 = vmov 1.0  }
 0x3a0   :  { %v987_v29 = vsel %vm844_vm6, %v977_v59, %v986_v37  ;;  %8382 = vmatmul.mubr.msk.f32.vlgmr.msra.gmra.mrb[0].mxu1 %vm498_vm9, %v14255_v62  ;;  %v400_v62 = vld [vmem:[#allocation12 + $0xa0] sm:$0xff] }
 0x3a1   :  { %v988_v13 = vsel %vm846_vm7, %v981_v27, %v987_v29  ;;  %1226 = vmatprep.mubr.f32.mxu1 %v14561_v1 }
 0x3a2   :  { %v990_v8 = vsel %vm849_vm8, %v988_v13, 0.0 }
 0x3a3   :  { %991 = vadd.xlane.f32.xlu1 %v990_v8 }
 0x430   :  { %v992_v16 = vpop.xlane.xlu1 %991 }
 0x431   :  { %v997_v43 = vrot.slane %v992_v16, %v12005_v17  ;;  %v1001_v20 = vrot.slane %v992_v16, %v12100_v48  ;;  %v1005_v33 = vrot.slane %v992_v16, %v12106_v51  ;;  %v1009_v23 = vrot.slane %v992_v16, %v12112_v14 }
 0x432   :  { %v1013_v59 = vrot.slane %v992_v16, %v12116_v24  ;;  %v1017_v29 = vrot.slane %v992_v16, %v12120_v18  ;;  %v1021_v3 = vrot.slane %v992_v16, %v12124_v0 }
 0x433   :  { %11155 = vrcp.f32 %v997_v43 }
 0x434   :  { %11157 = vrcp.f32 %v1001_v20  ;;  %v1025_v20 = vrot.slane %v992_v16, %v12103_v50 }
 0x435   :  { %11159 = vrcp.f32 %v1005_v33 }
 0x436   :  { %11161 = vrcp.f32 %v1009_v23 }
 0x437   :  { %11163 = vrcp.f32 %v1013_v59 }
 0x438   :  { %11165 = vrcp.f32 %v1017_v29  ;;  %v383_v29 = vld [vmem:[#allocation12 + $0x18] sm:$0xff] }
 0x439   :  { %11167 = vrcp.f32 %v1021_v3  ;;  %v390_v3 = vld [vmem:[#allocation12 + $0x50] sm:$0xff] }
 0x43a   :  { %11169 = vrcp.f32 %v1025_v20  ;;  %v386_v20 = vld [vmem:[#allocation12 + $0x30] sm:$0xff] }
 0x43d   :  { %v11156_v32 = vpop.eup %11155 }
 0x43e   :  { %v1035_v27 = vmul.f32 %v11156_v32, %v12127_v57  ;;  %v11158_v37 = vpop.eup %11157  ;;  %v384_v32 = vld [vmem:[#allocation12 + $0x20] sm:$0xff] }
 0x43f   :  { %v1037_v13 = vmul.f32 %v11158_v37, %v12136_v15  ;;  %v11160_v8 = vpop.eup %11159  ;;  %v381_v15 = vld [vmem:[#allocation12 + $0x8] sm:$0xff]  ;;  %v380_v37 = vld [vmem:[#allocation12] sm:$0xff] }
 0x440   :  { %1052 = vperm.xlu0 %11137, %v1035_v27   ;;  %v1039_v2 = vmul.f32 %v11160_v8, %v12141_v21  ;;  %v11162_v43 = vpop.eup %11161  ;;  %v12222_v27 = vpack.c.bf16 %v384_v32, %v381_v15  ;;  %v382_v21 = vld [vmem:[#allocation12 + $0x10] sm:$0xff]  ;;  %v385_v8 = vld [vmem:[#allocation12 + $0x28] sm:$0xff]  ;;  %v391_v32 = vld [vmem:[#allocation12 + $0x58] sm:$0xff] }
 0x441   :  { %v1041_v57 = vmul.f32 %v11162_v43, %v12144_v22  ;;  %v11164_v33 = vpop.eup %11163  ;;  %v12227_v22 = vpack.c.bf16 %v385_v8, %v382_v21 }
 0x442   :  { %v1043_v23 = vmul.f32 %v11164_v33, %v12147_v54  ;;  %v11166_v59 = vpop.eup %11165  ;;  %14562 = vst [vmem:[#allocation61_spill] sm:$0xff] %v12222_v27  ;;  %9690 = vmatprep.subr.bf16.mxu1 %v12222_v27  ;;  %v387_v54 = vld [vmem:[#allocation12 + $0x38] sm:$0xff]  ;;  %v388_v33 = vld [vmem:[#allocation12 + $0x40] sm:$0xff] }
 0x443   :  { %14564 = vst [vmem:[#allocation63_spill] sm:$0xff] %v12227_v22  ;;  %v1045_v16 = vmul.f32 %v11166_v59, %v12150_v9  ;;  %9723 = vmatpush3.bf16.msra.mxu0 %v12227_v22  ;;  %v12232_v43 = vpack.c.bf16 %v390_v3, %v387_v54  ;;  %v12238_v9 = vpack.c.bf16 %v391_v32, %v388_v33  ;;  %v395_v54 = vld [vmem:[#allocation12 + $0x78] sm:$0xff]  ;;  %v394_v3 = vld [vmem:[#allocation12 + $0x70] sm:$0xff] }
 0x444   :  { %1057 = vperm.xlu0 %11137, %v1037_v13   ;;  %v12224_v13 = vpack.c.bf16 %v383_v29, %v380_v37  ;;  %v393_v37 = vld [vmem:[#allocation12 + $0x68] sm:$0xff]  ;;  %v396_v29 = vld [vmem:[#allocation12 + $0x80] sm:$0xff]  ;;  %v399_v33 = vld [vmem:[#allocation12 + $0x98] sm:$0xff] }
 0x445   :  { %14565 = vst [vmem:[#allocation64_spill] sm:$0xff] %v12232_v43  ;;  %14568 = vst [vmem:[#allocation66_spill] sm:$0xff] %v12238_v9  ;;  %v12243_v8 = vpack.c.bf16 %v396_v29, %v393_v37  ;;  %v402_v32 = vld [vmem:[#allocation12 + $0xb0] sm:$0xff]  ;;  %v401_v29 = vld [vmem:[#allocation12 + $0xa8] sm:$0xff] }
 0x446   :  { %14563 = vst [vmem:[#allocation62_spill] sm:$0xff] %v12224_v13  ;;  %9692 = vmatpush1.bf16.msra.mxu1 %v12224_v13  ;;  %v12254_v37 = vpack.c.bf16 %v402_v32, %v399_v33  ;;  %v404_v33 = vld [vmem:[#allocation12 + $0xc0] sm:$0xff]  ;;  %v407_v32 = vld [vmem:[#allocation12 + $0xd8] sm:$0xff] }
 0x447   :  { %9694 = vmatprep.subr.bf16.mxu1 %v12232_v43  ;;  %14569 = vst [vmem:[#allocation67_spill] sm:$0xff] %v12243_v8  ;;  %v425_v43 = vld [vmem:[#allocation12 + $0x168] sm:$0xff]  ;;  %v427_v13 = vld [vmem:[#allocation12 + $0x178] sm:$0xff] }
 0x448   :  { %1062 = vperm.xlu0 %11137, %v1039_v2   ;;  %v11168_v2 = vpop.eup %11167  ;;  %14572 = vst [vmem:[#allocation70_spill] sm:$0xff] %v12254_v37 }
 0x449   :  { %v1047_v59 = vmul.f32 %v11168_v2, %v12153_v56  ;;  %v11170_v21 = vpop.eup %11169 }
 0x44a   :  { %v1049_v2 = vmul.f32 %v11170_v21, %v12129_v61  ;;  %v405_v21 = vld [vmem:[#allocation12 + $0xc8] sm:$0xff] }
 0x44c   :  { %1067 = vperm.xlu0 %11137, %v1041_v57   ;;  %v389_v57 = vld [vmem:[#allocation12 + $0x48] sm:$0xff] }
 0x44d   :  { %v12235_v15 = vpack.c.bf16 %v389_v57, %v386_v20  ;;  %v397_v57 = vld [vmem:[#allocation12 + $0x88] sm:$0xff] }
 0x44e   :  { %v12249_v56 = vpack.c.bf16 %v397_v57, %v394_v3  ;;  %v408_v3 = vld [vmem:[#allocation12 + $0xe0] sm:$0xff] }
 0x44f   :  { %14567 = vst [vmem:[#allocation65_spill] sm:$0xff] %v12235_v15  ;;  %9696 = vmatpush1.bf16.msra.mxu1 %v12235_v15  ;;  %v12264_v57 = vpack.c.bf16 %v408_v3, %v405_v21  ;;  %v410_v3 = vld [vmem:[#allocation12 + $0xf0] sm:$0xff]  ;;  %v423_v15 = vld [vmem:[#allocation12 + $0x158] sm:$0xff] }
 0x450   :  { %1072 = vperm.xlu0 %11137, %v1043_v23   ;;  %v14566_v23 = vmov 0.0|0.0   ;;  %9698 = vmatprep.subr.bf16.mxu1 %v12243_v8  ;;  %14571 = vst [vmem:[#allocation69_spill] sm:$0xff] %v12249_v56  ;;  %v418_v8 = vld [vmem:[#allocation12 + $0x130] sm:$0xff] }
 0x451   :  { %9724 = vmatprep.subr.bf16.mxu0 %v14566_v23  ;;  %14575 = vst [vmem:[#allocation73_spill] sm:$0xff] %v12264_v57 }
 0x452   :  { %9726 = vmatpush3.bf16.msra.mxu0 %v12238_v9 }
 0x453   :  { %9727 = vmatprep.subr.bf16.mxu0 %v14566_v23 }
 0x454   :  { %1077 = vperm.xlu0 %11137, %v1045_v16   ;;  %v392_v16 = vld [vmem:[#allocation12 + $0x60] sm:$0xff] }
 0x455   :  { %v12246_v20 = vpack.c.bf16 %v395_v54, %v392_v16  ;;  %v403_v54 = vld [vmem:[#allocation12 + $0xb8] sm:$0xff] }
 0x456   :  { %9729 = vmatpush3.bf16.msra.mxu0 %v12249_v56  ;;  %v12260_v61 = vpack.c.bf16 %v403_v54, %v400_v62  ;;  %v411_v54 = vld [vmem:[#allocation12 + $0xf8] sm:$0xff] }
 0x457   :  { %14570 = vst [vmem:[#allocation68_spill] sm:$0xff] %v12246_v20  ;;  %9700 = vmatpush1.bf16.msra.mxu1 %v12246_v20  ;;  %9730 = vmatprep.subr.bf16.mxu0 %v14566_v23  ;;  %v412_v20 = vld [vmem:[#allocation12 + $0x100] sm:$0xff] }
 0x458   :  { %1082 = vperm.xlu0 %11137, %v1047_v59   ;;  %v398_v59 = vld [vmem:[#allocation12 + $0x90] sm:$0xff]  ;;  %9702 = vmatprep.subr.bf16.mxu1 %v12254_v37  ;;  %14574 = vst [vmem:[#allocation72_spill] sm:$0xff] %v12260_v61  ;;  %v413_v37 = vld [vmem:[#allocation12 + $0x108] sm:$0xff] }
 0x459   :  { %v12257_v16 = vpack.c.bf16 %v401_v29, %v398_v59  ;;  %v12267_v59 = vpack.c.bf16 %v407_v32, %v404_v33  ;;  %v409_v29 = vld [vmem:[#allocation12 + $0xe8] sm:$0xff]  ;;  %v12277_v33 = vpack.c.bf16 %v413_v37, %v410_v3  ;;  %v415_v32 = vld [vmem:[#allocation12 + $0x118] sm:$0xff] }
 0x45a   :  { %9732 = vmatpush3.bf16.msra.mxu0 %v12260_v61  ;;  %v421_v3 = vld [vmem:[#allocation12 + $0x148] sm:$0xff] }
 0x45b   :  { %14573 = vst [vmem:[#allocation71_spill] sm:$0xff] %v12257_v16  ;;  %9704 = vmatpush1.bf16.msra.mxu1 %v12257_v16  ;;  %9733 = vmatprep.subr.bf16.mxu0 %v14566_v23  ;;  %14576 = vst [vmem:[#allocation74_spill] sm:$0xff] %v12267_v59  ;;  %v414_v16 = vld [vmem:[#allocation12 + $0x110] sm:$0xff] }
 0x45c   :  { %1087 = vperm.xlu0 %11137, %v1049_v2   ;;  %v406_v2 = vld [vmem:[#allocation12 + $0xd0] sm:$0xff]  ;;  %9706 = vmatprep.subr.bf16.mxu1 %v12264_v57  ;;  %v12274_v21 = vpack.c.bf16 %v414_v16, %v411_v54  ;;  %14579 = vst [vmem:[#allocation77_spill] sm:$0xff] %v12277_v33  ;;  %v416_v54 = vld [vmem:[#allocation12 + $0x120] sm:$0xff]  ;;  %v419_v57 = vld [vmem:[#allocation12 + $0x138] sm:$0xff] }
 0x45d   :  { %v12270_v62 = vpack.c.bf16 %v409_v29, %v406_v2  ;;  %v12280_v2 = vpack.c.bf16 %v415_v32, %v412_v20  ;;  %v417_v29 = vld [vmem:[#allocation12 + $0x128] sm:$0xff]  ;;  %v12287_v37 = vpack.c.bf16 %v419_v57, %v416_v54  ;;  %v12290_v20 = vpack.c.bf16 %v421_v3, %v418_v8  ;;  %v336_v57 = vld [vmem:[#allocation11 + $0x20] sm:$0xff] }
 0x45e   :  { %14578 = vst [vmem:[#allocation76_spill] sm:$0xff] %v12274_v21  ;;  %v12301_v8 = vpack.c.bf16 %v336_v57, %v333_v19 }
 0x45f   :  { %14577 = vst [vmem:[#allocation75_spill] sm:$0xff] %v12270_v62  ;;  %9708 = vmatpush1.bf16.msra.mxu1 %v12267_v59  ;;  %9735 = vmatpush3.bf16.msra.mxu0 %v12270_v62  ;;  %14580 = vst [vmem:[#allocation78_spill] sm:$0xff] %v12280_v2  ;;  %v420_v59 = vld [vmem:[#allocation12 + $0x140] sm:$0xff] }
 0x460   :  { %9736 = vmatprep.subr.bf16.mxu0 %v14566_v23  ;;  %9710 = vmatprep.subr.bf16.mxu1 %v12274_v21  ;;  %v12284_v16 = vpack.c.bf16 %v420_v59, %v417_v29  ;;  %14582 = vst [vmem:[#allocation80_spill] sm:$0xff] %v12287_v37  ;;  %v426_v21 = vld [vmem:[#allocation12 + $0x170] sm:$0xff]  ;;  %14583 = vst [vmem:[#allocation81_spill] sm:$0xff] %v12290_v20  ;;  %v424_v59 = vld [vmem:[#allocation12 + $0x160] sm:$0xff] }
 0x461   :  { %v12292_v32 = vpack.c.bf16 %v426_v21, %v423_v15  ;;  %v12299_v54 = vpack.c.bf16 %v427_v13, %v424_v59  ;;  %14587 = vst [vmem:[#allocation85_spill] sm:$0xff] %v12301_v8 }
 0x462   :  { %14581 = vst [vmem:[#allocation79_spill] sm:$0xff] %v12284_v16 }
 0x463   :  { %9712 = vmatpush1.bf16.msra.mxu1 %v12277_v33  ;;  %9738 = vmatpush3.bf16.msra.mxu0 %v12280_v2  ;;  %14584 = vst [vmem:[#allocation82_spill] sm:$0xff] %v12292_v32  ;;  %v422_v33 = vld [vmem:[#allocation12 + $0x150] sm:$0xff]  ;;  %14586 = vst [vmem:[#allocation84_spill] sm:$0xff] %v12299_v54 }
 0x464   :  { %9739 = vmatprep.subr.bf16.mxu0 %v14566_v23  ;;  %9714 = vmatprep.subr.bf16.mxu1 %v12284_v16  ;;  %v12295_v29 = vpack.c.bf16 %v425_v43, %v422_v33 }
 0x466   :  { %14585 = vst [vmem:[#allocation83_spill] sm:$0xff] %v12295_v29 }
 0x467   :  { %9716 = vmatpush1.bf16.msra.mxu1 %v12287_v37  ;;  %9741 = vmatpush3.bf16.msra.mxu0 %v12290_v20 }
 0x468   :  { %9718 = vmatprep.subr.bf16.mxu1 %v12292_v32  ;;  %9742 = vmatprep.subr.bf16.mxu0 %v14566_v23 }
 0x46b   :  { %9720 = vmatpush1.bf16.msra.mxu1 %v12295_v29  ;;  %9744 = vmatpush3.bf16.msra.mxu0 %v12299_v54 }
 0x46c   :  { %9746 = vmatprep.subr.bf16.mxu1 %v12301_v8  ;;  %9777 = vmatprep.subr.bf16.mxu0 %v14566_v23 }
 0x473   :  { %v12308_v43 = vpop.f32.mrb[0].mxu1 }
 0x474   :  { %v8383_v15 = vpop.f32.mrb[1].mxu1 }
 0x4bf   :  { %v1053_v21 = vpop.permute.xlu0 %1052 }
 0x4c0   :  { %v1090_v59 = vmul.f32 %v1053_v21, %v11935_v12 }
 0x4c2   :  { %v1098_v8 = vrot.slane %v1090_v59, 4 }
 0x4c3   :  { %v1058_v33 = vpop.permute.xlu0 %1057 }
 0x4c4   :  { %v1091_v13 = vmul.f32 %v1058_v33, %v11938_v30  ;;  %v1099_v24 = vadd.f32 %v1098_v8, %v1090_v59 }
 0x4c6   :  { %v1104_v29 = vrot.slane %v1091_v13, 4 }
 0x4c7   :  { %v1063_v3 = vpop.permute.xlu0 %1062 }
 0x4c8   :  { %v1092_v19 = vmul.f32 %v1063_v3, %v11943_v34  ;;  %v1105_v50 = vadd.f32 %v1104_v29, %v1091_v13  ;;  %v1100_v3 = vrot.slane %v1099_v24, 2 }
 0x4ca   :  { %v1110_v37 = vrot.slane %v1092_v19, 4  ;;  %v1106_v33 = vrot.slane %v1105_v50, 2 }
 0x4cb   :  { %v1068_v57 = vpop.permute.xlu0 %1067 }
 0x4cc   :  { %v1093_v32 = vmul.f32 %v1068_v57, %v11950_v36  ;;  %v1111_v18 = vadd.f32 %v1110_v37, %v1092_v19  ;;  %v1107_v28 = vadd.f32 %v1106_v33, %v1105_v50 }
 0x4ce   :  { %v1116_v16 = vrot.slane %v1093_v32, 4  ;;  %v1112_v21 = vrot.slane %v1111_v18, 2 }
 0x4cf   :  { %v1073_v0 = vpop.permute.xlu0 %1072 }
 0x4d0   :  { %v1094_v15 = vmul.f32 %v1073_v0, %v11953_v39  ;;  %v1117_v14 = vadd.f32 %v1116_v16, %v1093_v32  ;;  %v1113_v39 = vadd.f32 %v1112_v21, %v1111_v18  ;;  %v1101_v0 = vadd.f32 %v1100_v3, %v1099_v24 }
 0x4d2   :  { %v1122_v42 = vrot.slane %v1094_v15, 4  ;;  %v1118_v47 = vrot.slane %v1117_v14, 2 }
 0x4d3   :  { %v1078_v30 = vpop.permute.xlu0 %1077 }
 0x4d4   :  { %v1123_v34 = vadd.f32 %v1122_v42, %v1094_v15  ;;  %v1095_v12 = vmul.f32 %v1078_v30, %v11960_v41  ;;  %v1119_v37 = vadd.f32 %v1118_v47, %v1117_v14  ;;  %v1108_v42 = vrot.slane %v1107_v28, 1 }
 0x4d5   :  { %v1114_v15 = vrot.slane %v1113_v39, 1  ;;  %v1102_v30 = vrot.slane %v1101_v0, 1 }
 0x4d6   :  { %v1128_v36 = vrot.slane %v1095_v12, 4  ;;  %v1124_v57 = vrot.slane %v1123_v34, 2  ;;  %v1120_v25 = vrot.slane %v1119_v37, 1 }
 0x4d7   :  { %v1083_v63 = vpop.permute.xlu0 %1082  ;;  %v1115_v47 = vadd.f32 %v1114_v15, %v1113_v39  ;;  %v1103_v14 = vadd.f32 %v1102_v30, %v1101_v0  ;;  %v339_v39 = vld [vmem:[#allocation11 + $0x38] sm:$0xff]  ;;  %v342_v0 = vld [vmem:[#allocation11 + $0x50] sm:$0xff] }
 0x4d8   :  { %v1129_v38 = vadd.f32 %v1128_v36, %v1095_v12  ;;  %v1096_v29 = vmul.f32 %v1083_v63, %v11963_v44  ;;  %v1125_v8 = vadd.f32 %v1124_v57, %v1123_v34  ;;  %v1109_v12 = vadd.f32 %v1108_v42, %v1107_v28  ;;  %v332_v57 = vld [vmem:[#allocation11] sm:$0xff]  ;;  %v337_v28 = vld [vmem:[#allocation11 + $0x28] sm:$0xff] }
 0x4d9   :  { %v1121_v18 = vadd.f32 %v1120_v25, %v1119_v37  ;;  %v12328_v30 = vpack.c.bf16 %v342_v0, %v339_v39  ;;  %v360_v39 = vld [vmem:[#allocation11 + $0xe0] sm:$0xff] }
 0x4da   :  { %v1130_v16 = vrot.slane %v1129_v38, 2  ;;  %v1134_v32 = vrot.slane %v1096_v29, 4  ;;  %v1126_v33 = vrot.slane %v1125_v8, 1 }
 0x4db   :  { %v1088_v13 = vpop.permute.xlu0 %1087 }
 0x4dc   :  { %v1131_v19 = vadd.f32 %v1130_v16, %v1129_v38  ;;  %v1135_v41 = vadd.f32 %v1134_v32, %v1096_v29  ;;  %v1097_v59 = vmul.f32 %v1088_v13, %v11970_v46  ;;  %v1127_v3 = vadd.f32 %v1126_v33, %v1125_v8  ;;  %v335_v32 = vld [vmem:[#allocation11 + $0x18] sm:$0xff]  ;;  %v334_v13 = vld [vmem:[#allocation11 + $0x10] sm:$0xff]  ;;  %v340_v33 = vld [vmem:[#allocation11 + $0x40] sm:$0xff] }
 0x4dd   :  { %v1154_v38 = vsel %vm834_vm1, %v1109_v12, %v1103_v14  ;;  %v343_v12 = vld [vmem:[#allocation11 + $0x58] sm:$0xff] }
 0x4de   :  { %v1136_v11 = vrot.slane %v1135_v41, 2  ;;  %v1140_v50 = vrot.slane %v1097_v59, 4  ;;  %v1132_v44 = vrot.slane %v1131_v19, 1  ;;  %v1155_v29 = vsel %vm836_vm2, %v1115_v47, %v1154_v38  ;;  %v349_v38 = vld [vmem:[#allocation11 + $0x88] sm:$0xff] }
 0x4df   :  { %v12335_v14 = vpack.c.bf16 %v343_v12, %v340_v33  ;;  %v363_v33 = vld [vmem:[#allocation11 + $0xf8] sm:$0xff]  ;;  %v366_v12 = vld [vmem:[#allocation11 + $0x110] sm:$0xff] }
 0x4e0   :  { %v1137_v63 = vadd.f32 %v1136_v11, %v1135_v41  ;;  %v1141_v24 = vadd.f32 %v1140_v50, %v1097_v59  ;;  %v1133_v36 = vadd.f32 %v1132_v44, %v1131_v19  ;;  %v1156_v11 = vsel %vm838_vm3, %v1121_v18, %v1155_v29  ;;  %v338_v59 = vld [vmem:[#allocation11 + $0x30] sm:$0xff]  ;;  %v341_v50 = vld [vmem:[#allocation11 + $0x48] sm:$0xff]  ;;  %v344_v18 = vld [vmem:[#allocation11 + $0x60] sm:$0xff] }
 0x4e1   :  { %v1157_v25 = vsel %vm840_vm4, %v1127_v3, %v1156_v11  ;;  %v12323_v41 = vpack.c.bf16 %v335_v32, %v332_v57  ;;  %v12325_v19 = vpack.c.bf16 %v337_v28, %v334_v13  ;;  %v12333_v47 = vpack.c.bf16 %v341_v50, %v338_v59  ;;  %v346_v3 = vld [vmem:[#allocation11 + $0x70] sm:$0xff]  ;;  %v353_v13 = vld [vmem:[#allocation11 + $0xa8] sm:$0xff]  ;;  %v352_v28 = vld [vmem:[#allocation11 + $0xa0] sm:$0xff] }
 0x4e2   :  { %v1138_v34 = vrot.slane %v1137_v63, 1  ;;  %v1142_v21 = vrot.slane %v1141_v24, 2  ;;  %v1158_v8 = vsel %vm842_vm5, %v1133_v36, %v1157_v25  ;;  %v351_v36 = vld [vmem:[#allocation11 + $0x98] sm:$0xff]  ;;  %v12348_v29 = vpack.c.bf16 %v349_v38, %v346_v3  ;;  %v361_v50 = vld [vmem:[#allocation11 + $0xe8] sm:$0xff]  ;;  %v364_v3 = vld [vmem:[#allocation11 + $0x100] sm:$0xff] }
 0x4e3   :  { %v355_v11 = vld [vmem:[#allocation11 + $0xb8] sm:$0xff] }
 0x4e4   :  { %v1143_v46 = vadd.f32 %v1142_v21, %v1141_v24  ;;  %v1139_v16 = vadd.f32 %v1138_v34, %v1137_v63  ;;  %v345_v63 = vld [vmem:[#allocation11 + $0x68] sm:$0xff]  ;;  %v348_v24 = vld [vmem:[#allocation11 + $0x80] sm:$0xff]  ;;  %v347_v21 = vld [vmem:[#allocation11 + $0x78] sm:$0xff]  ;;  %v12358_v25 = vpack.c.bf16 %v355_v11, %v352_v28 }
 0x4e5   :  { %v12339_v34 = vpack.c.bf16 %v348_v24, %v345_v63  ;;  %v12346_v57 = vpack.c.bf16 %v347_v21, %v344_v18  ;;  %v359_v59 = vld [vmem:[#allocation11 + $0xd8] sm:$0xff]  ;;  %v362_v24 = vld [vmem:[#allocation11 + $0xf0] sm:$0xff]  ;;  %v12372_v18 = vpack.c.bf16 %v366_v12, %v363_v33  ;;  %v365_v21 = vld [vmem:[#allocation11 + $0x108] sm:$0xff] }
 0x4e6   :  { %v1144_v42 = vrot.slane %v1143_v46, 1  ;;  %v1159_v15 = vsel %vm844_vm6, %v1139_v16, %v1158_v8  ;;  %v350_v16 = vld [vmem:[#allocation11 + $0x90] sm:$0xff]  ;;  %v367_v38 = vld [vmem:[#allocation11 + $0x118] sm:$0xff]  ;;  %v368_v28 = vld [vmem:[#allocation11 + $0x120] sm:$0xff] }
 0x4e7   :  { %v12356_v0 = vpack.c.bf16 %v353_v13, %v350_v16  ;;  %v12376_v16 = vpack.c.bf16 %v365_v21, %v362_v24  ;;  %v12378_v13 = vpack.c.bf16 %v367_v38, %v364_v3  ;;  %v374_v12 = vld [vmem:[#allocation11 + $0x150] sm:$0xff]  ;;  %v377_v21 = vld [vmem:[#allocation11 + $0x168] sm:$0xff]  ;;  %v376_v3 = vld [vmem:[#allocation11 + $0x160] sm:$0xff] }
 0x4e8   :  { %v1145_v37 = vadd.f32 %v1144_v42, %v1143_v46  ;;  %v354_v46 = vld [vmem:[#allocation11 + $0xb0] sm:$0xff]  ;;  %v357_v42 = vld [vmem:[#allocation11 + $0xc8] sm:$0xff]  ;;  %v379_v38 = vld [vmem:[#allocation11 + $0x178] sm:$0xff] }
 0x4e9   :  { %v12352_v32 = vpack.c.bf16 %v354_v46, %v351_v36  ;;  %v12362_v8 = vpack.c.bf16 %v360_v39, %v357_v42  ;;  %v369_v36 = vld [vmem:[#allocation11 + $0x128] sm:$0xff]  ;;  %v372_v46 = vld [vmem:[#allocation11 + $0x140] sm:$0xff]  ;;  %14588 = vst [vmem:[#allocation86_spill] sm:$0xff] %v12376_v16  ;;  %14589 = vst [vmem:[#allocation87_spill] sm:$0xff] %v12378_v13 }
 0x4ea   :  { %v1160_v44 = vsel %vm846_vm7, %v1145_v37, %v1159_v15  ;;  %v356_v37 = vld [vmem:[#allocation11 + $0xc0] sm:$0xff]  ;;  %v358_v15 = vld [vmem:[#allocation11 + $0xd0] sm:$0xff]  ;;  %v12382_v11 = vpack.c.bf16 %v372_v46, %v369_v36  ;;  %v371_v42 = vld [vmem:[#allocation11 + $0x138] sm:$0xff] }
 0x4eb   :  { %1227 = vmatmul.mubr.f32.vlgmr.msra.gmra.mrb[2].mxu1 %v1160_v44  ;;  %8452 = vmatmul.mubr.f32.vlgmr.msra.gmra.mrb[10].mxu0 %v1160_v44  ;;  %v12366_v44 = vpack.c.bf16 %v359_v59, %v356_v37  ;;  %v12368_v63 = vpack.c.bf16 %v361_v50, %v358_v15  ;;  %v370_v39 = vld [vmem:[#allocation11 + $0x130] sm:$0xff]  ;;  %v373_v37 = vld [vmem:[#allocation11 + $0x148] sm:$0xff]  ;;  %v375_v59 = vld [vmem:[#allocation11 + $0x158] sm:$0xff]  ;;  %v12386_v50 = vpack.c.bf16 %v371_v42, %v368_v28 }
 0x4ec   :  { %9748 = vmatpush1.bf16.msra.mxu1 %v12323_v41  ;;  %9779 = vmatpush3.bf16.msra.mxu0 %v12325_v19  ;;  %14590 = vst [vmem:[#allocation88_spill] sm:$0xff] %v12382_v11  ;;  %v378_v15 = vld [vmem:[#allocation11 + $0x170] sm:$0xff]  ;;  %v12388_v33 = vpack.c.bf16 %v373_v37, %v370_v39  ;;  %v429_v36 = vld [vmem:[#allocation14 + $0x8] sm:$0xff]  ;;  %v432_v46 = vld [vmem:[#allocation14 + $0x20] sm:$0xff]  ;;  %v12396_v28 = vpack.c.bf16 %v377_v21, %v374_v12 }
 0x4ed   :  { %9750 = vmatprep.subr.bf16.mxu1 %v12328_v30  ;;  %9780 = vmatprep.subr.bf16.mxu0 %v14566_v23  ;;  %14591 = vst [vmem:[#allocation89_spill] sm:$0xff] %v12386_v50  ;;  %v12392_v24 = vpack.c.bf16 %v378_v15, %v375_v59  ;;  %v12398_v42 = vpack.c.bf16 %v379_v38, %v376_v3  ;;  %v428_v39 = vld [vmem:[#allocation14] sm:$0xff]  ;;  %v431_v59 = vld [vmem:[#allocation14 + $0x18] sm:$0xff]  ;;  %v430_v15 = vld [vmem:[#allocation14 + $0x10] sm:$0xff] }
 0x4ee   :  { %8486 = vmatprep.mubr.msk.f32.mxu0 %vm11694_vm0, %v14561_v1  ;;  %1367 = vmatprep.mubr.f32.mxu1 %v14561_v1  ;;  %14592 = vst [vmem:[#allocation90_spill] sm:$0xff] %v12388_v33  ;;  %v12402_v37 = vpack.c.bf16 %v432_v46, %v429_v36  ;;  %v12406_v12 = vpack.c.bf16 %v431_v59, %v428_v39  ;;  %v434_v21 = vld [vmem:[#allocation14 + $0x30] sm:$0xff]  ;;  %v437_v36 = vld [vmem:[#allocation14 + $0x48] sm:$0xff]  ;;  %v436_v46 = vld [vmem:[#allocation14 + $0x40] sm:$0xff] }
 0x4ef   :  { %14593 = vst [vmem:[#allocation91_spill] sm:$0xff] %v12392_v24  ;;  %14594 = vst [vmem:[#allocation92_spill] sm:$0xff] %v12398_v42  ;;  %v12417_v39 = vpack.c.bf16 %v437_v36, %v434_v21  ;;  %v443_v59 = vld [vmem:[#allocation14 + $0x78] sm:$0xff]  ;;  %v446_v21 = vld [vmem:[#allocation14 + $0x90] sm:$0xff] }
 0x4f0   :  { %9752 = vmatpush1.bf16.msra.mxu1 %v12333_v47  ;;  %9782 = vmatpush3.bf16.msra.mxu0 %v12335_v14  ;;  %14595 = vst [vmem:[#allocation93_spill] sm:$0xff] %v12402_v37  ;;  %14596 = vst [vmem:[#allocation94_spill] sm:$0xff] %v12406_v12  ;;  %v449_v36 = vld [vmem:[#allocation14 + $0xa8] sm:$0xff] }
 0x4f1   :  { %9754 = vmatprep.subr.bf16.mxu1 %v12339_v34  ;;  %9783 = vmatprep.subr.bf16.mxu0 %v14566_v23  ;;  %14599 = vst [vmem:[#allocation97_spill] sm:$0xff] %v12417_v39 }
 0x4f4   :  { %9756 = vmatpush1.bf16.msra.mxu1 %v12346_v57  ;;  %9785 = vmatpush3.bf16.msra.mxu0 %v12348_v29 }
 0x4f5   :  { %9758 = vmatprep.subr.bf16.mxu1 %v12352_v32  ;;  %9786 = vmatprep.subr.bf16.mxu0 %v14566_v23 }
 0x4f8   :  { %9760 = vmatpush1.bf16.msra.mxu1 %v12356_v0  ;;  %9788 = vmatpush3.bf16.msra.mxu0 %v12358_v25 }
 0x4f9   :  { %9762 = vmatprep.subr.bf16.mxu1 %v12362_v8  ;;  %9789 = vmatprep.subr.bf16.mxu0 %v14566_v23 }
 0x4fc   :  { %9764 = vmatpush1.bf16.msra.mxu1 %v12366_v44  ;;  %9791 = vmatpush3.bf16.msra.mxu0 %v12368_v63 }
 0x4fd   :  { %9766 = vmatprep.subr.bf16.mxu1 %v12372_v18  ;;  %9792 = vmatprep.subr.bf16.mxu0 %v14566_v23 }
 0x500   :  { %9768 = vmatpush1.bf16.msra.mxu1 %v12376_v16  ;;  %9794 = vmatpush3.bf16.msra.mxu0 %v12378_v13  ;;  %v435_v13 = vld [vmem:[#allocation14 + $0x38] sm:$0xff]  ;;  %v438_v16 = vld [vmem:[#allocation14 + $0x50] sm:$0xff] }
 0x501   :  { %9770 = vmatprep.subr.bf16.mxu1 %v12382_v11  ;;  %9795 = vmatprep.subr.bf16.mxu0 %v14566_v23  ;;  %v433_v11 = vld [vmem:[#allocation14 + $0x28] sm:$0xff]  ;;  %v12411_v38 = vpack.c.bf16 %v438_v16, %v435_v13 }
 0x502   :  { %v12408_v3 = vpack.c.bf16 %v433_v11, %v430_v15  ;;  %v440_v11 = vld [vmem:[#allocation14 + $0x60] sm:$0xff]  ;;  %v442_v15 = vld [vmem:[#allocation14 + $0x70] sm:$0xff] }
 0x503   :  { %14598 = vst [vmem:[#allocation96_spill] sm:$0xff] %v12411_v38 }
 0x504   :  { %9772 = vmatpush1.bf16.msra.mxu1 %v12386_v50  ;;  %9797 = vmatpush3.bf16.msra.mxu0 %v12388_v33  ;;  %14597 = vst [vmem:[#allocation95_spill] sm:$0xff] %v12408_v3  ;;  %v441_v33 = vld [vmem:[#allocation14 + $0x68] sm:$0xff]  ;;  %v444_v50 = vld [vmem:[#allocation14 + $0x80] sm:$0xff] }
 0x505   :  { %9774 = vmatprep.subr.bf16.mxu1 %v12392_v24  ;;  %9798 = vmatprep.subr.bf16.mxu0 %v14566_v23  ;;  %v439_v24 = vld [vmem:[#allocation14 + $0x58] sm:$0xff]  ;;  %v12423_v13 = vpack.c.bf16 %v444_v50, %v441_v33 }
 0x506   :  { %v12420_v16 = vpack.c.bf16 %v439_v24, %v436_v46  ;;  %v12430_v24 = vpack.c.bf16 %v443_v59, %v440_v11  ;;  %v448_v46 = vld [vmem:[#allocation14 + $0xa0] sm:$0xff]  ;;  %v12440_v11 = vpack.c.bf16 %v449_v36, %v446_v21  ;;  %v458_v36 = vld [vmem:[#allocation14 + $0xf0] sm:$0xff] }
 0x507   :  { %14601 = vst [vmem:[#allocation99_spill] sm:$0xff] %v12423_v13  ;;  %v452_v59 = vld [vmem:[#allocation14 + $0xc0] sm:$0xff] }
 0x508   :  { %9776 = vmatpush1.bf16.msra.mxu1 %v12396_v28  ;;  %9800 = vmatpush3.bf16.msra.mxu0 %v12398_v42  ;;  %14600 = vst [vmem:[#allocation98_spill] sm:$0xff] %v12420_v16  ;;  %v447_v42 = vld [vmem:[#allocation14 + $0x98] sm:$0xff]  ;;  %14602 = vst [vmem:[#allocation100_spill] sm:$0xff] %v12430_v24 }
 0x509   :  { %9802 = vmatprep.subr.bf16.mxu1 %v12402_v37  ;;  %9833 = vmatprep.subr.bf16.mxu0 %v14566_v23  ;;  %v445_v37 = vld [vmem:[#allocation14 + $0x88] sm:$0xff]  ;;  %14605 = vst [vmem:[#allocation103_spill] sm:$0xff] %v12440_v11 }
 0x50a   :  { %v12433_v50 = vpack.c.bf16 %v445_v37, %v442_v15  ;;  %v455_v15 = vld [vmem:[#allocation14 + $0xd8] sm:$0xff] }
 0x50b   :  { %8487 = vmatmul.mubr.f32.vlgmr.msra.gmra.mrb[12].mxu0 %v12308_v43  ;;  %1368 = vmatmul.mubr.f32.vlgmr.msra.gmra.mrb[2].mxu1 %v12308_v43  ;;  %v450_v43 = vld [vmem:[#allocation14 + $0xb0] sm:$0xff]  ;;  %v12450_v21 = vpack.c.bf16 %v455_v15, %v452_v59  ;;  %v464_v15 = vld [vmem:[#allocation14 + $0x120] sm:$0xff] }
 0x50c   :  { %9804 = vmatpush1.bf16.msra.mxu1 %v12406_v12  ;;  %9835 = vmatpush3.bf16.msra.mxu0 %v12408_v3  ;;  %14603 = vst [vmem:[#allocation101_spill] sm:$0xff] %v12433_v50  ;;  %v12436_v33 = vpack.c.bf16 %v450_v43, %v447_v42  ;;  %v453_v3 = vld [vmem:[#allocation14 + $0xc8] sm:$0xff]  ;;  %v456_v12 = vld [vmem:[#allocation14 + $0xe0] sm:$0xff]  ;;  %v454_v43 = vld [vmem:[#allocation14 + $0xd0] sm:$0xff] }
 0x50d   :  { %9806 = vmatprep.subr.bf16.mxu1 %v12411_v38  ;;  %9836 = vmatprep.subr.bf16.mxu0 %v14566_v23  ;;  %v451_v38 = vld [vmem:[#allocation14 + $0xb8] sm:$0xff]  ;;  %v12446_v42 = vpack.c.bf16 %v456_v12, %v453_v3  ;;  %14608 = vst [vmem:[#allocation106_spill] sm:$0xff] %v12450_v21  ;;  %v461_v3 = vld [vmem:[#allocation14 + $0x108] sm:$0xff] }
 0x50e   :  { %1527 = vmatprep.mubr.f32.mxu1 %v14561_v1  ;;  %8521 = vmatprep.mubr.msk.f32.mxu0 %vm11694_vm0, %v14561_v1  ;;  %14604 = vst [vmem:[#allocation102_spill] sm:$0xff] %v12436_v33  ;;  %v12443_v37 = vpack.c.bf16 %v451_v38, %v448_v46  ;;  %v460_v46 = vld [vmem:[#allocation14 + $0x100] sm:$0xff]  ;;  %v12460_v59 = vpack.c.bf16 %v461_v3, %v458_v36  ;;  %v470_v3 = vld [vmem:[#allocation14 + $0x150] sm:$0xff] }
 0x50f   :  { %14607 = vst [vmem:[#allocation105_spill] sm:$0xff] %v12446_v42 }
 0x510   :  { %9808 = vmatpush1.bf16.msra.mxu1 %v12417_v39  ;;  %9838 = vmatpush3.bf16.msra.mxu0 %v12420_v16  ;;  %14606 = vst [vmem:[#allocation104_spill] sm:$0xff] %v12443_v37  ;;  %v459_v16 = vld [vmem:[#allocation14 + $0xf8] sm:$0xff]  ;;  %v462_v39 = vld [vmem:[#allocation14 + $0x110] sm:$0xff]  ;;  %14611 = vst [vmem:[#allocation109_spill] sm:$0xff] %v12460_v59 }
 0x511   :  { %9810 = vmatprep.subr.bf16.mxu1 %v12423_v13  ;;  %9839 = vmatprep.subr.bf16.mxu0 %v14566_v23  ;;  %v457_v13 = vld [vmem:[#allocation14 + $0xe8] sm:$0xff]  ;;  %v12456_v12 = vpack.c.bf16 %v462_v39, %v459_v16  ;;  %v467_v16 = vld [vmem:[#allocation14 + $0x138] sm:$0xff] }
 0x512   :  { %v12453_v38 = vpack.c.bf16 %v457_v13, %v454_v43  ;;  %v466_v43 = vld [vmem:[#allocation14 + $0x130] sm:$0xff]  ;;  %v12470_v36 = vpack.c.bf16 %v467_v16, %v464_v15  ;;  %v481_v16 = vld [vmem:[#allocation15 + $0x18] sm:$0xff] }
 0x513   :  { %14610 = vst [vmem:[#allocation108_spill] sm:$0xff] %v12456_v12 }
 0x514   :  { %9812 = vmatpush1.bf16.msra.mxu1 %v12430_v24  ;;  %9841 = vmatpush3.bf16.msra.mxu0 %v12433_v50  ;;  %14609 = vst [vmem:[#allocation107_spill] sm:$0xff] %v12453_v38  ;;  %v465_v50 = vld [vmem:[#allocation14 + $0x128] sm:$0xff]  ;;  %v468_v24 = vld [vmem:[#allocation14 + $0x140] sm:$0xff]  ;;  %14614 = vst [vmem:[#allocation112_spill] sm:$0xff] %v12470_v36 }
 0x515   :  { %9814 = vmatprep.subr.bf16.mxu1 %v12436_v33  ;;  %9842 = vmatprep.subr.bf16.mxu0 %v14566_v23  ;;  %v463_v33 = vld [vmem:[#allocation14 + $0x118] sm:$0xff]  ;;  %v12466_v39 = vpack.c.bf16 %v468_v24, %v465_v50  ;;  %v473_v50 = vld [vmem:[#allocation14 + $0x168] sm:$0xff] }
 0x516   :  { %v12463_v13 = vpack.c.bf16 %v463_v33, %v460_v46  ;;  %v472_v46 = vld [vmem:[#allocation14 + $0x160] sm:$0xff] }
 0x517   :  { %14613 = vst [vmem:[#allocation111_spill] sm:$0xff] %v12466_v39 }
 0x518   :  { %9816 = vmatpush1.bf16.msra.mxu1 %v12440_v11  ;;  %9844 = vmatpush3.bf16.msra.mxu0 %v12443_v37  ;;  %14612 = vst [vmem:[#allocation110_spill] sm:$0xff] %v12463_v13  ;;  %v471_v37 = vld [vmem:[#allocation14 + $0x158] sm:$0xff]  ;;  %v474_v11 = vld [vmem:[#allocation14 + $0x170] sm:$0xff] }
 0x519   :  { %9818 = vmatprep.subr.bf16.mxu1 %v12446_v42  ;;  %9845 = vmatprep.subr.bf16.mxu0 %v14566_v23  ;;  %v469_v42 = vld [vmem:[#allocation14 + $0x148] sm:$0xff]  ;;  %v12476_v24 = vpack.c.bf16 %v474_v11, %v471_v37  ;;  %v478_v11 = vld [vmem:[#allocation15] sm:$0xff] }
 0x51a   :  { %v12473_v33 = vpack.c.bf16 %v469_v42, %v466_v43  ;;  %v479_v37 = vld [vmem:[#allocation15 + $0x8] sm:$0xff] }
 0x51b   :  { %14616 = vst [vmem:[#allocation114_spill] sm:$0xff] %v12476_v24  ;;  %v12513_v42 = vpack.c.bf16 %v479_v37, %v478_v11  ;;  %v484_v11 = vld [vmem:[#allocation15 + $0x30] sm:$0xff]  ;;  %v485_v37 = vld [vmem:[#allocation15 + $0x38] sm:$0xff] }
 0x51c   :  { %9820 = vmatpush1.bf16.msra.mxu1 %v12450_v21  ;;  %9847 = vmatpush3.bf16.msra.mxu0 %v12453_v38  ;;  %14615 = vst [vmem:[#allocation113_spill] sm:$0xff] %v12473_v33  ;;  %v12480_v38 = vpack.c.bf16 %v473_v50, %v470_v3  ;;  %v482_v3 = vld [vmem:[#allocation15 + $0x20] sm:$0xff]  ;;  %v483_v50 = vld [vmem:[#allocation15 + $0x28] sm:$0xff] }
 0x51d   :  { %9822 = vmatprep.subr.bf16.mxu1 %v12456_v12  ;;  %9848 = vmatprep.subr.bf16.mxu0 %v14566_v23  ;;  %v475_v12 = vld [vmem:[#allocation14 + $0x178] sm:$0xff]  ;;  %14619 = vst [vmem:[#allocation117_spill] sm:$0xff] %v12513_v42 }
 0x51e   :  { %14617 = vst [vmem:[#allocation115_spill] sm:$0xff] %v12480_v38  ;;  %v12483_v15 = vpack.c.bf16 %v475_v12, %v472_v46  ;;  %v480_v12 = vld [vmem:[#allocation15 + $0x10] sm:$0xff]  ;;  %v12521_v46 = vpack.c.bf16 %v483_v50, %v482_v3  ;;  %v490_v50 = vld [vmem:[#allocation15 + $0x60] sm:$0xff] }
 0x51f   :  { %v12517_v43 = vpack.c.bf16 %v481_v16, %v480_v12  ;;  %v488_v16 = vld [vmem:[#allocation15 + $0x50] sm:$0xff] }
 0x520   :  { %9824 = vmatpush1.bf16.msra.mxu1 %v12460_v59  ;;  %9850 = vmatpush3.bf16.msra.mxu0 %v12463_v13  ;;  %14618 = vst [vmem:[#allocation116_spill] sm:$0xff] %v12483_v15  ;;  %14621 = vst [vmem:[#allocation119_spill] sm:$0xff] %v12521_v46 }
 0x521   :  { %9826 = vmatprep.subr.bf16.mxu1 %v12466_v39  ;;  %9851 = vmatprep.subr.bf16.mxu0 %v14566_v23  ;;  %14620 = vst [vmem:[#allocation118_spill] sm:$0xff] %v12517_v43 }
 0x524   :  { %9828 = vmatpush1.bf16.msra.mxu1 %v12470_v36  ;;  %9853 = vmatpush3.bf16.msra.mxu0 %v12473_v33 }
 0x525   :  { %9830 = vmatprep.subr.bf16.mxu1 %v12476_v24  ;;  %9854 = vmatprep.subr.bf16.mxu0 %v14566_v23 }
 0x528   :  { %9832 = vmatpush1.bf16.msra.mxu1 %v12480_v38  ;;  %9856 = vmatpush3.bf16.msra.mxu0 %v12483_v15 }
 0x529   :  { %9857 = vmatprep.subr.bf16.mxu1 %v14566_v23  ;;  %9881 = vmatprep.subr.bf16.mxu0 %v14566_v23 }
 0x52b   :  { %1528 = vmatmul.mubr.f32.vlgmr.msra.gmra.mrb[2].mxu1 %v14561_v1  ;;  %8522 = vmatmul.mubr.f32.vlgmr.msra.gmra.mrb[14].mxu0 %v14561_v1 }
 0x52c   :  { %8556 = vmatprep.mubr.msk.f32.mxu1 %vm11694_vm0, %v14561_v1  ;;  %9883 = vmatpush3.bf16.msra.mxu0 %v12156_v26 }
 0x52d   :  { %9884 = vmatprep.subr.bf16.mxu0 %v14566_v23  ;;  %8591 = vmatprep.mubr.msk.f32.mxu0 %vm11694_vm0, %v14561_v1 }
 0x52e   :  { %9859 = vmatpush3.bf16.msra.mxu1 %v12513_v42 }
 0x52f   :  { %9860 = vmatprep.subr.bf16.mxu1 %v14566_v23 }
 0x530   :  { %9886 = vmatpush3.bf16.msra.mxu0 %v12159_v4 }
 0x531   :  { %9887 = vmatprep.subr.bf16.mxu0 %v14566_v23 }
 0x532   :  { %9862 = vmatpush3.bf16.msra.mxu1 %v12517_v43  ;;  %v12559_v43 = vld [vmem:[%s14238_s11] ss:$0 sm:$0xff] }
 0x533   :  { %9863 = vmatprep.subr.bf16.mxu1 %v14566_v23  ;;  %14629 = vst [vmem:[#allocation127_spill] sm:$0xff] %v12559_v43 }
 0x534   :  { %9889 = vmatpush3.bf16.msra.mxu0 %v12163_v60 }
 0x535   :  { %9890 = vmatprep.subr.bf16.mxu0 %v14566_v23 }
 0x536   :  { %9865 = vmatpush3.bf16.msra.mxu1 %v12521_v46 }
 0x537   :  { %9866 = vmatprep.subr.bf16.mxu1 %v14566_v23 }
 0x538   :  { %9892 = vmatpush3.bf16.msra.mxu0 %v12167_v6 }
 0x539   :  { %9893 = vmatprep.subr.bf16.mxu0 %v14566_v23 }
 0x53c   :  { %9895 = vmatpush3.bf16.msra.mxu0 %v12171_v10  ;;  %v491_v10 = vld [vmem:[#allocation15 + $0x68] sm:$0xff] }
 0x53d   :  { %9896 = vmatprep.subr.bf16.mxu0 %v14566_v23 }
 0x540   :  { %9898 = vmatpush3.bf16.msra.mxu0 %v12175_v53  ;;  %v489_v53 = vld [vmem:[#allocation15 + $0x58] sm:$0xff] }
 0x541   :  { %9899 = vmatprep.subr.bf16.mxu0 %v14566_v23  ;;  %v12532_v3 = vpack.c.bf16 %v489_v53, %v488_v16 }
 0x543   :  { %14624 = vst [vmem:[#allocation122_spill] sm:$0xff] %v12532_v3 }
 0x544   :  { %9901 = vmatpush3.bf16.msra.mxu0 %v12179_v5  ;;  %v487_v5 = vld [vmem:[#allocation15 + $0x48] sm:$0xff] }
 0x545   :  { %9902 = vmatprep.subr.bf16.mxu0 %v14566_v23 }
 0x548   :  { %9904 = vmatpush3.bf16.msra.mxu0 %v12203_v7  ;;  %v486_v7 = vld [vmem:[#allocation15 + $0x40] sm:$0xff] }
 0x549   :  { %9930 = vmatprep.subr.bf16.mxu0 %v12222_v27  ;;  %v12525_v27 = vpack.c.bf16 %v485_v37, %v484_v11  ;;  %v12528_v12 = vpack.c.bf16 %v487_v5, %v486_v7  ;;  %v12536_v11 = vpack.c.bf16 %v491_v10, %v490_v50  ;;  %v492_v5 = vld [vmem:[#allocation15 + $0x70] sm:$0xff]  ;;  %v493_v7 = vld [vmem:[#allocation15 + $0x78] sm:$0xff] }
 0x54a   :  { %v12540_v37 = vpack.c.bf16 %v493_v7, %v492_v5  ;;  %v476_v50 = vld [vmem:[%s14237_s10] sm:$0x7] }
 0x54b   :  { %14622 = vst [vmem:[#allocation120_spill] sm:$0xff] %v12525_v27  ;;  %9868 = vmatpush3.bf16.msra.mxu1 %v12525_v27  ;;  %14623 = vst [vmem:[#allocation121_spill] sm:$0xff] %v12528_v12  ;;  %v12549_v6 = vrot.slane %v476_v50, %v12005_v17  ;;  %v12552_v7 = vrot.slane %v476_v50, %v12100_v48  ;;  %v12562_v26 = vrot.slane %v476_v50, %v12106_v51 }
 0x54c   :  { %9869 = vmatprep.subr.bf16.mxu1 %v14566_v23  ;;  %14625 = vst [vmem:[#allocation123_spill] sm:$0xff] %v12536_v11  ;;  %14626 = vst [vmem:[#allocation124_spill] sm:$0xff] %v12540_v37 }
 0x54d   :  { %14627 = vst [vmem:[#allocation125_spill] sm:$0xff] %v12549_v6  ;;  %14628 = vst [vmem:[#allocation126_spill] sm:$0xff] %v12552_v7 }
 0x54e   :  { %14630 = vst [vmem:[#allocation128_spill] sm:$0xff] %v12562_v26 }
 0x54f   :  { %9871 = vmatpush3.bf16.msra.mxu1 %v12528_v12 }
 0x550   :  { %9872 = vmatprep.subr.bf16.mxu1 %v14566_v23 }
 0x553   :  { %9874 = vmatpush3.bf16.msra.mxu1 %v12532_v3 }
 0x554   :  { %9875 = vmatprep.subr.bf16.mxu1 %v14566_v23 }
 0x557   :  { %9877 = vmatpush3.bf16.msra.mxu1 %v12536_v11 }
 0x558   :  { %9878 = vmatprep.subr.bf16.mxu1 %v14566_v23 }
 0x55b   :  { %9880 = vmatpush3.bf16.msra.mxu1 %v12540_v37 }
 0x55c   :  { %9905 = vmatprep.subr.bf16.mxu1 %v14566_v23 }
 0x5be   :  { %v1299_v53 = vpop.f32.mrb[10].mxu0 }
 0x5bf   :  { %v8453_v16 = vpop.f32.mrb[11].mxu0 }
 0x5de   :  { %v1440_v12 = vpop.f32.mrb[12].mxu0 }
 0x5df   :  { %v1441_v3 = vadd.f32 %v1440_v12, %v1299_v53  ;;  %v8488_v10 = vpop.f32.mrb[13].mxu0 }
 0x5fe   :  { %v1529_v5 = vpop.f32.mrb[2].mxu1  ;;  %v1600_v11 = vpop.f32.mrb[14].mxu0 }
 0x5ff   :  { %v11081_v37 = vadd.f32 %v1529_v5, %v12549_v6  ;;  %v1531_v27 = vpop.f32.mrb[3].mxu1  ;;  %v8523_v60 = vpop.f32.mrb[15].mxu0 }
 0x600   :  { %v11082_v12 = vadd.f32 %v1531_v27, %v12552_v7  ;;  %v1624_v60 = vadd.f32 %v12559_v43, %v1600_v11  ;;  %v1462_v27 = vadd.f32 %v12562_v26, %v1441_v3 }
 0x601   :  { %v7645_v16 = vmul.f32 -1.442695, %v11081_v37 }
 0x602   :  { %v7646_v53 = vmul.f32 -1.442695, %v11082_v12 }
 0x603   :  { %11171 = vpow2.f32 %v7645_v16 }
 0x604   :  { %11173 = vpow2.f32 %v7646_v53 }
 0x60d   :  { %v11172_v10 = vpop.eup %11171 }
 0x60e   :  { %v1608_v46 = vadd.f32 1.0, %v11172_v10  ;;  %v11174_v4 = vpop.eup %11173 }
 0x60f   :  { %v1615_v5 = vadd.f32 1.0, %v11174_v4  ;;  %v12609_v4 = vld [vmem:[%s14240_s13] ss:$0 sm:$0xff] }
 0x610   :  { %11175 = vrcp.f32 %v1608_v46  ;;  %14632 = vst [vmem:[#allocation130_spill] sm:$0xff] %v12609_v4 }
 0x611   :  { %11177 = vrcp.f32 %v1615_v5 }
 0x61a   :  { %v11176_v37 = vpop.eup %11175 }
 0x61b   :  { %v1625_v16 = vmul.f32 %v11176_v37, %v1624_v60  ;;  %v11178_v46 = vpop.eup %11177 }
 0x61c   :  { %v1628_v53 = vsub.f32 1.0, %v11178_v46  ;;  %v1630_v6 = vmul.f32 0.0, %v11178_v46 }
 0x61d   :  { %v1626_v12 = vadd.f32 %v1625_v16, %v1462_v27 }
 0x61f   :  { %11179 = vtanh.f32 %v1626_v12 }
 0x629   :  { %v11180_v10 = vpop.eup %11179 }
 0x62a   :  { %v1629_v7 = vmul.f32 %v11180_v10, %v1628_v53 }
 0x62c   :  { %v12566_v42 = vadd.f32 %v1630_v6, %v1629_v7  ;;  %v14633_v7 = vld [vmem:[#allocation35_spill] sm:$0xff] }
 0x62e   :  { %14631 = vst [vmem:[#allocation129_spill] sm:$0xff] %v12566_v42  ;;  %8557 = vmatmul.mubr.f32.vlgmr.msra.gmra.mrb[4].mxu1 %v12566_v42 }
 0x62f   :  { %9907 = vmatpush3.bf16.msra.mxu1 %v11940_v31  ;;  %8626 = vmatprep.mubr.msk.f32.mxu1 %vm11694_vm0, %v14561_v1 }
 0x630   :  { %9908 = vmatprep.subr.bf16.mxu1 %v14566_v23 }
 0x633   :  { %9910 = vmatpush3.bf16.msra.mxu1 %v11947_v35 }
 0x634   :  { %9911 = vmatprep.subr.bf16.mxu1 %v14566_v23 }
 0x637   :  { %9913 = vmatpush3.bf16.msra.mxu1 %v11957_v40  ;;  %v14648_v40 = vld [vmem:[#allocation46_spill] sm:$0xff] }
 0x638   :  { %9914 = vmatprep.subr.bf16.mxu1 %v14566_v23 }
 0x63b   :  { %9916 = vmatpush3.bf16.msra.mxu1 %v11967_v45 }
 0x63c   :  { %9917 = vmatprep.subr.bf16.mxu1 %v14566_v23 }
 0x63f   :  { %9919 = vmatpush3.bf16.msra.mxu1 %v11975_v49 }
 0x640   :  { %9920 = vmatprep.subr.bf16.mxu1 %v14566_v23 }
 0x643   :  { %9922 = vmatpush3.bf16.msra.mxu1 %v11981_v52 }
 0x644   :  { %9923 = vmatprep.subr.bf16.mxu1 %v14566_v23 }
 0x647   :  { %9925 = vmatpush3.bf16.msra.mxu1 %v11985_v55 }
 0x648   :  { %9926 = vmatprep.subr.bf16.mxu1 %v14566_v23 }
 0x64b   :  { %9928 = vmatpush3.bf16.msra.mxu1 %v11989_v58 }
 0x64c   :  { %9961 = vmatprep.subr.bf16.mxu1 %v14566_v23 }
 0x64e   :  { %8627 = vmatmul.mubr.f32.vlgmr.msra.gmra.mrb[6].mxu1 %v12566_v42 }
 0x64f   :  { %9963 = vmatpush3.bf16.msra.mxu1 %v12227_v22  ;;  %8661 = vmatprep.mubr.msk.f32.mxu1 %vm11694_vm0, %v14561_v1 }
 0x650   :  { %9964 = vmatprep.subr.bf16.mxu1 %v14566_v23 }
 0x653   :  { %9966 = vmatpush3.bf16.msra.mxu1 %v12238_v9 }
 0x654   :  { %9967 = vmatprep.subr.bf16.mxu1 %v14566_v23 }
 0x657   :  { %9969 = vmatpush3.bf16.msra.mxu1 %v12249_v56  ;;  %v14638_v56 = vld [vmem:[#allocation40_spill] sm:$0xff] }
 0x658   :  { %9970 = vmatprep.subr.bf16.mxu1 %v14566_v23 }
 0x65b   :  { %9972 = vmatpush3.bf16.msra.mxu1 %v12260_v61 }
 0x65c   :  { %9973 = vmatprep.subr.bf16.mxu1 %v14566_v23 }
 0x65f   :  { %9975 = vmatpush3.bf16.msra.mxu1 %v12270_v62 }
 0x660   :  { %9976 = vmatprep.subr.bf16.mxu1 %v14566_v23 }
 0x663   :  { %9978 = vmatpush3.bf16.msra.mxu1 %v12280_v2  ;;  %v14637_v2 = vld [vmem:[#allocation37_spill] sm:$0xff] }
 0x664   :  { %9979 = vmatprep.subr.bf16.mxu1 %v14566_v23 }
 0x667   :  { %9981 = vmatpush3.bf16.msra.mxu1 %v12290_v20 }
 0x668   :  { %9982 = vmatprep.subr.bf16.mxu1 %v14566_v23 }
 0x66b   :  { %9984 = vmatpush3.bf16.msra.mxu1 %v12299_v54 }
 0x66c   :  { %10017 = vmatprep.subr.bf16.mxu1 %v14566_v23 }
 0x701   :  { %v1704_v6 = vpop.f32.mrb[4].mxu1 }
 0x702   :  { %v1705_v3 = vadd.f32 %v12609_v4, %v1704_v6  ;;  %v8558_v11 = vpop.f32.mrb[5].mxu1  ;;  %v14634_v6 = vld [vmem:[#allocation36_spill] sm:$0xff] }
 0x704   :  { %1708 = vmax.xlane.f32.xlu0 %v1705_v3 }
 0x721   :  { %v1864_v50 = vpop.f32.mrb[6].mxu1 }
 0x722   :  { %v1876_v5 = vrot.slane %v1864_v50, %v14633_v7  ;;  %v8628_v60 = vpop.f32.mrb[7].mxu1  ;;  %v1869_v37 = vcombine.high %v1864_v50, %v1864_v50  ;;  %v12623_v50 = vld [vmem:[%s14232_s5] ss:$0 sm:$0xff] }
 0x723   :  { %14635 = vst [vmem:[#allocation131_spill] sm:$0xff] %v12623_v50  ;;  %v14636_v60 = vld [vmem:[#allocation38_spill] sm:$0xff] }
 0x724   :  { %v1884_v27 = vcombine.high %v1876_v5, %v1876_v5  ;;  %v1892_v16 = vrot.slane %v1876_v5, %v14633_v7  ;;  %v1883_v46 = vrot.slane %v1869_v37, %v14633_v7 }
 0x726   :  { %v1906_v12 = vrot.slane %v1884_v27, %v14633_v7  ;;  %v1914_v53 = vcombine.high %v1892_v16, %v1892_v16  ;;  %v1921_v10 = vrot.slane %v1892_v16, %v12005_v17  ;;  %v1899_v4 = vrot.slane %v1883_v46, %v14633_v7 }
 0x727   :  { %v1885_v20 = vcombine.high %v1883_v46, %v1883_v46  ;;  %v14639_v46 = vld [vmem:[#allocation39_spill] sm:$0xff] }
 0x728   :  { %v1925_v54 = vrot.slane %v1906_v12, %v12005_v17  ;;  %v1958_v11 = vadd.f32 %v1921_v10, %v14634_v6  ;;  %v1929_v37 = vrot.slane %v1914_v53, %v12005_v17  ;;  %v1937_v10 = vrot.slane %v1899_v4, %v12005_v17 }
 0x729   :  { %v1916_v6 = vcombine.high %v1906_v12, %v1906_v12 }
 0x72a   :  { %v1966_v5 = vmul.f32 %v12623_v50, %v1958_v11  ;;  %v1959_v27 = vadd.f32 %v1925_v54, %v14636_v60  ;;  %v1960_v62 = vadd.f32 %v1929_v37, %v14637_v2  ;;  %v1962_v9 = vadd.f32 %v1937_v10, %v14638_v56  ;;  %v14644_v56 = vld [vmem:[#allocation44_spill] sm:$0xff] }
 0x72b   :  { %v1933_v11 = vrot.slane %v1916_v6, %v12005_v17  ;;  %v1913_v54 = vrot.slane %v1885_v20, %v14633_v7  ;;  %v1915_v37 = vcombine.high %v1899_v4, %v1899_v4  ;;  %v14641_v20 = vld [vmem:[#allocation42_spill] sm:$0xff] }
 0x72c   :  { %1974 = vadd.xlane.f32.xlu1 %v1966_v5  ;;  %v1967_v16 = vmul.f32 %v12623_v50, %v1959_v27  ;;  %v1968_v61 = vmul.f32 %v12623_v50, %v1960_v62  ;;  %v1970_v53 = vmul.f32 %v12623_v50, %v1962_v9 }
 0x72d   :  { %v1961_v5 = vadd.f32 %v1933_v11, %v14639_v46  ;;  %v1941_v27 = vrot.slane %v1913_v54, %v12005_v17  ;;  %v1945_v62 = vrot.slane %v1915_v37, %v12005_v17  ;;  %v1917_v10 = vcombine.high %v1913_v54, %v1913_v54  ;;  %v14642_v46 = vld [vmem:[#allocation43_spill] sm:$0xff] }
 0x72f   :  { %v1969_v12 = vmul.f32 %v12623_v50, %v1961_v5  ;;  %v1949_v9 = vrot.slane %v1917_v10, %v12005_v17  ;;  %v14643_v10 = vld [vmem:[#allocation45_spill] sm:$0xff] }
 0x730   :  { %1976 = vadd.xlane.f32.xlu1 %v1967_v16  ;;  %v14640_v16 = vld [vmem:[#allocation41_spill] sm:$0xff] }
 0x731   :  { %v1963_v2 = vadd.f32 %v1941_v27, %v14640_v16  ;;  %v1965_v4 = vadd.f32 %v1949_v9, %v14642_v46 }
 0x733   :  { %v1971_v6 = vmul.f32 %v12623_v50, %v1963_v2 }
 0x734   :  { %1978 = vadd.xlane.f32.xlu1 %v1968_v61  ;;  %v1964_v61 = vadd.f32 %v1945_v62, %v14641_v20 }
 0x736   :  { %v1972_v11 = vmul.f32 %v12623_v50, %v1964_v61 }
 0x738   :  { %1982 = vadd.xlane.f32.xlu1 %v1970_v53  ;;  %v1973_v53 = vmul.f32 %v12623_v50, %v1965_v4 }
 0x73c   :  { %1980 = vadd.xlane.f32.xlu1 %v1969_v12 }
 0x740   :  { %1984 = vadd.xlane.f32.xlu1 %v1971_v6 }
 0x744   :  { %1986 = vadd.xlane.f32.xlu1 %v1972_v11 }
 0x748   :  { %1988 = vadd.xlane.f32.xlu1 %v1973_v53 }
 0x791   :  { %v1709_v5 = vpop.xlane.xlu0 %1708 }
 0x792   :  { %v1710_v27 = vsub.f32 %v1705_v3, %v1709_v5 }
 0x794   :  { %v1711_v37 = vmul.f32 1.442695, %v1710_v27 }
 0x796   :  { %11181 = vpow2.f32 %v1711_v37 }
 0x7a0   :  { %v11182_v54 = vpop.eup %11181 }
 0x7a1   :  { %1713 = vadd.xlane.f32.xlu0 %v11182_v54 }
 0x7b9   :  { %v1975_v2 = vpop.xlane.xlu1 %1974 }
 0x7ba   :  { %v1990_v9 = vadd.f32 %v1975_v2, %v14643_v10 }
 0x7bc   :  { %v1998_v5 = vmax.f32 %v1990_v9, 0.0 }
 0x7bd   :  { %v1977_v12 = vpop.xlane.xlu1 %1976 }
 0x7be   :  { %v1991_v6 = vadd.f32 %v1977_v12, %v14643_v10 }
 0x7c0   :  { %v1999_v4 = vmax.f32 %v1991_v6, 0.0 }
 0x7c1   :  { %v1979_v62 = vpop.xlane.xlu1 %1978 }
 0x7c2   :  { %v1992_v61 = vadd.f32 %v1979_v62, %v14643_v10  ;;  %v2021_v60 = vrot.slane %v1999_v4, %v14644_v56  ;;  %v2017_v62 = vrot.slane %v1998_v5, %v14644_v56 }
 0x7c4   :  { %v2000_v53 = vmax.f32 %v1992_v61, 0.0  ;;  %v2046_v61 = vsel %vm834_vm1, %v2021_v60, %v2017_v62 }
 0x7c5   :  { %v1983_v20 = vpop.xlane.xlu1 %1982 }
 0x7c6   :  { %v1994_v46 = vadd.f32 %v1983_v20, %v14643_v10  ;;  %v2025_v12 = vrot.slane %v2000_v53, %v14644_v56 }
 0x7c8   :  { %v2002_v6 = vmax.f32 %v1994_v46, 0.0  ;;  %v2047_v20 = vsel %vm836_vm2, %v2025_v12, %v2046_v61 }
 0x7c9   :  { %v1981_v16 = vpop.xlane.xlu1 %1980 }
 0x7ca   :  { %v1993_v11 = vadd.f32 %v1981_v16, %v14643_v10  ;;  %v2033_v55 = vrot.slane %v2002_v6, %v14644_v56 }
 0x7cc   :  { %v2001_v37 = vmax.f32 %v1993_v11, 0.0 }
 0x7cd   :  { %v1985_v3 = vpop.xlane.xlu1 %1984 }
 0x7ce   :  { %v1995_v54 = vadd.f32 %v1985_v3, %v14643_v10  ;;  %v2029_v2 = vrot.slane %v2001_v37, %v14644_v56 }
 0x7d0   :  { %v2003_v7 = vmax.f32 %v1995_v54, 0.0  ;;  %v2048_v3 = vsel %vm838_vm3, %v2029_v2, %v2047_v20 }
 0x7d1   :  { %v1987_v50 = vpop.xlane.xlu1 %1986  ;;  %v2049_v60 = vsel %vm840_vm4, %v2033_v55, %v2048_v3 }
 0x7d2   :  { %v12658_v16 = vadd.f32 %v1987_v50, %v14643_v10  ;;  %v2037_v22 = vrot.slane %v2003_v7, %v14644_v56 }
 0x7d4   :  { %v14424_v9 = vmax.f32 %v12658_v16, 0.0  ;;  %v2050_v12 = vsel %vm842_vm5, %v2037_v22, %v2049_v60 }
 0x7d5   :  { %v1989_v11 = vpop.xlane.xlu1 %1988 }
 0x7d6   :  { %v1997_v58 = vadd.f32 %v1989_v11, %v14643_v10  ;;  %v2041_v50 = vrot.slane %v14424_v9, %v14644_v56 }
 0x7d8   :  { %v2005_v46 = vmax.f32 %v1997_v58, 0.0  ;;  %v2051_v62 = vsel %vm844_vm6, %v2041_v50, %v2050_v12  ;;  %v14645_v50 = vld [vmem:[#allocation48_spill] sm:$0xff] }
 0x7da   :  { %v2045_v54 = vrot.slane %v2005_v46, %v14644_v56 }
 0x7dc   :  { %v2052_v2 = vsel %vm846_vm7, %v2045_v54, %v2051_v62  ;;  %v14646_v54 = vld [vmem:[#allocation49_spill] sm:$0xff] }
 0x7dd   :  { %v2054_v61 = vsel %vm849_vm8, %v2052_v2, -inf }
 0x7de   :  { %2055 = vmax.xlane.f32.xlu1 %v2054_v61 }
 0x82e   :  { %v1714_v20 = vpop.xlane.xlu0 %1713 }
 0x82f   :  { %11183 = vlog2.f32 %v1714_v20  ;;  %v14647_v20 = vld [vmem:[#allocation50_spill] sm:$0xff] }
 0x839   :  { %v11184_v11 = vpop.eup %11183 }
 0x83a   :  { %v1716_v10 = vmul.f32 0.6931472, %v11184_v11 }
 0x83c   :  { %v1717_v52 = vsub.f32 %v1710_v27, %v1716_v10 }
 0x83e   :  { %1719 = vmax.xlane.f32.xlu0 %v1717_v52  ;;  %1718 = vst [vmem:[#allocation17] sm:$0xff] %v1717_v52 }
 0x86b   :  { %v2056_v58 = vpop.xlane.xlu1 %2055 }
 0x86c   :  { %v2061_v55 = vrot.slane %v2056_v58, %v12005_v17  ;;  %v2065_v3 = vrot.slane %v2056_v58, %v12100_v48  ;;  %v2069_v22 = vrot.slane %v2056_v58, %v12106_v51  ;;  %v2073_v60 = vrot.slane %v2056_v58, %v14645_v50 }
 0x86d   :  { %v2077_v12 = vrot.slane %v2056_v58, %v14646_v54  ;;  %v2081_v9 = vrot.slane %v2056_v58, %v14647_v20  ;;  %v2089_v35 = vrot.slane %v2056_v58, %v14648_v40 }
 0x86e   :  { %v2099_v62 = vsub.f32 %v1999_v4, %v2065_v3  ;;  %v2098_v2 = vsub.f32 %v1998_v5, %v2061_v55  ;;  %v2100_v61 = vsub.f32 %v2000_v53, %v2069_v22  ;;  %v2101_v11 = vsub.f32 %v2001_v37, %v2073_v60 }
 0x86f   :  { %v2102_v45 = vsub.f32 %v2002_v6, %v2077_v12  ;;  %v2103_v26 = vsub.f32 %v2003_v7, %v2081_v9  ;;  %v2105_v4 = vsub.f32 %v2005_v46, %v2089_v35  ;;  %v14651_v46 = vld [vmem:[#allocation59_spill] sm:$0xff] }
 0x870   :  { %v2108_v27 = vmul.f32 1.442695, %v2099_v62  ;;  %v2106_v10 = vmul.f32 1.442695, %v2098_v2  ;;  %v2110_v49 = vmul.f32 1.442695, %v2100_v61 }
 0x871   :  { %v2112_v31 = vmul.f32 1.442695, %v2101_v11  ;;  %v2114_v43 = vmul.f32 1.442695, %v2102_v45  ;;  %v2116_v42 = vmul.f32 1.442695, %v2103_v26 }
 0x872   :  { %11185 = vpow2.f32 %v2108_v27  ;;  %v2120_v53 = vmul.f32 1.442695, %v2105_v4 }
 0x873   :  { %11187 = vpow2.f32 %v2106_v10 }
 0x874   :  { %11189 = vpow2.f32 %v2110_v49  ;;  %v14649_v49 = vld [vmem:[#allocation51_spill] sm:$0xff] }
 0x875   :  { %11191 = vpow2.f32 %v2112_v31  ;;  %v2085_v26 = vrot.slane %v2056_v58, %v14649_v49 }
 0x876   :  { %11193 = vpow2.f32 %v2114_v43  ;;  %v14650_v43 = vmax.f32 %v12658_v16, 0.0 }
 0x877   :  { %11195 = vpow2.f32 %v2116_v42 }
 0x878   :  { %11197 = vpow2.f32 %v2120_v53  ;;  %v2104_v9 = vsub.f32 %v14650_v43, %v2085_v26 }
 0x87a   :  { %v2118_v3 = vmul.f32 1.442695, %v2104_v9  ;;  %v14652_v9 = vmov 1.0  }
 0x87c   :  { %v12683_v5 = vpop.eup %11185  ;;  %11199 = vpow2.f32 %v2118_v3 }
 0x87d   :  { %v12685_v37 = vpop.eup %11187  ;;  %2134 = vperm.xlu1 %11138, %v12683_v5  }
 0x87e   :  { %2131 = vperm.xlu0 %11137, %v12685_v37   ;;  %v12689_v6 = vpop.eup %11189 }
 0x87f   :  { %v12691_v7 = vpop.eup %11191 }
 0x880   :  { %v12695_v31 = vpop.eup %11193 }
 0x881   :  { %2137 = vperm.xlu1 %11138, %v12689_v6   ;;  %v12697_v35 = vpop.eup %11195 }
 0x882   :  { %2140 = vperm.xlu0 %11137, %v12691_v7   ;;  %v12701_v45 = vpop.eup %11197 }
 0x885   :  { %2143 = vperm.xlu1 %11138, %v12695_v31  }
 0x886   :  { %2146 = vperm.xlu0 %11137, %v12697_v35   ;;  %v12708_v22 = vpop.eup %11199 }
 0x88a   :  { %2152 = vperm.xlu0 %11137, %v12701_v45  }
 0x8cb   :  { %v1720_v42 = vpop.xlane.xlu0 %1719 }
 0x8cc   :  { %vm1721_vm10 = vcmp.eq.f32.partialorder %v1717_v52, %v1720_v42 }
 0x8cd   :  { %v1722_v55 = vsel %vm1721_vm10, %v14651_v46, 128.0 }
 0x8ce   :  { %1723 = vmin.xlane.f32.xlu1 %v1722_v55 }
 0x8df   :  { %2149 = vperm.xlu1 %11138, %v12708_v22  }
 0x8fc   :  { %v2135_v60 = vpop.permute.xlu1 %2134 }
 0x8fd   :  { %v2132_v12 = vpop.permute.xlu0 %2131  ;;  %v2161_v58 = vrot.slane %v2135_v60, %v14644_v56  ;;  %v14653_v60 = vld [vmem:[#allocation62_spill] sm:$0xff] }
 0x8fe   :  { %v2157_v52 = vrot.slane %v2132_v12, %v14644_v56 }
 0x900   :  { %v2138_v62 = vpop.permute.xlu1 %2137  ;;  %v2186_v27 = vsel %vm834_vm1, %v2161_v58, %v2157_v52 }
 0x901   :  { %v2141_v2 = vpop.permute.xlu0 %2140  ;;  %v2165_v16 = vrot.slane %v2138_v62, %v14644_v56  ;;  %v14654_v62 = vld [vmem:[#allocation64_spill] sm:$0xff] }
 0x902   :  { %v2169_v10 = vrot.slane %v2141_v2, %v14644_v56 }
 0x903   :  { %v2187_v4 = vsel %vm836_vm2, %v2165_v16, %v2186_v27  ;;  %v14656_v27 = vld [vmem:[#allocation67_spill] sm:$0xff] }
 0x904   :  { %v2144_v61 = vpop.permute.xlu1 %2143  ;;  %v2188_v42 = vsel %vm838_vm3, %v2169_v10, %v2187_v4  ;;  %v14657_v4 = vld [vmem:[#allocation68_spill] sm:$0xff] }
 0x905   :  { %v2147_v11 = vpop.permute.xlu0 %2146  ;;  %v2173_v53 = vrot.slane %v2144_v61, %v14644_v56  ;;  %v14655_v61 = vld [vmem:[#allocation65_spill] sm:$0xff] }
 0x906   :  { %v2177_v43 = vrot.slane %v2147_v11, %v14644_v56 }
 0x907   :  { %v2189_v55 = vsel %vm840_vm4, %v2173_v53, %v2188_v42  ;;  %v14658_v53 = vld [vmem:[#allocation70_spill] sm:$0xff]  ;;  %v14660_v42 = vld [vmem:[#allocation73_spill] sm:$0xff] }
 0x908   :  { %v2190_v52 = vsel %vm842_vm5, %v2177_v43, %v2189_v55  ;;  %v14661_v43 = vld [vmem:[#allocation74_spill] sm:$0xff]  ;;  %v14662_v55 = vld [vmem:[#allocation76_spill] sm:$0xff] }
 0x909   :  { %v2153_v3 = vpop.permute.xlu0 %2152 }
 0x90a   :  { %v2185_v58 = vrot.slane %v2153_v3, %v14644_v56  ;;  %v14663_v3 = vld [vmem:[#allocation77_spill] sm:$0xff] }
 0x95b   :  { %v1724_v26 = vpop.xlane.xlu1 %1723 }
 0x95c   :  { %vm1725_vm11 = vcmp.eq.f32.partialorder %v14651_v46, %v1724_v26  ;;  %v14659_v26 = vld [vmem:[#allocation71_spill] sm:$0xff] }
 0x95d   :  { %8592 = vmatmul.mubr.msk.f32.vlgmr.msra.gmra.mrb[16].mxu0 %vm1725_vm11, %v14652_v9 }
 0x95e   :  { %9932 = vmatpush1.bf16.msra.mxu0 %v14653_v60  ;;  %2430 = vmatprep.mubr.f32.mxu0 %v14561_v1 }
 0x95f   :  { %v2150_v12 = vpop.permute.xlu1 %2149  ;;  %9934 = vmatprep.subr.bf16.mxu0 %v14654_v62 }
 0x960   :  { %v2181_v2 = vrot.slane %v2150_v12, %v14644_v56  ;;  %v14664_v12 = vld [vmem:[#allocation79_spill] sm:$0xff] }
 0x962   :  { %v2191_v16 = vsel %vm844_vm6, %v2181_v2, %v2190_v52  ;;  %9936 = vmatpush1.bf16.msra.mxu0 %v14655_v61  ;;  %v14665_v2 = vld [vmem:[#allocation80_spill] sm:$0xff]  ;;  %v14667_v52 = vld [vmem:[#allocation83_spill] sm:$0xff] }
 0x963   :  { %v2192_v11 = vsel %vm846_vm7, %v2185_v58, %v2191_v16  ;;  %9938 = vmatprep.subr.bf16.mxu0 %v14656_v27  ;;  %v14666_v58 = vld [vmem:[#allocation82_spill] sm:$0xff]  ;;  %v14668_v16 = vld [vmem:[#allocation85_spill] sm:$0xff] }
 0x964   :  { %v2194_v10 = vsel %vm849_vm8, %v2192_v11, 0.0  ;;  %v12779_v27 = vld [vmem:[#allocation3 + $0x28] sm:$0xff] }
 0x965   :  { %2195 = vadd.xlane.f32.xlu1 %v2194_v10  ;;  %14674 = vst [vmem:[#allocation136_spill] sm:$0xff] %v12779_v27 }
 0x966   :  { %9940 = vmatpush1.bf16.msra.mxu0 %v14657_v4 }
 0x967   :  { %9942 = vmatprep.subr.bf16.mxu0 %v14658_v53 }
 0x96a   :  { %9944 = vmatpush1.bf16.msra.mxu0 %v14659_v26 }
 0x96b   :  { %9946 = vmatprep.subr.bf16.mxu0 %v14660_v42 }
 0x96e   :  { %9948 = vmatpush1.bf16.msra.mxu0 %v14661_v43 }
 0x96f   :  { %9950 = vmatprep.subr.bf16.mxu0 %v14662_v55 }
 0x972   :  { %9952 = vmatpush1.bf16.msra.mxu0 %v14663_v3 }
 0x973   :  { %9954 = vmatprep.subr.bf16.mxu0 %v14664_v12 }
 0x976   :  { %9956 = vmatpush1.bf16.msra.mxu0 %v14665_v2 }
 0x977   :  { %9958 = vmatprep.subr.bf16.mxu0 %v14666_v58 }
 0x97a   :  { %9960 = vmatpush1.bf16.msra.mxu0 %v14667_v52 }
 0x97b   :  { %9986 = vmatprep.subr.bf16.mxu0 %v14668_v16 }
 0x9f2   :  { %v2196_v11 = vpop.xlane.xlu1 %2195 }
 0x9f3   :  { %v2201_v10 = vrot.slane %v2196_v11, %v12005_v17  ;;  %v2205_v42 = vrot.slane %v2196_v11, %v12100_v48  ;;  %v2209_v55 = vrot.slane %v2196_v11, %v12106_v51  ;;  %v2213_v12 = vrot.slane %v2196_v11, %v14645_v50 }
 0x9f4   :  { %v2217_v58 = vrot.slane %v2196_v11, %v14646_v54  ;;  %v2221_v16 = vrot.slane %v2196_v11, %v14647_v20 }
 0x9f5   :  { %11201 = vrcp.f32 %v2201_v10 }
 0x9f6   :  { %11203 = vrcp.f32 %v2205_v42  ;;  %v2225_v42 = vrot.slane %v2196_v11, %v14649_v49  ;;  %v12785_v49 = vld [vmem:[#allocation3 + $0x38] sm:$0xff] }
 0x9f7   :  { %11205 = vrcp.f32 %v2209_v55  ;;  %14676 = vst [vmem:[#allocation138_spill] sm:$0xff] %v12785_v49 }
 0x9f8   :  { %11207 = vrcp.f32 %v2213_v12  ;;  %v2229_v12 = vrot.slane %v2196_v11, %v14648_v40 }
 0x9f9   :  { %11209 = vrcp.f32 %v2217_v58 }
 0x9fa   :  { %11211 = vrcp.f32 %v2221_v16 }
 0x9fb   :  { %11213 = vrcp.f32 %v2225_v42 }
 0x9fc   :  { %11215 = vrcp.f32 %v2229_v12 }
 0x9ff   :  { %v11202_v3 = vpop.eup %11201 }
 0xa00   :  { %v2239_v52 = vmul.f32 %v11202_v3, %v12685_v37  ;;  %v11204_v2 = vpop.eup %11203 }
 0xa01   :  { %v2241_v43 = vmul.f32 %v11204_v2, %v12683_v5  ;;  %v11206_v10 = vpop.eup %11205 }
 0xa02   :  { %2256 = vperm.xlu0 %11137, %v2239_v52   ;;  %v2243_v55 = vmul.f32 %v11206_v10, %v12689_v6  ;;  %v11208_v26 = vpop.eup %11207 }
 0xa03   :  { %v2245_v37 = vmul.f32 %v11208_v26, %v12691_v7  ;;  %v11210_v3 = vpop.eup %11209 }
 0xa04   :  { %v2247_v58 = vmul.f32 %v11210_v3, %v12695_v31  ;;  %v11212_v5 = vpop.eup %11211  ;;  %v12764_v31 = vld [vmem:[#allocation3 + $0x8] sm:$0xff] }
 0xa05   :  { %v11214_v2 = vpop.eup %11213  ;;  %14669 = vst [vmem:[#allocation44_spill] sm:$0xff] %v12764_v31 }
 0xa06   :  { %2261 = vperm.xlu0 %11137, %v2241_v43   ;;  %v2249_v43 = vmul.f32 %v11212_v5, %v12697_v35  ;;  %v2251_v6 = vmul.f32 %v11214_v2, %v12708_v22  ;;  %v11216_v52 = vpop.eup %11215  ;;  %v12767_v35 = vld [vmem:[#allocation3 + $0x10] sm:$0xff]  ;;  %v12770_v22 = vld [vmem:[#allocation3] sm:$0xff] }
 0xa07   :  { %v2253_v16 = vmul.f32 %v11216_v52, %v12701_v45  ;;  %14670 = vst [vmem:[#allocation132_spill] sm:$0xff] %v12767_v35  ;;  %14671 = vst [vmem:[#allocation133_spill] sm:$0xff] %v12770_v22 }
 0xa0a   :  { %2266 = vperm.xlu0 %11137, %v2243_v55  }
 0xa0e   :  { %2271 = vperm.xlu0 %11137, %v2245_v37  }
 0xa12   :  { %2276 = vperm.xlu0 %11137, %v2247_v58   ;;  %v12773_v58 = vld [vmem:[#allocation3 + $0x18] sm:$0xff] }
 0xa13   :  { %14672 = vst [vmem:[#allocation134_spill] sm:$0xff] %v12773_v58 }
 0xa16   :  { %2281 = vperm.xlu0 %11137, %v2249_v43  }
 0xa1a   :  { %2286 = vperm.xlu0 %11137, %v2251_v6  }
 0xa1e   :  { %2291 = vperm.xlu0 %11137, %v2253_v16  }
 0xa30   :  { %v12762_v11 = vpop.f32.mrb[16].mxu0 }
 0xa31   :  { %v8593_v7 = vpop.f32.mrb[17].mxu0 }
 0xa32   :  { %v12776_v7 = vld [vmem:[#allocation3 + $0x20] sm:$0xff] }
 0xa33   :  { %14673 = vst [vmem:[#allocation135_spill] sm:$0xff] %v12776_v7 }
 0xa81   :  { %v2257_v26 = vpop.permute.xlu0 %2256 }
 0xa82   :  { %v2294_v37 = vmul.f32 %v12770_v22, %v2257_v26 }
 0xa84   :  { %v2302_v2 = vrot.slane %v2294_v37, 4 }
 0xa85   :  { %v2262_v10 = vpop.permute.xlu0 %2261 }
 0xa86   :  { %v2295_v55 = vmul.f32 %v12764_v31, %v2262_v10 }
 0xa88   :  { %v2308_v3 = vrot.slane %v2295_v55, 4 }
 0xa89   :  { %v2267_v42 = vpop.permute.xlu0 %2266 }
 0xa8a   :  { %v2296_v12 = vmul.f32 %v12767_v35, %v2267_v42  ;;  %v2309_v16 = vadd.f32 %v2308_v3, %v2295_v55  ;;  %v2303_v35 = vadd.f32 %v2302_v2, %v2294_v37 }
 0xa8c   :  { %v2314_v43 = vrot.slane %v2296_v12, 4  ;;  %v2310_v22 = vrot.slane %v2309_v16, 2  ;;  %v2304_v61 = vrot.slane %v2303_v35, 2 }
 0xa8d   :  { %v2272_v45 = vpop.permute.xlu0 %2271 }
 0xa8e   :  { %v2297_v5 = vmul.f32 %v12773_v58, %v2272_v45  ;;  %v2315_v42 = vadd.f32 %v2314_v43, %v2296_v12  ;;  %v2311_v9 = vadd.f32 %v2310_v22, %v2309_v16 }
 0xa90   :  { %v2320_v6 = vrot.slane %v2297_v5, 4  ;;  %v2316_v58 = vrot.slane %v2315_v42, 2 }
 0xa91   :  { %v2277_v52 = vpop.permute.xlu0 %2276 }
 0xa92   :  { %v2298_v10 = vmul.f32 %v12776_v7, %v2277_v52  ;;  %v2321_v31 = vadd.f32 %v2320_v6, %v2297_v5  ;;  %v12782_v52 = vld [vmem:[#allocation3 + $0x30] sm:$0xff]  ;;  %v2317_v37 = vadd.f32 %v2316_v58, %v2315_v42  ;;  %v2305_v5 = vadd.f32 %v2304_v61, %v2303_v35 }
 0xa93   :  { %14675 = vst [vmem:[#allocation137_spill] sm:$0xff] %v12782_v52 }
 0xa94   :  { %v2326_v53 = vrot.slane %v2298_v10, 4  ;;  %v2322_v62 = vrot.slane %v2321_v31, 2  ;;  %v2318_v22 = vrot.slane %v2317_v37, 1 }
 0xa95   :  { %v2282_v26 = vpop.permute.xlu0 %2281 }
 0xa96   :  { %v2327_v4 = vadd.f32 %v2326_v53, %v2298_v10  ;;  %v2299_v45 = vmul.f32 %v12779_v27, %v2282_v26  ;;  %v2323_v43 = vadd.f32 %v2322_v62, %v2321_v31  ;;  %v2312_v26 = vrot.slane %v2311_v9, 1 }
 0xa97   :  { %v2319_v35 = vadd.f32 %v2318_v22, %v2317_v37  ;;  %v14686_v22 = vld [vmem:[#allocation95_spill] sm:$0xff] }
 0xa98   :  { %v2332_v60 = vrot.slane %v2299_v45, 4  ;;  %v2328_v55 = vrot.slane %v2327_v4, 2  ;;  %v2324_v16 = vrot.slane %v2323_v43, 1  ;;  %v2313_v58 = vadd.f32 %v2312_v26, %v2311_v9  ;;  %v14685_v26 = vld [vmem:[#allocation94_spill] sm:$0xff] }
 0xa99   :  { %v2287_v3 = vpop.permute.xlu0 %2286 }
 0xa9a   :  { %v2333_v46 = vadd.f32 %v2332_v60, %v2299_v45  ;;  %v2300_v12 = vmul.f32 %v12782_v52, %v2287_v3  ;;  %v2329_v6 = vadd.f32 %v2328_v55, %v2327_v4  ;;  %v2306_v60 = vrot.slane %v2305_v5, 1 }
 0xa9b   :  { %v2325_v42 = vadd.f32 %v2324_v16, %v2323_v43  ;;  %v14683_v43 = vld [vmem:[#allocation92_spill] sm:$0xff]  ;;  %v14688_v16 = vld [vmem:[#allocation97_spill] sm:$0xff] }
 0xa9c   :  { %v2334_v53 = vrot.slane %v2333_v46, 2  ;;  %v2338_v2 = vrot.slane %v2300_v12, 4  ;;  %v2330_v3 = vrot.slane %v2329_v6, 1  ;;  %v2307_v4 = vadd.f32 %v2306_v60, %v2305_v5  ;;  %v14682_v5 = vld [vmem:[#allocation91_spill] sm:$0xff]  ;;  %v14687_v60 = vld [vmem:[#allocation96_spill] sm:$0xff] }
 0xa9d   :  { %v2292_v10 = vpop.permute.xlu0 %2291 }
 0xa9e   :  { %v2335_v27 = vadd.f32 %v2334_v53, %v2333_v46  ;;  %v2339_v7 = vadd.f32 %v2338_v2, %v2300_v12  ;;  %v2301_v40 = vmul.f32 %v12785_v49, %v2292_v10  ;;  %v2331_v12 = vadd.f32 %v2330_v3, %v2329_v6  ;;  %v14684_v6 = vld [vmem:[#allocation93_spill] sm:$0xff]  ;;  %v14690_v3 = vld [vmem:[#allocation99_spill] sm:$0xff] }
 0xa9f   :  { %v2358_v53 = vsel %vm834_vm1, %v2313_v58, %v2307_v4  ;;  %v14692_v58 = vld [vmem:[#allocation101_spill] sm:$0xff]  ;;  %v14697_v4 = vld [vmem:[#allocation107_spill] sm:$0xff] }
 0xaa0   :  { %v2340_v45 = vrot.slane %v2339_v7, 2  ;;  %v2344_v20 = vrot.slane %v2301_v40, 4  ;;  %v2336_v61 = vrot.slane %v2335_v27, 1  ;;  %v2359_v49 = vsel %vm836_vm2, %v2319_v35, %v2358_v53  ;;  %v14696_v35 = vld [vmem:[#allocation105_spill] sm:$0xff]  ;;  %v14702_v53 = vld [vmem:[#allocation118_spill] sm:$0xff] }
 0xaa1   :  { %v2360_v54 = vsel %vm838_vm3, %v2325_v42, %v2359_v49  ;;  %v14679_v49 = vld [vmem:[#allocation88_spill] sm:$0xff] }
 0xaa2   :  { %v2341_v62 = vadd.f32 %v2340_v45, %v2339_v7  ;;  %v2345_v31 = vadd.f32 %v2344_v20, %v2301_v40  ;;  %v2337_v2 = vadd.f32 %v2336_v61, %v2335_v27  ;;  %v2361_v9 = vsel %vm840_vm4, %v2331_v12, %v2360_v54  ;;  %v14678_v54 = vld [vmem:[#allocation87_spill] sm:$0xff]  ;;  %v14680_v27 = vld [vmem:[#allocation89_spill] sm:$0xff]  ;;  %v14689_v45 = vld [vmem:[#allocation98_spill] sm:$0xff] }
 0xaa3   :  { %v14693_v61 = vld [vmem:[#allocation102_spill] sm:$0xff]  ;;  %v14698_v42 = vld [vmem:[#allocation108_spill] sm:$0xff] }
 0xaa4   :  { %v2342_v55 = vrot.slane %v2341_v62, 1  ;;  %v2346_v46 = vrot.slane %v2345_v31, 2  ;;  %v2362_v40 = vsel %vm842_vm5, %v2337_v2, %v2361_v9  ;;  %v14701_v12 = vld [vmem:[#allocation52_spill] sm:$0xff]  ;;  %v14703_v2 = vld [vmem:[#allocation53_spill] sm:$0xff]  ;;  %v14705_v9 = vld [vmem:[#allocation54_spill] sm:$0xff] }
 0xaa6   :  { %v2347_v10 = vadd.f32 %v2346_v46, %v2345_v31  ;;  %v2343_v52 = vadd.f32 %v2342_v55, %v2341_v62  ;;  %v14694_v62 = vld [vmem:[#allocation103_spill] sm:$0xff]  ;;  %v14695_v31 = vld [vmem:[#allocation104_spill] sm:$0xff]  ;;  %v14699_v55 = vld [vmem:[#allocation129_spill] sm:$0xff] }
 0xaa7   :  { %v14700_v46 = vld [vmem:[#allocation117_spill] sm:$0xff] }
 0xaa8   :  { %v2348_v50 = vrot.slane %v2347_v10, 1  ;;  %v2363_v20 = vsel %vm844_vm6, %v2343_v52, %v2362_v40  ;;  %v14681_v52 = vld [vmem:[#allocation90_spill] sm:$0xff]  ;;  %v14707_v40 = vld [vmem:[#allocation55_spill] sm:$0xff] }
 0xaaa   :  { %v2349_v7 = vadd.f32 %v2348_v50, %v2347_v10  ;;  %v14677_v50 = vld [vmem:[#allocation86_spill] sm:$0xff]  ;;  %v14704_v10 = vld [vmem:[#allocation119_spill] sm:$0xff] }
 0xaac   :  { %v2364_v37 = vsel %vm846_vm7, %v2349_v7, %v2363_v20  ;;  %v14706_v7 = vld [vmem:[#allocation120_spill] sm:$0xff]  ;;  %v14708_v20 = vld [vmem:[#allocation121_spill] sm:$0xff] }
 0xaad   :  { %2431 = vmatmul.mubr.f32.vlgmr.msra.gmra.mrb[18].mxu0 %v2364_v37  ;;  %8662 = vmatmul.mubr.f32.vlgmr.msra.gmra.mrb[8].mxu1 %v2364_v37  ;;  %v14709_v37 = vld [vmem:[#allocation56_spill] sm:$0xff] }
 0xaae   :  { %9988 = vmatpush1.bf16.msra.mxu0 %v12323_v41  ;;  %10019 = vmatpush3.bf16.msra.mxu1 %v12325_v19 }
 0xaaf   :  { %9990 = vmatprep.subr.bf16.mxu0 %v12328_v30  ;;  %10020 = vmatprep.subr.bf16.mxu1 %v14566_v23 }
 0xab0   :  { %2571 = vmatprep.mubr.f32.mxu0 %v14561_v1  ;;  %8696 = vmatprep.mubr.msk.f32.mxu1 %vm11694_vm0, %v14561_v1 }
 0xab2   :  { %9992 = vmatpush1.bf16.msra.mxu0 %v12333_v47  ;;  %10022 = vmatpush3.bf16.msra.mxu1 %v12335_v14 }
 0xab3   :  { %9994 = vmatprep.subr.bf16.mxu0 %v12339_v34  ;;  %10023 = vmatprep.subr.bf16.mxu1 %v14566_v23 }
 0xab6   :  { %9996 = vmatpush1.bf16.msra.mxu0 %v12346_v57  ;;  %10025 = vmatpush3.bf16.msra.mxu1 %v12348_v29 }
 0xab7   :  { %9998 = vmatprep.subr.bf16.mxu0 %v12352_v32  ;;  %10026 = vmatprep.subr.bf16.mxu1 %v14566_v23 }
 0xaba   :  { %10000 = vmatpush1.bf16.msra.mxu0 %v12356_v0  ;;  %10028 = vmatpush3.bf16.msra.mxu1 %v12358_v25 }
 0xabb   :  { %10002 = vmatprep.subr.bf16.mxu0 %v12362_v8  ;;  %10029 = vmatprep.subr.bf16.mxu1 %v14566_v23 }
 0xabe   :  { %10004 = vmatpush1.bf16.msra.mxu0 %v12366_v44  ;;  %10031 = vmatpush3.bf16.msra.mxu1 %v12368_v63 }
 0xabf   :  { %10006 = vmatprep.subr.bf16.mxu0 %v12372_v18  ;;  %10032 = vmatprep.subr.bf16.mxu1 %v14566_v23 }
 0xac2   :  { %10008 = vmatpush1.bf16.msra.mxu0 %v14677_v50  ;;  %10034 = vmatpush3.bf16.msra.mxu1 %v14678_v54 }
 0xac3   :  { %10010 = vmatprep.subr.bf16.mxu0 %v14679_v49  ;;  %10035 = vmatprep.subr.bf16.mxu1 %v14566_v23 }
 0xac6   :  { %10012 = vmatpush1.bf16.msra.mxu0 %v14680_v27  ;;  %10037 = vmatpush3.bf16.msra.mxu1 %v14681_v52 }
 0xac7   :  { %10014 = vmatprep.subr.bf16.mxu0 %v14682_v5  ;;  %10038 = vmatprep.subr.bf16.mxu1 %v14566_v23 }
 0xaca   :  { %10016 = vmatpush1.bf16.msra.mxu0 %v12396_v28  ;;  %10040 = vmatpush3.bf16.msra.mxu1 %v14683_v43 }
 0xacb   :  { %10042 = vmatprep.subr.bf16.mxu0 %v14684_v6  ;;  %10073 = vmatprep.subr.bf16.mxu1 %v14566_v23 }
 0xacd   :  { %2572 = vmatmul.mubr.f32.vlgmr.msra.gmra.mrb[18].mxu0 %v12762_v11  ;;  %8697 = vmatmul.mubr.f32.vlgmr.msra.gmra.mrb[10].mxu1 %v12762_v11  ;;  %v14691_v11 = vld [vmem:[#allocation100_spill] sm:$0xff] }
 0xace   :  { %10044 = vmatpush1.bf16.msra.mxu0 %v14685_v26  ;;  %10075 = vmatpush3.bf16.msra.mxu1 %v14686_v22 }
 0xacf   :  { %10046 = vmatprep.subr.bf16.mxu0 %v14687_v60  ;;  %10076 = vmatprep.subr.bf16.mxu1 %v14566_v23 }
 0xad0   :  { %2715 = vmatprep.mubr.f32.mxu0 %v14561_v1  ;;  %8731 = vmatprep.mubr.msk.f32.mxu1 %vm11694_vm0, %v14561_v1 }
 0xad2   :  { %10048 = vmatpush1.bf16.msra.mxu0 %v14688_v16  ;;  %10078 = vmatpush3.bf16.msra.mxu1 %v14689_v45 }
 0xad3   :  { %10050 = vmatprep.subr.bf16.mxu0 %v14690_v3  ;;  %10079 = vmatprep.subr.bf16.mxu1 %v14566_v23 }
 0xad6   :  { %10052 = vmatpush1.bf16.msra.mxu0 %v14691_v11  ;;  %10081 = vmatpush3.bf16.msra.mxu1 %v14692_v58  ;;  %v14754_v11 = vld [vmem:[#allocation46_spill] sm:$0xff] }
 0xad7   :  { %10054 = vmatprep.subr.bf16.mxu0 %v14693_v61  ;;  %10082 = vmatprep.subr.bf16.mxu1 %v14566_v23 }
 0xada   :  { %10056 = vmatpush1.bf16.msra.mxu0 %v14694_v62  ;;  %10084 = vmatpush3.bf16.msra.mxu1 %v14695_v31 }
 0xadb   :  { %10058 = vmatprep.subr.bf16.mxu0 %v14696_v35  ;;  %10085 = vmatprep.subr.bf16.mxu1 %v14566_v23 }
 0xade   :  { %10060 = vmatpush1.bf16.msra.mxu0 %v12450_v21  ;;  %10087 = vmatpush3.bf16.msra.mxu1 %v14697_v4 }
 0xadf   :  { %10062 = vmatprep.subr.bf16.mxu0 %v14698_v42  ;;  %10088 = vmatprep.subr.bf16.mxu1 %v14566_v23  ;;  %v14719_v42 = vld [vmem:[#allocation127_spill] sm:$0xff] }
 0xae2   :  { %10064 = vmatpush1.bf16.msra.mxu0 %v12460_v59  ;;  %10090 = vmatpush3.bf16.msra.mxu1 %v12463_v13 }
 0xae3   :  { %10066 = vmatprep.subr.bf16.mxu0 %v12466_v39  ;;  %10091 = vmatprep.subr.bf16.mxu1 %v14566_v23  ;;  %v14718_v39 = vld [vmem:[#allocation126_spill] sm:$0xff] }
 0xae6   :  { %10068 = vmatpush1.bf16.msra.mxu0 %v12470_v36  ;;  %10093 = vmatpush3.bf16.msra.mxu1 %v12473_v33 }
 0xae7   :  { %10070 = vmatprep.subr.bf16.mxu0 %v12476_v24  ;;  %10094 = vmatprep.subr.bf16.mxu1 %v14566_v23 }
 0xaea   :  { %10072 = vmatpush1.bf16.msra.mxu0 %v12480_v38  ;;  %10096 = vmatpush3.bf16.msra.mxu1 %v12483_v15  ;;  %v14717_v38 = vld [vmem:[#allocation125_spill] sm:$0xff] }
 0xaeb   :  { %10097 = vmatprep.subr.bf16.mxu0 %v14566_v23  ;;  %10121 = vmatprep.subr.bf16.mxu1 %v14566_v23 }
 0xaed   :  { %2716 = vmatmul.mubr.f32.vlgmr.msra.gmra.mrb[18].mxu0 %v14699_v55  ;;  %8732 = vmatmul.mubr.f32.vlgmr.msra.gmra.mrb[12].mxu1 %v14699_v55 }
 0xaee   :  { %10099 = vmatpush3.bf16.msra.mxu0 %v14700_v46  ;;  %8766 = vmatprep.mubr.msk.f32.mxu0 %vm11694_vm0, %v14561_v1 }
 0xaef   :  { %10100 = vmatprep.subr.bf16.mxu0 %v14566_v23  ;;  %10123 = vmatpush3.bf16.msra.mxu1 %v14701_v12 }
 0xaf0   :  { %10124 = vmatprep.subr.bf16.mxu1 %v14566_v23  ;;  %8801 = vmatprep.mubr.msk.f32.mxu1 %vm11694_vm0, %v14561_v1 }
 0xaf2   :  { %10102 = vmatpush3.bf16.msra.mxu0 %v14702_v53 }
 0xaf3   :  { %10103 = vmatprep.subr.bf16.mxu0 %v14566_v23  ;;  %10126 = vmatpush3.bf16.msra.mxu1 %v14703_v2 }
 0xaf4   :  { %10127 = vmatprep.subr.bf16.mxu1 %v14566_v23 }
 0xaf6   :  { %10105 = vmatpush3.bf16.msra.mxu0 %v14704_v10  ;;  %v14710_v10 = vld [vmem:[#allocation122_spill] sm:$0xff] }
 0xaf7   :  { %10106 = vmatprep.subr.bf16.mxu0 %v14566_v23  ;;  %10129 = vmatpush3.bf16.msra.mxu1 %v14705_v9  ;;  %v14711_v9 = vld [vmem:[#allocation57_spill] sm:$0xff] }
 0xaf8   :  { %10130 = vmatprep.subr.bf16.mxu1 %v14566_v23 }
 0xafa   :  { %10108 = vmatpush3.bf16.msra.mxu0 %v14706_v7  ;;  %v14712_v7 = vld [vmem:[#allocation123_spill] sm:$0xff] }
 0xafb   :  { %10109 = vmatprep.subr.bf16.mxu0 %v14566_v23  ;;  %10132 = vmatpush3.bf16.msra.mxu1 %v14707_v40  ;;  %v14713_v40 = vld [vmem:[#allocation58_spill] sm:$0xff] }
 0xafc   :  { %10133 = vmatprep.subr.bf16.mxu1 %v14566_v23 }
 0xafe   :  { %10111 = vmatpush3.bf16.msra.mxu0 %v14708_v20  ;;  %v14714_v20 = vld [vmem:[#allocation124_spill] sm:$0xff] }
 0xaff   :  { %10112 = vmatprep.subr.bf16.mxu0 %v14566_v23  ;;  %10135 = vmatpush3.bf16.msra.mxu1 %v14709_v37  ;;  %v14715_v37 = vld [vmem:[#allocation60_spill] sm:$0xff] }
 0xb00   :  { %10136 = vmatprep.subr.bf16.mxu1 %v14566_v23 }
 0xb02   :  { %10114 = vmatpush3.bf16.msra.mxu0 %v14710_v10  ;;  %v14716_v10 = vld [vmem:[#allocation61_spill] sm:$0xff] }
 0xb03   :  { %10115 = vmatprep.subr.bf16.mxu0 %v14566_v23  ;;  %10138 = vmatpush3.bf16.msra.mxu1 %v14711_v9 }
 0xb04   :  { %10139 = vmatprep.subr.bf16.mxu1 %v14566_v23 }
 0xb06   :  { %10117 = vmatpush3.bf16.msra.mxu0 %v14712_v7 }
 0xb07   :  { %10118 = vmatprep.subr.bf16.mxu0 %v14566_v23  ;;  %10141 = vmatpush3.bf16.msra.mxu1 %v14713_v40 }
 0xb08   :  { %10142 = vmatprep.subr.bf16.mxu1 %v14566_v23 }
 0xb0a   :  { %10120 = vmatpush3.bf16.msra.mxu0 %v14714_v20 }
 0xb0b   :  { %10145 = vmatprep.subr.bf16.mxu0 %v14566_v23  ;;  %10144 = vmatpush3.bf16.msra.mxu1 %v14715_v37 }
 0xb0c   :  { %10170 = vmatprep.subr.bf16.mxu1 %v14716_v10 }
 0xb80   :  { %v2503_v2 = vpop.f32.mrb[8].mxu1 }
 0xb81   :  { %v8663_v9 = vpop.f32.mrb[9].mxu1 }
 0xba0   :  { %v2644_v53 = vpop.f32.mrb[10].mxu1 }
 0xba1   :  { %v2645_v12 = vadd.f32 %v2644_v53, %v2503_v2  ;;  %v8698_v46 = vpop.f32.mrb[11].mxu1  ;;  %v14720_v2 = vld [vmem:[#allocation128_spill] sm:$0xff] }
 0xba3   :  { %v2650_v4 = vadd.f32 %v2645_v12, %v14720_v2  ;;  %v14728_v12 = vld [vmem:[#allocation33_spill] sm:$0xff] }
 0xbc0   :  { %v2717_v7 = vpop.f32.mrb[18].mxu0  ;;  %v2788_v15 = vpop.f32.mrb[12].mxu1 }
 0xbc1   :  { %v11083_v24 = vadd.f32 %v2717_v7, %v14717_v38  ;;  %v2719_v40 = vpop.f32.mrb[19].mxu0  ;;  %v8733_v33 = vpop.f32.mrb[13].mxu1  ;;  %v2806_v53 = vadd.f32 %v14719_v42, %v2788_v15  ;;  %v14723_v15 = vld [vmem:[#allocation28_spill] sm:$0xff]  ;;  %v14726_v42 = vld [vmem:[#allocation31_spill] sm:$0xff] }
 0xbc2   :  { %v11084_v20 = vadd.f32 %v2719_v40, %v14718_v39 }
 0xbc3   :  { %v7651_v36 = vmul.f32 -1.442695, %v11083_v24 }
 0xbc4   :  { %v7652_v13 = vmul.f32 -1.442695, %v11084_v20 }
 0xbc5   :  { %11217 = vpow2.f32 %v7651_v36 }
 0xbc6   :  { %11219 = vpow2.f32 %v7652_v13 }
 0xbcf   :  { %v11218_v37 = vpop.eup %11217 }
 0xbd0   :  { %v2796_v59 = vadd.f32 1.0, %v11218_v37  ;;  %v11220_v10 = vpop.eup %11219  ;;  %v14730_v37 = vld [vmem:[#allocation63_spill] sm:$0xff] }
 0xbd1   :  { %v2803_v9 = vadd.f32 1.0, %v11220_v10  ;;  %v14729_v10 = vld [vmem:[#allocation34_spill] sm:$0xff] }
 0xbd2   :  { %11221 = vrcp.f32 %v2796_v59  ;;  %v14722_v59 = vld [vmem:[#allocation27_spill] sm:$0xff] }
 0xbd3   :  { %11223 = vrcp.f32 %v2803_v9  ;;  %v14731_v9 = vld [vmem:[#allocation66_spill] sm:$0xff] }
 0xbdc   :  { %v11222_v46 = vpop.eup %11221 }
 0xbdd   :  { %v2807_v21 = vmul.f32 %v11222_v46, %v2806_v53  ;;  %v11224_v33 = vpop.eup %11223  ;;  %v14732_v53 = vld [vmem:[#allocation69_spill] sm:$0xff]  ;;  %v14733_v46 = vld [vmem:[#allocation72_spill] sm:$0xff] }
 0xbde   :  { %v2810_v24 = vsub.f32 1.0, %v11224_v33  ;;  %v2812_v13 = vmul.f32 %v11224_v33, %v14699_v55  ;;  %v14727_v55 = vld [vmem:[#allocation32_spill] sm:$0xff]  ;;  %v14735_v33 = vld [vmem:[#allocation78_spill] sm:$0xff] }
 0xbdf   :  { %v2808_v7 = vadd.f32 %v2807_v21, %v2650_v4  ;;  %v14724_v21 = vld [vmem:[#allocation29_spill] sm:$0xff]  ;;  %v14725_v4 = vld [vmem:[#allocation30_spill] sm:$0xff] }
 0xbe1   :  { %11225 = vtanh.f32 %v2808_v7  ;;  %v14734_v7 = vld [vmem:[#allocation75_spill] sm:$0xff] }
 0xbeb   :  { %v11226_v40 = vpop.eup %11225 }
 0xbec   :  { %v2811_v36 = vmul.f32 %v11226_v40, %v2810_v24  ;;  %v14736_v24 = vld [vmem:[#allocation81_spill] sm:$0xff]  ;;  %v14737_v40 = vld [vmem:[#allocation84_spill] sm:$0xff] }
 0xbee   :  { %v12910_v20 = vadd.f32 %v2812_v13, %v2811_v36  ;;  %v14738_v13 = vld [vmem:[#allocation130_spill] sm:$0xff] }
 0xbf0   :  { %14721 = vst [vmem:[#allocation86_spill] sm:$0xff] %v12910_v20  ;;  %8767 = vmatmul.mubr.f32.vlgmr.msra.gmra.mrb[20].mxu0 %v12910_v20 }
 0xbf1   :  { %10147 = vmatpush3.bf16.msra.mxu0 %v14722_v59  ;;  %8836 = vmatprep.mubr.msk.f32.mxu0 %vm11694_vm0, %v14561_v1 }
 0xbf2   :  { %10148 = vmatprep.subr.bf16.mxu0 %v14566_v23 }
 0xbf5   :  { %10150 = vmatpush3.bf16.msra.mxu0 %v14723_v15  ;;  %v14741_v15 = vld [vmem:[#allocation131_spill] sm:$0xff] }
 0xbf6   :  { %10151 = vmatprep.subr.bf16.mxu0 %v14566_v23 }
 0xbf9   :  { %10153 = vmatpush3.bf16.msra.mxu0 %v14724_v21 }
 0xbfa   :  { %10154 = vmatprep.subr.bf16.mxu0 %v14566_v23 }
 0xbfd   :  { %10156 = vmatpush3.bf16.msra.mxu0 %v14725_v4 }
 0xbfe   :  { %10157 = vmatprep.subr.bf16.mxu0 %v14566_v23 }
 0xc01   :  { %10159 = vmatpush3.bf16.msra.mxu0 %v14726_v42 }
 0xc02   :  { %10160 = vmatprep.subr.bf16.mxu0 %v14566_v23 }
 0xc05   :  { %10162 = vmatpush3.bf16.msra.mxu0 %v14727_v55 }
 0xc06   :  { %10163 = vmatprep.subr.bf16.mxu0 %v14566_v23 }
 0xc09   :  { %10165 = vmatpush3.bf16.msra.mxu0 %v14728_v12 }
 0xc0a   :  { %10166 = vmatprep.subr.bf16.mxu0 %v14566_v23 }
 0xc0d   :  { %10168 = vmatpush3.bf16.msra.mxu0 %v14729_v10 }
 0xc0e   :  { %10201 = vmatprep.subr.bf16.mxu0 %v14566_v23 }
 0xc10   :  { %8837 = vmatmul.mubr.f32.vlgmr.msra.gmra.mrb[22].mxu0 %v12910_v20 }
 0xc11   :  { %10203 = vmatpush3.bf16.msra.mxu0 %v14730_v37  ;;  %8871 = vmatprep.mubr.msk.f32.mxu0 %vm11694_vm0, %v14561_v1 }
 0xc12   :  { %10204 = vmatprep.subr.bf16.mxu0 %v14566_v23 }
 0xc15   :  { %10206 = vmatpush3.bf16.msra.mxu0 %v14731_v9  ;;  %v14739_v9 = vld [vmem:[#allocation35_spill] sm:$0xff] }
 0xc16   :  { %10207 = vmatprep.subr.bf16.mxu0 %v14566_v23 }
 0xc19   :  { %10209 = vmatpush3.bf16.msra.mxu0 %v14732_v53 }
 0xc1a   :  { %10210 = vmatprep.subr.bf16.mxu0 %v14566_v23 }
 0xc1d   :  { %10212 = vmatpush3.bf16.msra.mxu0 %v14733_v46 }
 0xc1e   :  { %10213 = vmatprep.subr.bf16.mxu0 %v14566_v23 }
 0xc21   :  { %10215 = vmatpush3.bf16.msra.mxu0 %v14734_v7 }
 0xc22   :  { %10216 = vmatprep.subr.bf16.mxu0 %v14566_v23 }
 0xc25   :  { %10218 = vmatpush3.bf16.msra.mxu0 %v14735_v33 }
 0xc26   :  { %10219 = vmatprep.subr.bf16.mxu0 %v14566_v23 }
 0xc29   :  { %10221 = vmatpush3.bf16.msra.mxu0 %v14736_v24 }
 0xc2a   :  { %10222 = vmatprep.subr.bf16.mxu0 %v14566_v23 }
 0xc2d   :  { %10224 = vmatpush3.bf16.msra.mxu0 %v14737_v40 }
 0xc2e   :  { %10257 = vmatprep.subr.bf16.mxu0 %v14566_v23 }
 0xcc3   :  { %v2880_v36 = vpop.f32.mrb[20].mxu0 }
 0xcc4   :  { %v2881_v46 = vadd.f32 %v14738_v13, %v2880_v36  ;;  %v8768_v53 = vpop.f32.mrb[21].mxu0  ;;  %v14740_v36 = vld [vmem:[#allocation36_spill] sm:$0xff] }
 0xcc6   :  { %2884 = vmax.xlane.f32.xlu0 %v2881_v46 }
 0xce3   :  { %v3041_v7 = vpop.f32.mrb[22].mxu0 }
 0xce4   :  { %v3053_v37 = vrot.slane %v3041_v7, %v14739_v9  ;;  %v8838_v10 = vpop.f32.mrb[23].mxu0  ;;  %v3046_v33 = vcombine.high %v3041_v7, %v3041_v7 }
 0xce5   :  { %v14742_v10 = vld [vmem:[#allocation38_spill] sm:$0xff] }
 0xce6   :  { %v3061_v12 = vcombine.high %v3053_v37, %v3053_v37  ;;  %v3069_v55 = vrot.slane %v3053_v37, %v14739_v9  ;;  %v3060_v42 = vrot.slane %v3046_v33, %v14739_v9  ;;  %v14743_v33 = vld [vmem:[#allocation37_spill] sm:$0xff] }
 0xce8   :  { %v3083_v24 = vrot.slane %v3061_v12, %v14739_v9  ;;  %v3091_v40 = vcombine.high %v3069_v55, %v3069_v55  ;;  %v3098_v4 = vrot.slane %v3069_v55, %v12005_v17  ;;  %v3076_v13 = vrot.slane %v3060_v42, %v14739_v9 }
 0xce9   :  { %v3062_v37 = vcombine.high %v3060_v42, %v3060_v42  ;;  %v14745_v42 = vld [vmem:[#allocation39_spill] sm:$0xff] }
 0xcea   :  { %v3102_v21 = vrot.slane %v3083_v24, %v12005_v17  ;;  %v3135_v53 = vadd.f32 %v3098_v4, %v14740_v36  ;;  %v3106_v2 = vrot.slane %v3091_v40, %v12005_v17  ;;  %v3114_v55 = vrot.slane %v3076_v13, %v12005_v17  ;;  %v14744_v36 = vld [vmem:[#allocation40_spill] sm:$0xff] }
 0xceb   :  { %v3093_v38 = vcombine.high %v3083_v24, %v3083_v24  ;;  %v12975_v24 = vld [vmem:[%s14232_s5] ss:$0 sm:$0xff] }
 0xcec   :  { %v3143_v59 = vmul.f32 %v14741_v15, %v3135_v53  ;;  %v3136_v7 = vadd.f32 %v3102_v21, %v14742_v10  ;;  %v3137_v39 = vadd.f32 %v3106_v2, %v14743_v33  ;;  %v3139_v20 = vadd.f32 %v3114_v55, %v14744_v36  ;;  %14746 = vst [vmem:[#allocation87_spill] sm:$0xff] %v12975_v24 }
 0xced   :  { %v3110_v53 = vrot.slane %v3093_v38, %v12005_v17  ;;  %v3090_v21 = vrot.slane %v3062_v37, %v14739_v9  ;;  %v3092_v2 = vcombine.high %v3076_v13, %v3076_v13 }
 0xcee   :  { %3151 = vadd.xlane.f32.xlu1 %v3143_v59  ;;  %v3144_v12 = vmul.f32 %v14741_v15, %v3136_v7  ;;  %v3145_v4 = vmul.f32 %v14741_v15, %v3137_v39  ;;  %v3147_v59 = vmul.f32 %v14741_v15, %v3139_v20  ;;  %v14748_v15 = vld [vmem:[#allocation42_spill] sm:$0xff] }
 0xcef   :  { %v3138_v40 = vadd.f32 %v3110_v53, %v14745_v42  ;;  %v3118_v7 = vrot.slane %v3090_v21, %v12005_v17  ;;  %v3122_v37 = vrot.slane %v3092_v2, %v12005_v17  ;;  %v3094_v55 = vcombine.high %v3090_v21, %v3090_v21 }
 0xcf1   :  { %v3146_v39 = vmul.f32 %v12975_v24, %v3138_v40  ;;  %v3126_v13 = vrot.slane %v3094_v55, %v12005_v17  ;;  %v14750_v55 = vld [vmem:[#allocation45_spill] sm:$0xff] }
 0xcf2   :  { %3153 = vadd.xlane.f32.xlu1 %v3144_v12  ;;  %v14747_v12 = vld [vmem:[#allocation41_spill] sm:$0xff] }
 0xcf3   :  { %v3140_v38 = vadd.f32 %v3118_v7, %v14747_v12 }
 0xcf5   :  { %v3148_v20 = vmul.f32 %v12975_v24, %v3140_v38 }
 0xcf6   :  { %3155 = vadd.xlane.f32.xlu1 %v3145_v4  ;;  %v3141_v4 = vadd.f32 %v3122_v37, %v14748_v15 }
 0xcf8   :  { %v3149_v53 = vmul.f32 %v12975_v24, %v3141_v4 }
 0xcfa   :  { %3159 = vadd.xlane.f32.xlu1 %v3147_v59  ;;  %v14749_v59 = vld [vmem:[#allocation43_spill] sm:$0xff] }
 0xcfb   :  { %v3142_v42 = vadd.f32 %v3126_v13, %v14749_v59 }
 0xcfd   :  { %v3150_v40 = vmul.f32 %v12975_v24, %v3142_v42 }
 0xcfe   :  { %3157 = vadd.xlane.f32.xlu1 %v3146_v39 }
 0xd02   :  { %3161 = vadd.xlane.f32.xlu1 %v3148_v20 }
 0xd06   :  { %3163 = vadd.xlane.f32.xlu1 %v3149_v53 }
 0xd0a   :  { %3165 = vadd.xlane.f32.xlu1 %v3150_v40 }
 0xd53   :  { %v2885_v7 = vpop.xlane.xlu0 %2884 }
 0xd54   :  { %v2886_v12 = vsub.f32 %v2881_v46, %v2885_v7 }
 0xd56   :  { %v2887_v2 = vmul.f32 1.442695, %v2886_v12 }
 0xd58   :  { %11227 = vpow2.f32 %v2887_v2 }
 0xd62   :  { %v11228_v21 = vpop.eup %11227 }
 0xd63   :  { %2889 = vadd.xlane.f32.xlu0 %v11228_v21 }
 0xd7b   :  { %v3152_v39 = vpop.xlane.xlu1 %3151 }
 0xd7c   :  { %v3167_v13 = vadd.f32 %v3152_v39, %v14750_v55 }
 0xd7e   :  { %v3175_v7 = vmax.f32 %v3167_v13, 0.0 }
 0xd7f   :  { %v3154_v38 = vpop.xlane.xlu1 %3153 }
 0xd80   :  { %v3168_v20 = vadd.f32 %v3154_v38, %v14750_v55 }
 0xd82   :  { %v3176_v53 = vmax.f32 %v3168_v20, 0.0 }
 0xd83   :  { %v3156_v37 = vpop.xlane.xlu1 %3155 }
 0xd84   :  { %v3169_v4 = vadd.f32 %v3156_v37, %v14750_v55  ;;  %v3198_v33 = vrot.slane %v3176_v53, %v14644_v56  ;;  %v3194_v37 = vrot.slane %v3175_v7, %v14644_v56 }
 0xd86   :  { %v3177_v40 = vmax.f32 %v3169_v4, 0.0  ;;  %v3223_v4 = vsel %vm834_vm1, %v3198_v33, %v3194_v37 }
 0xd87   :  { %v3160_v15 = vpop.xlane.xlu1 %3159 }
 0xd88   :  { %v3171_v59 = vadd.f32 %v3160_v15, %v14750_v55  ;;  %v3202_v38 = vrot.slane %v3177_v40, %v14644_v56 }
 0xd8a   :  { %v3179_v20 = vmax.f32 %v3171_v59, 0.0  ;;  %v3224_v15 = vsel %vm836_vm2, %v3202_v38, %v3223_v4 }
 0xd8b   :  { %v3158_v36 = vpop.xlane.xlu1 %3157 }
 0xd8c   :  { %v3170_v42 = vadd.f32 %v3158_v36, %v14750_v55  ;;  %v3210_v31 = vrot.slane %v3179_v20, %v14644_v56 }
 0xd8e   :  { %v3178_v2 = vmax.f32 %v3170_v42, 0.0 }
 0xd8f   :  { %v3162_v46 = vpop.xlane.xlu1 %3161 }
 0xd90   :  { %v3172_v21 = vadd.f32 %v3162_v46, %v14750_v55  ;;  %v3206_v39 = vrot.slane %v3178_v2, %v14644_v56 }
 0xd92   :  { %v3180_v24 = vmax.f32 %v3172_v21, 0.0  ;;  %v3225_v46 = vsel %vm838_vm3, %v3206_v39, %v3224_v15 }
 0xd93   :  { %v3164_v10 = vpop.xlane.xlu1 %3163  ;;  %v3226_v33 = vsel %vm840_vm4, %v3210_v31, %v3225_v46 }
 0xd94   :  { %v12997_v36 = vadd.f32 %v3164_v10, %v14750_v55  ;;  %v3214_v9 = vrot.slane %v3180_v24, %v14644_v56 }
 0xd96   :  { %v14478_v13 = vmax.f32 %v12997_v36, 0.0  ;;  %v3227_v38 = vsel %vm842_vm5, %v3214_v9, %v3226_v33 }
 0xd97   :  { %v3166_v42 = vpop.xlane.xlu1 %3165 }
 0xd98   :  { %v3174_v35 = vadd.f32 %v3166_v42, %v14750_v55  ;;  %v3218_v10 = vrot.slane %v14478_v13, %v14644_v56 }
 0xd9a   :  { %v3182_v59 = vmax.f32 %v3174_v35, 0.0  ;;  %v3228_v37 = vsel %vm844_vm6, %v3218_v10, %v3227_v38  ;;  %v14751_v10 = vld [vmem:[#allocation48_spill] sm:$0xff] }
 0xd9c   :  { %v3222_v21 = vrot.slane %v3182_v59, %v14644_v56 }
 0xd9e   :  { %v3229_v39 = vsel %vm846_vm7, %v3222_v21, %v3228_v37  ;;  %v14752_v21 = vld [vmem:[#allocation49_spill] sm:$0xff] }
 0xd9f   :  { %v3231_v4 = vsel %vm849_vm8, %v3229_v39, -inf }
 0xda0   :  { %3232 = vmax.xlane.f32.xlu1 %v3231_v4 }
 0xdf0   :  { %v2890_v15 = vpop.xlane.xlu0 %2889 }
 0xdf1   :  { %11229 = vlog2.f32 %v2890_v15  ;;  %v14753_v15 = vld [vmem:[#allocation50_spill] sm:$0xff] }
 0xdfb   :  { %v11230_v42 = vpop.eup %11229 }
 0xdfc   :  { %v2892_v55 = vmul.f32 0.6931472, %v11230_v42 }
 0xdfe   :  { %v2893_v62 = vsub.f32 %v2886_v12, %v2892_v55 }
 0xe00   :  { %2896 = vmax.xlane.f32.xlu0 %v2893_v62  ;;  %2895 = vst [vmem:[#allocation17 + $0x8] sm:$0xff] %v2893_v62 }
 0xe2d   :  { %v3233_v35 = vpop.xlane.xlu1 %3232 }
 0xe2e   :  { %v3238_v31 = vrot.slane %v3233_v35, %v12005_v17  ;;  %v3242_v46 = vrot.slane %v3233_v35, %v12100_v48  ;;  %v3246_v9 = vrot.slane %v3233_v35, %v12106_v51  ;;  %v3250_v33 = vrot.slane %v3233_v35, %v14751_v10 }
 0xe2f   :  { %v3254_v38 = vrot.slane %v3233_v35, %v14752_v21  ;;  %v3258_v13 = vrot.slane %v3233_v35, %v14753_v15  ;;  %v3266_v3 = vrot.slane %v3233_v35, %v14754_v11 }
 0xe30   :  { %v3276_v37 = vsub.f32 %v3176_v53, %v3242_v46  ;;  %v3275_v39 = vsub.f32 %v3175_v7, %v3238_v31  ;;  %v3277_v4 = vsub.f32 %v3177_v40, %v3246_v9  ;;  %v3278_v42 = vsub.f32 %v3178_v2, %v3250_v33 }
 0xe31   :  { %v3279_v58 = vsub.f32 %v3179_v20, %v3254_v38  ;;  %v3280_v16 = vsub.f32 %v3180_v24, %v3258_v13  ;;  %v3282_v53 = vsub.f32 %v3182_v59, %v3266_v3  ;;  %v14757_v59 = vld [vmem:[#allocation59_spill] sm:$0xff] }
 0xe32   :  { %v3285_v12 = vmul.f32 1.442695, %v3276_v37  ;;  %v3283_v55 = vmul.f32 1.442695, %v3275_v39  ;;  %v3287_v61 = vmul.f32 1.442695, %v3277_v4 }
 0xe33   :  { %v3289_v45 = vmul.f32 1.442695, %v3278_v42  ;;  %v3291_v60 = vmul.f32 1.442695, %v3279_v58  ;;  %v3293_v22 = vmul.f32 1.442695, %v3280_v16 }
 0xe34   :  { %11231 = vpow2.f32 %v3285_v12  ;;  %v3297_v40 = vmul.f32 1.442695, %v3282_v53 }
 0xe35   :  { %11233 = vpow2.f32 %v3283_v55 }
 0xe36   :  { %11235 = vpow2.f32 %v3287_v61  ;;  %v14756_v61 = vmax.f32 %v12997_v36, 0.0 }
 0xe37   :  { %11237 = vpow2.f32 %v3289_v45  ;;  %v14755_v45 = vld [vmem:[#allocation51_spill] sm:$0xff] }
 0xe38   :  { %11239 = vpow2.f32 %v3291_v60  ;;  %v3262_v3 = vrot.slane %v3233_v35, %v14755_v45 }
 0xe39   :  { %11241 = vpow2.f32 %v3293_v22 }
 0xe3a   :  { %11243 = vpow2.f32 %v3297_v40  ;;  %v3281_v13 = vsub.f32 %v14756_v61, %v3262_v3 }
 0xe3c   :  { %v3295_v46 = vmul.f32 1.442695, %v3281_v13  ;;  %v14758_v13 = vmov 1.0  }
 0xe3e   :  { %v13022_v7 = vpop.eup %11231  ;;  %11245 = vpow2.f32 %v3295_v46 }
 0xe3f   :  { %v13024_v2 = vpop.eup %11233  ;;  %3311 = vperm.xlu1 %11138, %v13022_v7  }
 0xe40   :  { %3308 = vperm.xlu0 %11137, %v13024_v2   ;;  %v13028_v20 = vpop.eup %11235 }
 0xe41   :  { %v13030_v24 = vpop.eup %11237 }
 0xe42   :  { %v13034_v60 = vpop.eup %11239 }
 0xe43   :  { %3314 = vperm.xlu1 %11138, %v13028_v20   ;;  %v13036_v22 = vpop.eup %11241 }
 0xe44   :  { %3317 = vperm.xlu0 %11137, %v13030_v24   ;;  %v13040_v16 = vpop.eup %11243 }
 0xe47   :  { %3320 = vperm.xlu1 %11138, %v13034_v60  }
 0xe48   :  { %3323 = vperm.xlu0 %11137, %v13036_v22   ;;  %v13047_v9 = vpop.eup %11245 }
 0xe4c   :  { %3329 = vperm.xlu0 %11137, %v13040_v16  }
 0xe8d   :  { %v2897_v58 = vpop.xlane.xlu0 %2896 }
 0xe8e   :  { %vm2898_vm12 = vcmp.eq.f32.partialorder %v2893_v62, %v2897_v58 }
 0xe8f   :  { %v2899_v31 = vsel %vm2898_vm12, %v14757_v59, 128.0 }
 0xe90   :  { %2900 = vmin.xlane.f32.xlu1 %v2899_v31 }
 0xea1   :  { %3326 = vperm.xlu1 %11138, %v13047_v9  }
 0xebe   :  { %v3312_v33 = vpop.permute.xlu1 %3311 }
 0xebf   :  { %v3309_v38 = vpop.permute.xlu0 %3308  ;;  %v3338_v35 = vrot.slane %v3312_v33, %v14644_v56  ;;  %v14759_v33 = vld [vmem:[#allocation62_spill] sm:$0xff] }
 0xec0   :  { %v3334_v62 = vrot.slane %v3309_v38, %v14644_v56 }
 0xec2   :  { %v3315_v37 = vpop.permute.xlu1 %3314  ;;  %v3363_v12 = vsel %vm834_vm1, %v3338_v35, %v3334_v62 }
 0xec3   :  { %v3318_v39 = vpop.permute.xlu0 %3317  ;;  %v3342_v36 = vrot.slane %v3315_v37, %v14644_v56  ;;  %v14760_v37 = vld [vmem:[#allocation64_spill] sm:$0xff] }
 0xec4   :  { %v3346_v55 = vrot.slane %v3318_v39, %v14644_v56 }
 0xec5   :  { %v3364_v53 = vsel %vm836_vm2, %v3342_v36, %v3363_v12  ;;  %v14762_v12 = vld [vmem:[#allocation67_spill] sm:$0xff] }
 0xec6   :  { %v3321_v4 = vpop.permute.xlu1 %3320  ;;  %v3365_v58 = vsel %vm838_vm3, %v3346_v55, %v3364_v53  ;;  %v14763_v53 = vld [vmem:[#allocation68_spill] sm:$0xff] }
 0xec7   :  { %v3324_v42 = vpop.permute.xlu0 %3323  ;;  %v3350_v40 = vrot.slane %v3321_v4, %v14644_v56  ;;  %v14761_v4 = vld [vmem:[#allocation65_spill] sm:$0xff] }
 0xec8   :  { %v3354_v61 = vrot.slane %v3324_v42, %v14644_v56 }
 0xec9   :  { %v3366_v31 = vsel %vm840_vm4, %v3350_v40, %v3365_v58  ;;  %v14764_v40 = vld [vmem:[#allocation70_spill] sm:$0xff]  ;;  %v14766_v58 = vld [vmem:[#allocation73_spill] sm:$0xff] }
 0xeca   :  { %v3367_v62 = vsel %vm842_vm5, %v3354_v61, %v3366_v31  ;;  %v14767_v61 = vld [vmem:[#allocation74_spill] sm:$0xff]  ;;  %v14768_v31 = vld [vmem:[#allocation76_spill] sm:$0xff] }
 0xecb   :  { %v3330_v46 = vpop.permute.xlu0 %3329 }
 0xecc   :  { %v3362_v35 = vrot.slane %v3330_v46, %v14644_v56  ;;  %v14769_v46 = vld [vmem:[#allocation77_spill] sm:$0xff] }
 0xf1d   :  { %v2901_v3 = vpop.xlane.xlu1 %2900 }
 0xf1e   :  { %vm2902_vm13 = vcmp.eq.f32.partialorder %v14757_v59, %v2901_v3  ;;  %v14765_v3 = vld [vmem:[#allocation71_spill] sm:$0xff] }
 0xf1f   :  { %8802 = vmatmul.mubr.msk.f32.vlgmr.msra.gmra.mrb[14].mxu1 %vm2902_vm13, %v14758_v13 }
 0xf20   :  { %10172 = vmatpush1.bf16.msra.mxu1 %v14759_v33  ;;  %3607 = vmatprep.mubr.f32.mxu1 %v14561_v1 }
 0xf21   :  { %v3327_v38 = vpop.permute.xlu1 %3326  ;;  %10174 = vmatprep.subr.bf16.mxu1 %v14760_v37 }
 0xf22   :  { %v3358_v39 = vrot.slane %v3327_v38, %v14644_v56  ;;  %v14770_v38 = vld [vmem:[#allocation79_spill] sm:$0xff] }
 0xf24   :  { %v3368_v36 = vsel %vm844_vm6, %v3358_v39, %v3367_v62  ;;  %10176 = vmatpush1.bf16.msra.mxu1 %v14761_v4  ;;  %v14771_v39 = vld [vmem:[#allocation80_spill] sm:$0xff]  ;;  %v14773_v62 = vld [vmem:[#allocation83_spill] sm:$0xff] }
 0xf25   :  { %v3369_v42 = vsel %vm846_vm7, %v3362_v35, %v3368_v36  ;;  %10178 = vmatprep.subr.bf16.mxu1 %v14762_v12  ;;  %v14772_v35 = vld [vmem:[#allocation82_spill] sm:$0xff]  ;;  %v14774_v36 = vld [vmem:[#allocation85_spill] sm:$0xff] }
 0xf26   :  { %v3371_v55 = vsel %vm849_vm8, %v3369_v42, 0.0 }
 0xf27   :  { %3372 = vadd.xlane.f32.xlu1 %v3371_v55 }
 0xf28   :  { %10180 = vmatpush1.bf16.msra.mxu1 %v14763_v53 }
 0xf29   :  { %10182 = vmatprep.subr.bf16.mxu1 %v14764_v40  ;;  %v14779_v40 = vld [vmem:[#allocation135_spill] sm:$0xff] }
 0xf2c   :  { %10184 = vmatpush1.bf16.msra.mxu1 %v14765_v3 }
 0xf2d   :  { %10186 = vmatprep.subr.bf16.mxu1 %v14766_v58 }
 0xf30   :  { %10188 = vmatpush1.bf16.msra.mxu1 %v14767_v61 }
 0xf31   :  { %10190 = vmatprep.subr.bf16.mxu1 %v14768_v31 }
 0xf34   :  { %10192 = vmatpush1.bf16.msra.mxu1 %v14769_v46 }
 0xf35   :  { %10194 = vmatprep.subr.bf16.mxu1 %v14770_v38 }
 0xf38   :  { %10196 = vmatpush1.bf16.msra.mxu1 %v14771_v39 }
 0xf39   :  { %10198 = vmatprep.subr.bf16.mxu1 %v14772_v35 }
 0xf3c   :  { %10200 = vmatpush1.bf16.msra.mxu1 %v14773_v62 }
 0xf3d   :  { %10226 = vmatprep.subr.bf16.mxu1 %v14774_v36 }
 0xfb4   :  { %v3373_v42 = vpop.xlane.xlu1 %3372 }
 0xfb5   :  { %v3378_v55 = vrot.slane %v3373_v42, %v12005_v17  ;;  %v3382_v58 = vrot.slane %v3373_v42, %v12100_v48  ;;  %v3386_v31 = vrot.slane %v3373_v42, %v12106_v51  ;;  %v3390_v38 = vrot.slane %v3373_v42, %v14751_v10 }
 0xfb6   :  { %v3394_v35 = vrot.slane %v3373_v42, %v14752_v21  ;;  %v3398_v36 = vrot.slane %v3373_v42, %v14753_v15 }
 0xfb7   :  { %11247 = vrcp.f32 %v3378_v55 }
 0xfb8   :  { %11249 = vrcp.f32 %v3382_v58  ;;  %v3402_v58 = vrot.slane %v3373_v42, %v14755_v45 }
 0xfb9   :  { %11251 = vrcp.f32 %v3386_v31 }
 0xfba   :  { %11253 = vrcp.f32 %v3390_v38  ;;  %v3406_v38 = vrot.slane %v3373_v42, %v14754_v11 }
 0xfbb   :  { %11255 = vrcp.f32 %v3394_v35 }
 0xfbc   :  { %11257 = vrcp.f32 %v3398_v36 }
 0xfbd   :  { %11259 = vrcp.f32 %v3402_v58 }
 0xfbe   :  { %11261 = vrcp.f32 %v3406_v38  ;;  %v14776_v38 = vld [vmem:[#allocation132_spill] sm:$0xff] }
 0xfc1   :  { %v11248_v46 = vpop.eup %11247 }
 0xfc2   :  { %v3416_v62 = vmul.f32 %v11248_v46, %v13024_v2  ;;  %v11250_v39 = vpop.eup %11249 }
 0xfc3   :  { %v3418_v61 = vmul.f32 %v11250_v39, %v13022_v7  ;;  %v11252_v55 = vpop.eup %11251 }
 0xfc4   :  { %3433 = vperm.xlu0 %11137, %v3416_v62   ;;  %v3420_v31 = vmul.f32 %v11252_v55, %v13028_v20  ;;  %v11254_v3 = vpop.eup %11253 }
 0xfc5   :  { %v3422_v2 = vmul.f32 %v11254_v3, %v13030_v24  ;;  %v11256_v46 = vpop.eup %11255 }
 0xfc6   :  { %v3424_v35 = vmul.f32 %v11256_v46, %v13034_v60  ;;  %v11258_v7 = vpop.eup %11257  ;;  %v14775_v60 = vld [vmem:[#allocation44_spill] sm:$0xff] }
 0xfc7   :  { %v11260_v39 = vpop.eup %11259 }
 0xfc8   :  { %3438 = vperm.xlu0 %11137, %v3418_v61   ;;  %v3426_v61 = vmul.f32 %v11258_v7, %v13036_v22  ;;  %v3428_v20 = vmul.f32 %v11260_v39, %v13047_v9  ;;  %v11262_v62 = vpop.eup %11261  ;;  %v14777_v22 = vld [vmem:[#allocation133_spill] sm:$0xff]  ;;  %v14778_v9 = vld [vmem:[#allocation134_spill] sm:$0xff] }
 0xfc9   :  { %v3430_v36 = vmul.f32 %v11262_v62, %v13040_v16 }
 0xfcc   :  { %3443 = vperm.xlu0 %11137, %v3420_v31  }
 0xfd0   :  { %3448 = vperm.xlu0 %11137, %v3422_v2  }
 0xfd4   :  { %3453 = vperm.xlu0 %11137, %v3424_v35  }
 0xfd8   :  { %3458 = vperm.xlu0 %11137, %v3426_v61  }
 0xfdc   :  { %3463 = vperm.xlu0 %11137, %v3428_v20  }
 0xfe0   :  { %3468 = vperm.xlu0 %11137, %v3430_v36  }
 0xff2   :  { %v13101_v42 = vpop.f32.mrb[14].mxu1 }
 0xff3   :  { %v8803_v24 = vpop.f32.mrb[15].mxu1 }
0x1043   :  { %v3434_v3 = vpop.permute.xlu0 %3433 }
0x1044   :  { %v3471_v46 = vmul.f32 %v14777_v22, %v3434_v3 }
0x1046   :  { %v3479_v20 = vrot.slane %v3471_v46, 4 }
0x1047   :  { %v3439_v55 = vpop.permute.xlu0 %3438 }
0x1048   :  { %v3472_v31 = vmul.f32 %v14775_v60, %v3439_v55  ;;  %v3480_v12 = vadd.f32 %v3479_v20, %v3471_v46 }
0x104a   :  { %v3485_v7 = vrot.slane %v3472_v31, 4  ;;  %v3481_v33 = vrot.slane %v3480_v12, 2 }
0x104b   :  { %v3444_v58 = vpop.permute.xlu0 %3443 }
0x104c   :  { %v3473_v2 = vmul.f32 %v14776_v38, %v3444_v58  ;;  %v3486_v36 = vadd.f32 %v3485_v7, %v3472_v31  ;;  %v14780_v38 = vld [vmem:[#allocation136_spill] sm:$0xff]  ;;  %v14781_v31 = vld [vmem:[#allocation137_spill] sm:$0xff] }
0x104e   :  { %v3491_v39 = vrot.slane %v3473_v2, 4  ;;  %v3487_v60 = vrot.slane %v3486_v36, 2 }
0x104f   :  { %v3449_v35 = vpop.permute.xlu0 %3448 }
0x1050   :  { %v3474_v61 = vmul.f32 %v14778_v9, %v3449_v35  ;;  %v3492_v53 = vadd.f32 %v3491_v39, %v3473_v2  ;;  %v3488_v45 = vadd.f32 %v3487_v60, %v3486_v36  ;;  %v3482_v2 = vadd.f32 %v3481_v33, %v3480_v12 }
0x1052   :  { %v3497_v16 = vrot.slane %v3474_v61, 4  ;;  %v3493_v22 = vrot.slane %v3492_v53, 2  ;;  %v3483_v15 = vrot.slane %v3482_v2, 1 }
0x1053   :  { %v3454_v62 = vpop.permute.xlu0 %3453 }
0x1054   :  { %v3475_v24 = vmul.f32 %v14779_v40, %v3454_v62  ;;  %v3498_v4 = vadd.f32 %v3497_v16, %v3474_v61  ;;  %v3494_v40 = vadd.f32 %v3493_v22, %v3492_v53 }
0x1056   :  { %v3503_v37 = vrot.slane %v3475_v24, 4  ;;  %v3499_v13 = vrot.slane %v3498_v4, 2  ;;  %v3495_v21 = vrot.slane %v3494_v40, 1 }
0x1057   :  { %v3459_v55 = vpop.permute.xlu0 %3458 }
0x1058   :  { %v3504_v58 = vadd.f32 %v3503_v37, %v3475_v24  ;;  %v3476_v3 = vmul.f32 %v14780_v38, %v3459_v55  ;;  %v3500_v46 = vadd.f32 %v3499_v13, %v3498_v4  ;;  %v3489_v37 = vrot.slane %v3488_v45, 1  ;;  %v14782_v55 = vld [vmem:[#allocation138_spill] sm:$0xff] }
0x1059   :  { %v3496_v13 = vadd.f32 %v3495_v21, %v3494_v40  ;;  %v3484_v4 = vadd.f32 %v3483_v15, %v3482_v2  ;;  %v14783_v40 = vld [vmem:[#allocation95_spill] sm:$0xff]  ;;  %v14784_v2 = vld [vmem:[#allocation96_spill] sm:$0xff] }
0x105a   :  { %v3509_v35 = vrot.slane %v3476_v3, 4  ;;  %v3505_v9 = vrot.slane %v3504_v58, 2  ;;  %v3501_v10 = vrot.slane %v3500_v46, 1 }
0x105b   :  { %v3464_v59 = vpop.permute.xlu0 %3463 }
0x105c   :  { %v3510_v11 = vadd.f32 %v3509_v35, %v3476_v3  ;;  %v3477_v7 = vmul.f32 %v14781_v31, %v3464_v59  ;;  %v3506_v20 = vadd.f32 %v3505_v9, %v3504_v58  ;;  %v3490_v3 = vadd.f32 %v3489_v37, %v3488_v45  ;;  %v14787_v37 = vld [vmem:[#allocation99_spill] sm:$0xff] }
0x105d   :  { %v3502_v12 = vadd.f32 %v3501_v10, %v3500_v46  ;;  %v14785_v46 = vld [vmem:[#allocation97_spill] sm:$0xff] }
0x105e   :  { %v3511_v61 = vrot.slane %v3510_v11, 2  ;;  %v3515_v39 = vrot.slane %v3477_v7, 4  ;;  %v3507_v60 = vrot.slane %v3506_v20, 1 }
0x105f   :  { %v3469_v16 = vpop.permute.xlu0 %3468 }
0x1060   :  { %v3512_v62 = vadd.f32 %v3511_v61, %v3510_v11  ;;  %v3516_v24 = vadd.f32 %v3515_v39, %v3477_v7  ;;  %v3478_v38 = vmul.f32 %v14782_v55, %v3469_v16  ;;  %v3508_v35 = vadd.f32 %v3507_v60, %v3506_v20  ;;  %v14786_v20 = vld [vmem:[#allocation98_spill] sm:$0xff]  ;;  %v14791_v55 = vld [vmem:[#allocation103_spill] sm:$0xff] }
0x1061   :  { %v3535_v11 = vsel %vm834_vm1, %v3490_v3, %v3484_v4  ;;  %v14794_v60 = vld [vmem:[#allocation106_spill] sm:$0xff]  ;;  %v14795_v3 = vld [vmem:[#allocation107_spill] sm:$0xff]  ;;  %v14800_v4 = vld [vmem:[#allocation112_spill] sm:$0xff] }
0x1062   :  { %v3517_v51 = vrot.slane %v3516_v24, 2  ;;  %v3521_v36 = vrot.slane %v3478_v38, 4  ;;  %v3513_v59 = vrot.slane %v3512_v62, 1  ;;  %v3536_v7 = vsel %vm836_vm2, %v3496_v13, %v3535_v11  ;;  %v14799_v13 = vld [vmem:[#allocation111_spill] sm:$0xff]  ;;  %v14805_v11 = vld [vmem:[#allocation86_spill] sm:$0xff] }
0x1063   :  { %v3537_v39 = vsel %vm838_vm3, %v3502_v12, %v3536_v7  ;;  %v14801_v12 = vld [vmem:[#allocation113_spill] sm:$0xff]  ;;  %v14808_v7 = vld [vmem:[#allocation118_spill] sm:$0xff] }
0x1064   :  { %v3518_v53 = vadd.f32 %v3517_v51, %v3516_v24  ;;  %v3522_v33 = vadd.f32 %v3521_v36, %v3478_v38  ;;  %v3514_v9 = vadd.f32 %v3513_v59, %v3512_v62  ;;  %v3538_v45 = vsel %vm840_vm4, %v3508_v35, %v3537_v39  ;;  %v14789_v62 = vld [vmem:[#allocation101_spill] sm:$0xff]  ;;  %v14790_v24 = vld [vmem:[#allocation102_spill] sm:$0xff]  ;;  %v14792_v38 = vld [vmem:[#allocation104_spill] sm:$0xff] }
0x1065   :  { %v14793_v36 = vld [vmem:[#allocation105_spill] sm:$0xff]  ;;  %v14796_v59 = vld [vmem:[#allocation108_spill] sm:$0xff]  ;;  %v14810_v39 = vld [vmem:[#allocation119_spill] sm:$0xff] }
0x1066   :  { %v3519_v58 = vrot.slane %v3518_v53, 1  ;;  %v3523_v22 = vrot.slane %v3522_v33, 2  ;;  %v3539_v21 = vsel %vm842_vm5, %v3514_v9, %v3538_v45  ;;  %v14804_v35 = vld [vmem:[#allocation116_spill] sm:$0xff]  ;;  %v14806_v9 = vld [vmem:[#allocation117_spill] sm:$0xff] }
0x1067   :  { %v14812_v45 = vld [vmem:[#allocation120_spill] sm:$0xff] }
0x1068   :  { %v3524_v31 = vadd.f32 %v3523_v22, %v3522_v33  ;;  %v3520_v61 = vadd.f32 %v3519_v58, %v3518_v53  ;;  %v14797_v53 = vld [vmem:[#allocation109_spill] sm:$0xff]  ;;  %v14798_v33 = vld [vmem:[#allocation110_spill] sm:$0xff]  ;;  %v14803_v22 = vld [vmem:[#allocation115_spill] sm:$0xff] }
0x1069   :  { %v14802_v58 = vld [vmem:[#allocation114_spill] sm:$0xff] }
0x106a   :  { %v3525_v16 = vrot.slane %v3524_v31, 1  ;;  %v3540_v10 = vsel %vm844_vm6, %v3520_v61, %v3539_v21  ;;  %v14809_v61 = vld [vmem:[#allocation53_spill] sm:$0xff] }
0x106b   :  { %v14814_v21 = vld [vmem:[#allocation121_spill] sm:$0xff] }
0x106c   :  { %v3526_v51 = vadd.f32 %v3525_v16, %v3524_v31  ;;  %v14807_v31 = vld [vmem:[#allocation52_spill] sm:$0xff]  ;;  %v14811_v16 = vld [vmem:[#allocation54_spill] sm:$0xff] }
0x106e   :  { %v3541_v15 = vsel %vm846_vm7, %v3526_v51, %v3540_v10  ;;  %v14813_v51 = vld [vmem:[#allocation55_spill] sm:$0xff]  ;;  %v14815_v10 = vld [vmem:[#allocation56_spill] sm:$0xff] }
0x106f   :  { %3608 = vmatmul.mubr.f32.vlgmr.msra.gmra.mrb[16].mxu1 %v3541_v15  ;;  %8872 = vmatmul.mubr.f32.vlgmr.msra.gmra.mrb[24].mxu0 %v3541_v15  ;;  %v14816_v15 = vld [vmem:[#allocation122_spill] sm:$0xff] }
0x1070   :  { %10228 = vmatpush1.bf16.msra.mxu1 %v12323_v41  ;;  %10259 = vmatpush3.bf16.msra.mxu0 %v12325_v19 }
0x1071   :  { %10230 = vmatprep.subr.bf16.mxu1 %v12328_v30  ;;  %10260 = vmatprep.subr.bf16.mxu0 %v14566_v23 }
0x1072   :  { %3748 = vmatprep.mubr.f32.mxu1 %v14561_v1  ;;  %8906 = vmatprep.mubr.msk.f32.mxu0 %vm11694_vm0, %v14561_v1 }
0x1074   :  { %10232 = vmatpush1.bf16.msra.mxu1 %v12333_v47  ;;  %10262 = vmatpush3.bf16.msra.mxu0 %v12335_v14 }
0x1075   :  { %10234 = vmatprep.subr.bf16.mxu1 %v12339_v34  ;;  %10263 = vmatprep.subr.bf16.mxu0 %v14566_v23 }
0x1078   :  { %10236 = vmatpush1.bf16.msra.mxu1 %v12346_v57  ;;  %10265 = vmatpush3.bf16.msra.mxu0 %v12348_v29 }
0x1079   :  { %10238 = vmatprep.subr.bf16.mxu1 %v12352_v32  ;;  %10266 = vmatprep.subr.bf16.mxu0 %v14566_v23 }
0x107c   :  { %10240 = vmatpush1.bf16.msra.mxu1 %v12356_v0  ;;  %10268 = vmatpush3.bf16.msra.mxu0 %v12358_v25 }
0x107d   :  { %10242 = vmatprep.subr.bf16.mxu1 %v12362_v8  ;;  %10269 = vmatprep.subr.bf16.mxu0 %v14566_v23 }
0x1080   :  { %10244 = vmatpush1.bf16.msra.mxu1 %v12366_v44  ;;  %10271 = vmatpush3.bf16.msra.mxu0 %v12368_v63 }
0x1081   :  { %10246 = vmatprep.subr.bf16.mxu1 %v12372_v18  ;;  %10272 = vmatprep.subr.bf16.mxu0 %v14566_v23 }
0x1084   :  { %10248 = vmatpush1.bf16.msra.mxu1 %v14677_v50  ;;  %10274 = vmatpush3.bf16.msra.mxu0 %v14678_v54 }
0x1085   :  { %10250 = vmatprep.subr.bf16.mxu1 %v14679_v49  ;;  %10275 = vmatprep.subr.bf16.mxu0 %v14566_v23 }
0x1088   :  { %10252 = vmatpush1.bf16.msra.mxu1 %v14680_v27  ;;  %10277 = vmatpush3.bf16.msra.mxu0 %v14681_v52 }
0x1089   :  { %10254 = vmatprep.subr.bf16.mxu1 %v14682_v5  ;;  %10278 = vmatprep.subr.bf16.mxu0 %v14566_v23 }
0x108c   :  { %10256 = vmatpush1.bf16.msra.mxu1 %v12396_v28  ;;  %10280 = vmatpush3.bf16.msra.mxu0 %v14683_v43 }
0x108d   :  { %10282 = vmatprep.subr.bf16.mxu1 %v14684_v6  ;;  %10313 = vmatprep.subr.bf16.mxu0 %v14566_v23 }
0x108f   :  { %3749 = vmatmul.mubr.f32.vlgmr.msra.gmra.mrb[16].mxu1 %v13101_v42  ;;  %8907 = vmatmul.mubr.f32.vlgmr.msra.gmra.mrb[26].mxu0 %v13101_v42  ;;  %v14788_v42 = vld [vmem:[#allocation100_spill] sm:$0xff] }
0x1090   :  { %10284 = vmatpush1.bf16.msra.mxu1 %v14685_v26  ;;  %10315 = vmatpush3.bf16.msra.mxu0 %v14783_v40 }
0x1091   :  { %10286 = vmatprep.subr.bf16.mxu1 %v14784_v2  ;;  %10316 = vmatprep.subr.bf16.mxu0 %v14566_v23 }
0x1092   :  { %3892 = vmatprep.mubr.f32.mxu1 %v14561_v1  ;;  %8941 = vmatprep.mubr.msk.f32.mxu0 %vm11694_vm0, %v14561_v1 }
0x1094   :  { %10288 = vmatpush1.bf16.msra.mxu1 %v14785_v46  ;;  %10318 = vmatpush3.bf16.msra.mxu0 %v14786_v20 }
0x1095   :  { %10290 = vmatprep.subr.bf16.mxu1 %v14787_v37  ;;  %10319 = vmatprep.subr.bf16.mxu0 %v14566_v23 }
0x1098   :  { %10292 = vmatpush1.bf16.msra.mxu1 %v14788_v42  ;;  %10321 = vmatpush3.bf16.msra.mxu0 %v14789_v62 }
0x1099   :  { %10294 = vmatprep.subr.bf16.mxu1 %v14790_v24  ;;  %10322 = vmatprep.subr.bf16.mxu0 %v14566_v23  ;;  %v14860_v24 = vld [vmem:[#allocation46_spill] sm:$0xff] }
0x109c   :  { %10296 = vmatpush1.bf16.msra.mxu1 %v14791_v55  ;;  %10324 = vmatpush3.bf16.msra.mxu0 %v14792_v38 }
0x109d   :  { %10298 = vmatprep.subr.bf16.mxu1 %v14793_v36  ;;  %10325 = vmatprep.subr.bf16.mxu0 %v14566_v23 }
0x10a0   :  { %10300 = vmatpush1.bf16.msra.mxu1 %v14794_v60  ;;  %10327 = vmatpush3.bf16.msra.mxu0 %v14795_v3 }
0x10a1   :  { %10302 = vmatprep.subr.bf16.mxu1 %v14796_v59  ;;  %10328 = vmatprep.subr.bf16.mxu0 %v14566_v23 }
0x10a4   :  { %10304 = vmatpush1.bf16.msra.mxu1 %v14797_v53  ;;  %10330 = vmatpush3.bf16.msra.mxu0 %v14798_v33 }
0x10a5   :  { %10306 = vmatprep.subr.bf16.mxu1 %v14799_v13  ;;  %10331 = vmatprep.subr.bf16.mxu0 %v14566_v23 }
0x10a8   :  { %10308 = vmatpush1.bf16.msra.mxu1 %v14800_v4  ;;  %10333 = vmatpush3.bf16.msra.mxu0 %v14801_v12  ;;  %v14824_v4 = vld [vmem:[#allocation126_spill] sm:$0xff] }
0x10a9   :  { %10310 = vmatprep.subr.bf16.mxu1 %v14802_v58  ;;  %10334 = vmatprep.subr.bf16.mxu0 %v14566_v23 }
0x10ac   :  { %10312 = vmatpush1.bf16.msra.mxu1 %v14803_v22  ;;  %10336 = vmatpush3.bf16.msra.mxu0 %v14804_v35  ;;  %v14823_v35 = vld [vmem:[#allocation125_spill] sm:$0xff] }
0x10ad   :  { %10337 = vmatprep.subr.bf16.mxu1 %v14566_v23  ;;  %10361 = vmatprep.subr.bf16.mxu0 %v14566_v23 }
0x10af   :  { %3893 = vmatmul.mubr.f32.vlgmr.msra.gmra.mrb[16].mxu1 %v14805_v11  ;;  %8942 = vmatmul.mubr.f32.vlgmr.msra.gmra.mrb[28].mxu0 %v14805_v11 }
0x10b0   :  { %10339 = vmatpush3.bf16.msra.mxu1 %v14806_v9  ;;  %8976 = vmatprep.mubr.msk.f32.mxu1 %vm11694_vm0, %v14561_v1 }
0x10b1   :  { %10340 = vmatprep.subr.bf16.mxu1 %v14566_v23  ;;  %10363 = vmatpush3.bf16.msra.mxu0 %v14807_v31 }
0x10b2   :  { %10364 = vmatprep.subr.bf16.mxu0 %v14566_v23  ;;  %9011 = vmatprep.mubr.msk.f32.mxu0 %vm11694_vm0, %v14561_v1 }
0x10b4   :  { %10342 = vmatpush3.bf16.msra.mxu1 %v14808_v7 }
0x10b5   :  { %10343 = vmatprep.subr.bf16.mxu1 %v14566_v23  ;;  %10366 = vmatpush3.bf16.msra.mxu0 %v14809_v61 }
0x10b6   :  { %10367 = vmatprep.subr.bf16.mxu0 %v14566_v23 }
0x10b8   :  { %10345 = vmatpush3.bf16.msra.mxu1 %v14810_v39 }
0x10b9   :  { %10346 = vmatprep.subr.bf16.mxu1 %v14566_v23  ;;  %10369 = vmatpush3.bf16.msra.mxu0 %v14811_v16  ;;  %v14817_v16 = vld [vmem:[#allocation57_spill] sm:$0xff] }
0x10ba   :  { %10370 = vmatprep.subr.bf16.mxu0 %v14566_v23 }
0x10bc   :  { %10348 = vmatpush3.bf16.msra.mxu1 %v14812_v45  ;;  %v14818_v45 = vld [vmem:[#allocation123_spill] sm:$0xff] }
0x10bd   :  { %10349 = vmatprep.subr.bf16.mxu1 %v14566_v23  ;;  %10372 = vmatpush3.bf16.msra.mxu0 %v14813_v51  ;;  %v14819_v51 = vld [vmem:[#allocation58_spill] sm:$0xff] }
0x10be   :  { %10373 = vmatprep.subr.bf16.mxu0 %v14566_v23 }
0x10c0   :  { %10351 = vmatpush3.bf16.msra.mxu1 %v14814_v21  ;;  %v14820_v21 = vld [vmem:[#allocation124_spill] sm:$0xff] }
0x10c1   :  { %10352 = vmatprep.subr.bf16.mxu1 %v14566_v23  ;;  %10375 = vmatpush3.bf16.msra.mxu0 %v14815_v10  ;;  %v14821_v10 = vld [vmem:[#allocation60_spill] sm:$0xff] }
0x10c2   :  { %10376 = vmatprep.subr.bf16.mxu0 %v14566_v23 }
0x10c4   :  { %10354 = vmatpush3.bf16.msra.mxu1 %v14816_v15  ;;  %v14822_v15 = vld [vmem:[#allocation61_spill] sm:$0xff] }
0x10c5   :  { %10355 = vmatprep.subr.bf16.mxu1 %v14566_v23  ;;  %10378 = vmatpush3.bf16.msra.mxu0 %v14817_v16 }
0x10c6   :  { %10379 = vmatprep.subr.bf16.mxu0 %v14566_v23 }
0x10c8   :  { %10357 = vmatpush3.bf16.msra.mxu1 %v14818_v45 }
0x10c9   :  { %10358 = vmatprep.subr.bf16.mxu1 %v14566_v23  ;;  %10381 = vmatpush3.bf16.msra.mxu0 %v14819_v51 }
0x10ca   :  { %10382 = vmatprep.subr.bf16.mxu0 %v14566_v23 }
0x10cc   :  { %10360 = vmatpush3.bf16.msra.mxu1 %v14820_v21 }
0x10cd   :  { %10385 = vmatprep.subr.bf16.mxu1 %v14566_v23  ;;  %10384 = vmatpush3.bf16.msra.mxu0 %v14821_v10 }
0x10ce   :  { %10410 = vmatprep.subr.bf16.mxu0 %v14822_v15 }
0x1142   :  { %v3680_v39 = vpop.f32.mrb[24].mxu0 }
0x1143   :  { %v8873_v16 = vpop.f32.mrb[25].mxu0 }
0x1162   :  { %v3821_v61 = vpop.f32.mrb[26].mxu0 }
0x1163   :  { %v3822_v7 = vadd.f32 %v3821_v61, %v3680_v39  ;;  %v8908_v31 = vpop.f32.mrb[27].mxu0 }
0x1164   :  { %v13233_v31 = vld [vmem:[%s14238_s11] ss:$0 sm:$0xff] }
0x1165   :  { %14825 = vst [vmem:[#allocation88_spill] sm:$0xff] %v13233_v31 }
0x1182   :  { %v3894_v45 = vpop.f32.mrb[16].mxu1  ;;  %v3965_v9 = vpop.f32.mrb[28].mxu0 }
0x1183   :  { %v11085_v22 = vadd.f32 %v3894_v45, %v14823_v35  ;;  %v3896_v51 = vpop.f32.mrb[17].mxu1  ;;  %v8943_v58 = vpop.f32.mrb[29].mxu0  ;;  %v3983_v61 = vadd.f32 %v13233_v31, %v3965_v9  ;;  %v14829_v9 = vld [vmem:[#allocation28_spill] sm:$0xff]  ;;  %v14847_v31 = vld [vmem:[#allocation87_spill] sm:$0xff] }
0x1184   :  { %v11086_v21 = vadd.f32 %v3896_v51, %v14824_v4  ;;  %v14826_v58 = vld [vmem:[#allocation128_spill] sm:$0xff]  ;;  %v14828_v4 = vld [vmem:[#allocation27_spill] sm:$0xff] }
0x1185   :  { %v7655_v12 = vmul.f32 -1.442695, %v11085_v22  ;;  %v3827_v22 = vadd.f32 %v3822_v7, %v14826_v58  ;;  %v14830_v7 = vld [vmem:[#allocation29_spill] sm:$0xff] }
0x1186   :  { %v7656_v13 = vmul.f32 -1.442695, %v11086_v21 }
0x1187   :  { %11263 = vpow2.f32 %v7655_v12 }
0x1188   :  { %11265 = vpow2.f32 %v7656_v13 }
0x1191   :  { %v11264_v10 = vpop.eup %11263 }
0x1192   :  { %v3973_v33 = vadd.f32 1.0, %v11264_v10  ;;  %v11266_v15 = vpop.eup %11265 }
0x1193   :  { %v3980_v16 = vadd.f32 1.0, %v11266_v15 }
0x1194   :  { %11267 = vrcp.f32 %v3973_v33 }
0x1195   :  { %11269 = vrcp.f32 %v3980_v16  ;;  %v14832_v16 = vld [vmem:[#allocation31_spill] sm:$0xff] }
0x119e   :  { %v11268_v39 = vpop.eup %11267 }
0x119f   :  { %v3984_v45 = vmul.f32 %v11268_v39, %v3983_v61  ;;  %v11270_v13 = vpop.eup %11269  ;;  %v14833_v61 = vld [vmem:[#allocation32_spill] sm:$0xff]  ;;  %v14834_v39 = vld [vmem:[#allocation33_spill] sm:$0xff] }
0x11a0   :  { %v3987_v51 = vsub.f32 1.0, %v11270_v13  ;;  %v3989_v10 = vmul.f32 %v11270_v13, %v14805_v11  ;;  %v14831_v11 = vld [vmem:[#allocation30_spill] sm:$0xff]  ;;  %v14838_v13 = vld [vmem:[#allocation69_spill] sm:$0xff] }
0x11a1   :  { %v3985_v12 = vadd.f32 %v3984_v45, %v3827_v22  ;;  %v14835_v22 = vld [vmem:[#allocation34_spill] sm:$0xff]  ;;  %v14836_v45 = vld [vmem:[#allocation63_spill] sm:$0xff] }
0x11a3   :  { %11271 = vtanh.f32 %v3985_v12  ;;  %v14837_v12 = vld [vmem:[#allocation66_spill] sm:$0xff] }
0x11ad   :  { %v11272_v21 = vpop.eup %11271 }
0x11ae   :  { %v3988_v33 = vmul.f32 %v11272_v21, %v3987_v51  ;;  %v14839_v51 = vld [vmem:[#allocation72_spill] sm:$0xff]  ;;  %v14840_v21 = vld [vmem:[#allocation75_spill] sm:$0xff] }
0x11b0   :  { %v13238_v15 = vadd.f32 %v3989_v10, %v3988_v33  ;;  %v14841_v33 = vld [vmem:[#allocation78_spill] sm:$0xff]  ;;  %v14842_v10 = vld [vmem:[#allocation81_spill] sm:$0xff] }
0x11b2   :  { %14827 = vst [vmem:[#allocation89_spill] sm:$0xff] %v13238_v15  ;;  %8977 = vmatmul.mubr.f32.vlgmr.msra.gmra.mrb[18].mxu1 %v13238_v15 }
0x11b3   :  { %10387 = vmatpush3.bf16.msra.mxu1 %v14828_v4  ;;  %9046 = vmatprep.mubr.msk.f32.mxu1 %vm11694_vm0, %v14561_v1 }
0x11b4   :  { %10388 = vmatprep.subr.bf16.mxu1 %v14566_v23 }
0x11b7   :  { %10390 = vmatpush3.bf16.msra.mxu1 %v14829_v9 }
0x11b8   :  { %10391 = vmatprep.subr.bf16.mxu1 %v14566_v23 }
0x11bb   :  { %10393 = vmatpush3.bf16.msra.mxu1 %v14830_v7 }
0x11bc   :  { %10394 = vmatprep.subr.bf16.mxu1 %v14566_v23 }
0x11bf   :  { %10396 = vmatpush3.bf16.msra.mxu1 %v14831_v11 }
0x11c0   :  { %10397 = vmatprep.subr.bf16.mxu1 %v14566_v23 }
0x11c3   :  { %10399 = vmatpush3.bf16.msra.mxu1 %v14832_v16 }
0x11c4   :  { %10400 = vmatprep.subr.bf16.mxu1 %v14566_v23 }
0x11c7   :  { %10402 = vmatpush3.bf16.msra.mxu1 %v14833_v61 }
0x11c8   :  { %10403 = vmatprep.subr.bf16.mxu1 %v14566_v23 }
0x11cb   :  { %10405 = vmatpush3.bf16.msra.mxu1 %v14834_v39 }
0x11cc   :  { %10406 = vmatprep.subr.bf16.mxu1 %v14566_v23 }
0x11cf   :  { %10408 = vmatpush3.bf16.msra.mxu1 %v14835_v22  ;;  %v14845_v22 = vld [vmem:[#allocation35_spill] sm:$0xff] }
0x11d0   :  { %10441 = vmatprep.subr.bf16.mxu1 %v14566_v23 }
0x11d2   :  { %9047 = vmatmul.mubr.f32.vlgmr.msra.gmra.mrb[20].mxu1 %v13238_v15 }
0x11d3   :  { %10443 = vmatpush3.bf16.msra.mxu1 %v14836_v45  ;;  %9081 = vmatprep.mubr.msk.f32.mxu1 %vm11694_vm0, %v14561_v1 }
0x11d4   :  { %10444 = vmatprep.subr.bf16.mxu1 %v14566_v23 }
0x11d7   :  { %10446 = vmatpush3.bf16.msra.mxu1 %v14837_v12  ;;  %v14843_v12 = vld [vmem:[#allocation84_spill] sm:$0xff] }
0x11d8   :  { %10447 = vmatprep.subr.bf16.mxu1 %v14566_v23 }
0x11db   :  { %10449 = vmatpush3.bf16.msra.mxu1 %v14838_v13 }
0x11dc   :  { %10450 = vmatprep.subr.bf16.mxu1 %v14566_v23 }
0x11df   :  { %10452 = vmatpush3.bf16.msra.mxu1 %v14839_v51  ;;  %v13281_v51 = vld [vmem:[%s14240_s13] ss:$0 sm:$0xff] }
0x11e0   :  { %10453 = vmatprep.subr.bf16.mxu1 %v14566_v23  ;;  %14844 = vst [vmem:[#allocation90_spill] sm:$0xff] %v13281_v51 }
0x11e3   :  { %10455 = vmatpush3.bf16.msra.mxu1 %v14840_v21 }
0x11e4   :  { %10456 = vmatprep.subr.bf16.mxu1 %v14566_v23 }
0x11e7   :  { %10458 = vmatpush3.bf16.msra.mxu1 %v14841_v33 }
0x11e8   :  { %10459 = vmatprep.subr.bf16.mxu1 %v14566_v23 }
0x11eb   :  { %10461 = vmatpush3.bf16.msra.mxu1 %v14842_v10 }
0x11ec   :  { %10462 = vmatprep.subr.bf16.mxu1 %v14566_v23 }
0x11ef   :  { %10464 = vmatpush3.bf16.msra.mxu1 %v14843_v12 }
0x11f0   :  { %10497 = vmatprep.subr.bf16.mxu1 %v14566_v23 }
0x1285   :  { %v4057_v13 = vpop.f32.mrb[18].mxu1 }
0x1286   :  { %v4058_v21 = vadd.f32 %v13281_v51, %v4057_v13  ;;  %v8978_v45 = vpop.f32.mrb[19].mxu1  ;;  %v14846_v13 = vld [vmem:[#allocation36_spill] sm:$0xff] }
0x1288   :  { %4061 = vmax.xlane.f32.xlu0 %v4058_v21 }
0x12a5   :  { %v4218_v33 = vpop.f32.mrb[20].mxu1 }
0x12a6   :  { %v4230_v39 = vrot.slane %v4218_v33, %v14845_v22  ;;  %v9048_v10 = vpop.f32.mrb[21].mxu1  ;;  %v4223_v61 = vcombine.high %v4218_v33, %v4218_v33 }
0x12a7   :  { %v14848_v10 = vld [vmem:[#allocation38_spill] sm:$0xff] }
0x12a8   :  { %v4238_v16 = vcombine.high %v4230_v39, %v4230_v39  ;;  %v4246_v12 = vrot.slane %v4230_v39, %v14845_v22  ;;  %v4237_v7 = vrot.slane %v4223_v61, %v14845_v22  ;;  %v14849_v61 = vld [vmem:[#allocation37_spill] sm:$0xff] }
0x12aa   :  { %v4260_v11 = vrot.slane %v4238_v16, %v14845_v22  ;;  %v4268_v9 = vcombine.high %v4246_v12, %v4246_v12  ;;  %v4275_v4 = vrot.slane %v4246_v12, %v12005_v17  ;;  %v4253_v51 = vrot.slane %v4237_v7, %v14845_v22 }
0x12ab   :  { %v4239_v39 = vcombine.high %v4237_v7, %v4237_v7  ;;  %v14851_v7 = vld [vmem:[#allocation39_spill] sm:$0xff] }
0x12ac   :  { %v4279_v58 = vrot.slane %v4260_v11, %v12005_v17  ;;  %v4312_v45 = vadd.f32 %v4275_v4, %v14846_v13  ;;  %v4283_v15 = vrot.slane %v4268_v9, %v12005_v17  ;;  %v4291_v12 = vrot.slane %v4253_v51, %v12005_v17  ;;  %v14850_v13 = vld [vmem:[#allocation40_spill] sm:$0xff] }
0x12ad   :  { %v4270_v59 = vcombine.high %v4260_v11, %v4260_v11  ;;  %v4269_v9 = vcombine.high %v4253_v51, %v4253_v51 }
0x12ae   :  { %v4320_v35 = vmul.f32 %v14847_v31, %v4312_v45  ;;  %v4313_v33 = vadd.f32 %v4279_v58, %v14848_v10  ;;  %v4314_v53 = vadd.f32 %v4283_v15, %v14849_v61  ;;  %v4316_v3 = vadd.f32 %v4291_v12, %v14850_v13 }
0x12af   :  { %v4287_v45 = vrot.slane %v4270_v59, %v12005_v17  ;;  %v4267_v58 = vrot.slane %v4239_v39, %v14845_v22  ;;  %v4299_v12 = vrot.slane %v4269_v9, %v12005_v17  ;;  %v14853_v39 = vld [vmem:[#allocation42_spill] sm:$0xff] }
0x12b0   :  { %4328 = vadd.xlane.f32.xlu1 %v4320_v35  ;;  %v4321_v16 = vmul.f32 %v14847_v31, %v4313_v33  ;;  %v4322_v4 = vmul.f32 %v14847_v31, %v4314_v53  ;;  %v4324_v35 = vmul.f32 %v14847_v31, %v4316_v3 }
0x12b1   :  { %v4315_v33 = vadd.f32 %v4287_v45, %v14851_v7  ;;  %v4295_v15 = vrot.slane %v4267_v58, %v12005_v17  ;;  %v4271_v53 = vcombine.high %v4267_v58, %v4267_v58  ;;  %v14854_v45 = vld [vmem:[#allocation43_spill] sm:$0xff] }
0x12b3   :  { %v4323_v11 = vmul.f32 %v14847_v31, %v4315_v33  ;;  %v4303_v51 = vrot.slane %v4271_v53, %v12005_v17  ;;  %v14855_v53 = vld [vmem:[#allocation45_spill] sm:$0xff] }
0x12b4   :  { %4330 = vadd.xlane.f32.xlu1 %v4321_v16  ;;  %v14852_v16 = vld [vmem:[#allocation41_spill] sm:$0xff] }
0x12b5   :  { %v4317_v61 = vadd.f32 %v4295_v15, %v14852_v16  ;;  %v4319_v7 = vadd.f32 %v4303_v51, %v14854_v45 }
0x12b7   :  { %v4325_v59 = vmul.f32 %v14847_v31, %v4317_v61 }
0x12b8   :  { %4332 = vadd.xlane.f32.xlu1 %v4322_v4  ;;  %v4318_v4 = vadd.f32 %v4299_v12, %v14853_v39 }
0x12ba   :  { %v4326_v3 = vmul.f32 %v14847_v31, %v4318_v4 }
0x12bc   :  { %4336 = vadd.xlane.f32.xlu1 %v4324_v35  ;;  %v4327_v35 = vmul.f32 %v14847_v31, %v4319_v7 }
0x12c0   :  { %4334 = vadd.xlane.f32.xlu1 %v4323_v11 }
0x12c4   :  { %4338 = vadd.xlane.f32.xlu1 %v4325_v59 }
0x12c8   :  { %4340 = vadd.xlane.f32.xlu1 %v4326_v3 }
0x12cc   :  { %4342 = vadd.xlane.f32.xlu1 %v4327_v35 }
0x1315   :  { %v4062_v33 = vpop.xlane.xlu0 %4061 }
0x1316   :  { %v4063_v58 = vsub.f32 %v4058_v21, %v4062_v33 }
0x1318   :  { %v4064_v15 = vmul.f32 1.442695, %v4063_v58 }
0x131a   :  { %11273 = vpow2.f32 %v4064_v15 }
0x1324   :  { %v11274_v9 = vpop.eup %11273 }
0x1325   :  { %4066 = vadd.xlane.f32.xlu0 %v11274_v9 }
0x133d   :  { %v4329_v61 = vpop.xlane.xlu1 %4328 }
0x133e   :  { %v4344_v51 = vadd.f32 %v4329_v61, %v14855_v53 }
0x1340   :  { %v4352_v35 = vmax.f32 %v4344_v51, 0.0 }
0x1341   :  { %v4331_v11 = vpop.xlane.xlu1 %4330 }
0x1342   :  { %v4345_v59 = vadd.f32 %v4331_v11, %v14855_v53 }
0x1344   :  { %v4353_v7 = vmax.f32 %v4345_v59, 0.0 }
0x1345   :  { %v4333_v12 = vpop.xlane.xlu1 %4332 }
0x1346   :  { %v4346_v4 = vadd.f32 %v4333_v12, %v14855_v53  ;;  %v4375_v45 = vrot.slane %v4353_v7, %v14644_v56  ;;  %v4371_v12 = vrot.slane %v4352_v35, %v14644_v56 }
0x1348   :  { %v4354_v3 = vmax.f32 %v4346_v4, 0.0  ;;  %v4400_v4 = vsel %vm834_vm1, %v4375_v45, %v4371_v12 }
0x1349   :  { %v4337_v39 = vpop.xlane.xlu1 %4336 }
0x134a   :  { %v4348_v9 = vadd.f32 %v4337_v39, %v14855_v53  ;;  %v4379_v11 = vrot.slane %v4354_v3, %v14644_v56 }
0x134c   :  { %v4356_v59 = vmax.f32 %v4348_v9, 0.0  ;;  %v4401_v39 = vsel %vm836_vm2, %v4379_v11, %v4400_v4 }
0x134d   :  { %v4335_v16 = vpop.xlane.xlu1 %4334 }
0x134e   :  { %v4347_v31 = vadd.f32 %v4335_v16, %v14855_v53  ;;  %v4387_v36 = vrot.slane %v4356_v59, %v14644_v56 }
0x1350   :  { %v4355_v33 = vmax.f32 %v4347_v31, 0.0 }
0x1351   :  { %v4339_v21 = vpop.xlane.xlu1 %4338 }
0x1352   :  { %v4349_v15 = vadd.f32 %v4339_v21, %v14855_v53  ;;  %v4383_v61 = vrot.slane %v4355_v33, %v14644_v56 }
0x1354   :  { %v4357_v10 = vmax.f32 %v4349_v15, 0.0  ;;  %v4402_v21 = vsel %vm838_vm3, %v4383_v61, %v4401_v39 }
0x1355   :  { %v4341_v13 = vpop.xlane.xlu1 %4340  ;;  %v4403_v45 = vsel %vm840_vm4, %v4387_v36, %v4402_v21 }
0x1356   :  { %v13325_v16 = vadd.f32 %v4341_v13, %v14855_v53  ;;  %v4391_v22 = vrot.slane %v4357_v10, %v14644_v56 }
0x1358   :  { %v14493_v51 = vmax.f32 %v13325_v16, 0.0  ;;  %v4404_v11 = vsel %vm842_vm5, %v4391_v22, %v4403_v45  ;;  %v14856_v22 = vld [vmem:[#allocation47_spill] sm:$0xff] }
0x1359   :  { %v4343_v31 = vpop.xlane.xlu1 %4342 }
0x135a   :  { %v4351_v60 = vadd.f32 %v4343_v31, %v14855_v53  ;;  %v4395_v13 = vrot.slane %v14493_v51, %v14644_v56 }
0x135c   :  { %v4359_v15 = vmax.f32 %v4351_v60, 0.0  ;;  %v4405_v12 = vsel %vm844_vm6, %v4395_v13, %v4404_v11  ;;  %v14857_v13 = vld [vmem:[#allocation48_spill] sm:$0xff] }
0x135e   :  { %v4399_v9 = vrot.slane %v4359_v15, %v14644_v56 }
0x1360   :  { %v4406_v61 = vsel %vm846_vm7, %v4399_v9, %v4405_v12  ;;  %v14858_v9 = vld [vmem:[#allocation50_spill] sm:$0xff] }
0x1361   :  { %v4408_v4 = vsel %vm849_vm8, %v4406_v61, -inf }
0x1362   :  { %4409 = vmax.xlane.f32.xlu1 %v4408_v4 }
0x13b2   :  { %v4067_v39 = vpop.xlane.xlu0 %4066 }
0x13b3   :  { %11275 = vlog2.f32 %v4067_v39  ;;  %v14859_v39 = vld [vmem:[#allocation49_spill] sm:$0xff] }
0x13bd   :  { %v11276_v31 = vpop.eup %11275 }
0x13be   :  { %v4069_v53 = vmul.f32 0.6931472, %v11276_v31 }
0x13c0   :  { %v4070_v38 = vsub.f32 %v4063_v58, %v4069_v53 }
0x13c2   :  { %4073 = vmax.xlane.f32.xlu0 %v4070_v38  ;;  %4072 = vst [vmem:[#allocation17 + $0x10] sm:$0xff] %v4070_v38 }
0x13ef   :  { %v4410_v60 = vpop.xlane.xlu1 %4409 }
0x13f0   :  { %v4415_v36 = vrot.slane %v4410_v60, %v12005_v17  ;;  %v4419_v21 = vrot.slane %v4410_v60, %v12100_v48  ;;  %v4423_v45 = vrot.slane %v4410_v60, %v14856_v22  ;;  %v4427_v11 = vrot.slane %v4410_v60, %v14857_v13 }
0x13f1   :  { %v4435_v12 = vrot.slane %v4410_v60, %v14858_v9  ;;  %v4431_v55 = vrot.slane %v4410_v60, %v14859_v39  ;;  %v4443_v62 = vrot.slane %v4410_v60, %v14860_v24 }
0x13f2   :  { %v4452_v61 = vsub.f32 %v4352_v35, %v4415_v36  ;;  %v4453_v4 = vsub.f32 %v4353_v7, %v4419_v21  ;;  %v4455_v51 = vsub.f32 %v4355_v33, %v4427_v11  ;;  %v4454_v31 = vsub.f32 %v4354_v3, %v4423_v45 }
0x13f3   :  { %v4457_v42 = vsub.f32 %v4357_v10, %v4435_v12  ;;  %v4456_v20 = vsub.f32 %v4356_v59, %v4431_v55  ;;  %v4459_v2 = vsub.f32 %v4359_v15, %v4443_v62  ;;  %v14862_v62 = vmax.f32 %v13325_v16, 0.0 }
0x13f4   :  { %v4460_v58 = vmul.f32 1.442695, %v4452_v61  ;;  %v4462_v53 = vmul.f32 1.442695, %v4453_v4  ;;  %v4466_v37 = vmul.f32 1.442695, %v4455_v51 }
0x13f5   :  { %v4464_v46 = vmul.f32 1.442695, %v4454_v31  ;;  %v4470_v40 = vmul.f32 1.442695, %v4457_v42  ;;  %v4468_v35 = vmul.f32 1.442695, %v4456_v20 }
0x13f6   :  { %11277 = vpow2.f32 %v4460_v58  ;;  %v4474_v7 = vmul.f32 1.442695, %v4459_v2  ;;  %v14861_v20 = vld [vmem:[#allocation51_spill] sm:$0xff] }
0x13f7   :  { %11279 = vpow2.f32 %v4462_v53  ;;  %v14863_v51 = vld [vmem:[#allocation59_spill] sm:$0xff] }
0x13f8   :  { %11281 = vpow2.f32 %v4466_v37  ;;  %v4439_v37 = vrot.slane %v4410_v60, %v14861_v20 }
0x13f9   :  { %11283 = vpow2.f32 %v4464_v46 }
0x13fa   :  { %11285 = vpow2.f32 %v4470_v40  ;;  %v4458_v59 = vsub.f32 %v14862_v62, %v4439_v37 }
0x13fb   :  { %11287 = vpow2.f32 %v4468_v35 }
0x13fc   :  { %11289 = vpow2.f32 %v4474_v7  ;;  %v4472_v36 = vmul.f32 1.442695, %v4458_v59  ;;  %v14864_v59 = vmov 1.0  }
0x13fe   :  { %11291 = vpow2.f32 %v4472_v36 }
0x1400   :  { %v13350_v33 = vpop.eup %11277 }
0x1401   :  { %v13352_v3 = vpop.eup %11279  ;;  %4485 = vperm.xlu0 %11137, %v13350_v33  }
0x1402   :  { %4488 = vperm.xlu1 %11138, %v13352_v3   ;;  %v13356_v55 = vpop.eup %11281 }
0x1403   :  { %v13358_v10 = vpop.eup %11283 }
0x1404   :  { %v13362_v40 = vpop.eup %11285 }
0x1405   :  { %4494 = vperm.xlu0 %11137, %v13356_v55   ;;  %v13364_v2 = vpop.eup %11287 }
0x1406   :  { %4491 = vperm.xlu1 %11138, %v13358_v10   ;;  %v13368_v46 = vpop.eup %11289 }
0x1408   :  { %v13375_v21 = vpop.eup %11291 }
0x1409   :  { %4500 = vperm.xlu0 %11137, %v13362_v40  }
0x140a   :  { %4497 = vperm.xlu1 %11138, %v13364_v2  }
0x140d   :  { %4506 = vperm.xlu0 %11137, %v13368_v46  }
0x144f   :  { %v4074_v42 = vpop.xlane.xlu0 %4073 }
0x1450   :  { %vm4075_vm14 = vcmp.eq.f32.partialorder %v4070_v38, %v4074_v42 }
0x1451   :  { %v4076_v15 = vsel %vm4075_vm14, %v14863_v51, 128.0 }
0x1452   :  { %4077 = vmin.xlane.f32.xlu1 %v4076_v15 }
0x1463   :  { %4503 = vperm.xlu1 %11138, %v13375_v21  }
0x1480   :  { %v4486_v11 = vpop.permute.xlu0 %4485 }
0x1481   :  { %v4489_v45 = vpop.permute.xlu1 %4488  ;;  %v4511_v4 = vrot.slane %v4486_v11, %v14644_v56 }
0x1482   :  { %v4515_v60 = vrot.slane %v4489_v45, %v14644_v56  ;;  %v14865_v45 = vld [vmem:[#allocation62_spill] sm:$0xff] }
0x1484   :  { %v4495_v61 = vpop.permute.xlu0 %4494  ;;  %v4540_v58 = vsel %vm834_vm1, %v4515_v60, %v4511_v4 }
0x1485   :  { %v4492_v12 = vpop.permute.xlu1 %4491  ;;  %v4523_v53 = vrot.slane %v4495_v61, %v14644_v56 }
0x1486   :  { %v4519_v16 = vrot.slane %v4492_v12, %v14644_v56  ;;  %v14866_v12 = vld [vmem:[#allocation64_spill] sm:$0xff] }
0x1488   :  { %v4501_v31 = vpop.permute.xlu0 %4500  ;;  %v4541_v35 = vsel %vm836_vm2, %v4519_v16, %v4540_v58  ;;  %v14868_v58 = vld [vmem:[#allocation67_spill] sm:$0xff] }
0x1489   :  { %v4498_v38 = vpop.permute.xlu1 %4497  ;;  %v4542_v42 = vsel %vm838_vm3, %v4523_v53, %v4541_v35  ;;  %v4531_v62 = vrot.slane %v4501_v31, %v14644_v56  ;;  %v14869_v35 = vld [vmem:[#allocation68_spill] sm:$0xff] }
0x148a   :  { %v4527_v7 = vrot.slane %v4498_v38, %v14644_v56  ;;  %v14867_v38 = vld [vmem:[#allocation65_spill] sm:$0xff] }
0x148c   :  { %v4543_v15 = vsel %vm840_vm4, %v4527_v7, %v4542_v42  ;;  %v4507_v36 = vpop.permute.xlu0 %4506  ;;  %v14870_v7 = vld [vmem:[#allocation70_spill] sm:$0xff]  ;;  %v14872_v42 = vld [vmem:[#allocation73_spill] sm:$0xff] }
0x148d   :  { %v4544_v60 = vsel %vm842_vm5, %v4531_v62, %v4543_v15  ;;  %v4539_v4 = vrot.slane %v4507_v36, %v14644_v56  ;;  %v14873_v62 = vld [vmem:[#allocation74_spill] sm:$0xff]  ;;  %v14874_v15 = vld [vmem:[#allocation76_spill] sm:$0xff]  ;;  %v14875_v36 = vld [vmem:[#allocation77_spill] sm:$0xff] }
0x14df   :  { %v4078_v37 = vpop.xlane.xlu1 %4077 }
0x14e0   :  { %vm4079_vm15 = vcmp.eq.f32.partialorder %v14863_v51, %v4078_v37  ;;  %v14871_v37 = vld [vmem:[#allocation71_spill] sm:$0xff] }
0x14e1   :  { %9012 = vmatmul.mubr.msk.f32.vlgmr.msra.gmra.mrb[30].mxu0 %vm4079_vm15, %v14864_v59 }
0x14e2   :  { %10412 = vmatpush1.bf16.msra.mxu0 %v14865_v45  ;;  %4784 = vmatprep.mubr.f32.mxu0 %v14561_v1 }
0x14e3   :  { %v4504_v11 = vpop.permute.xlu1 %4503  ;;  %10414 = vmatprep.subr.bf16.mxu0 %v14866_v12 }
0x14e4   :  { %v4535_v61 = vrot.slane %v4504_v11, %v14644_v56  ;;  %v14876_v11 = vld [vmem:[#allocation79_spill] sm:$0xff] }
0x14e6   :  { %v4545_v16 = vsel %vm844_vm6, %v4535_v61, %v4544_v60  ;;  %10416 = vmatpush1.bf16.msra.mxu0 %v14867_v38  ;;  %v14877_v61 = vld [vmem:[#allocation80_spill] sm:$0xff]  ;;  %v14878_v60 = vld [vmem:[#allocation82_spill] sm:$0xff] }
0x14e7   :  { %v4546_v31 = vsel %vm846_vm7, %v4539_v4, %v4545_v16  ;;  %10418 = vmatprep.subr.bf16.mxu0 %v14868_v58  ;;  %v14879_v4 = vld [vmem:[#allocation83_spill] sm:$0xff]  ;;  %v14880_v16 = vld [vmem:[#allocation85_spill] sm:$0xff] }
0x14e8   :  { %v4548_v53 = vsel %vm849_vm8, %v4546_v31, 0.0  ;;  %v13446_v58 = vld [vmem:[#allocation3 + $0x28] sm:$0xff] }
0x14e9   :  { %4549 = vadd.xlane.f32.xlu1 %v4548_v53  ;;  %14886 = vst [vmem:[#allocation127_spill] sm:$0xff] %v13446_v58 }
0x14ea   :  { %10420 = vmatpush1.bf16.msra.mxu0 %v14869_v35 }
0x14eb   :  { %10422 = vmatprep.subr.bf16.mxu0 %v14870_v7 }
0x14ee   :  { %10424 = vmatpush1.bf16.msra.mxu0 %v14871_v37 }
0x14ef   :  { %10426 = vmatprep.subr.bf16.mxu0 %v14872_v42 }
0x14f2   :  { %10428 = vmatpush1.bf16.msra.mxu0 %v14873_v62 }
0x14f3   :  { %10430 = vmatprep.subr.bf16.mxu0 %v14874_v15 }
0x14f6   :  { %10432 = vmatpush1.bf16.msra.mxu0 %v14875_v36 }
0x14f7   :  { %10434 = vmatprep.subr.bf16.mxu0 %v14876_v11 }
0x14fa   :  { %10436 = vmatpush1.bf16.msra.mxu0 %v14877_v61 }
0x14fb   :  { %10438 = vmatprep.subr.bf16.mxu0 %v14878_v60 }
0x14fe   :  { %10440 = vmatpush1.bf16.msra.mxu0 %v14879_v4 }
0x14ff   :  { %10466 = vmatprep.subr.bf16.mxu0 %v14880_v16 }
0x1576   :  { %v4550_v31 = vpop.xlane.xlu1 %4549 }
0x1577   :  { %v4555_v53 = vrot.slane %v4550_v31, %v12005_v17  ;;  %v4559_v42 = vrot.slane %v4550_v31, %v12100_v48  ;;  %v4563_v15 = vrot.slane %v4550_v31, %v14856_v22  ;;  %v4567_v11 = vrot.slane %v4550_v31, %v14857_v13 }
0x1578   :  { %v4571_v60 = vrot.slane %v4550_v31, %v14859_v39  ;;  %v4575_v16 = vrot.slane %v4550_v31, %v14858_v9 }
0x1579   :  { %11293 = vrcp.f32 %v4555_v53 }
0x157a   :  { %11295 = vrcp.f32 %v4559_v42  ;;  %v4579_v42 = vrot.slane %v4550_v31, %v14861_v20  ;;  %v13452_v20 = vld [vmem:[#allocation3 + $0x38] sm:$0xff] }
0x157b   :  { %11297 = vrcp.f32 %v4563_v15  ;;  %14888 = vst [vmem:[#allocation131_spill] sm:$0xff] %v13452_v20 }
0x157c   :  { %11299 = vrcp.f32 %v4567_v11  ;;  %v4583_v11 = vrot.slane %v4550_v31, %v14860_v24 }
0x157d   :  { %11301 = vrcp.f32 %v4571_v60 }
0x157e   :  { %11303 = vrcp.f32 %v4575_v16 }
0x157f   :  { %11305 = vrcp.f32 %v4579_v42 }
0x1580   :  { %11307 = vrcp.f32 %v4583_v11 }
0x1583   :  { %v11294_v36 = vpop.eup %11293 }
0x1584   :  { %v4593_v4 = vmul.f32 %v11294_v36, %v13350_v33  ;;  %v11296_v61 = vpop.eup %11295 }
0x1585   :  { %v4595_v62 = vmul.f32 %v11296_v61, %v13352_v3  ;;  %v11298_v53 = vpop.eup %11297 }
0x1586   :  { %4610 = vperm.xlu0 %11137, %v4593_v4   ;;  %v4597_v15 = vmul.f32 %v11298_v53, %v13358_v10  ;;  %v11300_v37 = vpop.eup %11299 }
0x1587   :  { %v4599_v33 = vmul.f32 %v11300_v37, %v13356_v55  ;;  %v11302_v36 = vpop.eup %11301 }
0x1588   :  { %v4601_v60 = vmul.f32 %v11302_v36, %v13364_v2  ;;  %v11304_v3 = vpop.eup %11303  ;;  %v13431_v2 = vld [vmem:[#allocation3 + $0x8] sm:$0xff] }
0x1589   :  { %v11306_v61 = vpop.eup %11305  ;;  %14881 = vst [vmem:[#allocation91_spill] sm:$0xff] %v13431_v2 }
0x158a   :  { %4615 = vperm.xlu0 %11137, %v4595_v62   ;;  %v4603_v62 = vmul.f32 %v11304_v3, %v13362_v40  ;;  %v4605_v10 = vmul.f32 %v11306_v61, %v13375_v21  ;;  %v11308_v4 = vpop.eup %11307  ;;  %v13434_v40 = vld [vmem:[#allocation3 + $0x10] sm:$0xff]  ;;  %v13437_v21 = vld [vmem:[#allocation3] sm:$0xff] }
0x158b   :  { %v4607_v16 = vmul.f32 %v11308_v4, %v13368_v46  ;;  %14882 = vst [vmem:[#allocation92_spill] sm:$0xff] %v13434_v40  ;;  %14883 = vst [vmem:[#allocation93_spill] sm:$0xff] %v13437_v21 }
0x158e   :  { %4620 = vperm.xlu0 %11137, %v4597_v15  }
0x1592   :  { %4625 = vperm.xlu0 %11137, %v4599_v33  }
0x1596   :  { %4630 = vperm.xlu0 %11137, %v4601_v60   ;;  %v13440_v60 = vld [vmem:[#allocation3 + $0x18] sm:$0xff] }
0x1597   :  { %14884 = vst [vmem:[#allocation94_spill] sm:$0xff] %v13440_v60 }
0x159a   :  { %4635 = vperm.xlu0 %11137, %v4603_v62  }
0x159e   :  { %4640 = vperm.xlu0 %11137, %v4605_v10  }
0x15a2   :  { %4645 = vperm.xlu0 %11137, %v4607_v16  }
0x15b4   :  { %v13429_v31 = vpop.f32.mrb[30].mxu0 }
0x15b5   :  { %v9013_v55 = vpop.f32.mrb[31].mxu0 }
0x15b6   :  { %v13443_v55 = vld [vmem:[#allocation3 + $0x20] sm:$0xff] }
0x15b7   :  { %14885 = vst [vmem:[#allocation129_spill] sm:$0xff] %v13443_v55 }
0x1605   :  { %v4611_v37 = vpop.permute.xlu0 %4610 }
0x1606   :  { %v4648_v33 = vmul.f32 %v13437_v21, %v4611_v37 }
0x1608   :  { %v4656_v61 = vrot.slane %v4648_v33, 4 }
0x1609   :  { %v4616_v53 = vpop.permute.xlu0 %4615 }
0x160a   :  { %v4649_v15 = vmul.f32 %v13431_v2, %v4616_v53 }
0x160c   :  { %v4662_v36 = vrot.slane %v4649_v15, 4 }
0x160d   :  { %v4621_v42 = vpop.permute.xlu0 %4620 }
0x160e   :  { %v4650_v11 = vmul.f32 %v13434_v40, %v4621_v42  ;;  %v4663_v16 = vadd.f32 %v4662_v36, %v4649_v15  ;;  %v4657_v40 = vadd.f32 %v4656_v61, %v4648_v33 }
0x1610   :  { %v4668_v62 = vrot.slane %v4650_v11, 4  ;;  %v4664_v21 = vrot.slane %v4663_v16, 2  ;;  %v4658_v38 = vrot.slane %v4657_v40, 2 }
0x1611   :  { %v4626_v46 = vpop.permute.xlu0 %4625 }
0x1612   :  { %v4651_v3 = vmul.f32 %v13440_v60, %v4626_v46  ;;  %v4669_v42 = vadd.f32 %v4668_v62, %v4650_v11  ;;  %v4665_v59 = vadd.f32 %v4664_v21, %v4663_v16 }
0x1614   :  { %v4674_v10 = vrot.slane %v4651_v3, 4  ;;  %v4670_v60 = vrot.slane %v4669_v42, 2 }
0x1615   :  { %v4631_v4 = vpop.permute.xlu0 %4630 }
0x1616   :  { %v4652_v53 = vmul.f32 %v13443_v55, %v4631_v4  ;;  %v4675_v2 = vadd.f32 %v4674_v10, %v4651_v3  ;;  %v13449_v4 = vld [vmem:[#allocation3 + $0x30] sm:$0xff]  ;;  %v4671_v33 = vadd.f32 %v4670_v60, %v4669_v42  ;;  %v4659_v3 = vadd.f32 %v4658_v38, %v4657_v40 }
0x1617   :  { %14887 = vst [vmem:[#allocation130_spill] sm:$0xff] %v13449_v4 }
0x1618   :  { %v4680_v7 = vrot.slane %v4652_v53, 4  ;;  %v4676_v12 = vrot.slane %v4675_v2, 2  ;;  %v4672_v21 = vrot.slane %v4671_v33, 1 }
0x1619   :  { %v4636_v37 = vpop.permute.xlu0 %4635 }
0x161a   :  { %v4681_v35 = vadd.f32 %v4680_v7, %v4652_v53  ;;  %v4653_v46 = vmul.f32 %v13446_v58, %v4636_v37  ;;  %v4677_v62 = vadd.f32 %v4676_v12, %v4675_v2  ;;  %v4666_v37 = vrot.slane %v4665_v59, 1 }
0x161b   :  { %v4673_v40 = vadd.f32 %v4672_v21, %v4671_v33  ;;  %v14899_v21 = vld [vmem:[#allocation105_spill] sm:$0xff] }
0x161c   :  { %v4686_v45 = vrot.slane %v4653_v46, 4  ;;  %v4682_v15 = vrot.slane %v4681_v35, 2  ;;  %v4678_v16 = vrot.slane %v4677_v62, 1  ;;  %v4667_v60 = vadd.f32 %v4666_v37, %v4665_v59  ;;  %v14898_v37 = vld [vmem:[#allocation104_spill] sm:$0xff] }
0x161d   :  { %v4641_v36 = vpop.permute.xlu0 %4640 }
0x161e   :  { %v4687_v51 = vadd.f32 %v4686_v45, %v4653_v46  ;;  %v4654_v11 = vmul.f32 %v13449_v4, %v4641_v36  ;;  %v4683_v10 = vadd.f32 %v4682_v15, %v4681_v35  ;;  %v4660_v45 = vrot.slane %v4659_v3, 1 }
0x161f   :  { %v4679_v42 = vadd.f32 %v4678_v16, %v4677_v62  ;;  %v14896_v62 = vld [vmem:[#allocation102_spill] sm:$0xff]  ;;  %v14901_v16 = vld [vmem:[#allocation107_spill] sm:$0xff] }
0x1620   :  { %v4688_v7 = vrot.slane %v4687_v51, 2  ;;  %v4692_v61 = vrot.slane %v4654_v11, 4  ;;  %v4684_v36 = vrot.slane %v4683_v10, 1  ;;  %v4661_v35 = vadd.f32 %v4660_v45, %v4659_v3  ;;  %v14895_v3 = vld [vmem:[#allocation101_spill] sm:$0xff]  ;;  %v14900_v45 = vld [vmem:[#allocation106_spill] sm:$0xff] }
0x1621   :  { %v4646_v53 = vpop.permute.xlu0 %4645 }
0x1622   :  { %v4689_v58 = vadd.f32 %v4688_v7, %v4687_v51  ;;  %v4693_v55 = vadd.f32 %v4692_v61, %v4654_v11  ;;  %v4655_v24 = vmul.f32 %v13452_v20, %v4646_v53  ;;  %v4685_v11 = vadd.f32 %v4684_v36, %v4683_v10  ;;  %v14897_v10 = vld [vmem:[#allocation103_spill] sm:$0xff]  ;;  %v14903_v36 = vld [vmem:[#allocation109_spill] sm:$0xff] }
0x1623   :  { %v4712_v7 = vsel %vm834_vm1, %v4667_v60, %v4661_v35  ;;  %v14904_v60 = vld [vmem:[#allocation110_spill] sm:$0xff]  ;;  %v14909_v35 = vld [vmem:[#allocation115_spill] sm:$0xff] }
0x1624   :  { %v4694_v46 = vrot.slane %v4693_v55, 2  ;;  %v4698_v39 = vrot.slane %v4655_v24, 4  ;;  %v4690_v38 = vrot.slane %v4689_v58, 1  ;;  %v4713_v20 = vsel %vm836_vm2, %v4673_v40, %v4712_v7  ;;  %v14908_v40 = vld [vmem:[#allocation114_spill] sm:$0xff] }
0x1625   :  { %v4714_v9 = vsel %vm838_vm3, %v4679_v42, %v4713_v20  ;;  %v14891_v20 = vld [vmem:[#allocation97_spill] sm:$0xff]  ;;  %v14910_v42 = vld [vmem:[#allocation116_spill] sm:$0xff]  ;;  %v14914_v7 = vld [vmem:[#allocation118_spill] sm:$0xff] }
0x1626   :  { %v4695_v12 = vadd.f32 %v4694_v46, %v4693_v55  ;;  %v4699_v2 = vadd.f32 %v4698_v39, %v4655_v24  ;;  %v4691_v61 = vadd.f32 %v4690_v38, %v4689_v58  ;;  %v4715_v59 = vsel %vm840_vm4, %v4685_v11, %v4714_v9  ;;  %v14890_v9 = vld [vmem:[#allocation96_spill] sm:$0xff]  ;;  %v14892_v58 = vld [vmem:[#allocation98_spill] sm:$0xff]  ;;  %v14905_v38 = vld [vmem:[#allocation111_spill] sm:$0xff] }
0x1627   :  { %v14902_v46 = vld [vmem:[#allocation108_spill] sm:$0xff] }
0x1628   :  { %v4696_v15 = vrot.slane %v4695_v12, 1  ;;  %v4700_v51 = vrot.slane %v4699_v2, 2  ;;  %v4716_v24 = vsel %vm842_vm5, %v4691_v61, %v4715_v59  ;;  %v14913_v11 = vld [vmem:[#allocation52_spill] sm:$0xff]  ;;  %v14915_v61 = vld [vmem:[#allocation53_spill] sm:$0xff]  ;;  %v14917_v59 = vld [vmem:[#allocation54_spill] sm:$0xff] }
0x162a   :  { %v4701_v53 = vadd.f32 %v4700_v51, %v4699_v2  ;;  %v4697_v4 = vadd.f32 %v4696_v15, %v4695_v12  ;;  %v14906_v12 = vld [vmem:[#allocation112_spill] sm:$0xff]  ;;  %v14907_v2 = vld [vmem:[#allocation113_spill] sm:$0xff] }
0x162b   :  { %v14911_v15 = vld [vmem:[#allocation89_spill] sm:$0xff] }
0x162c   :  { %v4702_v13 = vrot.slane %v4701_v53, 1  ;;  %v4717_v39 = vsel %vm844_vm6, %v4697_v4, %v4716_v24  ;;  %v14893_v4 = vld [vmem:[#allocation99_spill] sm:$0xff]  ;;  %v14912_v51 = vld [vmem:[#allocation117_spill] sm:$0xff] }
0x162d   :  { %v14919_v24 = vld [vmem:[#allocation55_spill] sm:$0xff] }
0x162e   :  { %v4703_v55 = vadd.f32 %v4702_v13, %v4701_v53  ;;  %v14889_v13 = vld [vmem:[#allocation95_spill] sm:$0xff] }
0x162f   :  { %v14916_v53 = vld [vmem:[#allocation119_spill] sm:$0xff] }
0x1630   :  { %v4718_v33 = vsel %vm846_vm7, %v4703_v55, %v4717_v39  ;;  %v14918_v55 = vld [vmem:[#allocation120_spill] sm:$0xff]  ;;  %v14920_v39 = vld [vmem:[#allocation121_spill] sm:$0xff] }
0x1631   :  { %4785 = vmatmul.mubr.f32.vlgmr.msra.gmra.mrb[32].mxu0 %v4718_v33  ;;  %9082 = vmatmul.mubr.f32.vlgmr.msra.gmra.mrb[22].mxu1 %v4718_v33  ;;  %v14921_v33 = vld [vmem:[#allocation56_spill] sm:$0xff] }
0x1632   :  { %10468 = vmatpush1.bf16.msra.mxu0 %v12323_v41  ;;  %10499 = vmatpush3.bf16.msra.mxu1 %v12325_v19 }
0x1633   :  { %10470 = vmatprep.subr.bf16.mxu0 %v12328_v30  ;;  %10500 = vmatprep.subr.bf16.mxu1 %v14566_v23 }
0x1634   :  { %4925 = vmatprep.mubr.f32.mxu0 %v14561_v1  ;;  %9116 = vmatprep.mubr.msk.f32.mxu1 %vm11694_vm0, %v14561_v1 }
0x1636   :  { %10472 = vmatpush1.bf16.msra.mxu0 %v12333_v47  ;;  %10502 = vmatpush3.bf16.msra.mxu1 %v12335_v14 }
0x1637   :  { %10474 = vmatprep.subr.bf16.mxu0 %v12339_v34  ;;  %10503 = vmatprep.subr.bf16.mxu1 %v14566_v23 }
0x163a   :  { %10476 = vmatpush1.bf16.msra.mxu0 %v12346_v57  ;;  %10505 = vmatpush3.bf16.msra.mxu1 %v12348_v29 }
0x163b   :  { %10478 = vmatprep.subr.bf16.mxu0 %v12352_v32  ;;  %10506 = vmatprep.subr.bf16.mxu1 %v14566_v23 }
0x163e   :  { %10480 = vmatpush1.bf16.msra.mxu0 %v12356_v0  ;;  %10508 = vmatpush3.bf16.msra.mxu1 %v12358_v25 }
0x163f   :  { %10482 = vmatprep.subr.bf16.mxu0 %v12362_v8  ;;  %10509 = vmatprep.subr.bf16.mxu1 %v14566_v23 }
0x1642   :  { %10484 = vmatpush1.bf16.msra.mxu0 %v12366_v44  ;;  %10511 = vmatpush3.bf16.msra.mxu1 %v12368_v63 }
0x1643   :  { %10486 = vmatprep.subr.bf16.mxu0 %v12372_v18  ;;  %10512 = vmatprep.subr.bf16.mxu1 %v14566_v23 }
0x1646   :  { %10488 = vmatpush1.bf16.msra.mxu0 %v14677_v50  ;;  %10514 = vmatpush3.bf16.msra.mxu1 %v14678_v54 }
0x1647   :  { %10490 = vmatprep.subr.bf16.mxu0 %v14679_v49  ;;  %10515 = vmatprep.subr.bf16.mxu1 %v14566_v23 }
0x164a   :  { %10492 = vmatpush1.bf16.msra.mxu0 %v14680_v27  ;;  %10517 = vmatpush3.bf16.msra.mxu1 %v14681_v52 }
0x164b   :  { %10494 = vmatprep.subr.bf16.mxu0 %v14682_v5  ;;  %10518 = vmatprep.subr.bf16.mxu1 %v14566_v23 }
0x164e   :  { %10496 = vmatpush1.bf16.msra.mxu0 %v12396_v28  ;;  %10520 = vmatpush3.bf16.msra.mxu1 %v14683_v43 }
0x164f   :  { %10522 = vmatprep.subr.bf16.mxu0 %v14684_v6  ;;  %10553 = vmatprep.subr.bf16.mxu1 %v14566_v23 }
0x1651   :  { %4926 = vmatmul.mubr.f32.vlgmr.msra.gmra.mrb[32].mxu0 %v13429_v31  ;;  %9117 = vmatmul.mubr.f32.vlgmr.msra.gmra.mrb[24].mxu1 %v13429_v31  ;;  %v14894_v31 = vld [vmem:[#allocation100_spill] sm:$0xff] }
0x1652   :  { %10524 = vmatpush1.bf16.msra.mxu0 %v14685_v26  ;;  %10555 = vmatpush3.bf16.msra.mxu1 %v14889_v13 }
0x1653   :  { %10526 = vmatprep.subr.bf16.mxu0 %v14890_v9  ;;  %10556 = vmatprep.subr.bf16.mxu1 %v14566_v23 }
0x1654   :  { %5069 = vmatprep.mubr.f32.mxu0 %v14561_v1  ;;  %9151 = vmatprep.mubr.msk.f32.mxu1 %vm11694_vm0, %v14561_v1 }
0x1656   :  { %10528 = vmatpush1.bf16.msra.mxu0 %v14891_v20  ;;  %10558 = vmatpush3.bf16.msra.mxu1 %v14892_v58 }
0x1657   :  { %10530 = vmatprep.subr.bf16.mxu0 %v14893_v4  ;;  %10559 = vmatprep.subr.bf16.mxu1 %v14566_v23 }
0x165a   :  { %10532 = vmatpush1.bf16.msra.mxu0 %v14894_v31  ;;  %10561 = vmatpush3.bf16.msra.mxu1 %v14895_v3 }
0x165b   :  { %10534 = vmatprep.subr.bf16.mxu0 %v14896_v62  ;;  %10562 = vmatprep.subr.bf16.mxu1 %v14566_v23  ;;  %v14965_v62 = vld [vmem:[#allocation46_spill] sm:$0xff] }
0x165e   :  { %10536 = vmatpush1.bf16.msra.mxu0 %v14897_v10  ;;  %10564 = vmatpush3.bf16.msra.mxu1 %v14898_v37 }
0x165f   :  { %10538 = vmatprep.subr.bf16.mxu0 %v14899_v21  ;;  %10565 = vmatprep.subr.bf16.mxu1 %v14566_v23 }
0x1662   :  { %10540 = vmatpush1.bf16.msra.mxu0 %v14900_v45  ;;  %10567 = vmatpush3.bf16.msra.mxu1 %v14901_v16 }
0x1663   :  { %10542 = vmatprep.subr.bf16.mxu0 %v14902_v46  ;;  %10568 = vmatprep.subr.bf16.mxu1 %v14566_v23  ;;  %v14931_v46 = vld [vmem:[#allocation88_spill] sm:$0xff] }
0x1666   :  { %10544 = vmatpush1.bf16.msra.mxu0 %v14903_v36  ;;  %10570 = vmatpush3.bf16.msra.mxu1 %v14904_v60 }
0x1667   :  { %10546 = vmatprep.subr.bf16.mxu0 %v14905_v38  ;;  %10571 = vmatprep.subr.bf16.mxu1 %v14566_v23  ;;  %v14930_v38 = vld [vmem:[#allocation126_spill] sm:$0xff] }
0x166a   :  { %10548 = vmatpush1.bf16.msra.mxu0 %v14906_v12  ;;  %10573 = vmatpush3.bf16.msra.mxu1 %v14907_v2 }
0x166b   :  { %10550 = vmatprep.subr.bf16.mxu0 %v14908_v40  ;;  %10574 = vmatprep.subr.bf16.mxu1 %v14566_v23 }
0x166e   :  { %10552 = vmatpush1.bf16.msra.mxu0 %v14909_v35  ;;  %10576 = vmatpush3.bf16.msra.mxu1 %v14910_v42  ;;  %v14929_v35 = vld [vmem:[#allocation125_spill] sm:$0xff] }
0x166f   :  { %10577 = vmatprep.subr.bf16.mxu0 %v14566_v23  ;;  %10601 = vmatprep.subr.bf16.mxu1 %v14566_v23 }
0x1671   :  { %5070 = vmatmul.mubr.f32.vlgmr.msra.gmra.mrb[32].mxu0 %v14911_v15  ;;  %9152 = vmatmul.mubr.f32.vlgmr.msra.gmra.mrb[26].mxu1 %v14911_v15 }
0x1672   :  { %10579 = vmatpush3.bf16.msra.mxu0 %v14912_v51  ;;  %9186 = vmatprep.mubr.msk.f32.mxu0 %vm11694_vm0, %v14561_v1 }
0x1673   :  { %10580 = vmatprep.subr.bf16.mxu0 %v14566_v23  ;;  %10603 = vmatpush3.bf16.msra.mxu1 %v14913_v11 }
0x1674   :  { %10604 = vmatprep.subr.bf16.mxu1 %v14566_v23  ;;  %9221 = vmatprep.mubr.msk.f32.mxu1 %vm11694_vm0, %v14561_v1 }
0x1676   :  { %10582 = vmatpush3.bf16.msra.mxu0 %v14914_v7 }
0x1677   :  { %10583 = vmatprep.subr.bf16.mxu0 %v14566_v23  ;;  %10606 = vmatpush3.bf16.msra.mxu1 %v14915_v61 }
0x1678   :  { %10607 = vmatprep.subr.bf16.mxu1 %v14566_v23 }
0x167a   :  { %10585 = vmatpush3.bf16.msra.mxu0 %v14916_v53  ;;  %v14922_v53 = vld [vmem:[#allocation122_spill] sm:$0xff] }
0x167b   :  { %10586 = vmatprep.subr.bf16.mxu0 %v14566_v23  ;;  %10609 = vmatpush3.bf16.msra.mxu1 %v14917_v59  ;;  %v14923_v59 = vld [vmem:[#allocation57_spill] sm:$0xff] }
0x167c   :  { %10610 = vmatprep.subr.bf16.mxu1 %v14566_v23 }
0x167e   :  { %10588 = vmatpush3.bf16.msra.mxu0 %v14918_v55  ;;  %v14924_v55 = vld [vmem:[#allocation123_spill] sm:$0xff] }
0x167f   :  { %10589 = vmatprep.subr.bf16.mxu0 %v14566_v23  ;;  %10612 = vmatpush3.bf16.msra.mxu1 %v14919_v24  ;;  %v14925_v24 = vld [vmem:[#allocation58_spill] sm:$0xff] }
0x1680   :  { %10613 = vmatprep.subr.bf16.mxu1 %v14566_v23 }
0x1682   :  { %10591 = vmatpush3.bf16.msra.mxu0 %v14920_v39  ;;  %v14926_v39 = vld [vmem:[#allocation124_spill] sm:$0xff] }
0x1683   :  { %10592 = vmatprep.subr.bf16.mxu0 %v14566_v23  ;;  %10615 = vmatpush3.bf16.msra.mxu1 %v14921_v33  ;;  %v14927_v33 = vld [vmem:[#allocation60_spill] sm:$0xff] }
0x1684   :  { %10616 = vmatprep.subr.bf16.mxu1 %v14566_v23 }
0x1686   :  { %10594 = vmatpush3.bf16.msra.mxu0 %v14922_v53  ;;  %v14928_v53 = vld [vmem:[#allocation61_spill] sm:$0xff] }
0x1687   :  { %10595 = vmatprep.subr.bf16.mxu0 %v14566_v23  ;;  %10618 = vmatpush3.bf16.msra.mxu1 %v14923_v59 }
0x1688   :  { %10619 = vmatprep.subr.bf16.mxu1 %v14566_v23 }
0x168a   :  { %10597 = vmatpush3.bf16.msra.mxu0 %v14924_v55 }
0x168b   :  { %10598 = vmatprep.subr.bf16.mxu0 %v14566_v23  ;;  %10621 = vmatpush3.bf16.msra.mxu1 %v14925_v24 }
0x168c   :  { %10622 = vmatprep.subr.bf16.mxu1 %v14566_v23 }
0x168e   :  { %10600 = vmatpush3.bf16.msra.mxu0 %v14926_v39 }
0x168f   :  { %10625 = vmatprep.subr.bf16.mxu0 %v14566_v23  ;;  %10624 = vmatpush3.bf16.msra.mxu1 %v14927_v33 }
0x1690   :  { %10650 = vmatprep.subr.bf16.mxu1 %v14928_v53 }
0x1704   :  { %v4857_v61 = vpop.f32.mrb[22].mxu1 }
0x1705   :  { %v9083_v59 = vpop.f32.mrb[23].mxu1 }
0x1724   :  { %v4998_v7 = vpop.f32.mrb[24].mxu1 }
0x1725   :  { %v4999_v11 = vadd.f32 %v4998_v7, %v4857_v61  ;;  %v9118_v51 = vpop.f32.mrb[25].mxu1  ;;  %v14932_v61 = vld [vmem:[#allocation128_spill] sm:$0xff] }
0x1727   :  { %v5004_v16 = vadd.f32 %v4999_v11, %v14932_v61  ;;  %v14940_v11 = vld [vmem:[#allocation33_spill] sm:$0xff] }
0x1744   :  { %v5071_v55 = vpop.f32.mrb[32].mxu0  ;;  %v5142_v42 = vpop.f32.mrb[26].mxu1 }
0x1745   :  { %v11087_v40 = vadd.f32 %v5071_v55, %v14929_v35  ;;  %v5073_v24 = vpop.f32.mrb[33].mxu0  ;;  %v9153_v2 = vpop.f32.mrb[27].mxu1  ;;  %v5160_v7 = vadd.f32 %v14931_v46, %v5142_v42  ;;  %v14935_v46 = vld [vmem:[#allocation28_spill] sm:$0xff]  ;;  %v14938_v42 = vld [vmem:[#allocation31_spill] sm:$0xff] }
0x1746   :  { %v11088_v39 = vadd.f32 %v5073_v24, %v14930_v38  ;;  %v14956_v35 = vld [vmem:[#allocation40_spill] sm:$0xff] }
0x1747   :  { %v7659_v12 = vmul.f32 -1.442695, %v11087_v40 }
0x1748   :  { %v7660_v60 = vmul.f32 -1.442695, %v11088_v39 }
0x1749   :  { %11309 = vpow2.f32 %v7659_v12 }
0x174a   :  { %11311 = vpow2.f32 %v7660_v60 }
0x1753   :  { %v11310_v33 = vpop.eup %11309 }
0x1754   :  { %v5150_v36 = vadd.f32 1.0, %v11310_v33  ;;  %v11312_v53 = vpop.eup %11311  ;;  %v14942_v33 = vld [vmem:[#allocation63_spill] sm:$0xff] }
0x1755   :  { %v5157_v59 = vadd.f32 1.0, %v11312_v53  ;;  %v14941_v53 = vld [vmem:[#allocation34_spill] sm:$0xff] }
0x1756   :  { %11313 = vrcp.f32 %v5150_v36  ;;  %v14934_v36 = vld [vmem:[#allocation27_spill] sm:$0xff] }
0x1757   :  { %11315 = vrcp.f32 %v5157_v59  ;;  %v14943_v59 = vld [vmem:[#allocation66_spill] sm:$0xff] }
0x1760   :  { %v11314_v51 = vpop.eup %11313 }
0x1761   :  { %v5161_v45 = vmul.f32 %v11314_v51, %v5160_v7  ;;  %v11316_v2 = vpop.eup %11315  ;;  %v14944_v7 = vld [vmem:[#allocation69_spill] sm:$0xff]  ;;  %v14945_v51 = vld [vmem:[#allocation72_spill] sm:$0xff] }
0x1762   :  { %v5164_v40 = vsub.f32 1.0, %v11316_v2  ;;  %v5166_v60 = vmul.f32 %v11316_v2, %v14911_v15  ;;  %v14939_v15 = vld [vmem:[#allocation32_spill] sm:$0xff]  ;;  %v14947_v2 = vld [vmem:[#allocation78_spill] sm:$0xff] }
0x1763   :  { %v5162_v55 = vadd.f32 %v5161_v45, %v5004_v16  ;;  %v14936_v45 = vld [vmem:[#allocation29_spill] sm:$0xff]  ;;  %v14937_v16 = vld [vmem:[#allocation30_spill] sm:$0xff] }
0x1765   :  { %11317 = vtanh.f32 %v5162_v55  ;;  %v14946_v55 = vld [vmem:[#allocation75_spill] sm:$0xff] }
0x176f   :  { %v11318_v24 = vpop.eup %11317 }
0x1770   :  { %v5165_v12 = vmul.f32 %v11318_v24, %v5164_v40  ;;  %v14948_v40 = vld [vmem:[#allocation81_spill] sm:$0xff]  ;;  %v14949_v24 = vld [vmem:[#allocation84_spill] sm:$0xff] }
0x1772   :  { %v13577_v39 = vadd.f32 %v5166_v60, %v5165_v12  ;;  %v14950_v60 = vld [vmem:[#allocation90_spill] sm:$0xff] }
0x1774   :  { %14933 = vst [vmem:[#allocation44_spill] sm:$0xff] %v13577_v39  ;;  %9187 = vmatmul.mubr.f32.vlgmr.msra.gmra.mrb[34].mxu0 %v13577_v39 }
0x1775   :  { %10627 = vmatpush3.bf16.msra.mxu0 %v14934_v36  ;;  %9256 = vmatprep.mubr.msk.f32.mxu0 %vm11694_vm0, %v14561_v1 }
0x1776   :  { %10628 = vmatprep.subr.bf16.mxu0 %v14566_v23 }
0x1779   :  { %10630 = vmatpush3.bf16.msra.mxu0 %v14935_v46 }
0x177a   :  { %10631 = vmatprep.subr.bf16.mxu0 %v14566_v23 }
0x177d   :  { %10633 = vmatpush3.bf16.msra.mxu0 %v14936_v45 }
0x177e   :  { %10634 = vmatprep.subr.bf16.mxu0 %v14566_v23 }
0x1781   :  { %10636 = vmatpush3.bf16.msra.mxu0 %v14937_v16 }
0x1782   :  { %10637 = vmatprep.subr.bf16.mxu0 %v14566_v23 }
0x1785   :  { %10639 = vmatpush3.bf16.msra.mxu0 %v14938_v42 }
0x1786   :  { %10640 = vmatprep.subr.bf16.mxu0 %v14566_v23 }
0x1789   :  { %10642 = vmatpush3.bf16.msra.mxu0 %v14939_v15 }
0x178a   :  { %10643 = vmatprep.subr.bf16.mxu0 %v14566_v23 }
0x178d   :  { %10645 = vmatpush3.bf16.msra.mxu0 %v14940_v11 }
0x178e   :  { %10646 = vmatprep.subr.bf16.mxu0 %v14566_v23 }
0x1791   :  { %10648 = vmatpush3.bf16.msra.mxu0 %v14941_v53 }
0x1792   :  { %10681 = vmatprep.subr.bf16.mxu0 %v14566_v23 }
0x1794   :  { %9257 = vmatmul.mubr.f32.vlgmr.msra.gmra.mrb[36].mxu0 %v13577_v39 }
0x1795   :  { %10683 = vmatpush3.bf16.msra.mxu0 %v14942_v33  ;;  %9291 = vmatprep.mubr.msk.f32.mxu0 %vm11694_vm0, %v14561_v1 }
0x1796   :  { %10684 = vmatprep.subr.bf16.mxu0 %v14566_v23 }
0x1799   :  { %10686 = vmatpush3.bf16.msra.mxu0 %v14943_v59  ;;  %v14951_v59 = vld [vmem:[#allocation35_spill] sm:$0xff] }
0x179a   :  { %10687 = vmatprep.subr.bf16.mxu0 %v14566_v23 }
0x179d   :  { %10689 = vmatpush3.bf16.msra.mxu0 %v14944_v7 }
0x179e   :  { %10690 = vmatprep.subr.bf16.mxu0 %v14566_v23 }
0x17a1   :  { %10692 = vmatpush3.bf16.msra.mxu0 %v14945_v51 }
0x17a2   :  { %10693 = vmatprep.subr.bf16.mxu0 %v14566_v23 }
0x17a5   :  { %10695 = vmatpush3.bf16.msra.mxu0 %v14946_v55 }
0x17a6   :  { %10696 = vmatprep.subr.bf16.mxu0 %v14566_v23 }
0x17a9   :  { %10698 = vmatpush3.bf16.msra.mxu0 %v14947_v2 }
0x17aa   :  { %10699 = vmatprep.subr.bf16.mxu0 %v14566_v23 }
0x17ad   :  { %10701 = vmatpush3.bf16.msra.mxu0 %v14948_v40 }
0x17ae   :  { %10702 = vmatprep.subr.bf16.mxu0 %v14566_v23 }
0x17b1   :  { %10704 = vmatpush3.bf16.msra.mxu0 %v14949_v24 }
0x17b2   :  { %10737 = vmatprep.subr.bf16.mxu0 %v14566_v23 }
0x1847   :  { %v5234_v12 = vpop.f32.mrb[34].mxu0 }
0x1848   :  { %v5235_v51 = vadd.f32 %v14950_v60, %v5234_v12  ;;  %v9188_v7 = vpop.f32.mrb[35].mxu0  ;;  %v14952_v12 = vld [vmem:[#allocation36_spill] sm:$0xff] }
0x184a   :  { %5238 = vmax.xlane.f32.xlu0 %v5235_v51 }
0x1867   :  { %v5395_v55 = vpop.f32.mrb[36].mxu0 }
0x1868   :  { %v5407_v33 = vrot.slane %v5395_v55, %v14951_v59  ;;  %v9258_v53 = vpop.f32.mrb[37].mxu0  ;;  %v5400_v2 = vcombine.high %v5395_v55, %v5395_v55 }
0x1869   :  { %v13630_v53 = vld [vmem:[%s14232_s5] ss:$0 sm:$0xff] }
0x186a   :  { %v5415_v11 = vcombine.high %v5407_v33, %v5407_v33  ;;  %v5423_v15 = vrot.slane %v5407_v33, %v14951_v59  ;;  %v5414_v42 = vrot.slane %v5400_v2, %v14951_v59  ;;  %14953 = vst [vmem:[#allocation132_spill] sm:$0xff] %v13630_v53  ;;  %v14954_v33 = vld [vmem:[#allocation38_spill] sm:$0xff] }
0x186c   :  { %v5437_v40 = vrot.slane %v5415_v11, %v14951_v59  ;;  %v5445_v24 = vcombine.high %v5423_v15, %v5423_v15  ;;  %v5452_v16 = vrot.slane %v5423_v15, %v12005_v17  ;;  %v5430_v60 = vrot.slane %v5414_v42, %v14951_v59 }
0x186d   :  { %v5416_v2 = vcombine.high %v5414_v42, %v5414_v42 }
0x186e   :  { %v5456_v45 = vrot.slane %v5437_v40, %v12005_v17  ;;  %v5489_v7 = vadd.f32 %v5452_v16, %v14952_v12  ;;  %v5460_v46 = vrot.slane %v5445_v24, %v12005_v17  ;;  %v5447_v15 = vcombine.high %v5437_v40, %v5437_v40  ;;  %v14955_v12 = vld [vmem:[#allocation37_spill] sm:$0xff]  ;;  %v14957_v40 = vld [vmem:[#allocation39_spill] sm:$0xff] }
0x186f   :  { %v5468_v36 = vrot.slane %v5430_v60, %v12005_v17  ;;  %v5444_v24 = vrot.slane %v5416_v2, %v14951_v59 }
0x1870   :  { %v5497_v11 = vmul.f32 %v13630_v53, %v5489_v7  ;;  %v5490_v55 = vadd.f32 %v5456_v45, %v14954_v33  ;;  %v5491_v61 = vadd.f32 %v5460_v46, %v14955_v12  ;;  %v5464_v7 = vrot.slane %v5447_v15, %v12005_v17  ;;  %v14959_v15 = vld [vmem:[#allocation42_spill] sm:$0xff] }
0x1871   :  { %v5493_v39 = vadd.f32 %v5468_v36, %v14956_v35  ;;  %v5446_v45 = vcombine.high %v5430_v60, %v5430_v60  ;;  %v5472_v33 = vrot.slane %v5444_v24, %v12005_v17 }
0x1872   :  { %5505 = vadd.xlane.f32.xlu1 %v5497_v11  ;;  %v5498_v16 = vmul.f32 %v13630_v53, %v5490_v55  ;;  %v5499_v38 = vmul.f32 %v13630_v53, %v5491_v61  ;;  %v5492_v11 = vadd.f32 %v5464_v7, %v14957_v40  ;;  %v5448_v55 = vcombine.high %v5444_v24, %v5444_v24  ;;  %v14960_v7 = vld [vmem:[#allocation43_spill] sm:$0xff] }
0x1873   :  { %v5501_v42 = vmul.f32 %v13630_v53, %v5493_v39  ;;  %v5476_v61 = vrot.slane %v5446_v45, %v12005_v17 }
0x1874   :  { %v5500_v46 = vmul.f32 %v13630_v53, %v5492_v11  ;;  %v5480_v60 = vrot.slane %v5448_v55, %v12005_v17  ;;  %v14961_v55 = vld [vmem:[#allocation45_spill] sm:$0xff] }
0x1876   :  { %5507 = vadd.xlane.f32.xlu1 %v5498_v16  ;;  %v14958_v16 = vld [vmem:[#allocation41_spill] sm:$0xff]  ;;  %v5496_v40 = vadd.f32 %v5480_v60, %v14960_v7 }
0x1877   :  { %v5494_v2 = vadd.f32 %v5472_v33, %v14958_v16 }
0x1878   :  { %v5504_v24 = vmul.f32 %v13630_v53, %v5496_v40 }
0x1879   :  { %v5502_v36 = vmul.f32 %v13630_v53, %v5494_v2 }
0x187a   :  { %5509 = vadd.xlane.f32.xlu1 %v5499_v38  ;;  %v5495_v38 = vadd.f32 %v5476_v61, %v14959_v15 }
0x187c   :  { %v5503_v39 = vmul.f32 %v13630_v53, %v5495_v38 }
0x187e   :  { %5513 = vadd.xlane.f32.xlu1 %v5501_v42 }
0x1882   :  { %5511 = vadd.xlane.f32.xlu1 %v5500_v46 }
0x1886   :  { %5515 = vadd.xlane.f32.xlu1 %v5502_v36 }
0x188a   :  { %5517 = vadd.xlane.f32.xlu1 %v5503_v39 }
0x188e   :  { %5519 = vadd.xlane.f32.xlu1 %v5504_v24 }
0x18d7   :  { %v5239_v42 = vpop.xlane.xlu0 %5238 }
0x18d8   :  { %v5240_v33 = vsub.f32 %v5235_v51, %v5239_v42 }
0x18da   :  { %v5241_v11 = vmul.f32 1.442695, %v5240_v33 }
0x18dc   :  { %11319 = vpow2.f32 %v5241_v11 }
0x18e6   :  { %v11320_v45 = vpop.eup %11319 }
0x18e7   :  { %5243 = vadd.xlane.f32.xlu0 %v11320_v45 }
0x18ff   :  { %v5506_v46 = vpop.xlane.xlu1 %5505 }
0x1900   :  { %v5521_v60 = vadd.f32 %v5506_v46, %v14961_v55 }
0x1902   :  { %v5529_v42 = vmax.f32 %v5521_v60, 0.0 }
0x1903   :  { %v5508_v2 = vpop.xlane.xlu1 %5507 }
0x1904   :  { %v5522_v36 = vadd.f32 %v5508_v2, %v14961_v55 }
0x1906   :  { %v5530_v39 = vmax.f32 %v5522_v36, 0.0 }
0x1907   :  { %v5510_v61 = vpop.xlane.xlu1 %5509 }
0x1908   :  { %v5523_v38 = vadd.f32 %v5510_v61, %v14961_v55  ;;  %v5552_v35 = vrot.slane %v5530_v39, %v14644_v56  ;;  %v5548_v61 = vrot.slane %v5529_v42, %v14644_v56 }
0x190a   :  { %v5531_v24 = vmax.f32 %v5523_v38, 0.0  ;;  %v5577_v38 = vsel %vm834_vm1, %v5552_v35, %v5548_v61 }
0x190b   :  { %v5514_v15 = vpop.xlane.xlu1 %5513 }
0x190c   :  { %v5525_v7 = vadd.f32 %v5514_v15, %v14961_v55  ;;  %v5556_v2 = vrot.slane %v5531_v24, %v14644_v56 }
0x190e   :  { %v5533_v36 = vmax.f32 %v5525_v7, 0.0  ;;  %v5578_v15 = vsel %vm836_vm2, %v5556_v2, %v5577_v38 }
0x190f   :  { %v5512_v16 = vpop.xlane.xlu1 %5511 }
0x1910   :  { %v5524_v40 = vadd.f32 %v5512_v16, %v14961_v55  ;;  %v5564_v37 = vrot.slane %v5533_v36, %v14644_v56 }
0x1912   :  { %v5532_v11 = vmax.f32 %v5524_v40, 0.0 }
0x1913   :  { %v5516_v51 = vpop.xlane.xlu1 %5515 }
0x1914   :  { %v5526_v45 = vadd.f32 %v5516_v51, %v14961_v55  ;;  %v5560_v46 = vrot.slane %v5532_v11, %v14644_v56 }
0x1916   :  { %v5534_v53 = vmax.f32 %v5526_v45, 0.0  ;;  %v5579_v51 = vsel %vm838_vm3, %v5560_v46, %v5578_v15 }
0x1917   :  { %v5518_v12 = vpop.xlane.xlu1 %5517  ;;  %v5580_v35 = vsel %vm840_vm4, %v5564_v37, %v5579_v51 }
0x1918   :  { %v13664_v16 = vadd.f32 %v5518_v12, %v14961_v55  ;;  %v5568_v59 = vrot.slane %v5534_v53, %v14644_v56 }
0x191a   :  { %v14514_v60 = vmax.f32 %v13664_v16, 0.0  ;;  %v5581_v2 = vsel %vm842_vm5, %v5568_v59, %v5580_v35 }
0x191b   :  { %v5520_v40 = vpop.xlane.xlu1 %5519 }
0x191c   :  { %v5528_v21 = vadd.f32 %v5520_v40, %v14961_v55  ;;  %v5572_v12 = vrot.slane %v14514_v60, %v14644_v56 }
0x191e   :  { %v5536_v7 = vmax.f32 %v5528_v21, 0.0  ;;  %v5582_v61 = vsel %vm844_vm6, %v5572_v12, %v5581_v2  ;;  %v14962_v12 = vld [vmem:[#allocation48_spill] sm:$0xff] }
0x1920   :  { %v5576_v45 = vrot.slane %v5536_v7, %v14644_v56 }
0x1922   :  { %v5583_v46 = vsel %vm846_vm7, %v5576_v45, %v5582_v61  ;;  %v14963_v45 = vld [vmem:[#allocation50_spill] sm:$0xff] }
0x1923   :  { %v5585_v38 = vsel %vm849_vm8, %v5583_v46, -inf }
0x1924   :  { %5586 = vmax.xlane.f32.xlu1 %v5585_v38 }
0x1974   :  { %v5244_v15 = vpop.xlane.xlu0 %5243 }
0x1975   :  { %11321 = vlog2.f32 %v5244_v15  ;;  %v14964_v15 = vld [vmem:[#allocation49_spill] sm:$0xff] }
0x197f   :  { %v11322_v40 = vpop.eup %11321 }
0x1980   :  { %v5246_v55 = vmul.f32 0.6931472, %v11322_v40 }
0x1982   :  { %v5247_v10 = vsub.f32 %v5240_v33, %v5246_v55 }
0x1984   :  { %5250 = vmax.xlane.f32.xlu0 %v5247_v10  ;;  %5249 = vst [vmem:[#allocation17 + $0x18] sm:$0xff] %v5247_v10 }
0x19b1   :  { %v5587_v21 = vpop.xlane.xlu1 %5586 }
0x19b2   :  { %v5592_v37 = vrot.slane %v5587_v21, %v12005_v17  ;;  %v5596_v51 = vrot.slane %v5587_v21, %v12100_v48  ;;  %v5600_v59 = vrot.slane %v5587_v21, %v14856_v22  ;;  %v5604_v35 = vrot.slane %v5587_v21, %v14962_v12 }
0x19b3   :  { %v5612_v2 = vrot.slane %v5587_v21, %v14963_v45  ;;  %v5608_v60 = vrot.slane %v5587_v21, %v14964_v15  ;;  %v5620_v3 = vrot.slane %v5587_v21, %v14965_v62 }
0x19b4   :  { %v5629_v61 = vsub.f32 %v5529_v42, %v5592_v37  ;;  %v5630_v46 = vsub.f32 %v5530_v39, %v5596_v51  ;;  %v5632_v38 = vsub.f32 %v5532_v11, %v5604_v35  ;;  %v5631_v40 = vsub.f32 %v5531_v24, %v5600_v59 }
0x19b5   :  { %v5634_v31 = vsub.f32 %v5534_v53, %v5612_v2  ;;  %v5633_v58 = vsub.f32 %v5533_v36, %v5608_v60  ;;  %v5636_v9 = vsub.f32 %v5536_v7, %v5620_v3  ;;  %v14967_v3 = vmax.f32 %v13664_v16, 0.0  ;;  %v14968_v7 = vld [vmem:[#allocation59_spill] sm:$0xff] }
0x19b6   :  { %v5637_v33 = vmul.f32 1.442695, %v5629_v61  ;;  %v5639_v55 = vmul.f32 1.442695, %v5630_v46  ;;  %v5643_v4 = vmul.f32 1.442695, %v5632_v38 }
0x19b7   :  { %v5641_v20 = vmul.f32 1.442695, %v5631_v40  ;;  %v5647_v13 = vmul.f32 1.442695, %v5634_v31  ;;  %v5645_v42 = vmul.f32 1.442695, %v5633_v58 }
0x19b8   :  { %11323 = vpow2.f32 %v5637_v33  ;;  %v5651_v39 = vmul.f32 1.442695, %v5636_v9  ;;  %v14966_v58 = vld [vmem:[#allocation51_spill] sm:$0xff] }
0x19b9   :  { %11325 = vpow2.f32 %v5639_v55 }
0x19ba   :  { %11327 = vpow2.f32 %v5643_v4  ;;  %v5616_v4 = vrot.slane %v5587_v21, %v14966_v58 }
0x19bb   :  { %11329 = vpow2.f32 %v5641_v20 }
0x19bc   :  { %11331 = vpow2.f32 %v5647_v13  ;;  %v5635_v60 = vsub.f32 %v14967_v3, %v5616_v4 }
0x19bd   :  { %11333 = vpow2.f32 %v5645_v42 }
0x19be   :  { %11335 = vpow2.f32 %v5651_v39  ;;  %v5649_v51 = vmul.f32 1.442695, %v5635_v60  ;;  %v14969_v60 = vmov 1.0  }
0x19c0   :  { %11337 = vpow2.f32 %v5649_v51 }
0x19c2   :  { %v13689_v11 = vpop.eup %11323 }
0x19c3   :  { %v13691_v24 = vpop.eup %11325  ;;  %5662 = vperm.xlu0 %11137, %v13689_v11  }
0x19c4   :  { %5665 = vperm.xlu1 %11138, %v13691_v24   ;;  %v13695_v53 = vpop.eup %11327 }
0x19c5   :  { %v13697_v36 = vpop.eup %11329 }
0x19c6   :  { %v13701_v13 = vpop.eup %11331 }
0x19c7   :  { %5671 = vperm.xlu0 %11137, %v13695_v53   ;;  %v13703_v9 = vpop.eup %11333 }
0x19c8   :  { %5668 = vperm.xlu1 %11138, %v13697_v36   ;;  %v13707_v20 = vpop.eup %11335 }
0x19ca   :  { %v13714_v59 = vpop.eup %11337 }
0x19cb   :  { %5677 = vperm.xlu0 %11137, %v13701_v13  }
0x19cc   :  { %5674 = vperm.xlu1 %11138, %v13703_v9  }
0x19cf   :  { %5683 = vperm.xlu0 %11137, %v13707_v20  }
0x1a11   :  { %v5251_v31 = vpop.xlane.xlu0 %5250 }
0x1a12   :  { %vm5252_vm9 = vcmp.eq.f32.partialorder %v5247_v10, %v5251_v31 }
0x1a13   :  { %v5253_v37 = vsel %vm5252_vm9, %v14968_v7, 128.0 }
0x1a14   :  { %5254 = vmin.xlane.f32.xlu1 %v5253_v37 }
0x1a25   :  { %5680 = vperm.xlu1 %11138, %v13714_v59  }
0x1a42   :  { %v5663_v2 = vpop.permute.xlu0 %5662 }
0x1a43   :  { %v5666_v35 = vpop.permute.xlu1 %5665  ;;  %v5688_v38 = vrot.slane %v5663_v2, %v14644_v56 }
0x1a44   :  { %v5692_v21 = vrot.slane %v5666_v35, %v14644_v56  ;;  %v14970_v35 = vld [vmem:[#allocation62_spill] sm:$0xff] }
0x1a46   :  { %v5672_v46 = vpop.permute.xlu0 %5671  ;;  %v5717_v33 = vsel %vm834_vm1, %v5692_v21, %v5688_v38 }
0x1a47   :  { %v5669_v61 = vpop.permute.xlu1 %5668  ;;  %v5700_v55 = vrot.slane %v5672_v46, %v14644_v56 }
0x1a48   :  { %v5696_v16 = vrot.slane %v5669_v61, %v14644_v56  ;;  %v14971_v61 = vld [vmem:[#allocation64_spill] sm:$0xff] }
0x1a4a   :  { %v5678_v40 = vpop.permute.xlu0 %5677  ;;  %v5718_v42 = vsel %vm836_vm2, %v5696_v16, %v5717_v33  ;;  %v14973_v33 = vld [vmem:[#allocation67_spill] sm:$0xff] }
0x1a4b   :  { %v5675_v10 = vpop.permute.xlu1 %5674  ;;  %v5719_v31 = vsel %vm838_vm3, %v5700_v55, %v5718_v42  ;;  %v5708_v3 = vrot.slane %v5678_v40, %v14644_v56  ;;  %v14974_v42 = vld [vmem:[#allocation68_spill] sm:$0xff] }
0x1a4c   :  { %v5704_v39 = vrot.slane %v5675_v10, %v14644_v56  ;;  %v14972_v10 = vld [vmem:[#allocation65_spill] sm:$0xff] }
0x1a4e   :  { %v5720_v37 = vsel %vm840_vm4, %v5704_v39, %v5719_v31  ;;  %v5684_v51 = vpop.permute.xlu0 %5683  ;;  %v14975_v39 = vld [vmem:[#allocation70_spill] sm:$0xff]  ;;  %v14977_v31 = vld [vmem:[#allocation73_spill] sm:$0xff] }
0x1a4f   :  { %v5721_v21 = vsel %vm842_vm5, %v5708_v3, %v5720_v37  ;;  %v5716_v38 = vrot.slane %v5684_v51, %v14644_v56  ;;  %v14978_v3 = vld [vmem:[#allocation74_spill] sm:$0xff]  ;;  %v14979_v37 = vld [vmem:[#allocation76_spill] sm:$0xff]  ;;  %v14980_v51 = vld [vmem:[#allocation77_spill] sm:$0xff] }
0x1aa1   :  { %v5255_v4 = vpop.xlane.xlu1 %5254 }
0x1aa2   :  { %vm5256_vm10 = vcmp.eq.f32.partialorder %v14968_v7, %v5255_v4  ;;  %v14976_v4 = vld [vmem:[#allocation71_spill] sm:$0xff] }
0x1aa3   :  { %9222 = vmatmul.mubr.msk.f32.vlgmr.msra.gmra.mrb[28].mxu1 %vm5256_vm10, %v14969_v60 }
0x1aa4   :  { %10652 = vmatpush1.bf16.msra.mxu1 %v14970_v35  ;;  %5961 = vmatprep.mubr.f32.mxu1 %v14561_v1 }
0x1aa5   :  { %v5681_v2 = vpop.permute.xlu1 %5680  ;;  %10654 = vmatprep.subr.bf16.mxu1 %v14971_v61 }
0x1aa6   :  { %v5712_v46 = vrot.slane %v5681_v2, %v14644_v56  ;;  %v14981_v2 = vld [vmem:[#allocation79_spill] sm:$0xff] }
0x1aa8   :  { %v5722_v16 = vsel %vm844_vm6, %v5712_v46, %v5721_v21  ;;  %10656 = vmatpush1.bf16.msra.mxu1 %v14972_v10  ;;  %v14982_v46 = vld [vmem:[#allocation80_spill] sm:$0xff]  ;;  %v14983_v21 = vld [vmem:[#allocation82_spill] sm:$0xff] }
0x1aa9   :  { %v5723_v40 = vsel %vm846_vm7, %v5716_v38, %v5722_v16  ;;  %10658 = vmatprep.subr.bf16.mxu1 %v14973_v33  ;;  %v14984_v38 = vld [vmem:[#allocation83_spill] sm:$0xff]  ;;  %v14985_v16 = vld [vmem:[#allocation85_spill] sm:$0xff] }
0x1aaa   :  { %v5725_v55 = vsel %vm849_vm8, %v5723_v40, 0.0 }
0x1aab   :  { %5726 = vadd.xlane.f32.xlu1 %v5725_v55 }
0x1aac   :  { %10660 = vmatpush1.bf16.msra.mxu1 %v14974_v42 }
0x1aad   :  { %10662 = vmatprep.subr.bf16.mxu1 %v14975_v39  ;;  %v14990_v39 = vld [vmem:[#allocation129_spill] sm:$0xff] }
0x1ab0   :  { %10664 = vmatpush1.bf16.msra.mxu1 %v14976_v4 }
0x1ab1   :  { %10666 = vmatprep.subr.bf16.mxu1 %v14977_v31 }
0x1ab4   :  { %10668 = vmatpush1.bf16.msra.mxu1 %v14978_v3 }
0x1ab5   :  { %10670 = vmatprep.subr.bf16.mxu1 %v14979_v37 }
0x1ab8   :  { %10672 = vmatpush1.bf16.msra.mxu1 %v14980_v51 }
0x1ab9   :  { %10674 = vmatprep.subr.bf16.mxu1 %v14981_v2 }
0x1abc   :  { %10676 = vmatpush1.bf16.msra.mxu1 %v14982_v46 }
0x1abd   :  { %10678 = vmatprep.subr.bf16.mxu1 %v14983_v21 }
0x1ac0   :  { %10680 = vmatpush1.bf16.msra.mxu1 %v14984_v38 }
0x1ac1   :  { %10706 = vmatprep.subr.bf16.mxu1 %v14985_v16 }
0x1b38   :  { %v5727_v40 = vpop.xlane.xlu1 %5726 }
0x1b39   :  { %v5732_v55 = vrot.slane %v5727_v40, %v12005_v17  ;;  %v5736_v31 = vrot.slane %v5727_v40, %v12100_v48  ;;  %v5740_v37 = vrot.slane %v5727_v40, %v14856_v22  ;;  %v5744_v2 = vrot.slane %v5727_v40, %v14962_v12 }
0x1b3a   :  { %v5748_v21 = vrot.slane %v5727_v40, %v14964_v15  ;;  %v5752_v16 = vrot.slane %v5727_v40, %v14963_v45 }
0x1b3b   :  { %11339 = vrcp.f32 %v5732_v55 }
0x1b3c   :  { %11341 = vrcp.f32 %v5736_v31  ;;  %v5756_v31 = vrot.slane %v5727_v40, %v14966_v58 }
0x1b3d   :  { %11343 = vrcp.f32 %v5740_v37 }
0x1b3e   :  { %11345 = vrcp.f32 %v5744_v2  ;;  %v5760_v2 = vrot.slane %v5727_v40, %v14965_v62 }
0x1b3f   :  { %11347 = vrcp.f32 %v5748_v21 }
0x1b40   :  { %11349 = vrcp.f32 %v5752_v16 }
0x1b41   :  { %11351 = vrcp.f32 %v5756_v31 }
0x1b42   :  { %11353 = vrcp.f32 %v5760_v2  ;;  %v14987_v2 = vld [vmem:[#allocation92_spill] sm:$0xff] }
0x1b45   :  { %v11340_v51 = vpop.eup %11339 }
0x1b46   :  { %v5770_v38 = vmul.f32 %v11340_v51, %v13689_v11  ;;  %v11342_v46 = vpop.eup %11341 }
0x1b47   :  { %v5772_v3 = vmul.f32 %v11342_v46, %v13691_v24  ;;  %v11344_v55 = vpop.eup %11343 }
0x1b48   :  { %5787 = vperm.xlu0 %11137, %v5770_v38   ;;  %v5774_v37 = vmul.f32 %v11344_v55, %v13697_v36  ;;  %v11346_v4 = vpop.eup %11345 }
0x1b49   :  { %v5776_v11 = vmul.f32 %v11346_v4, %v13695_v53  ;;  %v11348_v51 = vpop.eup %11347 }
0x1b4a   :  { %v5778_v21 = vmul.f32 %v11348_v51, %v13703_v9  ;;  %v11350_v24 = vpop.eup %11349  ;;  %v14986_v9 = vld [vmem:[#allocation91_spill] sm:$0xff] }
0x1b4b   :  { %v11352_v46 = vpop.eup %11351 }
0x1b4c   :  { %5792 = vperm.xlu0 %11137, %v5772_v3   ;;  %v5780_v3 = vmul.f32 %v11350_v24, %v13701_v13  ;;  %v5782_v36 = vmul.f32 %v11352_v46, %v13714_v59  ;;  %v11354_v38 = vpop.eup %11353  ;;  %v14988_v13 = vld [vmem:[#allocation93_spill] sm:$0xff]  ;;  %v14989_v59 = vld [vmem:[#allocation94_spill] sm:$0xff] }
0x1b4d   :  { %v5784_v16 = vmul.f32 %v11354_v38, %v13707_v20 }
0x1b50   :  { %5797 = vperm.xlu0 %11137, %v5774_v37  }
0x1b54   :  { %5802 = vperm.xlu0 %11137, %v5776_v11  }
0x1b58   :  { %5807 = vperm.xlu0 %11137, %v5778_v21  }
0x1b5c   :  { %5812 = vperm.xlu0 %11137, %v5780_v3  }
0x1b60   :  { %5817 = vperm.xlu0 %11137, %v5782_v36  }
0x1b64   :  { %5822 = vperm.xlu0 %11137, %v5784_v16  }
0x1b76   :  { %v13768_v40 = vpop.f32.mrb[28].mxu1 }
0x1b77   :  { %v9223_v53 = vpop.f32.mrb[29].mxu1 }
0x1bc7   :  { %v5788_v4 = vpop.permute.xlu0 %5787 }
0x1bc8   :  { %v5825_v51 = vmul.f32 %v14988_v13, %v5788_v4 }
0x1bca   :  { %v5833_v36 = vrot.slane %v5825_v51, 4 }
0x1bcb   :  { %v5793_v55 = vpop.permute.xlu0 %5792 }
0x1bcc   :  { %v5826_v37 = vmul.f32 %v14986_v9, %v5793_v55  ;;  %v5834_v33 = vadd.f32 %v5833_v36, %v5825_v51 }
0x1bce   :  { %v5839_v24 = vrot.slane %v5826_v37, 4  ;;  %v5835_v35 = vrot.slane %v5834_v33, 2 }
0x1bcf   :  { %v5798_v31 = vpop.permute.xlu0 %5797 }
0x1bd0   :  { %v5827_v11 = vmul.f32 %v14987_v2, %v5798_v31  ;;  %v5840_v16 = vadd.f32 %v5839_v24, %v5826_v37  ;;  %v14991_v2 = vld [vmem:[#allocation127_spill] sm:$0xff]  ;;  %v14992_v37 = vld [vmem:[#allocation130_spill] sm:$0xff] }
0x1bd2   :  { %v5845_v46 = vrot.slane %v5827_v11, 4  ;;  %v5841_v9 = vrot.slane %v5840_v16, 2 }
0x1bd3   :  { %v5803_v21 = vpop.permute.xlu0 %5802 }
0x1bd4   :  { %v5828_v3 = vmul.f32 %v14989_v59, %v5803_v21  ;;  %v5846_v42 = vadd.f32 %v5845_v46, %v5827_v11  ;;  %v5842_v58 = vadd.f32 %v5841_v9, %v5840_v16  ;;  %v5836_v11 = vadd.f32 %v5835_v35, %v5834_v33 }
0x1bd6   :  { %v5851_v20 = vrot.slane %v5828_v3, 4  ;;  %v5847_v13 = vrot.slane %v5846_v42, 2  ;;  %v5837_v45 = vrot.slane %v5836_v11, 1 }
0x1bd7   :  { %v5808_v38 = vpop.permute.xlu0 %5807 }
0x1bd8   :  { %v5829_v53 = vmul.f32 %v14990_v39, %v5808_v38  ;;  %v5852_v10 = vadd.f32 %v5851_v20, %v5828_v3  ;;  %v5848_v39 = vadd.f32 %v5847_v13, %v5846_v42 }
0x1bda   :  { %v5857_v61 = vrot.slane %v5829_v53, 4  ;;  %v5853_v60 = vrot.slane %v5852_v10, 2  ;;  %v5849_v15 = vrot.slane %v5848_v39, 1 }
0x1bdb   :  { %v5813_v55 = vpop.permute.xlu0 %5812 }
0x1bdc   :  { %v5858_v31 = vadd.f32 %v5857_v61, %v5829_v53  ;;  %v5830_v4 = vmul.f32 %v14991_v2, %v5813_v55  ;;  %v5854_v51 = vadd.f32 %v5853_v60, %v5852_v10  ;;  %v5843_v61 = vrot.slane %v5842_v58, 1  ;;  %v14993_v55 = vld [vmem:[#allocation131_spill] sm:$0xff] }
0x1bdd   :  { %v5850_v60 = vadd.f32 %v5849_v15, %v5848_v39  ;;  %v5838_v10 = vadd.f32 %v5837_v45, %v5836_v11  ;;  %v14994_v39 = vld [vmem:[#allocation95_spill] sm:$0xff]  ;;  %v14995_v11 = vld [vmem:[#allocation96_spill] sm:$0xff] }
0x1bde   :  { %v5863_v21 = vrot.slane %v5830_v4, 4  ;;  %v5859_v59 = vrot.slane %v5858_v31, 2  ;;  %v5855_v12 = vrot.slane %v5854_v51, 1 }
0x1bdf   :  { %v5818_v7 = vpop.permute.xlu0 %5817 }
0x1be0   :  { %v5864_v62 = vadd.f32 %v5863_v21, %v5830_v4  ;;  %v5831_v24 = vmul.f32 %v14992_v37, %v5818_v7  ;;  %v5860_v36 = vadd.f32 %v5859_v59, %v5858_v31  ;;  %v5844_v4 = vadd.f32 %v5843_v61, %v5842_v58  ;;  %v14998_v61 = vld [vmem:[#allocation99_spill] sm:$0xff] }
0x1be1   :  { %v5856_v33 = vadd.f32 %v5855_v12, %v5854_v51  ;;  %v14996_v51 = vld [vmem:[#allocation97_spill] sm:$0xff] }
0x1be2   :  { %v5865_v3 = vrot.slane %v5864_v62, 2  ;;  %v5869_v46 = vrot.slane %v5831_v24, 4  ;;  %v5861_v9 = vrot.slane %v5860_v36, 1 }
0x1be3   :  { %v5823_v20 = vpop.permute.xlu0 %5822 }
0x1be4   :  { %v5866_v38 = vadd.f32 %v5865_v3, %v5864_v62  ;;  %v5870_v53 = vadd.f32 %v5869_v46, %v5831_v24  ;;  %v5832_v2 = vmul.f32 %v14993_v55, %v5823_v20  ;;  %v5862_v21 = vadd.f32 %v5861_v9, %v5860_v36  ;;  %v14997_v36 = vld [vmem:[#allocation98_spill] sm:$0xff]  ;;  %v15002_v55 = vld [vmem:[#allocation103_spill] sm:$0xff] }
0x1be5   :  { %v5889_v62 = vsel %vm834_vm1, %v5844_v4, %v5838_v10  ;;  %v15005_v9 = vld [vmem:[#allocation106_spill] sm:$0xff]  ;;  %v15006_v4 = vld [vmem:[#allocation107_spill] sm:$0xff]  ;;  %v15011_v10 = vld [vmem:[#allocation112_spill] sm:$0xff] }
0x1be6   :  { %v5871_v22 = vrot.slane %v5870_v53, 2  ;;  %v5875_v16 = vrot.slane %v5832_v2, 4  ;;  %v5867_v7 = vrot.slane %v5866_v38, 1  ;;  %v5890_v24 = vsel %vm836_vm2, %v5850_v60, %v5889_v62  ;;  %v15010_v60 = vld [vmem:[#allocation111_spill] sm:$0xff]  ;;  %v15016_v62 = vld [vmem:[#allocation44_spill] sm:$0xff] }
0x1be7   :  { %v5891_v46 = vsel %vm838_vm3, %v5856_v33, %v5890_v24  ;;  %v15012_v33 = vld [vmem:[#allocation113_spill] sm:$0xff]  ;;  %v15019_v24 = vld [vmem:[#allocation118_spill] sm:$0xff] }
0x1be8   :  { %v5872_v42 = vadd.f32 %v5871_v22, %v5870_v53  ;;  %v5876_v35 = vadd.f32 %v5875_v16, %v5832_v2  ;;  %v5868_v59 = vadd.f32 %v5867_v7, %v5866_v38  ;;  %v5892_v58 = vsel %vm840_vm4, %v5862_v21, %v5891_v46  ;;  %v15000_v38 = vld [vmem:[#allocation101_spill] sm:$0xff]  ;;  %v15001_v53 = vld [vmem:[#allocation102_spill] sm:$0xff]  ;;  %v15003_v2 = vld [vmem:[#allocation104_spill] sm:$0xff] }
0x1be9   :  { %v15004_v16 = vld [vmem:[#allocation105_spill] sm:$0xff]  ;;  %v15007_v7 = vld [vmem:[#allocation108_spill] sm:$0xff]  ;;  %v15021_v46 = vld [vmem:[#allocation119_spill] sm:$0xff] }
0x1bea   :  { %v5873_v31 = vrot.slane %v5872_v42, 1  ;;  %v5877_v13 = vrot.slane %v5876_v35, 2  ;;  %v5893_v15 = vsel %vm842_vm5, %v5868_v59, %v5892_v58  ;;  %v15015_v21 = vld [vmem:[#allocation116_spill] sm:$0xff]  ;;  %v15017_v59 = vld [vmem:[#allocation117_spill] sm:$0xff] }
0x1beb   :  { %v15023_v58 = vld [vmem:[#allocation120_spill] sm:$0xff] }
0x1bec   :  { %v5878_v37 = vadd.f32 %v5877_v13, %v5876_v35  ;;  %v5874_v3 = vadd.f32 %v5873_v31, %v5872_v42  ;;  %v15008_v42 = vld [vmem:[#allocation109_spill] sm:$0xff]  ;;  %v15009_v35 = vld [vmem:[#allocation110_spill] sm:$0xff]  ;;  %v15014_v13 = vld [vmem:[#allocation115_spill] sm:$0xff] }
0x1bed   :  { %v15013_v31 = vld [vmem:[#allocation114_spill] sm:$0xff] }
0x1bee   :  { %v5879_v20 = vrot.slane %v5878_v37, 1  ;;  %v5894_v12 = vsel %vm844_vm6, %v5874_v3, %v5893_v15  ;;  %v15020_v3 = vld [vmem:[#allocation53_spill] sm:$0xff] }
0x1bef   :  { %v15025_v15 = vld [vmem:[#allocation121_spill] sm:$0xff] }
0x1bf0   :  { %v5880_v22 = vadd.f32 %v5879_v20, %v5878_v37  ;;  %v15018_v37 = vld [vmem:[#allocation52_spill] sm:$0xff]  ;;  %v15022_v20 = vld [vmem:[#allocation54_spill] sm:$0xff] }
0x1bf2   :  { %v5895_v45 = vsel %vm846_vm7, %v5880_v22, %v5894_v12  ;;  %v15024_v22 = vld [vmem:[#allocation55_spill] sm:$0xff]  ;;  %v15026_v12 = vld [vmem:[#allocation56_spill] sm:$0xff] }
0x1bf3   :  { %5962 = vmatmul.mubr.f32.vlgmr.msra.gmra.mrb[30].mxu1 %v5895_v45  ;;  %9292 = vmatmul.mubr.f32.vlgmr.msra.gmra.mrb[38].mxu0 %v5895_v45  ;;  %v15027_v45 = vld [vmem:[#allocation122_spill] sm:$0xff] }
0x1bf4   :  { %10708 = vmatpush1.bf16.msra.mxu1 %v12323_v41  ;;  %10739 = vmatpush3.bf16.msra.mxu0 %v12325_v19 }
0x1bf5   :  { %10710 = vmatprep.subr.bf16.mxu1 %v12328_v30  ;;  %10740 = vmatprep.subr.bf16.mxu0 %v14566_v23 }
0x1bf6   :  { %6102 = vmatprep.mubr.f32.mxu1 %v14561_v1  ;;  %9326 = vmatprep.mubr.msk.f32.mxu0 %vm11694_vm0, %v14561_v1 }
0x1bf8   :  { %10712 = vmatpush1.bf16.msra.mxu1 %v12333_v47  ;;  %10742 = vmatpush3.bf16.msra.mxu0 %v12335_v14 }
0x1bf9   :  { %10714 = vmatprep.subr.bf16.mxu1 %v12339_v34  ;;  %10743 = vmatprep.subr.bf16.mxu0 %v14566_v23 }
0x1bfc   :  { %10716 = vmatpush1.bf16.msra.mxu1 %v12346_v57  ;;  %10745 = vmatpush3.bf16.msra.mxu0 %v12348_v29 }
0x1bfd   :  { %10718 = vmatprep.subr.bf16.mxu1 %v12352_v32  ;;  %10746 = vmatprep.subr.bf16.mxu0 %v14566_v23 }
0x1c00   :  { %10720 = vmatpush1.bf16.msra.mxu1 %v12356_v0  ;;  %10748 = vmatpush3.bf16.msra.mxu0 %v12358_v25 }
0x1c01   :  { %10722 = vmatprep.subr.bf16.mxu1 %v12362_v8  ;;  %10749 = vmatprep.subr.bf16.mxu0 %v14566_v23 }
0x1c04   :  { %10724 = vmatpush1.bf16.msra.mxu1 %v12366_v44  ;;  %10751 = vmatpush3.bf16.msra.mxu0 %v12368_v63 }
0x1c05   :  { %10726 = vmatprep.subr.bf16.mxu1 %v12372_v18  ;;  %10752 = vmatprep.subr.bf16.mxu0 %v14566_v23 }
0x1c08   :  { %10728 = vmatpush1.bf16.msra.mxu1 %v14677_v50  ;;  %10754 = vmatpush3.bf16.msra.mxu0 %v14678_v54 }
0x1c09   :  { %10730 = vmatprep.subr.bf16.mxu1 %v14679_v49  ;;  %10755 = vmatprep.subr.bf16.mxu0 %v14566_v23 }
0x1c0c   :  { %10732 = vmatpush1.bf16.msra.mxu1 %v14680_v27  ;;  %10757 = vmatpush3.bf16.msra.mxu0 %v14681_v52 }
0x1c0d   :  { %10734 = vmatprep.subr.bf16.mxu1 %v14682_v5  ;;  %10758 = vmatprep.subr.bf16.mxu0 %v14566_v23 }
0x1c10   :  { %10736 = vmatpush1.bf16.msra.mxu1 %v12396_v28  ;;  %10760 = vmatpush3.bf16.msra.mxu0 %v14683_v43 }
0x1c11   :  { %10762 = vmatprep.subr.bf16.mxu1 %v14684_v6  ;;  %10793 = vmatprep.subr.bf16.mxu0 %v14566_v23 }
0x1c13   :  { %6103 = vmatmul.mubr.f32.vlgmr.msra.gmra.mrb[30].mxu1 %v13768_v40  ;;  %9327 = vmatmul.mubr.f32.vlgmr.msra.gmra.mrb[40].mxu0 %v13768_v40  ;;  %v14999_v40 = vld [vmem:[#allocation100_spill] sm:$0xff] }
0x1c14   :  { %10764 = vmatpush1.bf16.msra.mxu1 %v14685_v26  ;;  %10795 = vmatpush3.bf16.msra.mxu0 %v14994_v39 }
0x1c15   :  { %10766 = vmatprep.subr.bf16.mxu1 %v14995_v11  ;;  %10796 = vmatprep.subr.bf16.mxu0 %v14566_v23 }
0x1c16   :  { %6246 = vmatprep.mubr.f32.mxu1 %v14561_v1  ;;  %9361 = vmatprep.mubr.msk.f32.mxu0 %vm11694_vm0, %v14561_v1 }
0x1c18   :  { %10768 = vmatpush1.bf16.msra.mxu1 %v14996_v51  ;;  %10798 = vmatpush3.bf16.msra.mxu0 %v14997_v36 }
0x1c19   :  { %10770 = vmatprep.subr.bf16.mxu1 %v14998_v61  ;;  %10799 = vmatprep.subr.bf16.mxu0 %v14566_v23 }
0x1c1c   :  { %10772 = vmatpush1.bf16.msra.mxu1 %v14999_v40  ;;  %10801 = vmatpush3.bf16.msra.mxu0 %v15000_v38 }
0x1c1d   :  { %10774 = vmatprep.subr.bf16.mxu1 %v15001_v53  ;;  %10802 = vmatprep.subr.bf16.mxu0 %v14566_v23  ;;  %v15071_v53 = vld [vmem:[#allocation46_spill] sm:$0xff] }
0x1c20   :  { %10776 = vmatpush1.bf16.msra.mxu1 %v15002_v55  ;;  %10804 = vmatpush3.bf16.msra.mxu0 %v15003_v2 }
0x1c21   :  { %10778 = vmatprep.subr.bf16.mxu1 %v15004_v16  ;;  %10805 = vmatprep.subr.bf16.mxu0 %v14566_v23 }
0x1c24   :  { %10780 = vmatpush1.bf16.msra.mxu1 %v15005_v9  ;;  %10807 = vmatpush3.bf16.msra.mxu0 %v15006_v4  ;;  %v15061_v4 = vld [vmem:[#allocation40_spill] sm:$0xff] }
0x1c25   :  { %10782 = vmatprep.subr.bf16.mxu1 %v15007_v7  ;;  %10808 = vmatprep.subr.bf16.mxu0 %v14566_v23 }
0x1c28   :  { %10784 = vmatpush1.bf16.msra.mxu1 %v15008_v42  ;;  %10810 = vmatpush3.bf16.msra.mxu0 %v15009_v35 }
0x1c29   :  { %10786 = vmatprep.subr.bf16.mxu1 %v15010_v60  ;;  %10811 = vmatprep.subr.bf16.mxu0 %v14566_v23 }
0x1c2c   :  { %10788 = vmatpush1.bf16.msra.mxu1 %v15011_v10  ;;  %10813 = vmatpush3.bf16.msra.mxu0 %v15012_v33  ;;  %v15035_v10 = vld [vmem:[#allocation126_spill] sm:$0xff] }
0x1c2d   :  { %10790 = vmatprep.subr.bf16.mxu1 %v15013_v31  ;;  %10814 = vmatprep.subr.bf16.mxu0 %v14566_v23 }
0x1c30   :  { %10792 = vmatpush1.bf16.msra.mxu1 %v15014_v13  ;;  %10816 = vmatpush3.bf16.msra.mxu0 %v15015_v21  ;;  %v15034_v21 = vld [vmem:[#allocation125_spill] sm:$0xff] }
0x1c31   :  { %10817 = vmatprep.subr.bf16.mxu1 %v14566_v23  ;;  %10841 = vmatprep.subr.bf16.mxu0 %v14566_v23 }
0x1c33   :  { %6247 = vmatmul.mubr.f32.vlgmr.msra.gmra.mrb[30].mxu1 %v15016_v62  ;;  %9362 = vmatmul.mubr.f32.vlgmr.msra.gmra.mrb[42].mxu0 %v15016_v62 }
0x1c34   :  { %10819 = vmatpush3.bf16.msra.mxu1 %v15017_v59  ;;  %9396 = vmatprep.mubr.msk.f32.mxu1 %vm11694_vm0, %v14561_v1 }
0x1c35   :  { %10820 = vmatprep.subr.bf16.mxu1 %v14566_v23  ;;  %10843 = vmatpush3.bf16.msra.mxu0 %v15018_v37  ;;  %v15028_v37 = vld [vmem:[#allocation57_spill] sm:$0xff] }
0x1c36   :  { %10844 = vmatprep.subr.bf16.mxu0 %v14566_v23  ;;  %9431 = vmatprep.mubr.msk.f32.mxu0 %vm11694_vm0, %v14561_v1 }
0x1c38   :  { %10822 = vmatpush3.bf16.msra.mxu1 %v15019_v24 }
0x1c39   :  { %10823 = vmatprep.subr.bf16.mxu1 %v14566_v23  ;;  %10846 = vmatpush3.bf16.msra.mxu0 %v15020_v3  ;;  %v15029_v3 = vld [vmem:[#allocation123_spill] sm:$0xff] }
0x1c3a   :  { %10847 = vmatprep.subr.bf16.mxu0 %v14566_v23 }
0x1c3c   :  { %10825 = vmatpush3.bf16.msra.mxu1 %v15021_v46 }
0x1c3d   :  { %10826 = vmatprep.subr.bf16.mxu1 %v14566_v23  ;;  %10849 = vmatpush3.bf16.msra.mxu0 %v15022_v20  ;;  %v15030_v20 = vld [vmem:[#allocation58_spill] sm:$0xff] }
0x1c3e   :  { %10850 = vmatprep.subr.bf16.mxu0 %v14566_v23 }
0x1c40   :  { %10828 = vmatpush3.bf16.msra.mxu1 %v15023_v58 }
0x1c41   :  { %10829 = vmatprep.subr.bf16.mxu1 %v14566_v23  ;;  %10852 = vmatpush3.bf16.msra.mxu0 %v15024_v22  ;;  %v15031_v22 = vld [vmem:[#allocation124_spill] sm:$0xff] }
0x1c42   :  { %10853 = vmatprep.subr.bf16.mxu0 %v14566_v23 }
0x1c44   :  { %10831 = vmatpush3.bf16.msra.mxu1 %v15025_v15 }
0x1c45   :  { %10832 = vmatprep.subr.bf16.mxu1 %v14566_v23  ;;  %10855 = vmatpush3.bf16.msra.mxu0 %v15026_v12  ;;  %v15032_v12 = vld [vmem:[#allocation60_spill] sm:$0xff] }
0x1c46   :  { %10856 = vmatprep.subr.bf16.mxu0 %v14566_v23 }
0x1c48   :  { %10834 = vmatpush3.bf16.msra.mxu1 %v15027_v45  ;;  %v15033_v45 = vld [vmem:[#allocation61_spill] sm:$0xff] }
0x1c49   :  { %10835 = vmatprep.subr.bf16.mxu1 %v14566_v23  ;;  %10858 = vmatpush3.bf16.msra.mxu0 %v15028_v37 }
0x1c4a   :  { %10859 = vmatprep.subr.bf16.mxu0 %v14566_v23 }
0x1c4c   :  { %10837 = vmatpush3.bf16.msra.mxu1 %v15029_v3 }
0x1c4d   :  { %10838 = vmatprep.subr.bf16.mxu1 %v14566_v23  ;;  %10861 = vmatpush3.bf16.msra.mxu0 %v15030_v20 }
0x1c4e   :  { %10862 = vmatprep.subr.bf16.mxu0 %v14566_v23 }
0x1c50   :  { %10840 = vmatpush3.bf16.msra.mxu1 %v15031_v22 }
0x1c51   :  { %10865 = vmatprep.subr.bf16.mxu1 %v14566_v23  ;;  %10864 = vmatpush3.bf16.msra.mxu0 %v15032_v12 }
0x1c52   :  { %10890 = vmatprep.subr.bf16.mxu0 %v15033_v45 }
0x1cc6   :  { %v6034_v15 = vpop.f32.mrb[38].mxu0 }
0x1cc7   :  { %v9293_v37 = vpop.f32.mrb[39].mxu0 }
0x1ce6   :  { %v6175_v58 = vpop.f32.mrb[40].mxu0 }
0x1ce7   :  { %v6176_v46 = vadd.f32 %v6175_v58, %v6034_v15  ;;  %v9328_v24 = vpop.f32.mrb[41].mxu0 }
0x1ce8   :  { %v13900_v24 = vld [vmem:[%s14238_s11] ss:$0 sm:$0xff] }
0x1ce9   :  { %15036 = vst [vmem:[#allocation133_spill] sm:$0xff] %v13900_v24 }
0x1d06   :  { %v6248_v3 = vpop.f32.mrb[30].mxu1  ;;  %v6319_v59 = vpop.f32.mrb[42].mxu0 }
0x1d07   :  { %v11089_v13 = vadd.f32 %v6248_v3, %v15034_v21  ;;  %v6250_v20 = vpop.f32.mrb[31].mxu1  ;;  %v9363_v31 = vpop.f32.mrb[43].mxu0  ;;  %v6337_v58 = vadd.f32 %v13900_v24, %v6319_v59  ;;  %v15040_v59 = vld [vmem:[#allocation28_spill] sm:$0xff]  ;;  %v15059_v21 = vld [vmem:[#allocation38_spill] sm:$0xff] }
0x1d08   :  { %v11090_v22 = vadd.f32 %v6250_v20, %v15035_v10  ;;  %v15037_v31 = vld [vmem:[#allocation128_spill] sm:$0xff]  ;;  %v15039_v10 = vld [vmem:[#allocation27_spill] sm:$0xff] }
0x1d09   :  { %v7663_v33 = vmul.f32 -1.442695, %v11089_v13  ;;  %v6181_v13 = vadd.f32 %v6176_v46, %v15037_v31  ;;  %v15041_v46 = vld [vmem:[#allocation29_spill] sm:$0xff] }
0x1d0a   :  { %v7664_v60 = vmul.f32 -1.442695, %v11090_v22 }
0x1d0b   :  { %11355 = vpow2.f32 %v7663_v33 }
0x1d0c   :  { %11357 = vpow2.f32 %v7664_v60 }
0x1d15   :  { %v11356_v12 = vpop.eup %11355 }
0x1d16   :  { %v6327_v35 = vadd.f32 1.0, %v11356_v12  ;;  %v11358_v45 = vpop.eup %11357 }
0x1d17   :  { %v6334_v37 = vadd.f32 1.0, %v11358_v45 }
0x1d18   :  { %11359 = vrcp.f32 %v6327_v35 }
0x1d19   :  { %11361 = vrcp.f32 %v6334_v37  ;;  %v15043_v37 = vld [vmem:[#allocation31_spill] sm:$0xff] }
0x1d22   :  { %v11360_v15 = vpop.eup %11359 }
0x1d23   :  { %v6338_v3 = vmul.f32 %v11360_v15, %v6337_v58  ;;  %v11362_v60 = vpop.eup %11361  ;;  %v15045_v58 = vld [vmem:[#allocation33_spill] sm:$0xff]  ;;  %v15046_v15 = vld [vmem:[#allocation34_spill] sm:$0xff] }
0x1d24   :  { %v6341_v22 = vsub.f32 1.0, %v11362_v60  ;;  %v6343_v12 = vmul.f32 %v11362_v60, %v15016_v62  ;;  %v15042_v62 = vld [vmem:[#allocation30_spill] sm:$0xff]  ;;  %v15050_v60 = vld [vmem:[#allocation72_spill] sm:$0xff] }
0x1d25   :  { %v6339_v33 = vadd.f32 %v6338_v3, %v6181_v13  ;;  %v15047_v13 = vld [vmem:[#allocation63_spill] sm:$0xff]  ;;  %v15048_v3 = vld [vmem:[#allocation66_spill] sm:$0xff] }
0x1d27   :  { %11363 = vtanh.f32 %v6339_v33  ;;  %v15049_v33 = vld [vmem:[#allocation69_spill] sm:$0xff] }
0x1d31   :  { %v11364_v20 = vpop.eup %11363 }
0x1d32   :  { %v6342_v35 = vmul.f32 %v11364_v20, %v6341_v22  ;;  %v15051_v22 = vld [vmem:[#allocation75_spill] sm:$0xff]  ;;  %v15052_v20 = vld [vmem:[#allocation78_spill] sm:$0xff] }
0x1d34   :  { %v13905_v45 = vadd.f32 %v6343_v12, %v6342_v35  ;;  %v15053_v35 = vld [vmem:[#allocation81_spill] sm:$0xff]  ;;  %v15054_v12 = vld [vmem:[#allocation84_spill] sm:$0xff] }
0x1d36   :  { %15038 = vst [vmem:[#allocation134_spill] sm:$0xff] %v13905_v45  ;;  %9397 = vmatmul.mubr.f32.vlgmr.msra.gmra.mrb[32].mxu1 %v13905_v45 }
0x1d37   :  { %10867 = vmatpush3.bf16.msra.mxu1 %v15039_v10  ;;  %9466 = vmatprep.mubr.msk.f32.mxu1 %vm11694_vm0, %v14561_v1  ;;  %v15044_v10 = vld [vmem:[#allocation32_spill] sm:$0xff] }
0x1d38   :  { %10868 = vmatprep.subr.bf16.mxu1 %v14566_v23 }
0x1d3b   :  { %10870 = vmatpush3.bf16.msra.mxu1 %v15040_v59 }
0x1d3c   :  { %10871 = vmatprep.subr.bf16.mxu1 %v14566_v23 }
0x1d3f   :  { %10873 = vmatpush3.bf16.msra.mxu1 %v15041_v46  ;;  %v13948_v46 = vld [vmem:[%s14240_s13] ss:$0 sm:$0xff] }
0x1d40   :  { %10874 = vmatprep.subr.bf16.mxu1 %v14566_v23  ;;  %15055 = vst [vmem:[#allocation135_spill] sm:$0xff] %v13948_v46 }
0x1d43   :  { %10876 = vmatpush3.bf16.msra.mxu1 %v15042_v62 }
0x1d44   :  { %10877 = vmatprep.subr.bf16.mxu1 %v14566_v23 }
0x1d47   :  { %10879 = vmatpush3.bf16.msra.mxu1 %v15043_v37 }
0x1d48   :  { %10880 = vmatprep.subr.bf16.mxu1 %v14566_v23 }
0x1d4b   :  { %10882 = vmatpush3.bf16.msra.mxu1 %v15044_v10 }
0x1d4c   :  { %10883 = vmatprep.subr.bf16.mxu1 %v14566_v23 }
0x1d4f   :  { %10885 = vmatpush3.bf16.msra.mxu1 %v15045_v58  ;;  %v15056_v58 = vld [vmem:[#allocation35_spill] sm:$0xff] }
0x1d50   :  { %10886 = vmatprep.subr.bf16.mxu1 %v14566_v23 }
0x1d53   :  { %10888 = vmatpush3.bf16.msra.mxu1 %v15046_v15 }
0x1d54   :  { %10921 = vmatprep.subr.bf16.mxu1 %v14566_v23 }
0x1d56   :  { %9467 = vmatmul.mubr.f32.vlgmr.msra.gmra.mrb[34].mxu1 %v13905_v45 }
0x1d57   :  { %10923 = vmatpush3.bf16.msra.mxu1 %v15047_v13  ;;  %9501 = vmatprep.mubr.msk.f32.mxu1 %vm11694_vm0, %v14561_v1 }
0x1d58   :  { %10924 = vmatprep.subr.bf16.mxu1 %v14566_v23 }
0x1d5b   :  { %10926 = vmatpush3.bf16.msra.mxu1 %v15048_v3 }
0x1d5c   :  { %10927 = vmatprep.subr.bf16.mxu1 %v14566_v23 }
0x1d5f   :  { %10929 = vmatpush3.bf16.msra.mxu1 %v15049_v33 }
0x1d60   :  { %10930 = vmatprep.subr.bf16.mxu1 %v14566_v23 }
0x1d63   :  { %10932 = vmatpush3.bf16.msra.mxu1 %v15050_v60 }
0x1d64   :  { %10933 = vmatprep.subr.bf16.mxu1 %v14566_v23 }
0x1d67   :  { %10935 = vmatpush3.bf16.msra.mxu1 %v15051_v22 }
0x1d68   :  { %10936 = vmatprep.subr.bf16.mxu1 %v14566_v23 }
0x1d6b   :  { %10938 = vmatpush3.bf16.msra.mxu1 %v15052_v20 }
0x1d6c   :  { %10939 = vmatprep.subr.bf16.mxu1 %v14566_v23 }
0x1d6f   :  { %10941 = vmatpush3.bf16.msra.mxu1 %v15053_v35 }
0x1d70   :  { %10942 = vmatprep.subr.bf16.mxu1 %v14566_v23 }
0x1d73   :  { %10944 = vmatpush3.bf16.msra.mxu1 %v15054_v12 }
0x1d74   :  { %10977 = vmatprep.subr.bf16.mxu1 %v14566_v23 }
0x1e09   :  { %v6411_v59 = vpop.f32.mrb[32].mxu1 }
0x1e0a   :  { %v6412_v62 = vadd.f32 %v13948_v46, %v6411_v59  ;;  %v9398_v37 = vpop.f32.mrb[33].mxu1  ;;  %v15057_v59 = vld [vmem:[#allocation36_spill] sm:$0xff] }
0x1e0c   :  { %6415 = vmax.xlane.f32.xlu0 %v6412_v62 }
0x1e29   :  { %v6572_v10 = vpop.f32.mrb[34].mxu1 }
0x1e2a   :  { %v6584_v15 = vrot.slane %v6572_v10, %v15056_v58  ;;  %v9468_v13 = vpop.f32.mrb[35].mxu1  ;;  %v6577_v3 = vcombine.high %v6572_v10, %v6572_v10 }
0x1e2b   :  { %v15058_v13 = vld [vmem:[#allocation132_spill] sm:$0xff] }
0x1e2c   :  { %v6592_v33 = vcombine.high %v6584_v15, %v6584_v15  ;;  %v6600_v60 = vrot.slane %v6584_v15, %v15056_v58  ;;  %v6591_v20 = vrot.slane %v6577_v3, %v15056_v58 }
0x1e2e   :  { %v6614_v22 = vrot.slane %v6592_v33, %v15056_v58  ;;  %v6622_v35 = vcombine.high %v6600_v60, %v6600_v60  ;;  %v6629_v12 = vrot.slane %v6600_v60, %v12005_v17  ;;  %v6607_v46 = vrot.slane %v6591_v20, %v15056_v58  ;;  %v15060_v60 = vld [vmem:[#allocation37_spill] sm:$0xff] }
0x1e2f   :  { %v6593_v15 = vcombine.high %v6591_v20, %v6591_v20 }
0x1e30   :  { %v6633_v31 = vrot.slane %v6614_v22, %v12005_v17  ;;  %v6666_v37 = vadd.f32 %v6629_v12, %v15057_v59  ;;  %v6637_v24 = vrot.slane %v6622_v35, %v12005_v17  ;;  %v6624_v33 = vcombine.high %v6614_v22, %v6614_v22  ;;  %v15062_v22 = vld [vmem:[#allocation39_spill] sm:$0xff] }
0x1e31   :  { %v6645_v3 = vrot.slane %v6607_v46, %v12005_v17  ;;  %v6621_v12 = vrot.slane %v6593_v15, %v15056_v58 }
0x1e32   :  { %v6674_v10 = vmul.f32 %v15058_v13, %v6666_v37  ;;  %v6667_v45 = vadd.f32 %v6633_v31, %v15059_v21  ;;  %v6668_v7 = vadd.f32 %v6637_v24, %v15060_v60  ;;  %v6641_v37 = vrot.slane %v6624_v33, %v12005_v17  ;;  %v15065_v60 = vld [vmem:[#allocation43_spill] sm:$0xff] }
0x1e33   :  { %v6670_v35 = vadd.f32 %v6645_v3, %v15061_v4  ;;  %v6623_v21 = vcombine.high %v6607_v46, %v6607_v46  ;;  %v15064_v46 = vld [vmem:[#allocation42_spill] sm:$0xff] }
0x1e34   :  { %6682 = vadd.xlane.f32.xlu1 %v6674_v10  ;;  %v6675_v42 = vmul.f32 %v15058_v13, %v6667_v45  ;;  %v6676_v59 = vmul.f32 %v15058_v13, %v6668_v7  ;;  %v6669_v20 = vadd.f32 %v6641_v37, %v15062_v22  ;;  %v6649_v10 = vrot.slane %v6621_v12, %v12005_v17  ;;  %v15063_v7 = vld [vmem:[#allocation41_spill] sm:$0xff] }
0x1e35   :  { %v6678_v31 = vmul.f32 %v15058_v13, %v6670_v35  ;;  %v6625_v45 = vcombine.high %v6621_v12, %v6621_v12  ;;  %v6653_v4 = vrot.slane %v6623_v21, %v12005_v17 }
0x1e36   :  { %v6671_v58 = vadd.f32 %v6649_v10, %v15063_v7  ;;  %v15066_v7 = vld [vmem:[#allocation45_spill] sm:$0xff] }
0x1e37   :  { %v6672_v33 = vadd.f32 %v6653_v4, %v15064_v46  ;;  %v6657_v13 = vrot.slane %v6625_v45, %v12005_v17 }
0x1e38   :  { %6684 = vadd.xlane.f32.xlu1 %v6675_v42  ;;  %v11438_v42 = vld [vmem:[%s14232_s5] ss:$0 sm:$0xff]  ;;  %s11699_s5 = smov [#allocation18]  }
0x1e39   :  { %v6677_v24 = vmul.f32 %v11438_v42, %v6669_v20  ;;  %v6679_v15 = vmul.f32 %v11438_v42, %v6671_v58  ;;  %v6680_v3 = vmul.f32 %v11438_v42, %v6672_v33  ;;  %s7623_s12 = sshll.u32 %s11699_s5, 4  ;;  %s7624_s12 = int_to_ptr.vmem [resolvable:$true] %s7623_s12 }
0x1e3a   :  { %s11623_s28 = scalar_lea.vmem %s7624_s12, 128  ;;  %p11628_p9 = scmp.lt.s32.totalorder %s7624_s12, %s7624_s12 }
0x1e3b   :  { %p11624_p8 = scmp.ne.s32.totalorder %s7624_s12, %s11623_s28  ;;  %p11629_p10 = scmp.lt.s32.totalorder %s11623_s28, %s11623_s28 }
0x1e3c   :  { %6686 = vadd.xlane.f32.xlu1 %v6676_v59  ;;  %v6673_v59 = vadd.f32 %v6657_v13, %v15065_v60 }
0x1e3d   :  { %p11630_p11 = por %p11629_p10, %p11628_p9 }
0x1e3e   :  { %v6681_v12 = vmul.f32 %v11438_v42, %v6673_v59 }
0x1e3f   :  { %p11631_p12 = pnand %p11630_p11, %p11624_p8 }
0x1e40   :  { %6690 = vadd.xlane.f32.xlu1 %v6678_v31 }
0x1e44   :  { %6688 = vadd.xlane.f32.xlu1 %v6677_v24 }
0x1e48   :  { %6692 = vadd.xlane.f32.xlu1 %v6679_v15 }
0x1e4c   :  { %6694 = vadd.xlane.f32.xlu1 %v6680_v3 }
0x1e50   :  { %6696 = vadd.xlane.f32.xlu1 %v6681_v12 }
0x1e99   :  { %v6416_v35 = vpop.xlane.xlu0 %6415 }
0x1e9a   :  { %v6417_v37 = vsub.f32 %v6412_v62, %v6416_v35 }
0x1e9c   :  { %v6418_v31 = vmul.f32 1.442695, %v6417_v37 }
0x1e9e   :  { %11365 = vpow2.f32 %v6418_v31 }
0x1ea8   :  { %v11366_v22 = vpop.eup %11365 }
0x1ea9   :  { %6420 = vadd.xlane.f32.xlu0 %v11366_v22 }
0x1ec1   :  { %v6683_v21 = vpop.xlane.xlu1 %6682 }
0x1ec2   :  { %v6698_v15 = vadd.f32 %v6683_v21, %v15066_v7 }
0x1ec4   :  { %v6706_v13 = vmax.f32 %v6698_v15, 0.0 }
0x1ec5   :  { %v6685_v20 = vpop.xlane.xlu1 %6684 }
0x1ec6   :  { %v6699_v58 = vadd.f32 %v6685_v20, %v15066_v7  ;;  %v6725_v22 = vrot.slane %v6706_v13, %v14644_v56 }
0x1ec8   :  { %v6707_v46 = vmax.f32 %v6699_v58, 0.0 }
0x1ec9   :  { %v6687_v10 = vpop.xlane.xlu1 %6686 }
0x1eca   :  { %v6700_v45 = vadd.f32 %v6687_v10, %v15066_v7  ;;  %v6729_v12 = vrot.slane %v6707_v46, %v14644_v56 }
0x1ecc   :  { %v6708_v33 = vmax.f32 %v6700_v45, 0.0  ;;  %v6754_v45 = vsel %vm834_vm1, %v6729_v12, %v6725_v22 }
0x1ecd   :  { %v6691_v24 = vpop.xlane.xlu1 %6690 }
0x1ece   :  { %v6702_v59 = vadd.f32 %v6691_v24, %v15066_v7  ;;  %v6733_v35 = vrot.slane %v6708_v33, %v14644_v56 }
0x1ed0   :  { %v6710_v58 = vmax.f32 %v6702_v59, 0.0  ;;  %v6755_v24 = vsel %vm836_vm2, %v6733_v35, %v6754_v45 }
0x1ed1   :  { %v6689_v4 = vpop.xlane.xlu1 %6688 }
0x1ed2   :  { %v6701_v42 = vadd.f32 %v6689_v4, %v15066_v7  ;;  %v6741_v16 = vrot.slane %v6710_v58, %v14644_v56 }
0x1ed4   :  { %v6709_v3 = vmax.f32 %v6701_v42, 0.0 }
0x1ed5   :  { %v6693_v62 = vpop.xlane.xlu1 %6692 }
0x1ed6   :  { %v6703_v60 = vadd.f32 %v6693_v62, %v15066_v7  ;;  %v6737_v21 = vrot.slane %v6709_v3, %v14644_v56 }
0x1ed8   :  { %v6711_v20 = vmax.f32 %v6703_v60, 0.0  ;;  %v6756_v42 = vsel %vm838_vm3, %v6737_v21, %v6755_v24 }
0x1ed9   :  { %v6695_v31 = vpop.xlane.xlu1 %6694  ;;  %v6757_v12 = vsel %vm840_vm4, %v6741_v16, %v6756_v42 }
0x1eda   :  { %v13991_v10 = vadd.f32 %v6695_v31, %v15066_v7  ;;  %v6745_v62 = vrot.slane %v6711_v20, %v14644_v56 }
0x1edc   :  { %v14526_v4 = vmax.f32 %v13991_v10, 0.0  ;;  %v6758_v35 = vsel %vm842_vm5, %v6745_v62, %v6757_v12  ;;  %v15067_v62 = vld [vmem:[#allocation47_spill] sm:$0xff] }
0x1edd   :  { %v6697_v15 = vpop.xlane.xlu1 %6696 }
0x1ede   :  { %v6705_v9 = vadd.f32 %v6697_v15, %v15066_v7  ;;  %v6749_v60 = vrot.slane %v14526_v4, %v14644_v56 }
0x1ee0   :  { %v6713_v59 = vmax.f32 %v6705_v9, 0.0  ;;  %v6759_v22 = vsel %vm844_vm6, %v6749_v60, %v6758_v35  ;;  %v15068_v60 = vld [vmem:[#allocation48_spill] sm:$0xff] }
0x1ee2   :  { %v6753_v31 = vrot.slane %v6713_v59, %v14644_v56 }
0x1ee4   :  { %v6760_v21 = vsel %vm846_vm7, %v6753_v31, %v6759_v22  ;;  %v15069_v31 = vld [vmem:[#allocation50_spill] sm:$0xff] }
0x1ee5   :  { %v6762_v45 = vsel %vm849_vm8, %v6760_v21, -inf }
0x1ee6   :  { %6763 = vmax.xlane.f32.xlu1 %v6762_v45 }
0x1f36   :  { %v6421_v7 = vpop.xlane.xlu0 %6420 }
0x1f37   :  { %11367 = vlog2.f32 %v6421_v7  ;;  %v15070_v7 = vld [vmem:[#allocation49_spill] sm:$0xff] }
0x1f41   :  { %v11368_v24 = vpop.eup %11367 }
0x1f42   :  { %v6423_v15 = vmul.f32 0.6931472, %v11368_v24 }
0x1f44   :  { %v6424_v2 = vsub.f32 %v6417_v37, %v6423_v15 }
0x1f46   :  { %6427 = vmax.xlane.f32.xlu0 %v6424_v2  ;;  %6426 = vst [vmem:[#allocation17 + $0x20] sm:$0xff] %v6424_v2 }
0x1f73   :  { %v6764_v9 = vpop.xlane.xlu1 %6763 }
0x1f74   :  { %v6769_v16 = vrot.slane %v6764_v9, %v12005_v17  ;;  %v6773_v42 = vrot.slane %v6764_v9, %v12100_v48  ;;  %v6777_v12 = vrot.slane %v6764_v9, %v15067_v62  ;;  %v6781_v35 = vrot.slane %v6764_v9, %v15068_v60 }
0x1f75   :  { %v6789_v22 = vrot.slane %v6764_v9, %v15069_v31  ;;  %v6785_v55 = vrot.slane %v6764_v9, %v15070_v7  ;;  %v6797_v38 = vrot.slane %v6764_v9, %v15071_v53 }
0x1f76   :  { %v6806_v21 = vsub.f32 %v6706_v13, %v6769_v16  ;;  %v6807_v45 = vsub.f32 %v6707_v46, %v6773_v42  ;;  %v6809_v4 = vsub.f32 %v6709_v3, %v6781_v35  ;;  %v6808_v24 = vsub.f32 %v6708_v33, %v6777_v12 }
0x1f77   :  { %v6811_v40 = vsub.f32 %v6711_v20, %v6789_v22  ;;  %v6810_v36 = vsub.f32 %v6710_v58, %v6785_v55  ;;  %v6813_v11 = vsub.f32 %v6713_v59, %v6797_v38  ;;  %v15073_v38 = vmax.f32 %v13991_v10, 0.0 }
0x1f78   :  { %v6814_v37 = vmul.f32 1.442695, %v6806_v21  ;;  %v6816_v15 = vmul.f32 1.442695, %v6807_v45  ;;  %v6820_v61 = vmul.f32 1.442695, %v6809_v4 }
0x1f79   :  { %v6818_v51 = vmul.f32 1.442695, %v6808_v24  ;;  %v6824_v39 = vmul.f32 1.442695, %v6811_v40  ;;  %v6822_v13 = vmul.f32 1.442695, %v6810_v36 }
0x1f7a   :  { %11369 = vpow2.f32 %v6814_v37  ;;  %v6828_v46 = vmul.f32 1.442695, %v6813_v11  ;;  %v15072_v36 = vld [vmem:[#allocation51_spill] sm:$0xff] }
0x1f7b   :  { %11371 = vpow2.f32 %v6816_v15  ;;  %v15074_v4 = vld [vmem:[#allocation59_spill] sm:$0xff] }
0x1f7c   :  { %11373 = vpow2.f32 %v6820_v61  ;;  %v6793_v61 = vrot.slane %v6764_v9, %v15072_v36 }
0x1f7d   :  { %11375 = vpow2.f32 %v6818_v51 }
0x1f7e   :  { %11377 = vpow2.f32 %v6824_v39  ;;  %v6812_v58 = vsub.f32 %v15073_v38, %v6793_v61 }
0x1f7f   :  { %11379 = vpow2.f32 %v6822_v13 }
0x1f80   :  { %11381 = vpow2.f32 %v6828_v46  ;;  %v6826_v16 = vmul.f32 1.442695, %v6812_v58  ;;  %v15075_v58 = vmov 1.0  }
0x1f82   :  { %11383 = vpow2.f32 %v6826_v16 }
0x1f84   :  { %v14016_v3 = vpop.eup %11369 }
0x1f85   :  { %v14018_v33 = vpop.eup %11371  ;;  %6839 = vperm.xlu0 %11137, %v14016_v3  }
0x1f86   :  { %6842 = vperm.xlu1 %11138, %v14018_v33   ;;  %v14022_v55 = vpop.eup %11373 }
0x1f87   :  { %v14024_v20 = vpop.eup %11375 }
0x1f88   :  { %v14028_v39 = vpop.eup %11377 }
0x1f89   :  { %6848 = vperm.xlu0 %11137, %v14022_v55   ;;  %v14030_v11 = vpop.eup %11379 }
0x1f8a   :  { %6845 = vperm.xlu1 %11138, %v14024_v20   ;;  %v14034_v51 = vpop.eup %11381 }
0x1f8c   :  { %v14041_v42 = vpop.eup %11383 }
0x1f8d   :  { %6854 = vperm.xlu0 %11137, %v14028_v39  }
0x1f8e   :  { %6851 = vperm.xlu1 %11138, %v14030_v11  }
0x1f91   :  { %6860 = vperm.xlu0 %11137, %v14034_v51  }
0x1fd3   :  { %v6428_v40 = vpop.xlane.xlu0 %6427 }
0x1fd4   :  { %vm6429_vm11 = vcmp.eq.f32.partialorder %v6424_v2, %v6428_v40 }
0x1fd5   :  { %v6430_v59 = vsel %vm6429_vm11, %v15074_v4, 128.0 }
0x1fd6   :  { %6431 = vmin.xlane.f32.xlu1 %v6430_v59 }
0x1fe7   :  { %6857 = vperm.xlu1 %11138, %v14041_v42  }
0x2004   :  { %v6840_v35 = vpop.permute.xlu0 %6839 }
0x2005   :  { %v6843_v12 = vpop.permute.xlu1 %6842  ;;  %v6865_v45 = vrot.slane %v6840_v35, %v14644_v56 }
0x2006   :  { %v6869_v9 = vrot.slane %v6843_v12, %v14644_v56  ;;  %v15076_v12 = vld [vmem:[#allocation62_spill] sm:$0xff] }
0x2008   :  { %v6849_v21 = vpop.permute.xlu0 %6848  ;;  %v6894_v37 = vsel %vm834_vm1, %v6869_v9, %v6865_v45 }
0x2009   :  { %v6846_v22 = vpop.permute.xlu1 %6845  ;;  %v6877_v15 = vrot.slane %v6849_v21, %v14644_v56 }
0x200a   :  { %v6873_v10 = vrot.slane %v6846_v22, %v14644_v56  ;;  %v15077_v22 = vld [vmem:[#allocation64_spill] sm:$0xff] }
0x200c   :  { %v6855_v24 = vpop.permute.xlu0 %6854  ;;  %v6895_v13 = vsel %vm836_vm2, %v6873_v10, %v6894_v37  ;;  %v15078_v10 = vld [vmem:[#allocation65_spill] sm:$0xff] }
0x200d   :  { %v6852_v2 = vpop.permute.xlu1 %6851  ;;  %v6896_v40 = vsel %vm838_vm3, %v6877_v15, %v6895_v13  ;;  %v6885_v38 = vrot.slane %v6855_v24, %v14644_v56  ;;  %v15079_v24 = vld [vmem:[#allocation67_spill] sm:$0xff]  ;;  %v15080_v15 = vld [vmem:[#allocation68_spill] sm:$0xff]  ;;  %v15081_v13 = vld [vmem:[#allocation70_spill] sm:$0xff] }
0x200e   :  { %v6881_v46 = vrot.slane %v6852_v2, %v14644_v56 }
0x2010   :  { %v6897_v59 = vsel %vm840_vm4, %v6881_v46, %v6896_v40  ;;  %v6861_v16 = vpop.permute.xlu0 %6860  ;;  %v15082_v46 = vld [vmem:[#allocation71_spill] sm:$0xff]  ;;  %v15085_v40 = vld [vmem:[#allocation76_spill] sm:$0xff] }
0x2011   :  { %v6893_v9 = vrot.slane %v6861_v16, %v14644_v56  ;;  %v15089_v16 = vld [vmem:[#allocation82_spill] sm:$0xff] }
0x2063   :  { %v6432_v61 = vpop.xlane.xlu1 %6431 }
0x2064   :  { %vm6433_vm12 = vcmp.eq.f32.partialorder %v15074_v4, %v6432_v61  ;;  %v6898_v4 = vsel %vm842_vm5, %v6885_v38, %v6897_v59  ;;  %v15083_v61 = vld [vmem:[#allocation73_spill] sm:$0xff]  ;;  %v15088_v59 = vld [vmem:[#allocation80_spill] sm:$0xff] }
0x2065   :  { %9432 = vmatmul.mubr.msk.f32.vlgmr.msra.gmra.mrb[44].mxu0 %vm6433_vm12, %v15075_v58  ;;  %v15086_v38 = vld [vmem:[#allocation77_spill] sm:$0xff]  ;;  %v15087_v58 = vld [vmem:[#allocation79_spill] sm:$0xff] }
0x2066   :  { %10892 = vmatpush1.bf16.msra.mxu0 %v15076_v12  ;;  %7138 = vmatprep.mubr.f32.mxu0 %v14561_v1  ;;  %v15090_v12 = vld [vmem:[#allocation83_spill] sm:$0xff] }
0x2067   :  { %v6858_v35 = vpop.permute.xlu1 %6857  ;;  %10894 = vmatprep.subr.bf16.mxu0 %v15077_v22 }
0x2068   :  { %v6889_v21 = vrot.slane %v6858_v35, %v14644_v56  ;;  %v15084_v56 = vld [vmem:[#allocation74_spill] sm:$0xff]  ;;  %v15091_v35 = vld [vmem:[#allocation85_spill] sm:$0xff] }
0x206a   :  { %v6899_v45 = vsel %vm844_vm6, %v6889_v21, %v6898_v4  ;;  %10896 = vmatpush1.bf16.msra.mxu0 %v15078_v10 }
0x206b   :  { %v6900_v2 = vsel %vm846_vm7, %v6893_v9, %v6899_v45  ;;  %10898 = vmatprep.subr.bf16.mxu0 %v15079_v24 }
0x206c   :  { %v6902_v37 = vsel %vm849_vm8, %v6900_v2, 0.0 }
0x206d   :  { %6903 = vadd.xlane.f32.xlu1 %v6902_v37 }
0x206e   :  { %10900 = vmatpush1.bf16.msra.mxu0 %v15080_v15 }
0x206f   :  { %10902 = vmatprep.subr.bf16.mxu0 %v15081_v13 }
0x2072   :  { %10904 = vmatpush1.bf16.msra.mxu0 %v15082_v46 }
0x2073   :  { %10906 = vmatprep.subr.bf16.mxu0 %v15083_v61 }
0x2076   :  { %10908 = vmatpush1.bf16.msra.mxu0 %v15084_v56 }
0x2077   :  { %10910 = vmatprep.subr.bf16.mxu0 %v15085_v40 }
0x207a   :  { %10912 = vmatpush1.bf16.msra.mxu0 %v15086_v38 }
0x207b   :  { %10914 = vmatprep.subr.bf16.mxu0 %v15087_v58 }
0x207e   :  { %10916 = vmatpush1.bf16.msra.mxu0 %v15088_v59 }
0x207f   :  { %10918 = vmatprep.subr.bf16.mxu0 %v15089_v16 }
0x2082   :  { %10920 = vmatpush1.bf16.msra.mxu0 %v15090_v12  ;;  %v11440_v12 = vld [vmem:[#allocation3 + $0x10] sm:$0xff] }
0x2083   :  { %10946 = vmatprep.subr.bf16.mxu0 %v15091_v35 }
0x20fa   :  { %v6904_v22 = vpop.xlane.xlu1 %6903 }
0x20fb   :  { %v6909_v21 = vrot.slane %v6904_v22, %v12005_v17  ;;  %v6913_v4 = vrot.slane %v6904_v22, %v12100_v48  ;;  %v6917_v9 = vrot.slane %v6904_v22, %v15067_v62  ;;  %v6921_v45 = vrot.slane %v6904_v22, %v15068_v60 }
0x20fc   :  { %v6925_v2 = vrot.slane %v6904_v22, %v15070_v7  ;;  %v6929_v17 = vrot.slane %v6904_v22, %v15069_v31  ;;  %v6933_v62 = vrot.slane %v6904_v22, %v15072_v36  ;;  %v6937_v7 = vrot.slane %v6904_v22, %v15071_v53 }
0x20fd   :  { %11385 = vrcp.f32 %v6909_v21 }
0x20fe   :  { %11387 = vrcp.f32 %v6913_v4 }
0x20ff   :  { %11389 = vrcp.f32 %v6917_v9 }
0x2100   :  { %11391 = vrcp.f32 %v6921_v45 }
0x2101   :  { %11393 = vrcp.f32 %v6925_v2 }
0x2102   :  { %11395 = vrcp.f32 %v6929_v17 }
0x2103   :  { %11397 = vrcp.f32 %v6933_v62 }
0x2104   :  { %11399 = vrcp.f32 %v6937_v7 }
0x2107   :  { %v11386_v10 = vpop.eup %11385 }
0x2108   :  { %v6947_v24 = vmul.f32 %v11386_v10, %v14016_v3  ;;  %v11388_v37 = vpop.eup %11387 }
0x2109   :  { %v6949_v48 = vmul.f32 %v11388_v37, %v14018_v33  ;;  %v11390_v15 = vpop.eup %11389  ;;  %v11443_v37 = vld [vmem:[#allocation3 + $0x20] sm:$0xff] }
0x210a   :  { %6964 = vperm.xlu0 %11137, %v6947_v24   ;;  %v6951_v60 = vmul.f32 %v11390_v15, %v14024_v20  ;;  %v11392_v13 = vpop.eup %11391 }
0x210b   :  { %v6953_v3 = vmul.f32 %v11392_v13, %v14022_v55  ;;  %v11394_v46 = vpop.eup %11393 }
0x210c   :  { %v6955_v31 = vmul.f32 %v11394_v46, %v14030_v11  ;;  %v11396_v33 = vpop.eup %11395  ;;  %v11439_v11 = vld [vmem:[#allocation3 + $0x8] sm:$0xff] }
0x210d   :  { %v6957_v61 = vmul.f32 %v11396_v33, %v14028_v39  ;;  %v11398_v56 = vpop.eup %11397  ;;  %v11441_v39 = vld [vmem:[#allocation3] sm:$0xff]  ;;  %v11444_v46 = vld [vmem:[#allocation3 + $0x28] sm:$0xff] }
0x210e   :  { %6969 = vperm.xlu0 %11137, %v6949_v48   ;;  %v6959_v20 = vmul.f32 %v11398_v56, %v14041_v42  ;;  %v11400_v36 = vpop.eup %11399  ;;  %v11442_v42 = vld [vmem:[#allocation3 + $0x18] sm:$0xff] }
0x210f   :  { %v6961_v40 = vmul.f32 %v11400_v36, %v14034_v51 }
0x2112   :  { %6974 = vperm.xlu0 %11137, %v6951_v60  }
0x2116   :  { %6979 = vperm.xlu0 %11137, %v6953_v3  }
0x211a   :  { %6984 = vperm.xlu0 %11137, %v6955_v31  }
0x211e   :  { %6989 = vperm.xlu0 %11137, %v6957_v61  }
0x2122   :  { %6994 = vperm.xlu0 %11137, %v6959_v20  }
0x2126   :  { %6999 = vperm.xlu0 %11137, %v6961_v40  }
0x2138   :  { %v14095_v53 = vpop.f32.mrb[44].mxu0 }
0x2139   :  { %v9433_v55 = vpop.f32.mrb[45].mxu0 }
0x2189   :  { %v6965_v38 = vpop.permute.xlu0 %6964 }
0x218a   :  { %v7002_v22 = vmul.f32 %v11441_v39, %v6965_v38 }
0x218c   :  { %v7010_v10 = vrot.slane %v7002_v22, 4 }
0x218d   :  { %v6970_v58 = vpop.permute.xlu0 %6969 }
0x218e   :  { %v7003_v16 = vmul.f32 %v11439_v11, %v6970_v58  ;;  %v7011_v15 = vadd.f32 %v7010_v10, %v7002_v22  ;;  %v11445_v58 = vld [vmem:[#allocation3 + $0x30] sm:$0xff] }
0x2190   :  { %v7016_v4 = vrot.slane %v7003_v16, 4  ;;  %v7012_v61 = vrot.slane %v7011_v15, 2 }
0x2191   :  { %v6975_v59 = vpop.permute.xlu0 %6974 }
0x2192   :  { %v7004_v35 = vmul.f32 %v11440_v12, %v6975_v59  ;;  %v7017_v24 = vadd.f32 %v7016_v4, %v7003_v16  ;;  %v7013_v16 = vadd.f32 %v7012_v61, %v7011_v15 }
0x2194   :  { %v7022_v45 = vrot.slane %v7004_v35, 4  ;;  %v7018_v7 = vrot.slane %v7017_v24, 2 }
0x2195   :  { %v6980_v21 = vpop.permute.xlu0 %6979 }
0x2196   :  { %v7005_v9 = vmul.f32 %v11442_v42, %v6980_v21  ;;  %v7023_v48 = vadd.f32 %v7022_v45, %v7004_v35  ;;  %v7019_v55 = vadd.f32 %v7018_v7, %v7017_v24  ;;  %v11446_v45 = vld [vmem:[#allocation3 + $0x38] sm:$0xff] }
0x2198   :  { %v7028_v51 = vrot.slane %v7005_v9, 4  ;;  %v7024_v33 = vrot.slane %v7023_v48, 2  ;;  %v7020_v4 = vrot.slane %v7019_v55, 1 }
0x2199   :  { %v6985_v2 = vpop.permute.xlu0 %6984 }
0x219a   :  { %v7006_v17 = vmul.f32 %v11443_v37, %v6985_v2  ;;  %v7029_v62 = vadd.f32 %v7028_v51, %v7005_v9  ;;  %v7025_v11 = vadd.f32 %v7024_v33, %v7023_v48  ;;  %v7014_v2 = vrot.slane %v7013_v16, 1 }
0x219c   :  { %v7034_v60 = vrot.slane %v7006_v17, 4  ;;  %v7030_v56 = vrot.slane %v7029_v62, 2  ;;  %v7026_v51 = vrot.slane %v7025_v11, 1 }
0x219d   :  { %v6990_v13 = vpop.permute.xlu0 %6989 }
0x219e   :  { %v7035_v3 = vadd.f32 %v7034_v60, %v7006_v17  ;;  %v7007_v31 = vmul.f32 %v11444_v46, %v6990_v13  ;;  %v7031_v12 = vadd.f32 %v7030_v56, %v7029_v62  ;;  %v7021_v13 = vadd.f32 %v7020_v4, %v7019_v55  ;;  %v15122_v4 = vld [vmem:[#allocation124_spill] sm:$0xff] }
0x219f   :  { %v7027_v62 = vadd.f32 %v7026_v51, %v7025_v11  ;;  %v7015_v46 = vadd.f32 %v7014_v2, %v7013_v16 }
0x21a0   :  { %v7040_v20 = vrot.slane %v7007_v31, 4  ;;  %v7036_v36 = vrot.slane %v7035_v3, 2  ;;  %v7032_v37 = vrot.slane %v7031_v12, 1 }
0x21a1   :  { %v6995_v40 = vpop.permute.xlu0 %6994  ;;  %v7066_v56 = vsel %vm834_vm1, %v7021_v13, %v7015_v46 }
0x21a2   :  { %v7041_v38 = vadd.f32 %v7040_v20, %v7007_v31  ;;  %v7008_v59 = vmul.f32 %v11445_v58, %v6995_v40  ;;  %v7037_v22 = vadd.f32 %v7036_v36, %v7035_v3  ;;  %v7033_v31 = vadd.f32 %v7032_v37, %v7031_v12 }
0x21a3   :  { %v7067_v40 = vsel %vm836_vm2, %v7027_v62, %v7066_v56 }
0x21a4   :  { %v7042_v35 = vrot.slane %v7041_v38, 2  ;;  %v7046_v39 = vrot.slane %v7008_v59, 4  ;;  %v7038_v60 = vrot.slane %v7037_v22, 1  ;;  %v7068_v58 = vsel %vm838_vm3, %v7033_v31, %v7067_v40 }
0x21a5   :  { %v7000_v21 = vpop.permute.xlu0 %6999 }
0x21a6   :  { %v7043_v42 = vadd.f32 %v7042_v35, %v7041_v38  ;;  %v7047_v9 = vadd.f32 %v7046_v39, %v7008_v59  ;;  %v7009_v10 = vmul.f32 %v11446_v45, %v7000_v21  ;;  %v7039_v61 = vadd.f32 %v7038_v60, %v7037_v22  ;;  %v15118_v39 = vld [vmem:[#allocation120_spill] sm:$0xff]  ;;  %v15119_v22 = vld [vmem:[#allocation121_spill] sm:$0xff]  ;;  %v15120_v21 = vld [vmem:[#allocation122_spill] sm:$0xff] }
0x21a8   :  { %v7048_v17 = vrot.slane %v7047_v9, 2  ;;  %v7052_v24 = vrot.slane %v7009_v10, 4  ;;  %v7044_v7 = vrot.slane %v7043_v42, 1  ;;  %v7069_v55 = vsel %vm840_vm4, %v7039_v61, %v7068_v58 }
0x21aa   :  { %v7049_v48 = vadd.f32 %v7048_v17, %v7047_v9  ;;  %v7053_v15 = vadd.f32 %v7052_v24, %v7009_v10  ;;  %v7045_v20 = vadd.f32 %v7044_v7, %v7043_v42  ;;  %v15123_v17 = vld [vmem:[#allocation125_spill] sm:$0xff] }
0x21ac   :  { %v7050_v3 = vrot.slane %v7049_v48, 1  ;;  %v7054_v33 = vrot.slane %v7053_v15, 2  ;;  %v7070_v11 = vsel %vm842_vm5, %v7045_v20, %v7069_v55  ;;  %v15126_v20 = vld [vmem:[#allocation128_spill] sm:$0xff] }
0x21ae   :  { %v7055_v36 = vadd.f32 %v7054_v33, %v7053_v15  ;;  %v7051_v38 = vadd.f32 %v7050_v3, %v7049_v48  ;;  %v15124_v48 = vld [vmem:[#allocation126_spill] sm:$0xff]  ;;  %v15125_v33 = vld [vmem:[#allocation133_spill] sm:$0xff] }
0x21b0   :  { %v7056_v59 = vrot.slane %v7055_v36, 1  ;;  %v7071_v16 = vsel %vm844_vm6, %v7051_v38, %v7070_v11 }
0x21b2   :  { %v7057_v35 = vadd.f32 %v7056_v59, %v7055_v36 }
0x21b4   :  { %v7072_v12 = vsel %vm846_vm7, %v7057_v35, %v7071_v16 }
0x21b5   :  { %7139 = vmatmul.mubr.f32.vlgmr.msra.gmra.mrb[46].mxu0 %v7072_v12  ;;  %9502 = vmatmul.mubr.f32.vlgmr.msra.gmra.mrb[36].mxu1 %v7072_v12 }
0x21b6   :  { %10948 = vmatpush1.bf16.msra.mxu0 %v12323_v41  ;;  %10979 = vmatpush3.bf16.msra.mxu1 %v12325_v19  ;;  %v15092_v41 = vld [vmem:[#allocation95_spill] sm:$0xff]  ;;  %v15093_v19 = vld [vmem:[#allocation96_spill] sm:$0xff] }
0x21b7   :  { %10950 = vmatprep.subr.bf16.mxu0 %v12328_v30  ;;  %10980 = vmatprep.subr.bf16.mxu1 %v14566_v23  ;;  %v15094_v30 = vld [vmem:[#allocation97_spill] sm:$0xff] }
0x21b8   :  { %7279 = vmatprep.mubr.f32.mxu0 %v14561_v1  ;;  %9536 = vmatprep.mubr.msk.f32.mxu1 %vm11694_vm0, %v14561_v1 }
0x21ba   :  { %10952 = vmatpush1.bf16.msra.mxu0 %v12333_v47  ;;  %10982 = vmatpush3.bf16.msra.mxu1 %v12335_v14  ;;  %v15095_v47 = vld [vmem:[#allocation98_spill] sm:$0xff]  ;;  %v15096_v14 = vld [vmem:[#allocation99_spill] sm:$0xff] }
0x21bb   :  { %10954 = vmatprep.subr.bf16.mxu0 %v12339_v34  ;;  %10983 = vmatprep.subr.bf16.mxu1 %v14566_v23  ;;  %v15097_v34 = vld [vmem:[#allocation100_spill] sm:$0xff] }
0x21be   :  { %10956 = vmatpush1.bf16.msra.mxu0 %v12346_v57  ;;  %10985 = vmatpush3.bf16.msra.mxu1 %v12348_v29  ;;  %v15098_v57 = vld [vmem:[#allocation101_spill] sm:$0xff]  ;;  %v15099_v29 = vld [vmem:[#allocation102_spill] sm:$0xff] }
0x21bf   :  { %10958 = vmatprep.subr.bf16.mxu0 %v12352_v32  ;;  %10986 = vmatprep.subr.bf16.mxu1 %v14566_v23  ;;  %v15100_v32 = vld [vmem:[#allocation103_spill] sm:$0xff] }
0x21c2   :  { %10960 = vmatpush1.bf16.msra.mxu0 %v12356_v0  ;;  %10988 = vmatpush3.bf16.msra.mxu1 %v12358_v25  ;;  %v15101_v0 = vld [vmem:[#allocation104_spill] sm:$0xff]  ;;  %v15102_v25 = vld [vmem:[#allocation105_spill] sm:$0xff] }
0x21c3   :  { %10962 = vmatprep.subr.bf16.mxu0 %v12362_v8  ;;  %10989 = vmatprep.subr.bf16.mxu1 %v14566_v23  ;;  %v15103_v8 = vld [vmem:[#allocation106_spill] sm:$0xff] }
0x21c6   :  { %10964 = vmatpush1.bf16.msra.mxu0 %v12366_v44  ;;  %10991 = vmatpush3.bf16.msra.mxu1 %v12368_v63  ;;  %v15104_v44 = vld [vmem:[#allocation107_spill] sm:$0xff]  ;;  %v15105_v63 = vld [vmem:[#allocation108_spill] sm:$0xff] }
0x21c7   :  { %10966 = vmatprep.subr.bf16.mxu0 %v12372_v18  ;;  %10992 = vmatprep.subr.bf16.mxu1 %v14566_v23  ;;  %v15106_v18 = vld [vmem:[#allocation109_spill] sm:$0xff] }
0x21ca   :  { %10968 = vmatpush1.bf16.msra.mxu0 %v14677_v50  ;;  %10994 = vmatpush3.bf16.msra.mxu1 %v14678_v54  ;;  %v15108_v50 = vld [vmem:[#allocation111_spill] sm:$0xff]  ;;  %v15109_v54 = vld [vmem:[#allocation112_spill] sm:$0xff] }
0x21cb   :  { %10970 = vmatprep.subr.bf16.mxu0 %v14679_v49  ;;  %10995 = vmatprep.subr.bf16.mxu1 %v14566_v23  ;;  %v15110_v49 = vld [vmem:[#allocation113_spill] sm:$0xff] }
0x21ce   :  { %10972 = vmatpush1.bf16.msra.mxu0 %v14680_v27  ;;  %10997 = vmatpush3.bf16.msra.mxu1 %v14681_v52  ;;  %v15111_v27 = vld [vmem:[#allocation114_spill] sm:$0xff]  ;;  %v15112_v52 = vld [vmem:[#allocation115_spill] sm:$0xff] }
0x21cf   :  { %10974 = vmatprep.subr.bf16.mxu0 %v14682_v5  ;;  %10998 = vmatprep.subr.bf16.mxu1 %v14566_v23  ;;  %v15113_v5 = vld [vmem:[#allocation116_spill] sm:$0xff] }
0x21d2   :  { %10976 = vmatpush1.bf16.msra.mxu0 %v12396_v28  ;;  %11000 = vmatpush3.bf16.msra.mxu1 %v14683_v43  ;;  %v15107_v28 = vld [vmem:[#allocation110_spill] sm:$0xff] }
0x21d3   :  { %11002 = vmatprep.subr.bf16.mxu0 %v14684_v6  ;;  %11033 = vmatprep.subr.bf16.mxu1 %v14566_v23  ;;  %v15114_v43 = vld [vmem:[#allocation134_spill] sm:$0xff]  ;;  %v15115_v6 = vld [vmem:[#allocation117_spill] sm:$0xff] }
0x21d5   :  { %7280 = vmatmul.mubr.f32.vlgmr.msra.gmra.mrb[46].mxu0 %v14095_v53  ;;  %9537 = vmatmul.mubr.f32.vlgmr.msra.gmra.mrb[38].mxu1 %v14095_v53  ;;  %v15117_v53 = vld [vmem:[#allocation119_spill] sm:$0xff] }
0x21d6   :  { %11004 = vmatpush1.bf16.msra.mxu0 %v14685_v26  ;;  %11035 = vmatpush3.bf16.msra.mxu1 %v15092_v41  ;;  %v15116_v26 = vld [vmem:[#allocation118_spill] sm:$0xff]  ;;  %v15127_v41 = vld [vmem:[#allocation135_spill] sm:$0xff] }
0x21d7   :  { %11006 = vmatprep.subr.bf16.mxu0 %v15093_v19  ;;  %11036 = vmatprep.subr.bf16.mxu1 %v14566_v23 }
0x21d8   :  { %7423 = vmatprep.mubr.f32.mxu0 %v14561_v1  ;;  %9571 = vmatprep.mubr.msk.f32.mxu1 %vm11694_vm0, %v14561_v1 }
0x21da   :  { %11008 = vmatpush1.bf16.msra.mxu0 %v15094_v30  ;;  %11038 = vmatpush3.bf16.msra.mxu1 %v15095_v47 }
0x21db   :  { %11010 = vmatprep.subr.bf16.mxu0 %v15096_v14  ;;  %11039 = vmatprep.subr.bf16.mxu1 %v14566_v23 }
0x21de   :  { %11012 = vmatpush1.bf16.msra.mxu0 %v15097_v34  ;;  %11041 = vmatpush3.bf16.msra.mxu1 %v15098_v57 }
0x21df   :  { %11014 = vmatprep.subr.bf16.mxu0 %v15099_v29  ;;  %11042 = vmatprep.subr.bf16.mxu1 %v14566_v23 }
0x21e2   :  { %11016 = vmatpush1.bf16.msra.mxu0 %v15100_v32  ;;  %11044 = vmatpush3.bf16.msra.mxu1 %v15101_v0 }
0x21e3   :  { %11018 = vmatprep.subr.bf16.mxu0 %v15102_v25  ;;  %11045 = vmatprep.subr.bf16.mxu1 %v14566_v23 }
0x21e6   :  { %11020 = vmatpush1.bf16.msra.mxu0 %v15103_v8  ;;  %11047 = vmatpush3.bf16.msra.mxu1 %v15104_v44 }
0x21e7   :  { %11022 = vmatprep.subr.bf16.mxu0 %v15105_v63  ;;  %11048 = vmatprep.subr.bf16.mxu1 %v14566_v23 }
0x21ea   :  { %11024 = vmatpush1.bf16.msra.mxu0 %v15106_v18  ;;  %11050 = vmatpush3.bf16.msra.mxu1 %v15107_v28 }
0x21eb   :  { %11026 = vmatprep.subr.bf16.mxu0 %v15108_v50  ;;  %11051 = vmatprep.subr.bf16.mxu1 %v14566_v23 }
0x21ee   :  { %11028 = vmatpush1.bf16.msra.mxu0 %v15109_v54  ;;  %11053 = vmatpush3.bf16.msra.mxu1 %v15110_v49 }
0x21ef   :  { %11030 = vmatprep.subr.bf16.mxu0 %v15111_v27  ;;  %11054 = vmatprep.subr.bf16.mxu1 %v14566_v23 }
0x21f2   :  { %11032 = vmatpush1.bf16.msra.mxu0 %v15112_v52  ;;  %11056 = vmatpush3.bf16.msra.mxu1 %v15113_v5 }
0x21f3   :  { %11057 = vmatprep.subr.bf16.mxu0 %v14566_v23 }
0x21f5   :  { %7424 = vmatmul.mubr.f32.vlgmr.msra.gmra.mrb[46].mxu0 %v15114_v43  ;;  %9572 = vmatmul.mubr.f32.vlgmr.msra.gmra.mrb[40].mxu1 %v15114_v43 }
0x21f6   :  { %11059 = vmatpush3.bf16.msra.mxu0 %v15115_v6  ;;  %9606 = vmatprep.mubr.msk.f32.mxu0 %vm11694_vm0, %v14561_v1  ;;  %v15121_v1 = vld [vmem:[#allocation123_spill] sm:$0xff] }
0x21f7   :  { %11060 = vmatprep.subr.bf16.mxu0 %v14566_v23 }
0x21fa   :  { %11062 = vmatpush3.bf16.msra.mxu0 %v15116_v26 }
0x21fb   :  { %11063 = vmatprep.subr.bf16.mxu0 %v14566_v23 }
0x21fe   :  { %11065 = vmatpush3.bf16.msra.mxu0 %v15117_v53 }
0x21ff   :  { %11066 = vmatprep.subr.bf16.mxu0 %v14566_v23 }
0x2202   :  { %11068 = vmatpush3.bf16.msra.mxu0 %v15118_v39 }
0x2203   :  { %11069 = vmatprep.subr.bf16.mxu0 %v14566_v23 }
0x2206   :  { %11071 = vmatpush3.bf16.msra.mxu0 %v15119_v22 }
0x2207   :  { %11072 = vmatprep.subr.bf16.mxu0 %v14566_v23 }
0x220a   :  { %11074 = vmatpush3.bf16.msra.mxu0 %v15120_v21 }
0x220b   :  { %11075 = vmatprep.subr.bf16.mxu0 %v14566_v23 }
0x220e   :  { %11077 = vmatpush3.bf16.msra.mxu0 %v15121_v1 }
0x220f   :  { %11078 = vmatprep.subr.bf16.mxu0 %v14566_v23 }
0x2212   :  { %11080 = vmatpush3.bf16.msra.mxu0 %v15122_v4 }
0x2288   :  { %v7211_v42 = vpop.f32.mrb[36].mxu1 }
0x2289   :  { %v9503_v9 = vpop.f32.mrb[37].mxu1 }
0x22a8   :  { %v7352_v45 = vpop.f32.mrb[38].mxu1 }
0x22a9   :  { %v7353_v10 = vadd.f32 %v7352_v45, %v7211_v42  ;;  %v9538_v51 = vpop.f32.mrb[39].mxu1 }
0x22ab   :  { %v7358_v36 = vadd.f32 %v7353_v10, %v15126_v20 }
0x22c8   :  { %v7425_v2 = vpop.f32.mrb[46].mxu0  ;;  %v7496_v37 = vpop.f32.mrb[40].mxu1 }
0x22c9   :  { %v11091_v24 = vadd.f32 %v7425_v2, %v15123_v17  ;;  %v7427_v60 = vpop.f32.mrb[47].mxu0  ;;  %v9573_v13 = vpop.f32.mrb[41].mxu1  ;;  %v7514_v61 = vadd.f32 %v15125_v33, %v7496_v37 }
0x22ca   :  { %v11092_v15 = vadd.f32 %v7427_v60, %v15124_v48 }
0x22cb   :  { %v7667_v7 = vmul.f32 -1.442695, %v11091_v24 }
0x22cc   :  { %v7668_v62 = vmul.f32 -1.442695, %v11092_v15 }
0x22cd   :  { %11401 = vpow2.f32 %v7667_v7 }
0x22ce   :  { %11403 = vpow2.f32 %v7668_v62 }
0x22d7   :  { %v11402_v23 = vpop.eup %11401 }
0x22d8   :  { %v7504_v46 = vadd.f32 1.0, %v11402_v23  ;;  %v11404_v31 = vpop.eup %11403 }
0x22d9   :  { %v7511_v3 = vadd.f32 1.0, %v11404_v31 }
0x22da   :  { %11405 = vrcp.f32 %v7504_v46 }
0x22db   :  { %11407 = vrcp.f32 %v7511_v3 }
0x22e4   :  { %v11406_v56 = vpop.eup %11405 }
0x22e5   :  { %v7515_v40 = vmul.f32 %v11406_v56, %v7514_v61  ;;  %v11408_v58 = vpop.eup %11407 }
0x22e6   :  { %v7518_v59 = vsub.f32 1.0, %v11408_v58  ;;  %v7520_v11 = vmul.f32 %v11408_v58, %v15114_v43 }
0x22e7   :  { %v7516_v38 = vadd.f32 %v7515_v40, %v7358_v36 }
0x22e9   :  { %11409 = vtanh.f32 %v7516_v38 }
0x22f3   :  { %v11410_v55 = vpop.eup %11409 }
0x22f4   :  { %v7519_v35 = vmul.f32 %v11410_v55, %v7518_v59 }
0x22f6   :  { %v7521_v16 = vadd.f32 %v7520_v11, %v7519_v35 }
0x22f8   :  { %9607 = vmatmul.mubr.f32.vlgmr.msra.gmra.mrb[48].mxu0 %v7521_v16  ;;  %7604 = vst [vmem:[#allocation18] sm:$0xff] %v7521_v16 }
0x23cb   :  { %v7588_v12 = vpop.f32.mrb[48].mxu0 }
0x23cc   :  { %v7589_v19 = vadd.f32 %v15127_v41, %v7588_v12  ;;  %v9608_v30 = vpop.f32.mrb[49].mxu0 }
0x23ce   :  { %7592 = vmax.xlane.f32.xlu0 %v7589_v19 }
0x245b   :  { %v7593_v47 = vpop.xlane.xlu0 %7592 }
0x245c   :  { %v7594_v14 = vsub.f32 %v7589_v19, %v7593_v47 }
0x245e   :  { %v7595_v34 = vmul.f32 1.442695, %v7594_v14 }
0x2460   :  { %11411 = vpow2.f32 %v7595_v34 }
0x246a   :  { %v11412_v57 = vpop.eup %11411 }
0x246b   :  { %7597 = vadd.xlane.f32.xlu1 %v11412_v57 }
0x246c   :  { %11634 = shalt.err (!%p11631_p12)
}
0x246d   :  { %s11635_s4 = scalar_lea.hbm %s14242_s15, 128 }
0x246e   :  { %p11636_p13 = scmp.ne.s32.totalorder %s14242_s15, %s11635_s4  ;;  %p11639_p0 = scmp.lt.u32.totalorder %s11635_s4, %s14242_s15 }
0x2470   :  { %p11641_p1 = pnand %p11639_p0, %p11636_p13 }
0x2472   :  { %11644 = shalt.err (!%p11641_p1)
}
0x2473   :  { %7626 = dma.vmem_to_hbm [thread:$0]  %s7624_s12, 128, %s14242_s15, [#allocation19]  }
0x2474   :  { %s11700_s7 = smov [#allocation17]  }
0x2475   :  { %s7610_s21 = sshll.u32 %s11700_s7, 4  ;;  %s7611_s21 = int_to_ptr.vmem [resolvable:$true] %s7610_s21 }
0x2476   :  { %s11645_s18 = scalar_lea.vmem %s7611_s21, 768  ;;  %p11650_p3 = scmp.lt.s32.totalorder %s7611_s21, %s7611_s21 }
0x2477   :  { %p11646_p2 = scmp.ne.s32.totalorder %s7611_s21, %s11645_s18  ;;  %p11651_p4 = scmp.lt.s32.totalorder %s11645_s18, %s11645_s18 }
0x2479   :  { %p11652_p5 = por %p11651_p4, %p11650_p3 }
0x247b   :  { %p11653_p6 = pnand %p11652_p5, %p11646_p2 }
0x24f8   :  { %v7598_v29 = vpop.xlane.xlu1 %7597 }
0x24f9   :  { %11413 = vlog2.f32 %v7598_v29 }
0x2503   :  { %v11414_v32 = vpop.eup %11413 }
0x2504   :  { %v7600_v0 = vmul.f32 0.6931472, %v11414_v32 }
0x2506   :  { %v7601_v25 = vsub.f32 %v7594_v14, %v7600_v0 }
0x2508   :  { %7603 = vst [vmem:[#allocation17 + $0x28] sm:$0xff] %v7601_v25 }
0x2509   :  { %11656 = shalt.err (!%p11653_p6)
}
0x250a   :  { %s11657_s15 = scalar_lea.hbm %s14241_s14, 768 }
0x250b   :  { %p11658_p7 = scmp.ne.s32.totalorder %s14241_s14, %s11657_s15  ;;  %p11661_p8 = scmp.lt.u32.totalorder %s11657_s15, %s14241_s14 }
0x250d   :  { %p11663_p9 = pnand %p11661_p8, %p11658_p7 }
0x250f   :  { %11666 = shalt.err (!%p11663_p9)
}
0x2510   :  { %7616 = dma.vmem_to_hbm [thread:$0]  %s7611_s21, 768, %s14241_s14, [#allocation5], %s11683_s16, %s11683_s16, %s11684_s17  }
0x2511   :  { %11677 = dma.done.wait [#allocation5], 768  }
0x2512   :  { %11678 = vsyncadd [#allocation5], 4294966528 }
0x2513   :  { %11679 = dma.done.wait [#allocation19], 128  }
0x2514   :  { %11680 = vsyncadd [#allocation19], 4294967168 }
0x2515   :  { %7633 = vsyncpa [#allocation4], 1 }
0x2516   :  { %7634 = vsyncpa [#allocation7], 1 }
0x2517   :  { %7635 = vsyncpa [#allocation10], 1 }
0x2518   :  { %7636 = vsyncpa [#allocation13], 1 }
0x2519   :  { %7637 = vsyncpa [#allocation16], 1 }
0x251a   :  { %7638 = vsyncpa [#allocation5], 1 }
0x251b   :  { %7639 = vsyncpa [#allocation19], 1 }

</bundles_post_ra>
